<compile_context>
chip_gen: v7x
topology: tpu7x:2x2x1
jax: 0.10.0
libtpu: 0.0.40
codegen_flags: <defaults>
</compile_context>

<pallas_src>
import functools

import jax
import jax.numpy as jnp
from jax.experimental import pallas as pl
from jax.experimental.pallas import tpu as pltpu


# --------------------------- in-kernel math helpers --------------------------

def _layernorm(t, g_ref, b_ref, eps):
    mu = jnp.mean(t, axis=-1, keepdims=True)
    var = jnp.mean(jnp.square(t - mu), axis=-1, keepdims=True)
    return (t - mu) * jax.lax.rsqrt(var + eps) * g_ref[...] + b_ref[...]


def _erf(x):
    """Abramowitz & Stegun 7.1.26 erf (|abs err| < 1.5e-7 == f32-exact here).

    Uses only exp / mul / add / div / select, all of which lower cleanly on the
    VPU/EUP; avoids depending on an erf primitive lowering.
    """
    a1, a2, a3, a4, a5 = (0.254829592, -0.284496736, 1.421413741,
                          -1.453152027, 1.061405429)
    p = 0.3275911
    z = jnp.abs(x)
    t = 1.0 / (1.0 + p * z)
    poly = ((((a5 * t + a4) * t + a3) * t + a2) * t + a1) * t
    y = 1.0 - poly * jnp.exp(-z * z)
    return jnp.where(x >= 0, y, -y)


def _gelu(x):                         # exact (erf-based) GELU, matching nn.GELU()
    return 0.5 * x * (1.0 + _erf(x * (2.0 ** -0.5)))


def _matmul(a_f32, w_ref):            # bf16 x bf16 -> f32 accumulation on the MXU
    return jnp.dot(a_f32.astype(jnp.bfloat16), w_ref[...],
                   preferred_element_type=jnp.float32)


# ----------------------------- Pallas kernels --------------------------------

def _patch_expand_kernel(x_ref, w_ref, g_ref, b_ref, o_ref, *, eps, c):
    """Linear expand (bias-free) + LayerNorm over each of the 4 (p1,p2) groups.

    x_ref: (1, L, E)   w_ref: (E, 2E) bf16   g_ref/b_ref: (1, c)   o_ref: (1, L, 2E)
    """
    x = x_ref[0]                                                     # (L, E) f32
    t = _matmul(x, w_ref)                                            # (L, 2E) f32
    groups = []
    for g in range(4):                                               # static unroll
        tg = t[:, g * c:(g + 1) * c]                                 # (L, c)
        mu = jnp.mean(tg, axis=-1, keepdims=True)
        var = jnp.mean(jnp.square(tg - mu), axis=-1, keepdims=True)
        groups.append((tg - mu) * jax.lax.rsqrt(var + eps)
                      * g_ref[...] + b_ref[...])
    o_ref[0] = jnp.concatenate(groups, axis=-1)                      # (L, 2E)


def _block_body(x, prm, *, n_heads, scale, eps, with_up):
    """One ViT Block on a resident (T, C) activation.  Returns (T, C) or (T, C//2)."""
    if with_up:
        (ln1_g, ln1_b, qkv_w, qkv_b, proj_w, proj_b,
         ln2_g, ln2_b, fc1_w, fc1_b, fc2_w, fc2_b,
         e1_w, e1_b, e2_w, e2_b) = prm
    else:
        (ln1_g, ln1_b, qkv_w, qkv_b, proj_w, proj_b,
         ln2_g, ln2_b, fc1_w, fc1_b, fc2_w, fc2_b) = prm

    T, C = x.shape
    Dh = C // n_heads

    # ---- attention: LN1 -> QKV -> per-head SDPA -> proj -> +residual ----
    xn = _layernorm(x, ln1_g, ln1_b, eps)
    qkv = _matmul(xn, qkv_w) + qkv_b[...]                            # (T, 3C) f32

    heads = []
    for h in range(n_heads):                                         # static unroll
        q = qkv[:, h * Dh:(h + 1) * Dh] * scale                      # scale folded in q
        k = qkv[:, C + h * Dh:C + (h + 1) * Dh]
        v = qkv[:, 2 * C + h * Dh:2 * C + (h + 1) * Dh]
        # q @ k^T without an explicit transpose: contract head_dim of both.
        s = jax.lax.dot_general(q.astype(jnp.bfloat16), k.astype(jnp.bfloat16),
                                (((1,), (1,)), ((), ())),
                                preferred_element_type=jnp.float32)  # (T, T)
        s = s - jnp.max(s, axis=-1, keepdims=True)
        p = jnp.exp(s)
        p = p * pl.reciprocal(jnp.sum(p, axis=-1, keepdims=True), approx=True)
        heads.append(jnp.dot(p.astype(jnp.bfloat16), v.astype(jnp.bfloat16),
                             preferred_element_type=jnp.float32))    # (T, Dh)
    attn = jnp.concatenate(heads, axis=-1)                           # (T, C)
    x = x + (_matmul(attn, proj_w) + proj_b[...])                    # fused residual

    # ---- MLP: LN2 -> fc1 -> GELU -> fc2 -> +residual ----
    xn = _layernorm(x, ln2_g, ln2_b, eps)
    h1 = _gelu(_matmul(xn, fc1_w) + fc1_b[...])                      # (T, hidden)
    x = x + (_matmul(h1, fc2_w) + fc2_b[...])                        # fused residual

    if with_up:
        # mlp_expand: fc1 -> GELU -> fc2 (halves channels), no residual
        h2 = _gelu(_matmul(x, e1_w) + e1_b[...])
        x = _matmul(h2, e2_w) + e2_b[...]
    return x


_N_PLAIN = 12      # refs per plain block
_N_UP = 16         # refs per block with mlp_expand


def _up_blocks_kernel(*refs, n_heads, scale, eps, with_up):
    """Both ViT Blocks fused; one batch element per grid step.

    refs = (x_ref, <12 block1 param refs>, <12|16 block2 param refs>, o_ref)
    """
    x_ref = refs[0]
    b1 = refs[1:1 + _N_PLAIN]
    n2 = _N_UP if with_up else _N_PLAIN
    b2 = refs[1 + _N_PLAIN:1 + _N_PLAIN + n2]
    o_ref = refs[1 + _N_PLAIN + n2]

    x = x_ref[0]                                                     # (T, C) f32
    x = _block_body(x, b1, n_heads=n_heads, scale=scale, eps=eps, with_up=False)
    x = _block_body(x, b2, n_heads=n_heads, scale=scale, eps=eps, with_up=with_up)
    o_ref[0] = x


# --------------------------- pallas_call wrappers ----------------------------

def _const_spec(a):
    nd = a.ndim
    return pl.BlockSpec(a.shape, lambda b, _nd=nd: (0,) * _nd)


def pallas_patch_expand(x_tok, p, eps=1e-5):
    """x_tok: (B, L, E) tokens -> (B, L, 2E): expanded + groupwise-normalised."""
    B, L, E = x_tok.shape
    c = E // 2
    return pl.pallas_call(
        functools.partial(_patch_expand_kernel, eps=eps, c=c),
        out_shape=jax.ShapeDtypeStruct((B, L, 2 * E), jnp.float32),
        grid=(B,),
        in_specs=[pl.BlockSpec((1, L, E), lambda b: (b, 0, 0)),
                  _const_spec(p["expand_w"]),
                  _const_spec(p["norm"]["g"]),
                  _const_spec(p["norm"]["b"])],
        out_specs=pl.BlockSpec((1, L, 2 * E), lambda b: (b, 0, 0)),
        compiler_params=pltpu.CompilerParams(dimension_semantics=("parallel",)),
    )(x_tok, p["expand_w"], p["norm"]["g"], p["norm"]["b"])


def _flatten_block(p, with_up):
    out = [p["norm1"]["g"], p["norm1"]["b"],
           p["qkv"]["w"], p["qkv"]["b"],
           p["proj"]["w"], p["proj"]["b"],
           p["norm2"]["g"], p["norm2"]["b"],
           p["mlp_fc1"]["w"], p["mlp_fc1"]["b"],
           p["mlp_fc2"]["w"], p["mlp_fc2"]["b"]]
    if with_up:
        out += [p["exp_fc1"]["w"], p["exp_fc1"]["b"],
                p["exp_fc2"]["w"], p["exp_fc2"]["b"]]
    return out


def pallas_up_blocks(x, p_block1, p_block2, *, n_heads, with_up, eps=1e-6):
    """Both fused ViT Blocks. x: (B, T, C) -> (B, T, C) or (B, T, C//2)."""
    B, T, C = x.shape
    Dh = C // n_heads
    C_out = C // 2 if with_up else C

    params = _flatten_block(p_block1, False) + _flatten_block(p_block2, with_up)
    in_specs = [pl.BlockSpec((1, T, C), lambda b: (b, 0, 0))]
    in_specs += [_const_spec(a) for a in params]

    return pl.pallas_call(
        functools.partial(_up_blocks_kernel, n_heads=n_heads,
                          scale=float(Dh) ** -0.5, eps=eps, with_up=with_up),
        out_shape=jax.ShapeDtypeStruct((B, T, C_out), jnp.float32),
        grid=(B,),
        in_specs=in_specs,
        out_specs=pl.BlockSpec((1, T, C_out), lambda b: (b, 0, 0)),
        compiler_params=pltpu.CompilerParams(dimension_semantics=("parallel",)),
    )(x, *params)


# ------------------------------ module forward -------------------------------

def up_forward(x2, x1, params, *, n_heads, up_flag):
    """x2: (B, E, h, w), x1: (B, E//2, 2h, 2w) -> (B, E//2, 2h, 2w) when up_flag set."""
    B, E, h, w = x2.shape
    L = h * w
    c = E // 2
    T = 4 * L

    # ---- PatchExpand (fused linear + groupwise LayerNorm kernel) ----
    x2_tok = x2.reshape(B, E, L).transpose(0, 2, 1)                  # (B, L, E)
    pe = pallas_patch_expand(x2_tok, params["patch_expand"])         # (B, L, 2E)
    # spatial rearrange 'b h w (p1 p2 c) -> b (h p1)(w p2) c' — tiny permutation in XLA
    pe = (pe.reshape(B, h, w, 2, 2, c)
            .transpose(0, 1, 3, 2, 4, 5)
            .reshape(B, T, c))                                       # (B, T, c)

    # ---- concat with skip connection in token/feature layout ----
    x1_tok = x1.reshape(B, c, T).transpose(0, 2, 1)                  # (B, T, c)
    tok = jnp.concatenate([x1_tok, pe], axis=-1)                     # (B, T, E)

    # ---- two ViT Blocks fused into one kernel (activations stay in VMEM) ----
    tok = pallas_up_blocks(tok, params["block1"], params["block2"],
                           n_heads=n_heads, with_up=(up_flag is not None))

    C_out = E // 2 if up_flag is not None else E
    return tok.transpose(0, 2, 1).reshape(B, C_out, 2 * h, 2 * w)    # back to NCHW


# ------------------------------ parameter init -------------------------------

def init_up_params(key, embed_dim, n_heads, mlp_ratio, up_flag):
    E = embed_dim
    hidden = int(E * mlp_ratio)
    keys = iter(jax.random.split(key, 64))

    def lin(fi, fo, bias=True):
        # matmul weights stored bf16 (MXU-native, halves weight DMA); biases f32
        w = (jax.random.normal(next(keys), (fi, fo), jnp.float32) * 0.02
             ).astype(jnp.bfloat16)
        d = {"w": w}
        if bias:
            d["b"] = jax.random.normal(next(keys), (1, fo), jnp.float32) * 0.02
        return d

    def ln(d):
        return {"g": jnp.ones((1, d), jnp.float32),
                "b": jnp.zeros((1, d), jnp.float32)}

    def block(with_up):
        p = {
            "norm1": ln(E),
            "qkv": lin(E, 3 * E),
            "proj": lin(E, E),
            "norm2": ln(E),
            "mlp_fc1": lin(E, hidden),
            "mlp_fc2": lin(hidden, E),
        }
        if with_up:
            p["exp_fc1"] = lin(E, hidden)
            p["exp_fc2"] = lin(hidden, E // 2)
        return p

    return {
        "patch_expand": {
            "expand_w": (jax.random.normal(next(keys), (E, 2 * E), jnp.float32)
                         * 0.02).astype(jnp.bfloat16),
            "norm": ln(E // 2),
        },
        "block1": block(False),
        "block2": block(up_flag is not None),
    }


# ----------------------------------- main ------------------------------------

if __name__ == "__main__":
    embed_dim, n_heads, mlp_ratio = 32, 4, 4.0
    up_flag = True                    # second Block uses mlp_expand (halves channels)
    B, h, w = 2, 4, 4

    key = jax.random.PRNGKey(0)
    kx2, kx1, kp = jax.random.split(key, 3)
    x2 = jax.random.normal(kx2, (B, embed_dim, h, w), jnp.float32)
    x1 = jax.random.normal(kx1, (B, embed_dim // 2, 2 * h, 2 * w), jnp.float32)
    params = init_up_params(kp, embed_dim, n_heads, mlp_ratio, up_flag)

    fwd = jax.jit(functools.partial(up_forward, n_heads=n_heads, up_flag=up_flag))
    out = fwd(x2, x1, params)
    jax.block_until_ready(out)

    assert out.shape == (B, embed_dim // 2, 2 * h, 2 * w), out.shape
    assert out.dtype == jnp.float32
    print("KERNEL_OK")
</pallas_src>

<mosaic_0001>
module attributes {stable_mosaic.version = 11 : i64} {
  func.func @_patch_expand_kernel(%arg0: i32, %arg1: memref<1x16x32xf32, #tpu.memory_space<vmem>>, %arg2: memref<32x64xbf16, #tpu.memory_space<vmem>>, %arg3: memref<1x16xf32, #tpu.memory_space<vmem>>, %arg4: memref<1x16xf32, #tpu.memory_space<vmem>>, %arg5: memref<1x16x64xf32, #tpu.memory_space<vmem>>) attributes {dimension_semantics = [#tpu.dimension_semantics<parallel>], iteration_bounds = array<i64: 2>, scalar_prefetch = 0 : i64, scratch_operands = 0 : i64, tpu.core_type = #tpu.core_type<tc>, window_params = [{transform_indices = @transform_0, window_bounds = array<i64: 1, 16, 32>}, {pipeline_mode = #tpu.pipeline_mode<synchronous>, transform_indices = @transform_1, window_bounds = array<i64: 32, 64>}, {pipeline_mode = #tpu.pipeline_mode<synchronous>, transform_indices = @transform_2, window_bounds = array<i64: 1, 16>}, {pipeline_mode = #tpu.pipeline_mode<synchronous>, transform_indices = @transform_3, window_bounds = array<i64: 1, 16>}, {transform_indices = @transform_4, window_bounds = array<i64: 1, 16, 64>}]} {
    %c0 = arith.constant 0 : index
    %c0_0 = arith.constant 0 : index
    %c0_1 = arith.constant 0 : index
    %0 = vector.load %arg1[%c0, %c0_0, %c0_1] : memref<1x16x32xf32, #tpu.memory_space<vmem>>, vector<1x16x32xf32>
    %1 = vector.shape_cast %0 : vector<1x16x32xf32> to vector<16x32xf32>
    %2 = arith.truncf %1 : vector<16x32xf32> to vector<16x32xbf16>
    %c0_2 = arith.constant 0 : index
    %c0_3 = arith.constant 0 : index
    %3 = vector.load %arg2[%c0_2, %c0_3] : memref<32x64xbf16, #tpu.memory_space<vmem>>, vector<32x64xbf16>
    %cst = arith.constant dense<0.000000e+00> : vector<16x64xf32>
    %4 = tpu.matmul %2, %3, %cst {dimension_numbers = #tpu.dot_dimension_numbers<[1], [0], [0], [1], [0, 0, 1, 1], [], []>} : vector<16x32xbf16>, vector<32x64xbf16>, vector<16x64xf32> -> vector<16x64xf32>
    %5 = vector.extract_strided_slice %4 {offsets = [0, 0], sizes = [16, 16], strides = [1, 1]} : vector<16x64xf32> to vector<16x16xf32>
    %cst_4 = arith.constant dense<0.000000e+00> : vector<16xf32>
    %6 = vector.multi_reduction <add>, %5, %cst_4 [1] : vector<16x16xf32> to vector<16xf32>
    %7 = vector.shape_cast %6 : vector<16xf32> to vector<16x1xf32>
    %cst_5 = arith.constant 1.600000e+01 : f32
    %8 = vector.broadcast %cst_5 : f32 to vector<16x1xf32>
    %9 = arith.divf %7, %8 : vector<16x1xf32>
    %10 = vector.broadcast %9 : vector<16x1xf32> to vector<16x16xf32>
    %11 = arith.subf %5, %10 : vector<16x16xf32>
    %12 = arith.mulf %11, %11 : vector<16x16xf32>
    %cst_6 = arith.constant dense<0.000000e+00> : vector<16xf32>
    %13 = vector.multi_reduction <add>, %12, %cst_6 [1] : vector<16x16xf32> to vector<16xf32>
    %14 = vector.shape_cast %13 : vector<16xf32> to vector<16x1xf32>
    %cst_7 = arith.constant 1.600000e+01 : f32
    %15 = vector.broadcast %cst_7 : f32 to vector<16x1xf32>
    %16 = arith.divf %14, %15 : vector<16x1xf32>
    %17 = vector.broadcast %9 : vector<16x1xf32> to vector<16x16xf32>
    %18 = arith.subf %5, %17 : vector<16x16xf32>
    %cst_8 = arith.constant 9.99999974E-6 : f32
    %19 = vector.broadcast %cst_8 : f32 to vector<16x1xf32>
    %20 = arith.addf %16, %19 : vector<16x1xf32>
    %21 = math.rsqrt %20 : vector<16x1xf32>
    %22 = vector.broadcast %21 : vector<16x1xf32> to vector<16x16xf32>
    %23 = arith.mulf %18, %22 : vector<16x16xf32>
    %c0_9 = arith.constant 0 : index
    %c0_10 = arith.constant 0 : index
    %24 = vector.load %arg3[%c0_9, %c0_10] : memref<1x16xf32, #tpu.memory_space<vmem>>, vector<1x16xf32>
    %25 = vector.broadcast %24 : vector<1x16xf32> to vector<16x16xf32>
    %26 = arith.mulf %23, %25 : vector<16x16xf32>
    %c0_11 = arith.constant 0 : index
    %c0_12 = arith.constant 0 : index
    %27 = vector.load %arg4[%c0_11, %c0_12] : memref<1x16xf32, #tpu.memory_space<vmem>>, vector<1x16xf32>
    %28 = vector.broadcast %27 : vector<1x16xf32> to vector<16x16xf32>
    %29 = arith.addf %26, %28 : vector<16x16xf32>
    %30 = vector.extract_strided_slice %4 {offsets = [0, 16], sizes = [16, 16], strides = [1, 1]} : vector<16x64xf32> to vector<16x16xf32>
    %cst_13 = arith.constant dense<0.000000e+00> : vector<16xf32>
    %31 = vector.multi_reduction <add>, %30, %cst_13 [1] : vector<16x16xf32> to vector<16xf32>
    %32 = vector.shape_cast %31 : vector<16xf32> to vector<16x1xf32>
    %cst_14 = arith.constant 1.600000e+01 : f32
    %33 = vector.broadcast %cst_14 : f32 to vector<16x1xf32>
    %34 = arith.divf %32, %33 : vector<16x1xf32>
    %35 = vector.broadcast %34 : vector<16x1xf32> to vector<16x16xf32>
    %36 = arith.subf %30, %35 : vector<16x16xf32>
    %37 = arith.mulf %36, %36 : vector<16x16xf32>
    %cst_15 = arith.constant dense<0.000000e+00> : vector<16xf32>
    %38 = vector.multi_reduction <add>, %37, %cst_15 [1] : vector<16x16xf32> to vector<16xf32>
    %39 = vector.shape_cast %38 : vector<16xf32> to vector<16x1xf32>
    %cst_16 = arith.constant 1.600000e+01 : f32
    %40 = vector.broadcast %cst_16 : f32 to vector<16x1xf32>
    %41 = arith.divf %39, %40 : vector<16x1xf32>
    %42 = vector.broadcast %34 : vector<16x1xf32> to vector<16x16xf32>
    %43 = arith.subf %30, %42 : vector<16x16xf32>
    %cst_17 = arith.constant 9.99999974E-6 : f32
    %44 = vector.broadcast %cst_17 : f32 to vector<16x1xf32>
    %45 = arith.addf %41, %44 : vector<16x1xf32>
    %46 = math.rsqrt %45 : vector<16x1xf32>
    %47 = vector.broadcast %46 : vector<16x1xf32> to vector<16x16xf32>
    %48 = arith.mulf %43, %47 : vector<16x16xf32>
    %c0_18 = arith.constant 0 : index
    %c0_19 = arith.constant 0 : index
    %49 = vector.load %arg3[%c0_18, %c0_19] : memref<1x16xf32, #tpu.memory_space<vmem>>, vector<1x16xf32>
    %50 = vector.broadcast %49 : vector<1x16xf32> to vector<16x16xf32>
    %51 = arith.mulf %48, %50 : vector<16x16xf32>
    %c0_20 = arith.constant 0 : index
    %c0_21 = arith.constant 0 : index
    %52 = vector.load %arg4[%c0_20, %c0_21] : memref<1x16xf32, #tpu.memory_space<vmem>>, vector<1x16xf32>
    %53 = vector.broadcast %52 : vector<1x16xf32> to vector<16x16xf32>
    %54 = arith.addf %51, %53 : vector<16x16xf32>
    %55 = vector.extract_strided_slice %4 {offsets = [0, 32], sizes = [16, 16], strides = [1, 1]} : vector<16x64xf32> to vector<16x16xf32>
    %cst_22 = arith.constant dense<0.000000e+00> : vector<16xf32>
    %56 = vector.multi_reduction <add>, %55, %cst_22 [1] : vector<16x16xf32> to vector<16xf32>
    %57 = vector.shape_cast %56 : vector<16xf32> to vector<16x1xf32>
    %cst_23 = arith.constant 1.600000e+01 : f32
    %58 = vector.broadcast %cst_23 : f32 to vector<16x1xf32>
    %59 = arith.divf %57, %58 : vector<16x1xf32>
    %60 = vector.broadcast %59 : vector<16x1xf32> to vector<16x16xf32>
    %61 = arith.subf %55, %60 : vector<16x16xf32>
    %62 = arith.mulf %61, %61 : vector<16x16xf32>
    %cst_24 = arith.constant dense<0.000000e+00> : vector<16xf32>
    %63 = vector.multi_reduction <add>, %62, %cst_24 [1] : vector<16x16xf32> to vector<16xf32>
    %64 = vector.shape_cast %63 : vector<16xf32> to vector<16x1xf32>
    %cst_25 = arith.constant 1.600000e+01 : f32
    %65 = vector.broadcast %cst_25 : f32 to vector<16x1xf32>
    %66 = arith.divf %64, %65 : vector<16x1xf32>
    %67 = vector.broadcast %59 : vector<16x1xf32> to vector<16x16xf32>
    %68 = arith.subf %55, %67 : vector<16x16xf32>
    %cst_26 = arith.constant 9.99999974E-6 : f32
    %69 = vector.broadcast %cst_26 : f32 to vector<16x1xf32>
    %70 = arith.addf %66, %69 : vector<16x1xf32>
    %71 = math.rsqrt %70 : vector<16x1xf32>
    %72 = vector.broadcast %71 : vector<16x1xf32> to vector<16x16xf32>
    %73 = arith.mulf %68, %72 : vector<16x16xf32>
    %c0_27 = arith.constant 0 : index
    %c0_28 = arith.constant 0 : index
    %74 = vector.load %arg3[%c0_27, %c0_28] : memref<1x16xf32, #tpu.memory_space<vmem>>, vector<1x16xf32>
    %75 = vector.broadcast %74 : vector<1x16xf32> to vector<16x16xf32>
    %76 = arith.mulf %73, %75 : vector<16x16xf32>
    %c0_29 = arith.constant 0 : index
    %c0_30 = arith.constant 0 : index
    %77 = vector.load %arg4[%c0_29, %c0_30] : memref<1x16xf32, #tpu.memory_space<vmem>>, vector<1x16xf32>
    %78 = vector.broadcast %77 : vector<1x16xf32> to vector<16x16xf32>
    %79 = arith.addf %76, %78 : vector<16x16xf32>
    %80 = vector.extract_strided_slice %4 {offsets = [0, 48], sizes = [16, 16], strides = [1, 1]} : vector<16x64xf32> to vector<16x16xf32>
    %cst_31 = arith.constant dense<0.000000e+00> : vector<16xf32>
    %81 = vector.multi_reduction <add>, %80, %cst_31 [1] : vector<16x16xf32> to vector<16xf32>
    %82 = vector.shape_cast %81 : vector<16xf32> to vector<16x1xf32>
    %cst_32 = arith.constant 1.600000e+01 : f32
    %83 = vector.broadcast %cst_32 : f32 to vector<16x1xf32>
    %84 = arith.divf %82, %83 : vector<16x1xf32>
    %85 = vector.broadcast %84 : vector<16x1xf32> to vector<16x16xf32>
    %86 = arith.subf %80, %85 : vector<16x16xf32>
    %87 = arith.mulf %86, %86 : vector<16x16xf32>
    %cst_33 = arith.constant dense<0.000000e+00> : vector<16xf32>
    %88 = vector.multi_reduction <add>, %87, %cst_33 [1] : vector<16x16xf32> to vector<16xf32>
    %89 = vector.shape_cast %88 : vector<16xf32> to vector<16x1xf32>
    %cst_34 = arith.constant 1.600000e+01 : f32
    %90 = vector.broadcast %cst_34 : f32 to vector<16x1xf32>
    %91 = arith.divf %89, %90 : vector<16x1xf32>
    %92 = vector.broadcast %84 : vector<16x1xf32> to vector<16x16xf32>
    %93 = arith.subf %80, %92 : vector<16x16xf32>
    %cst_35 = arith.constant 9.99999974E-6 : f32
    %94 = vector.broadcast %cst_35 : f32 to vector<16x1xf32>
    %95 = arith.addf %91, %94 : vector<16x1xf32>
    %96 = math.rsqrt %95 : vector<16x1xf32>
    %97 = vector.broadcast %96 : vector<16x1xf32> to vector<16x16xf32>
    %98 = arith.mulf %93, %97 : vector<16x16xf32>
    %c0_36 = arith.constant 0 : index
    %c0_37 = arith.constant 0 : index
    %99 = vector.load %arg3[%c0_36, %c0_37] : memref<1x16xf32, #tpu.memory_space<vmem>>, vector<1x16xf32>
    %100 = vector.broadcast %99 : vector<1x16xf32> to vector<16x16xf32>
    %101 = arith.mulf %98, %100 : vector<16x16xf32>
    %c0_38 = arith.constant 0 : index
    %c0_39 = arith.constant 0 : index
    %102 = vector.load %arg4[%c0_38, %c0_39] : memref<1x16xf32, #tpu.memory_space<vmem>>, vector<1x16xf32>
    %103 = vector.broadcast %102 : vector<1x16xf32> to vector<16x16xf32>
    %104 = arith.addf %101, %103 : vector<16x16xf32>
    %105 = tpu.concatenate %29, %54, %79, %104 in 1 : vector<16x16xf32>, vector<16x16xf32>, vector<16x16xf32>, vector<16x16xf32> -> vector<16x64xf32>
    %c0_40 = arith.constant 0 : index
    %c0_41 = arith.constant 0 : index
    %c0_42 = arith.constant 0 : index
    %106 = vector.load %arg5[%c0_40, %c0_41, %c0_42] : memref<1x16x64xf32, #tpu.memory_space<vmem>>, vector<1x16x64xf32>
    %107 = vector.shape_cast %106 : vector<1x16x64xf32> to vector<16x64xf32>
    %108 = vector.shape_cast %105 : vector<16x64xf32> to vector<1x16x64xf32>
    tpu.vector_store %arg5[%c0_40, %c0_41, %c0_42], %108 {strides = array<i32>} : memref<1x16x64xf32, #tpu.memory_space<vmem>>, vector<1x16x64xf32>,
    return
  }
  func.func @transform_0(%arg0: i32) -> (i32, i32, i32) {
    %c0_i32 = arith.constant 0 : i32
    %c0_i32_0 = arith.constant 0 : i32
    %c0_i32_1 = arith.constant 0 : i32
    return %arg0, %c0_i32, %c0_i32_0 : i32, i32, i32
  }
  func.func @transform_1(%arg0: i32) -> (i32, i32) {
    %c0_i32 = arith.constant 0 : i32
    %c0_i32_0 = arith.constant 0 : i32
    %c0_i32_1 = arith.constant 0 : i32
    return %c0_i32, %c0_i32_0 : i32, i32
  }
  func.func @transform_2(%arg0: i32) -> (i32, i32) {
    %c0_i32 = arith.constant 0 : i32
    %c0_i32_0 = arith.constant 0 : i32
    %c0_i32_1 = arith.constant 0 : i32
    return %c0_i32, %c0_i32_0 : i32, i32
  }
  func.func @transform_3(%arg0: i32) -> (i32, i32) {
    %c0_i32 = arith.constant 0 : i32
    %c0_i32_0 = arith.constant 0 : i32
    %c0_i32_1 = arith.constant 0 : i32
    return %c0_i32, %c0_i32_0 : i32, i32
  }
  func.func @transform_4(%arg0: i32) -> (i32, i32, i32) {
    %c0_i32 = arith.constant 0 : i32
    %c0_i32_0 = arith.constant 0 : i32
    %c0_i32_1 = arith.constant 0 : i32
    return %arg0, %c0_i32, %c0_i32_0 : i32, i32, i32
  }
}

module attributes {stable_mosaic.version = 11 : i64} {
  func.func @_up_blocks_kernel(%arg0: i32, %arg1: memref<1x64x32xf32, #tpu.memory_space<vmem>>, %arg2: memref<1x32xf32, #tpu.memory_space<vmem>>, %arg3: memref<1x32xf32, #tpu.memory_space<vmem>>, %arg4: memref<32x96xbf16, #tpu.memory_space<vmem>>, %arg5: memref<1x96xf32, #tpu.memory_space<vmem>>, %arg6: memref<32x32xbf16, #tpu.memory_space<vmem>>, %arg7: memref<1x32xf32, #tpu.memory_space<vmem>>, %arg8: memref<1x32xf32, #tpu.memory_space<vmem>>, %arg9: memref<1x32xf32, #tpu.memory_space<vmem>>, %arg10: memref<32x128xbf16, #tpu.memory_space<vmem>>, %arg11: memref<1x128xf32, #tpu.memory_space<vmem>>, %arg12: memref<128x32xbf16, #tpu.memory_space<vmem>>, %arg13: memref<1x32xf32, #tpu.memory_space<vmem>>, %arg14: memref<1x32xf32, #tpu.memory_space<vmem>>, %arg15: memref<1x32xf32, #tpu.memory_space<vmem>>, %arg16: memref<32x96xbf16, #tpu.memory_space<vmem>>, %arg17: memref<1x96xf32, #tpu.memory_space<vmem>>, %arg18: memref<32x32xbf16, #tpu.memory_space<vmem>>, %arg19: memref<1x32xf32, #tpu.memory_space<vmem>>, %arg20: memref<1x32xf32, #tpu.memory_space<vmem>>, %arg21: memref<1x32xf32, #tpu.memory_space<vmem>>, %arg22: memref<32x128xbf16, #tpu.memory_space<vmem>>, %arg23: memref<1x128xf32, #tpu.memory_space<vmem>>, %arg24: memref<128x32xbf16, #tpu.memory_space<vmem>>, %arg25: memref<1x32xf32, #tpu.memory_space<vmem>>, %arg26: memref<32x128xbf16, #tpu.memory_space<vmem>>, %arg27: memref<1x128xf32, #tpu.memory_space<vmem>>, %arg28: memref<128x16xbf16, #tpu.memory_space<vmem>>, %arg29: memref<1x16xf32, #tpu.memory_space<vmem>>, %arg30: memref<1x64x16xf32, #tpu.memory_space<vmem>>) attributes {dimension_semantics = [#tpu.dimension_semantics<parallel>], iteration_bounds = array<i64: 2>, scalar_prefetch = 0 : i64, scratch_operands = 0 : i64, tpu.core_type = #tpu.core_type<tc>, window_params = [{transform_indices = @transform_0, window_bounds = array<i64: 1, 64, 32>}, {pipeline_mode = #tpu.pipeline_mode<synchronous>, transform_indices = @transform_1, window_bounds = array<i64: 1, 32>}, {pipeline_mode = #tpu.pipeline_mode<synchronous>, transform_indices = @transform_2, window_bounds = array<i64: 1, 32>}, {pipeline_mode = #tpu.pipeline_mode<synchronous>, transform_indices = @transform_3, window_bounds = array<i64: 32, 96>}, {pipeline_mode = #tpu.pipeline_mode<synchronous>, transform_indices = @transform_4, window_bounds = array<i64: 1, 96>}, {pipeline_mode = #tpu.pipeline_mode<synchronous>, transform_indices = @transform_5, window_bounds = array<i64: 32, 32>}, {pipeline_mode = #tpu.pipeline_mode<synchronous>, transform_indices = @transform_6, window_bounds = array<i64: 1, 32>}, {pipeline_mode = #tpu.pipeline_mode<synchronous>, transform_indices = @transform_7, window_bounds = array<i64: 1, 32>}, {pipeline_mode = #tpu.pipeline_mode<synchronous>, transform_indices = @transform_8, window_bounds = array<i64: 1, 32>}, {pipeline_mode = #tpu.pipeline_mode<synchronous>, transform_indices = @transform_9, window_bounds = array<i64: 32, 128>}, {pipeline_mode = #tpu.pipeline_mode<synchronous>, transform_indices = @transform_10, window_bounds = array<i64: 1, 128>}, {pipeline_mode = #tpu.pipeline_mode<synchronous>, transform_indices = @transform_11, window_bounds = array<i64: 128, 32>}, {pipeline_mode = #tpu.pipeline_mode<synchronous>, transform_indices = @transform_12, window_bounds = array<i64: 1, 32>}, {pipeline_mode = #tpu.pipeline_mode<synchronous>, transform_indices = @transform_13, window_bounds = array<i64: 1, 32>}, {pipeline_mode = #tpu.pipeline_mode<synchronous>, transform_indices = @transform_14, window_bounds = array<i64: 1, 32>}, {pipeline_mode = #tpu.pipeline_mode<synchronous>, transform_indices = @transform_15, window_bounds = array<i64: 32, 96>}, {pipeline_mode = #tpu.pipeline_mode<synchronous>, transform_indices = @transform_16, window_bounds = array<i64: 1, 96>}, {pipeline_mode = #tpu.pipeline_mode<synchronous>, transform_indices = @transform_17, window_bounds = array<i64: 32, 32>}, {pipeline_mode = #tpu.pipeline_mode<synchronous>, transform_indices = @transform_18, window_bounds = array<i64: 1, 32>}, {pipeline_mode = #tpu.pipeline_mode<synchronous>, transform_indices = @transform_19, window_bounds = array<i64: 1, 32>}, {pipeline_mode = #tpu.pipeline_mode<synchronous>, transform_indices = @transform_20, window_bounds = array<i64: 1, 32>}, {pipeline_mode = #tpu.pipeline_mode<synchronous>, transform_indices = @transform_21, window_bounds = array<i64: 32, 128>}, {pipeline_mode = #tpu.pipeline_mode<synchronous>, transform_indices = @transform_22, window_bounds = array<i64: 1, 128>}, {pipeline_mode = #tpu.pipeline_mode<synchronous>, transform_indices = @transform_23, window_bounds = array<i64: 128, 32>}, {pipeline_mode = #tpu.pipeline_mode<synchronous>, transform_indices = @transform_24, window_bounds = array<i64: 1, 32>}, {pipeline_mode = #tpu.pipeline_mode<synchronous>, transform_indices = @transform_25, window_bounds = array<i64: 32, 128>}, {pipeline_mode = #tpu.pipeline_mode<synchronous>, transform_indices = @transform_26, window_bounds = array<i64: 1, 128>}, {pipeline_mode = #tpu.pipeline_mode<synchronous>, transform_indices = @transform_27, window_bounds = array<i64: 128, 16>}, {pipeline_mode = #tpu.pipeline_mode<synchronous>, transform_indices = @transform_28, window_bounds = array<i64: 1, 16>}, {transform_indices = @transform_29, window_bounds = array<i64: 1, 64, 16>}]} {
    %c0 = arith.constant 0 : index
    %c0_0 = arith.constant 0 : index
    %c0_1 = arith.constant 0 : index
    %0 = vector.load %arg1[%c0, %c0_0, %c0_1] : memref<1x64x32xf32, #tpu.memory_space<vmem>>, vector<1x64x32xf32>
    %1 = vector.shape_cast %0 : vector<1x64x32xf32> to vector<64x32xf32>
    %cst = arith.constant dense<0.000000e+00> : vector<64xf32>
    %2 = vector.multi_reduction <add>, %1, %cst [1] : vector<64x32xf32> to vector<64xf32>
    %3 = vector.shape_cast %2 : vector<64xf32> to vector<64x1xf32>
    %cst_2 = arith.constant 3.200000e+01 : f32
    %4 = vector.broadcast %cst_2 : f32 to vector<64x1xf32>
    %5 = arith.divf %3, %4 : vector<64x1xf32>
    %6 = vector.broadcast %5 : vector<64x1xf32> to vector<64x32xf32>
    %7 = arith.subf %1, %6 : vector<64x32xf32>
    %8 = arith.mulf %7, %7 : vector<64x32xf32>
    %cst_3 = arith.constant dense<0.000000e+00> : vector<64xf32>
    %9 = vector.multi_reduction <add>, %8, %cst_3 [1] : vector<64x32xf32> to vector<64xf32>
    %10 = vector.shape_cast %9 : vector<64xf32> to vector<64x1xf32>
    %cst_4 = arith.constant 3.200000e+01 : f32
    %11 = vector.broadcast %cst_4 : f32 to vector<64x1xf32>
    %12 = arith.divf %10, %11 : vector<64x1xf32>
    %13 = vector.broadcast %5 : vector<64x1xf32> to vector<64x32xf32>
    %14 = arith.subf %1, %13 : vector<64x32xf32>
    %cst_5 = arith.constant 9.99999997E-7 : f32
    %15 = vector.broadcast %cst_5 : f32 to vector<64x1xf32>
    %16 = arith.addf %12, %15 : vector<64x1xf32>
    %17 = math.rsqrt %16 : vector<64x1xf32>
    %18 = vector.broadcast %17 : vector<64x1xf32> to vector<64x32xf32>
    %19 = arith.mulf %14, %18 : vector<64x32xf32>
    %c0_6 = arith.constant 0 : index
    %c0_7 = arith.constant 0 : index
    %20 = vector.load %arg2[%c0_6, %c0_7] : memref<1x32xf32, #tpu.memory_space<vmem>>, vector<1x32xf32>
    %21 = vector.broadcast %20 : vector<1x32xf32> to vector<64x32xf32>
    %22 = arith.mulf %19, %21 : vector<64x32xf32>
    %c0_8 = arith.constant 0 : index
    %c0_9 = arith.constant 0 : index
    %23 = vector.load %arg3[%c0_8, %c0_9] : memref<1x32xf32, #tpu.memory_space<vmem>>, vector<1x32xf32>
    %24 = vector.broadcast %23 : vector<1x32xf32> to vector<64x32xf32>
    %25 = arith.addf %22, %24 : vector<64x32xf32>
    %26 = arith.truncf %25 : vector<64x32xf32> to vector<64x32xbf16>
    %c0_10 = arith.constant 0 : index
    %c0_11 = arith.constant 0 : index
    %27 = vector.load %arg4[%c0_10, %c0_11] : memref<32x96xbf16, #tpu.memory_space<vmem>>, vector<32x96xbf16>
    %cst_12 = arith.constant dense<0.000000e+00> : vector<64x96xf32>
    %28 = tpu.matmul %26, %27, %cst_12 {dimension_numbers = #tpu.dot_dimension_numbers<[1], [0], [0], [1], [0, 0, 1, 1], [], []>} : vector<64x32xbf16>, vector<32x96xbf16>, vector<64x96xf32> -> vector<64x96xf32>
    %c0_13 = arith.constant 0 : index
    %c0_14 = arith.constant 0 : index
    %29 = vector.load %arg5[%c0_13, %c0_14] : memref<1x96xf32, #tpu.memory_space<vmem>>, vector<1x96xf32>
    %30 = vector.broadcast %29 : vector<1x96xf32> to vector<64x96xf32>
    %31 = arith.addf %28, %30 : vector<64x96xf32>
    %32 = vector.extract_strided_slice %31 {offsets = [0, 0], sizes = [64, 8], strides = [1, 1]} : vector<64x96xf32> to vector<64x8xf32>
    %cst_15 = arith.constant 0.353553385 : f32
    %33 = vector.broadcast %cst_15 : f32 to vector<64x8xf32>
    %34 = arith.mulf %32, %33 : vector<64x8xf32>
    %35 = vector.extract_strided_slice %31 {offsets = [0, 32], sizes = [64, 8], strides = [1, 1]} : vector<64x96xf32> to vector<64x8xf32>
    %36 = vector.extract_strided_slice %31 {offsets = [0, 64], sizes = [64, 8], strides = [1, 1]} : vector<64x96xf32> to vector<64x8xf32>
    %37 = arith.truncf %34 : vector<64x8xf32> to vector<64x8xbf16>
    %38 = arith.truncf %35 : vector<64x8xf32> to vector<64x8xbf16>
    %cst_16 = arith.constant dense<0.000000e+00> : vector<64x64xf32>
    %39 = tpu.matmul %37, %38, %cst_16 {dimension_numbers = #tpu.dot_dimension_numbers<[1], [1], [0], [0], [0, 0, 1, 0], [], []>} : vector<64x8xbf16>, vector<64x8xbf16>, vector<64x64xf32> -> vector<64x64xf32>
    %cst_17 = arith.constant dense<0xFF800000> : vector<64xf32>
    %40 = vector.multi_reduction <maximumf>, %39, %cst_17 [1] : vector<64x64xf32> to vector<64xf32>
    %41 = vector.shape_cast %40 : vector<64xf32> to vector<64x1xf32>
    %42 = vector.broadcast %41 : vector<64x1xf32> to vector<64x64xf32>
    %43 = arith.subf %39, %42 : vector<64x64xf32>
    %44 = math.exp %43 : vector<64x64xf32>
    %cst_18 = arith.constant dense<0.000000e+00> : vector<64xf32>
    %45 = vector.multi_reduction <add>, %44, %cst_18 [1] : vector<64x64xf32> to vector<64xf32>
    %46 = vector.shape_cast %45 : vector<64xf32> to vector<64x1xf32>
    %47 = tpu.reciprocal %46 {approx = true} : vector<64x1xf32> -> vector<64x1xf32>
    %48 = vector.broadcast %47 : vector<64x1xf32> to vector<64x64xf32>
    %49 = arith.mulf %44, %48 : vector<64x64xf32>
    %50 = arith.truncf %49 : vector<64x64xf32> to vector<64x64xbf16>
    %51 = arith.truncf %36 : vector<64x8xf32> to vector<64x8xbf16>
    %cst_19 = arith.constant dense<0.000000e+00> : vector<64x8xf32>
    %52 = tpu.matmul %50, %51, %cst_19 {dimension_numbers = #tpu.dot_dimension_numbers<[1], [0], [0], [1], [0, 0, 1, 1], [], []>} : vector<64x64xbf16>, vector<64x8xbf16>, vector<64x8xf32> -> vector<64x8xf32>
    %53 = vector.extract_strided_slice %31 {offsets = [0, 8], sizes = [64, 8], strides = [1, 1]} : vector<64x96xf32> to vector<64x8xf32>
    %cst_20 = arith.constant 0.353553385 : f32
    %54 = vector.broadcast %cst_20 : f32 to vector<64x8xf32>
    %55 = arith.mulf %53, %54 : vector<64x8xf32>
    %56 = vector.extract_strided_slice %31 {offsets = [0, 40], sizes = [64, 8], strides = [1, 1]} : vector<64x96xf32> to vector<64x8xf32>
    %57 = vector.extract_strided_slice %31 {offsets = [0, 72], sizes = [64, 8], strides = [1, 1]} : vector<64x96xf32> to vector<64x8xf32>
    %58 = arith.truncf %55 : vector<64x8xf32> to vector<64x8xbf16>
    %59 = arith.truncf %56 : vector<64x8xf32> to vector<64x8xbf16>
    %cst_21 = arith.constant dense<0.000000e+00> : vector<64x64xf32>
    %60 = tpu.matmul %58, %59, %cst_21 {dimension_numbers = #tpu.dot_dimension_numbers<[1], [1], [0], [0], [0, 0, 1, 0], [], []>} : vector<64x8xbf16>, vector<64x8xbf16>, vector<64x64xf32> -> vector<64x64xf32>
    %cst_22 = arith.constant dense<0xFF800000> : vector<64xf32>
    %61 = vector.multi_reduction <maximumf>, %60, %cst_22 [1] : vector<64x64xf32> to vector<64xf32>
    %62 = vector.shape_cast %61 : vector<64xf32> to vector<64x1xf32>
    %63 = vector.broadcast %62 : vector<64x1xf32> to vector<64x64xf32>
    %64 = arith.subf %60, %63 : vector<64x64xf32>
    %65 = math.exp %64 : vector<64x64xf32>
    %cst_23 = arith.constant dense<0.000000e+00> : vector<64xf32>
    %66 = vector.multi_reduction <add>, %65, %cst_23 [1] : vector<64x64xf32> to vector<64xf32>
    %67 = vector.shape_cast %66 : vector<64xf32> to vector<64x1xf32>
    %68 = tpu.reciprocal %67 {approx = true} : vector<64x1xf32> -> vector<64x1xf32>
    %69 = vector.broadcast %68 : vector<64x1xf32> to vector<64x64xf32>
    %70 = arith.mulf %65, %69 : vector<64x64xf32>
    %71 = arith.truncf %70 : vector<64x64xf32> to vector<64x64xbf16>
    %72 = arith.truncf %57 : vector<64x8xf32> to vector<64x8xbf16>
    %cst_24 = arith.constant dense<0.000000e+00> : vector<64x8xf32>
    %73 = tpu.matmul %71, %72, %cst_24 {dimension_numbers = #tpu.dot_dimension_numbers<[1], [0], [0], [1], [0, 0, 1, 1], [], []>} : vector<64x64xbf16>, vector<64x8xbf16>, vector<64x8xf32> -> vector<64x8xf32>
    %74 = vector.extract_strided_slice %31 {offsets = [0, 16], sizes = [64, 8], strides = [1, 1]} : vector<64x96xf32> to vector<64x8xf32>
    %cst_25 = arith.constant 0.353553385 : f32
    %75 = vector.broadcast %cst_25 : f32 to vector<64x8xf32>
    %76 = arith.mulf %74, %75 : vector<64x8xf32>
    %77 = vector.extract_strided_slice %31 {offsets = [0, 48], sizes = [64, 8], strides = [1, 1]} : vector<64x96xf32> to vector<64x8xf32>
    %78 = vector.extract_strided_slice %31 {offsets = [0, 80], sizes = [64, 8], strides = [1, 1]} : vector<64x96xf32> to vector<64x8xf32>
    %79 = arith.truncf %76 : vector<64x8xf32> to vector<64x8xbf16>
    %80 = arith.truncf %77 : vector<64x8xf32> to vector<64x8xbf16>
    %cst_26 = arith.constant dense<0.000000e+00> : vector<64x64xf32>
    %81 = tpu.matmul %79, %80, %cst_26 {dimension_numbers = #tpu.dot_dimension_numbers<[1], [1], [0], [0], [0, 0, 1, 0], [], []>} : vector<64x8xbf16>, vector<64x8xbf16>, vector<64x64xf32> -> vector<64x64xf32>
    %cst_27 = arith.constant dense<0xFF800000> : vector<64xf32>
    %82 = vector.multi_reduction <maximumf>, %81, %cst_27 [1] : vector<64x64xf32> to vector<64xf32>
    %83 = vector.shape_cast %82 : vector<64xf32> to vector<64x1xf32>
    %84 = vector.broadcast %83 : vector<64x1xf32> to vector<64x64xf32>
    %85 = arith.subf %81, %84 : vector<64x64xf32>
    %86 = math.exp %85 : vector<64x64xf32>
    %cst_28 = arith.constant dense<0.000000e+00> : vector<64xf32>
    %87 = vector.multi_reduction <add>, %86, %cst_28 [1] : vector<64x64xf32> to vector<64xf32>
    %88 = vector.shape_cast %87 : vector<64xf32> to vector<64x1xf32>
    %89 = tpu.reciprocal %88 {approx = true} : vector<64x1xf32> -> vector<64x1xf32>
    %90 = vector.broadcast %89 : vector<64x1xf32> to vector<64x64xf32>
    %91 = arith.mulf %86, %90 : vector<64x64xf32>
    %92 = arith.truncf %91 : vector<64x64xf32> to vector<64x64xbf16>
    %93 = arith.truncf %78 : vector<64x8xf32> to vector<64x8xbf16>
    %cst_29 = arith.constant dense<0.000000e+00> : vector<64x8xf32>
    %94 = tpu.matmul %92, %93, %cst_29 {dimension_numbers = #tpu.dot_dimension_numbers<[1], [0], [0], [1], [0, 0, 1, 1], [], []>} : vector<64x64xbf16>, vector<64x8xbf16>, vector<64x8xf32> -> vector<64x8xf32>
    %95 = vector.extract_strided_slice %31 {offsets = [0, 24], sizes = [64, 8], strides = [1, 1]} : vector<64x96xf32> to vector<64x8xf32>
    %cst_30 = arith.constant 0.353553385 : f32
    %96 = vector.broadcast %cst_30 : f32 to vector<64x8xf32>
    %97 = arith.mulf %95, %96 : vector<64x8xf32>
    %98 = vector.extract_strided_slice %31 {offsets = [0, 56], sizes = [64, 8], strides = [1, 1]} : vector<64x96xf32> to vector<64x8xf32>
    %99 = vector.extract_strided_slice %31 {offsets = [0, 88], sizes = [64, 8], strides = [1, 1]} : vector<64x96xf32> to vector<64x8xf32>
    %100 = arith.truncf %97 : vector<64x8xf32> to vector<64x8xbf16>
    %101 = arith.truncf %98 : vector<64x8xf32> to vector<64x8xbf16>
    %cst_31 = arith.constant dense<0.000000e+00> : vector<64x64xf32>
    %102 = tpu.matmul %100, %101, %cst_31 {dimension_numbers = #tpu.dot_dimension_numbers<[1], [1], [0], [0], [0, 0, 1, 0], [], []>} : vector<64x8xbf16>, vector<64x8xbf16>, vector<64x64xf32> -> vector<64x64xf32>
    %cst_32 = arith.constant dense<0xFF800000> : vector<64xf32>
    %103 = vector.multi_reduction <maximumf>, %102, %cst_32 [1] : vector<64x64xf32> to vector<64xf32>
    %104 = vector.shape_cast %103 : vector<64xf32> to vector<64x1xf32>
    %105 = vector.broadcast %104 : vector<64x1xf32> to vector<64x64xf32>
    %106 = arith.subf %102, %105 : vector<64x64xf32>
    %107 = math.exp %106 : vector<64x64xf32>
    %cst_33 = arith.constant dense<0.000000e+00> : vector<64xf32>
    %108 = vector.multi_reduction <add>, %107, %cst_33 [1] : vector<64x64xf32> to vector<64xf32>
    %109 = vector.shape_cast %108 : vector<64xf32> to vector<64x1xf32>
    %110 = tpu.reciprocal %109 {approx = true} : vector<64x1xf32> -> vector<64x1xf32>
    %111 = vector.broadcast %110 : vector<64x1xf32> to vector<64x64xf32>
    %112 = arith.mulf %107, %111 : vector<64x64xf32>
    %113 = arith.truncf %112 : vector<64x64xf32> to vector<64x64xbf16>
    %114 = arith.truncf %99 : vector<64x8xf32> to vector<64x8xbf16>
    %cst_34 = arith.constant dense<0.000000e+00> : vector<64x8xf32>
    %115 = tpu.matmul %113, %114, %cst_34 {dimension_numbers = #tpu.dot_dimension_numbers<[1], [0], [0], [1], [0, 0, 1, 1], [], []>} : vector<64x64xbf16>, vector<64x8xbf16>, vector<64x8xf32> -> vector<64x8xf32>
    %116 = tpu.concatenate %52, %73, %94, %115 in 1 : vector<64x8xf32>, vector<64x8xf32>, vector<64x8xf32>, vector<64x8xf32> -> vector<64x32xf32>
    %117 = arith.truncf %116 : vector<64x32xf32> to vector<64x32xbf16>
    %c0_35 = arith.constant 0 : index
    %c0_36 = arith.constant 0 : index
    %118 = vector.load %arg6[%c0_35, %c0_36] : memref<32x32xbf16, #tpu.memory_space<vmem>>, vector<32x32xbf16>
    %cst_37 = arith.constant dense<0.000000e+00> : vector<64x32xf32>
    %119 = tpu.matmul %117, %118, %cst_37 {dimension_numbers = #tpu.dot_dimension_numbers<[1], [0], [0], [1], [0, 0, 1, 1], [], []>} : vector<64x32xbf16>, vector<32x32xbf16>, vector<64x32xf32> -> vector<64x32xf32>
    %c0_38 = arith.constant 0 : index
    %c0_39 = arith.constant 0 : index
    %120 = vector.load %arg7[%c0_38, %c0_39] : memref<1x32xf32, #tpu.memory_space<vmem>>, vector<1x32xf32>
    %121 = vector.broadcast %120 : vector<1x32xf32> to vector<64x32xf32>
    %122 = arith.addf %119, %121 : vector<64x32xf32>
    %123 = arith.addf %1, %122 : vector<64x32xf32>
    %cst_40 = arith.constant dense<0.000000e+00> : vector<64xf32>
    %124 = vector.multi_reduction <add>, %123, %cst_40 [1] : vector<64x32xf32> to vector<64xf32>
    %125 = vector.shape_cast %124 : vector<64xf32> to vector<64x1xf32>
    %cst_41 = arith.constant 3.200000e+01 : f32
    %126 = vector.broadcast %cst_41 : f32 to vector<64x1xf32>
    %127 = arith.divf %125, %126 : vector<64x1xf32>
    %128 = vector.broadcast %127 : vector<64x1xf32> to vector<64x32xf32>
    %129 = arith.subf %123, %128 : vector<64x32xf32>
    %130 = arith.mulf %129, %129 : vector<64x32xf32>
    %cst_42 = arith.constant dense<0.000000e+00> : vector<64xf32>
    %131 = vector.multi_reduction <add>, %130, %cst_42 [1] : vector<64x32xf32> to vector<64xf32>
    %132 = vector.shape_cast %131 : vector<64xf32> to vector<64x1xf32>
    %cst_43 = arith.constant 3.200000e+01 : f32
    %133 = vector.broadcast %cst_43 : f32 to vector<64x1xf32>
    %134 = arith.divf %132, %133 : vector<64x1xf32>
    %135 = vector.broadcast %127 : vector<64x1xf32> to vector<64x32xf32>
    %136 = arith.subf %123, %135 : vector<64x32xf32>
    %cst_44 = arith.constant 9.99999997E-7 : f32
    %137 = vector.broadcast %cst_44 : f32 to vector<64x1xf32>
    %138 = arith.addf %134, %137 : vector<64x1xf32>
    %139 = math.rsqrt %138 : vector<64x1xf32>
    %140 = vector.broadcast %139 : vector<64x1xf32> to vector<64x32xf32>
    %141 = arith.mulf %136, %140 : vector<64x32xf32>
    %c0_45 = arith.constant 0 : index
    %c0_46 = arith.constant 0 : index
    %142 = vector.load %arg8[%c0_45, %c0_46] : memref<1x32xf32, #tpu.memory_space<vmem>>, vector<1x32xf32>
    %143 = vector.broadcast %142 : vector<1x32xf32> to vector<64x32xf32>
    %144 = arith.mulf %141, %143 : vector<64x32xf32>
    %c0_47 = arith.constant 0 : index
    %c0_48 = arith.constant 0 : index
    %145 = vector.load %arg9[%c0_47, %c0_48] : memref<1x32xf32, #tpu.memory_space<vmem>>, vector<1x32xf32>
    %146 = vector.broadcast %145 : vector<1x32xf32> to vector<64x32xf32>
    %147 = arith.addf %144, %146 : vector<64x32xf32>
    %148 = arith.truncf %147 : vector<64x32xf32> to vector<64x32xbf16>
    %c0_49 = arith.constant 0 : index
    %c0_50 = arith.constant 0 : index
    %149 = vector.load %arg10[%c0_49, %c0_50] : memref<32x128xbf16, #tpu.memory_space<vmem>>, vector<32x128xbf16>
    %cst_51 = arith.constant dense<0.000000e+00> : vector<64x128xf32>
    %150 = tpu.matmul %148, %149, %cst_51 {dimension_numbers = #tpu.dot_dimension_numbers<[1], [0], [0], [1], [0, 0, 1, 1], [], []>} : vector<64x32xbf16>, vector<32x128xbf16>, vector<64x128xf32> -> vector<64x128xf32>
    %c0_52 = arith.constant 0 : index
    %c0_53 = arith.constant 0 : index
    %151 = vector.load %arg11[%c0_52, %c0_53] : memref<1x128xf32, #tpu.memory_space<vmem>>, vector<1x128xf32>
    %152 = vector.broadcast %151 : vector<1x128xf32> to vector<64x128xf32>
    %153 = arith.addf %150, %152 : vector<64x128xf32>
    %cst_54 = arith.constant 5.000000e-01 : f32
    %154 = vector.broadcast %cst_54 : f32 to vector<64x128xf32>
    %155 = arith.mulf %154, %153 : vector<64x128xf32>
    %cst_55 = arith.constant 0.707106769 : f32
    %156 = vector.broadcast %cst_55 : f32 to vector<64x128xf32>
    %157 = arith.mulf %153, %156 : vector<64x128xf32>
    %158 = math.absf %157 : vector<64x128xf32>
    %cst_56 = arith.constant 0.327591091 : f32
    %159 = vector.broadcast %cst_56 : f32 to vector<64x128xf32>
    %160 = arith.mulf %159, %158 : vector<64x128xf32>
    %cst_57 = arith.constant 1.000000e+00 : f32
    %161 = vector.broadcast %cst_57 : f32 to vector<64x128xf32>
    %162 = arith.addf %161, %160 : vector<64x128xf32>
    %cst_58 = arith.constant 1.000000e+00 : f32
    %163 = vector.broadcast %cst_58 : f32 to vector<64x128xf32>
    %164 = arith.divf %163, %162 : vector<64x128xf32>
    %cst_59 = arith.constant 1.06140542 : f32
    %165 = vector.broadcast %cst_59 : f32 to vector<64x128xf32>
    %166 = arith.mulf %165, %164 : vector<64x128xf32>
    %cst_60 = arith.constant -1.45315206 : f32
    %167 = vector.broadcast %cst_60 : f32 to vector<64x128xf32>
    %168 = arith.addf %166, %167 : vector<64x128xf32>
    %169 = arith.mulf %168, %164 : vector<64x128xf32>
    %cst_61 = arith.constant 1.42141378 : f32
    %170 = vector.broadcast %cst_61 : f32 to vector<64x128xf32>
    %171 = arith.addf %169, %170 : vector<64x128xf32>
    %172 = arith.mulf %171, %164 : vector<64x128xf32>
    %cst_62 = arith.constant -0.284496725 : f32
    %173 = vector.broadcast %cst_62 : f32 to vector<64x128xf32>
    %174 = arith.addf %172, %173 : vector<64x128xf32>
    %175 = arith.mulf %174, %164 : vector<64x128xf32>
    %cst_63 = arith.constant 0.254829586 : f32
    %176 = vector.broadcast %cst_63 : f32 to vector<64x128xf32>
    %177 = arith.addf %175, %176 : vector<64x128xf32>
    %178 = arith.mulf %177, %164 : vector<64x128xf32>
    %cst_64 = arith.constant 0.000000e+00 : f32
    %179 = vector.broadcast %cst_64 : f32 to vector<64x128xf32>
    %180 = arith.subf %179, %158 : vector<64x128xf32>
    %181 = arith.mulf %180, %158 : vector<64x128xf32>
    %182 = math.exp %181 : vector<64x128xf32>
    %183 = arith.mulf %178, %182 : vector<64x128xf32>
    %cst_65 = arith.constant 1.000000e+00 : f32
    %184 = vector.broadcast %cst_65 : f32 to vector<64x128xf32>
    %185 = arith.subf %184, %183 : vector<64x128xf32>
    %cst_66 = arith.constant 0.000000e+00 : f32
    %186 = vector.broadcast %cst_66 : f32 to vector<64x128xf32>
    %187 = arith.cmpf oge, %157, %186 : vector<64x128xf32>
    %cst_67 = arith.constant 0.000000e+00 : f32
    %188 = vector.broadcast %cst_67 : f32 to vector<64x128xf32>
    %189 = arith.subf %188, %185 : vector<64x128xf32>
    %190 = arith.select %187, %185, %189 : vector<64x128xi1>, vector<64x128xf32>
    %cst_68 = arith.constant 1.000000e+00 : f32
    %191 = vector.broadcast %cst_68 : f32 to vector<64x128xf32>
    %192 = arith.addf %191, %190 : vector<64x128xf32>
    %193 = arith.mulf %155, %192 : vector<64x128xf32>
    %194 = arith.truncf %193 : vector<64x128xf32> to vector<64x128xbf16>
    %c0_69 = arith.constant 0 : index
    %c0_70 = arith.constant 0 : index
    %195 = vector.load %arg12[%c0_69, %c0_70] : memref<128x32xbf16, #tpu.memory_space<vmem>>, vector<128x32xbf16>
    %cst_71 = arith.constant dense<0.000000e+00> : vector<64x32xf32>
    %196 = tpu.matmul %194, %195, %cst_71 {dimension_numbers = #tpu.dot_dimension_numbers<[1], [0], [0], [1], [0, 0, 1, 1], [], []>} : vector<64x128xbf16>, vector<128x32xbf16>, vector<64x32xf32> -> vector<64x32xf32>
    %c0_72 = arith.constant 0 : index
    %c0_73 = arith.constant 0 : index
    %197 = vector.load %arg13[%c0_72, %c0_73] : memref<1x32xf32, #tpu.memory_space<vmem>>, vector<1x32xf32>
    %198 = vector.broadcast %197 : vector<1x32xf32> to vector<64x32xf32>
    %199 = arith.addf %196, %198 : vector<64x32xf32>
    %200 = arith.addf %123, %199 : vector<64x32xf32>
    %cst_74 = arith.constant dense<0.000000e+00> : vector<64xf32>
    %201 = vector.multi_reduction <add>, %200, %cst_74 [1] : vector<64x32xf32> to vector<64xf32>
    %202 = vector.shape_cast %201 : vector<64xf32> to vector<64x1xf32>
    %cst_75 = arith.constant 3.200000e+01 : f32
    %203 = vector.broadcast %cst_75 : f32 to vector<64x1xf32>
    %204 = arith.divf %202, %203 : vector<64x1xf32>
    %205 = vector.broadcast %204 : vector<64x1xf32> to vector<64x32xf32>
    %206 = arith.subf %200, %205 : vector<64x32xf32>
    %207 = arith.mulf %206, %206 : vector<64x32xf32>
    %cst_76 = arith.constant dense<0.000000e+00> : vector<64xf32>
    %208 = vector.multi_reduction <add>, %207, %cst_76 [1] : vector<64x32xf32> to vector<64xf32>
    %209 = vector.shape_cast %208 : vector<64xf32> to vector<64x1xf32>
    %cst_77 = arith.constant 3.200000e+01 : f32
    %210 = vector.broadcast %cst_77 : f32 to vector<64x1xf32>
    %211 = arith.divf %209, %210 : vector<64x1xf32>
    %212 = vector.broadcast %204 : vector<64x1xf32> to vector<64x32xf32>
    %213 = arith.subf %200, %212 : vector<64x32xf32>
    %cst_78 = arith.constant 9.99999997E-7 : f32
    %214 = vector.broadcast %cst_78 : f32 to vector<64x1xf32>
    %215 = arith.addf %211, %214 : vector<64x1xf32>
    %216 = math.rsqrt %215 : vector<64x1xf32>
    %217 = vector.broadcast %216 : vector<64x1xf32> to vector<64x32xf32>
    %218 = arith.mulf %213, %217 : vector<64x32xf32>
    %c0_79 = arith.constant 0 : index
    %c0_80 = arith.constant 0 : index
    %219 = vector.load %arg14[%c0_79, %c0_80] : memref<1x32xf32, #tpu.memory_space<vmem>>, vector<1x32xf32>
    %220 = vector.broadcast %219 : vector<1x32xf32> to vector<64x32xf32>
    %221 = arith.mulf %218, %220 : vector<64x32xf32>
    %c0_81 = arith.constant 0 : index
    %c0_82 = arith.constant 0 : index
    %222 = vector.load %arg15[%c0_81, %c0_82] : memref<1x32xf32, #tpu.memory_space<vmem>>, vector<1x32xf32>
    %223 = vector.broadcast %222 : vector<1x32xf32> to vector<64x32xf32>
    %224 = arith.addf %221, %223 : vector<64x32xf32>
    %225 = arith.truncf %224 : vector<64x32xf32> to vector<64x32xbf16>
    %c0_83 = arith.constant 0 : index
    %c0_84 = arith.constant 0 : index
    %226 = vector.load %arg16[%c0_83, %c0_84] : memref<32x96xbf16, #tpu.memory_space<vmem>>, vector<32x96xbf16>
    %cst_85 = arith.constant dense<0.000000e+00> : vector<64x96xf32>
    %227 = tpu.matmul %225, %226, %cst_85 {dimension_numbers = #tpu.dot_dimension_numbers<[1], [0], [0], [1], [0, 0, 1, 1], [], []>} : vector<64x32xbf16>, vector<32x96xbf16>, vector<64x96xf32> -> vector<64x96xf32>
    %c0_86 = arith.constant 0 : index
    %c0_87 = arith.constant 0 : index
    %228 = vector.load %arg17[%c0_86, %c0_87] : memref<1x96xf32, #tpu.memory_space<vmem>>, vector<1x96xf32>
    %229 = vector.broadcast %228 : vector<1x96xf32> to vector<64x96xf32>
    %230 = arith.addf %227, %229 : vector<64x96xf32>
    %231 = vector.extract_strided_slice %230 {offsets = [0, 0], sizes = [64, 8], strides = [1, 1]} : vector<64x96xf32> to vector<64x8xf32>
    %cst_88 = arith.constant 0.353553385 : f32
    %232 = vector.broadcast %cst_88 : f32 to vector<64x8xf32>
    %233 = arith.mulf %231, %232 : vector<64x8xf32>
    %234 = vector.extract_strided_slice %230 {offsets = [0, 32], sizes = [64, 8], strides = [1, 1]} : vector<64x96xf32> to vector<64x8xf32>
    %235 = vector.extract_strided_slice %230 {offsets = [0, 64], sizes = [64, 8], strides = [1, 1]} : vector<64x96xf32> to vector<64x8xf32>
    %236 = arith.truncf %233 : vector<64x8xf32> to vector<64x8xbf16>
    %237 = arith.truncf %234 : vector<64x8xf32> to vector<64x8xbf16>
    %cst_89 = arith.constant dense<0.000000e+00> : vector<64x64xf32>
    %238 = tpu.matmul %236, %237, %cst_89 {dimension_numbers = #tpu.dot_dimension_numbers<[1], [1], [0], [0], [0, 0, 1, 0], [], []>} : vector<64x8xbf16>, vector<64x8xbf16>, vector<64x64xf32> -> vector<64x64xf32>
    %cst_90 = arith.constant dense<0xFF800000> : vector<64xf32>
    %239 = vector.multi_reduction <maximumf>, %238, %cst_90 [1] : vector<64x64xf32> to vector<64xf32>
    %240 = vector.shape_cast %239 : vector<64xf32> to vector<64x1xf32>
    %241 = vector.broadcast %240 : vector<64x1xf32> to vector<64x64xf32>
    %242 = arith.subf %238, %241 : vector<64x64xf32>
    %243 = math.exp %242 : vector<64x64xf32>
    %cst_91 = arith.constant dense<0.000000e+00> : vector<64xf32>
    %244 = vector.multi_reduction <add>, %243, %cst_91 [1] : vector<64x64xf32> to vector<64xf32>
    %245 = vector.shape_cast %244 : vector<64xf32> to vector<64x1xf32>
    %246 = tpu.reciprocal %245 {approx = true} : vector<64x1xf32> -> vector<64x1xf32>
    %247 = vector.broadcast %246 : vector<64x1xf32> to vector<64x64xf32>
    %248 = arith.mulf %243, %247 : vector<64x64xf32>
    %249 = arith.truncf %248 : vector<64x64xf32> to vector<64x64xbf16>
    %250 = arith.truncf %235 : vector<64x8xf32> to vector<64x8xbf16>
    %cst_92 = arith.constant dense<0.000000e+00> : vector<64x8xf32>
    %251 = tpu.matmul %249, %250, %cst_92 {dimension_numbers = #tpu.dot_dimension_numbers<[1], [0], [0], [1], [0, 0, 1, 1], [], []>} : vector<64x64xbf16>, vector<64x8xbf16>, vector<64x8xf32> -> vector<64x8xf32>
    %252 = vector.extract_strided_slice %230 {offsets = [0, 8], sizes = [64, 8], strides = [1, 1]} : vector<64x96xf32> to vector<64x8xf32>
    %cst_93 = arith.constant 0.353553385 : f32
    %253 = vector.broadcast %cst_93 : f32 to vector<64x8xf32>
    %254 = arith.mulf %252, %253 : vector<64x8xf32>
    %255 = vector.extract_strided_slice %230 {offsets = [0, 40], sizes = [64, 8], strides = [1, 1]} : vector<64x96xf32> to vector<64x8xf32>
    %256 = vector.extract_strided_slice %230 {offsets = [0, 72], sizes = [64, 8], strides = [1, 1]} : vector<64x96xf32> to vector<64x8xf32>
    %257 = arith.truncf %254 : vector<64x8xf32> to vector<64x8xbf16>
    %258 = arith.truncf %255 : vector<64x8xf32> to vector<64x8xbf16>
    %cst_94 = arith.constant dense<0.000000e+00> : vector<64x64xf32>
    %259 = tpu.matmul %257, %258, %cst_94 {dimension_numbers = #tpu.dot_dimension_numbers<[1], [1], [0], [0], [0, 0, 1, 0], [], []>} : vector<64x8xbf16>, vector<64x8xbf16>, vector<64x64xf32> -> vector<64x64xf32>
    %cst_95 = arith.constant dense<0xFF800000> : vector<64xf32>
    %260 = vector.multi_reduction <maximumf>, %259, %cst_95 [1] : vector<64x64xf32> to vector<64xf32>
    %261 = vector.shape_cast %260 : vector<64xf32> to vector<64x1xf32>
    %262 = vector.broadcast %261 : vector<64x1xf32> to vector<64x64xf32>
    %263 = arith.subf %259, %262 : vector<64x64xf32>
    %264 = math.exp %263 : vector<64x64xf32>
    %cst_96 = arith.constant dense<0.000000e+00> : vector<64xf32>
    %265 = vector.multi_reduction <add>, %264, %cst_96 [1] : vector<64x64xf32> to vector<64xf32>
    %266 = vector.shape_cast %265 : vector<64xf32> to vector<64x1xf32>
    %267 = tpu.reciprocal %266 {approx = true} : vector<64x1xf32> -> vector<64x1xf32>
    %268 = vector.broadcast %267 : vector<64x1xf32> to vector<64x64xf32>
    %269 = arith.mulf %264, %268 : vector<64x64xf32>
    %270 = arith.truncf %269 : vector<64x64xf32> to vector<64x64xbf16>
    %271 = arith.truncf %256 : vector<64x8xf32> to vector<64x8xbf16>
    %cst_97 = arith.constant dense<0.000000e+00> : vector<64x8xf32>
    %272 = tpu.matmul %270, %271, %cst_97 {dimension_numbers = #tpu.dot_dimension_numbers<[1], [0], [0], [1], [0, 0, 1, 1], [], []>} : vector<64x64xbf16>, vector<64x8xbf16>, vector<64x8xf32> -> vector<64x8xf32>
    %273 = vector.extract_strided_slice %230 {offsets = [0, 16], sizes = [64, 8], strides = [1, 1]} : vector<64x96xf32> to vector<64x8xf32>
    %cst_98 = arith.constant 0.353553385 : f32
    %274 = vector.broadcast %cst_98 : f32 to vector<64x8xf32>
    %275 = arith.mulf %273, %274 : vector<64x8xf32>
    %276 = vector.extract_strided_slice %230 {offsets = [0, 48], sizes = [64, 8], strides = [1, 1]} : vector<64x96xf32> to vector<64x8xf32>
    %277 = vector.extract_strided_slice %230 {offsets = [0, 80], sizes = [64, 8], strides = [1, 1]} : vector<64x96xf32> to vector<64x8xf32>
    %278 = arith.truncf %275 : vector<64x8xf32> to vector<64x8xbf16>
    %279 = arith.truncf %276 : vector<64x8xf32> to vector<64x8xbf16>
    %cst_99 = arith.constant dense<0.000000e+00> : vector<64x64xf32>
    %280 = tpu.matmul %278, %279, %cst_99 {dimension_numbers = #tpu.dot_dimension_numbers<[1], [1], [0], [0], [0, 0, 1, 0], [], []>} : vector<64x8xbf16>, vector<64x8xbf16>, vector<64x64xf32> -> vector<64x64xf32>
    %cst_100 = arith.constant dense<0xFF800000> : vector<64xf32>
    %281 = vector.multi_reduction <maximumf>, %280, %cst_100 [1] : vector<64x64xf32> to vector<64xf32>
    %282 = vector.shape_cast %281 : vector<64xf32> to vector<64x1xf32>
    %283 = vector.broadcast %282 : vector<64x1xf32> to vector<64x64xf32>
    %284 = arith.subf %280, %283 : vector<64x64xf32>
    %285 = math.exp %284 : vector<64x64xf32>
    %cst_101 = arith.constant dense<0.000000e+00> : vector<64xf32>
    %286 = vector.multi_reduction <add>, %285, %cst_101 [1] : vector<64x64xf32> to vector<64xf32>
    %287 = vector.shape_cast %286 : vector<64xf32> to vector<64x1xf32>
    %288 = tpu.reciprocal %287 {approx = true} : vector<64x1xf32> -> vector<64x1xf32>
    %289 = vector.broadcast %288 : vector<64x1xf32> to vector<64x64xf32>
    %290 = arith.mulf %285, %289 : vector<64x64xf32>
    %291 = arith.truncf %290 : vector<64x64xf32> to vector<64x64xbf16>
    %292 = arith.truncf %277 : vector<64x8xf32> to vector<64x8xbf16>
    %cst_102 = arith.constant dense<0.000000e+00> : vector<64x8xf32>
    %293 = tpu.matmul %291, %292, %cst_102 {dimension_numbers = #tpu.dot_dimension_numbers<[1], [0], [0], [1], [0, 0, 1, 1], [], []>} : vector<64x64xbf16>, vector<64x8xbf16>, vector<64x8xf32> -> vector<64x8xf32>
    %294 = vector.extract_strided_slice %230 {offsets = [0, 24], sizes = [64, 8], strides = [1, 1]} : vector<64x96xf32> to vector<64x8xf32>
    %cst_103 = arith.constant 0.353553385 : f32
    %295 = vector.broadcast %cst_103 : f32 to vector<64x8xf32>
    %296 = arith.mulf %294, %295 : vector<64x8xf32>
    %297 = vector.extract_strided_slice %230 {offsets = [0, 56], sizes = [64, 8], strides = [1, 1]} : vector<64x96xf32> to vector<64x8xf32>
    %298 = vector.extract_strided_slice %230 {offsets = [0, 88], sizes = [64, 8], strides = [1, 1]} : vector<64x96xf32> to vector<64x8xf32>
    %299 = arith.truncf %296 : vector<64x8xf32> to vector<64x8xbf16>
    %300 = arith.truncf %297 : vector<64x8xf32> to vector<64x8xbf16>
    %cst_104 = arith.constant dense<0.000000e+00> : vector<64x64xf32>
    %301 = tpu.matmul %299, %300, %cst_104 {dimension_numbers = #tpu.dot_dimension_numbers<[1], [1], [0], [0], [0, 0, 1, 0], [], []>} : vector<64x8xbf16>, vector<64x8xbf16>, vector<64x64xf32> -> vector<64x64xf32>
    %cst_105 = arith.constant dense<0xFF800000> : vector<64xf32>
    %302 = vector.multi_reduction <maximumf>, %301, %cst_105 [1] : vector<64x64xf32> to vector<64xf32>
    %303 = vector.shape_cast %302 : vector<64xf32> to vector<64x1xf32>
    %304 = vector.broadcast %303 : vector<64x1xf32> to vector<64x64xf32>
    %305 = arith.subf %301, %304 : vector<64x64xf32>
    %306 = math.exp %305 : vector<64x64xf32>
    %cst_106 = arith.constant dense<0.000000e+00> : vector<64xf32>
    %307 = vector.multi_reduction <add>, %306, %cst_106 [1] : vector<64x64xf32> to vector<64xf32>
    %308 = vector.shape_cast %307 : vector<64xf32> to vector<64x1xf32>
    %309 = tpu.reciprocal %308 {approx = true} : vector<64x1xf32> -> vector<64x1xf32>
    %310 = vector.broadcast %309 : vector<64x1xf32> to vector<64x64xf32>
    %311 = arith.mulf %306, %310 : vector<64x64xf32>
    %312 = arith.truncf %311 : vector<64x64xf32> to vector<64x64xbf16>
    %313 = arith.truncf %298 : vector<64x8xf32> to vector<64x8xbf16>
    %cst_107 = arith.constant dense<0.000000e+00> : vector<64x8xf32>
    %314 = tpu.matmul %312, %313, %cst_107 {dimension_numbers = #tpu.dot_dimension_numbers<[1], [0], [0], [1], [0, 0, 1, 1], [], []>} : vector<64x64xbf16>, vector<64x8xbf16>, vector<64x8xf32> -> vector<64x8xf32>
    %315 = tpu.concatenate %251, %272, %293, %314 in 1 : vector<64x8xf32>, vector<64x8xf32>, vector<64x8xf32>, vector<64x8xf32> -> vector<64x32xf32>
    %316 = arith.truncf %315 : vector<64x32xf32> to vector<64x32xbf16>
    %c0_108 = arith.constant 0 : index
    %c0_109 = arith.constant 0 : index
    %317 = vector.load %arg18[%c0_108, %c0_109] : memref<32x32xbf16, #tpu.memory_space<vmem>>, vector<32x32xbf16>
    %cst_110 = arith.constant dense<0.000000e+00> : vector<64x32xf32>
    %318 = tpu.matmul %316, %317, %cst_110 {dimension_numbers = #tpu.dot_dimension_numbers<[1], [0], [0], [1], [0, 0, 1, 1], [], []>} : vector<64x32xbf16>, vector<32x32xbf16>, vector<64x32xf32> -> vector<64x32xf32>
    %c0_111 = arith.constant 0 : index
    %c0_112 = arith.constant 0 : index
    %319 = vector.load %arg19[%c0_111, %c0_112] : memref<1x32xf32, #tpu.memory_space<vmem>>, vector<1x32xf32>
    %320 = vector.broadcast %319 : vector<1x32xf32> to vector<64x32xf32>
    %321 = arith.addf %318, %320 : vector<64x32xf32>
    %322 = arith.addf %200, %321 : vector<64x32xf32>
    %cst_113 = arith.constant dense<0.000000e+00> : vector<64xf32>
    %323 = vector.multi_reduction <add>, %322, %cst_113 [1] : vector<64x32xf32> to vector<64xf32>
    %324 = vector.shape_cast %323 : vector<64xf32> to vector<64x1xf32>
    %cst_114 = arith.constant 3.200000e+01 : f32
    %325 = vector.broadcast %cst_114 : f32 to vector<64x1xf32>
    %326 = arith.divf %324, %325 : vector<64x1xf32>
    %327 = vector.broadcast %326 : vector<64x1xf32> to vector<64x32xf32>
    %328 = arith.subf %322, %327 : vector<64x32xf32>
    %329 = arith.mulf %328, %328 : vector<64x32xf32>
    %cst_115 = arith.constant dense<0.000000e+00> : vector<64xf32>
    %330 = vector.multi_reduction <add>, %329, %cst_115 [1] : vector<64x32xf32> to vector<64xf32>
    %331 = vector.shape_cast %330 : vector<64xf32> to vector<64x1xf32>
    %cst_116 = arith.constant 3.200000e+01 : f32
    %332 = vector.broadcast %cst_116 : f32 to vector<64x1xf32>
    %333 = arith.divf %331, %332 : vector<64x1xf32>
    %334 = vector.broadcast %326 : vector<64x1xf32> to vector<64x32xf32>
    %335 = arith.subf %322, %334 : vector<64x32xf32>
    %cst_117 = arith.constant 9.99999997E-7 : f32
    %336 = vector.broadcast %cst_117 : f32 to vector<64x1xf32>
    %337 = arith.addf %333, %336 : vector<64x1xf32>
    %338 = math.rsqrt %337 : vector<64x1xf32>
    %339 = vector.broadcast %338 : vector<64x1xf32> to vector<64x32xf32>
    %340 = arith.mulf %335, %339 : vector<64x32xf32>
    %c0_118 = arith.constant 0 : index
    %c0_119 = arith.constant 0 : index
    %341 = vector.load %arg20[%c0_118, %c0_119] : memref<1x32xf32, #tpu.memory_space<vmem>>, vector<1x32xf32>
    %342 = vector.broadcast %341 : vector<1x32xf32> to vector<64x32xf32>
    %343 = arith.mulf %340, %342 : vector<64x32xf32>
    %c0_120 = arith.constant 0 : index
    %c0_121 = arith.constant 0 : index
    %344 = vector.load %arg21[%c0_120, %c0_121] : memref<1x32xf32, #tpu.memory_space<vmem>>, vector<1x32xf32>
    %345 = vector.broadcast %344 : vector<1x32xf32> to vector<64x32xf32>
    %346 = arith.addf %343, %345 : vector<64x32xf32>
    %347 = arith.truncf %346 : vector<64x32xf32> to vector<64x32xbf16>
    %c0_122 = arith.constant 0 : index
    %c0_123 = arith.constant 0 : index
    %348 = vector.load %arg22[%c0_122, %c0_123] : memref<32x128xbf16, #tpu.memory_space<vmem>>, vector<32x128xbf16>
    %cst_124 = arith.constant dense<0.000000e+00> : vector<64x128xf32>
    %349 = tpu.matmul %347, %348, %cst_124 {dimension_numbers = #tpu.dot_dimension_numbers<[1], [0], [0], [1], [0, 0, 1, 1], [], []>} : vector<64x32xbf16>, vector<32x128xbf16>, vector<64x128xf32> -> vector<64x128xf32>
    %c0_125 = arith.constant 0 : index
    %c0_126 = arith.constant 0 : index
    %350 = vector.load %arg23[%c0_125, %c0_126] : memref<1x128xf32, #tpu.memory_space<vmem>>, vector<1x128xf32>
    %351 = vector.broadcast %350 : vector<1x128xf32> to vector<64x128xf32>
    %352 = arith.addf %349, %351 : vector<64x128xf32>
    %cst_127 = arith.constant 5.000000e-01 : f32
    %353 = vector.broadcast %cst_127 : f32 to vector<64x128xf32>
    %354 = arith.mulf %353, %352 : vector<64x128xf32>
    %cst_128 = arith.constant 0.707106769 : f32
    %355 = vector.broadcast %cst_128 : f32 to vector<64x128xf32>
    %356 = arith.mulf %352, %355 : vector<64x128xf32>
    %357 = math.absf %356 : vector<64x128xf32>
    %cst_129 = arith.constant 0.327591091 : f32
    %358 = vector.broadcast %cst_129 : f32 to vector<64x128xf32>
    %359 = arith.mulf %358, %357 : vector<64x128xf32>
    %cst_130 = arith.constant 1.000000e+00 : f32
    %360 = vector.broadcast %cst_130 : f32 to vector<64x128xf32>
    %361 = arith.addf %360, %359 : vector<64x128xf32>
    %cst_131 = arith.constant 1.000000e+00 : f32
    %362 = vector.broadcast %cst_131 : f32 to vector<64x128xf32>
    %363 = arith.divf %362, %361 : vector<64x128xf32>
    %cst_132 = arith.constant 1.06140542 : f32
    %364 = vector.broadcast %cst_132 : f32 to vector<64x128xf32>
    %365 = arith.mulf %364, %363 : vector<64x128xf32>
    %cst_133 = arith.constant -1.45315206 : f32
    %366 = vector.broadcast %cst_133 : f32 to vector<64x128xf32>
    %367 = arith.addf %365, %366 : vector<64x128xf32>
    %368 = arith.mulf %367, %363 : vector<64x128xf32>
    %cst_134 = arith.constant 1.42141378 : f32
    %369 = vector.broadcast %cst_134 : f32 to vector<64x128xf32>
    %370 = arith.addf %368, %369 : vector<64x128xf32>
    %371 = arith.mulf %370, %363 : vector<64x128xf32>
    %cst_135 = arith.constant -0.284496725 : f32
    %372 = vector.broadcast %cst_135 : f32 to vector<64x128xf32>
    %373 = arith.addf %371, %372 : vector<64x128xf32>
    %374 = arith.mulf %373, %363 : vector<64x128xf32>
    %cst_136 = arith.constant 0.254829586 : f32
    %375 = vector.broadcast %cst_136 : f32 to vector<64x128xf32>
    %376 = arith.addf %374, %375 : vector<64x128xf32>
    %377 = arith.mulf %376, %363 : vector<64x128xf32>
    %cst_137 = arith.constant 0.000000e+00 : f32
    %378 = vector.broadcast %cst_137 : f32 to vector<64x128xf32>
    %379 = arith.subf %378, %357 : vector<64x128xf32>
    %380 = arith.mulf %379, %357 : vector<64x128xf32>
    %381 = math.exp %380 : vector<64x128xf32>
    %382 = arith.mulf %377, %381 : vector<64x128xf32>
    %cst_138 = arith.constant 1.000000e+00 : f32
    %383 = vector.broadcast %cst_138 : f32 to vector<64x128xf32>
    %384 = arith.subf %383, %382 : vector<64x128xf32>
    %cst_139 = arith.constant 0.000000e+00 : f32
    %385 = vector.broadcast %cst_139 : f32 to vector<64x128xf32>
    %386 = arith.cmpf oge, %356, %385 : vector<64x128xf32>
    %cst_140 = arith.constant 0.000000e+00 : f32
    %387 = vector.broadcast %cst_140 : f32 to vector<64x128xf32>
    %388 = arith.subf %387, %384 : vector<64x128xf32>
    %389 = arith.select %386, %384, %388 : vector<64x128xi1>, vector<64x128xf32>
    %cst_141 = arith.constant 1.000000e+00 : f32
    %390 = vector.broadcast %cst_141 : f32 to vector<64x128xf32>
    %391 = arith.addf %390, %389 : vector<64x128xf32>
    %392 = arith.mulf %354, %391 : vector<64x128xf32>
    %393 = arith.truncf %392 : vector<64x128xf32> to vector<64x128xbf16>
    %c0_142 = arith.constant 0 : index
    %c0_143 = arith.constant 0 : index
    %394 = vector.load %arg24[%c0_142, %c0_143] : memref<128x32xbf16, #tpu.memory_space<vmem>>, vector<128x32xbf16>
    %cst_144 = arith.constant dense<0.000000e+00> : vector<64x32xf32>
    %395 = tpu.matmul %393, %394, %cst_144 {dimension_numbers = #tpu.dot_dimension_numbers<[1], [0], [0], [1], [0, 0, 1, 1], [], []>} : vector<64x128xbf16>, vector<128x32xbf16>, vector<64x32xf32> -> vector<64x32xf32>
    %c0_145 = arith.constant 0 : index
    %c0_146 = arith.constant 0 : index
    %396 = vector.load %arg25[%c0_145, %c0_146] : memref<1x32xf32, #tpu.memory_space<vmem>>, vector<1x32xf32>
    %397 = vector.broadcast %396 : vector<1x32xf32> to vector<64x32xf32>
    %398 = arith.addf %395, %397 : vector<64x32xf32>
    %399 = arith.addf %322, %398 : vector<64x32xf32>
    %400 = arith.truncf %399 : vector<64x32xf32> to vector<64x32xbf16>
    %c0_147 = arith.constant 0 : index
    %c0_148 = arith.constant 0 : index
    %401 = vector.load %arg26[%c0_147, %c0_148] : memref<32x128xbf16, #tpu.memory_space<vmem>>, vector<32x128xbf16>
    %cst_149 = arith.constant dense<0.000000e+00> : vector<64x128xf32>
    %402 = tpu.matmul %400, %401, %cst_149 {dimension_numbers = #tpu.dot_dimension_numbers<[1], [0], [0], [1], [0, 0, 1, 1], [], []>} : vector<64x32xbf16>, vector<32x128xbf16>, vector<64x128xf32> -> vector<64x128xf32>
    %c0_150 = arith.constant 0 : index
    %c0_151 = arith.constant 0 : index
    %403 = vector.load %arg27[%c0_150, %c0_151] : memref<1x128xf32, #tpu.memory_space<vmem>>, vector<1x128xf32>
    %404 = vector.broadcast %403 : vector<1x128xf32> to vector<64x128xf32>
    %405 = arith.addf %402, %404 : vector<64x128xf32>
    %cst_152 = arith.constant 5.000000e-01 : f32
    %406 = vector.broadcast %cst_152 : f32 to vector<64x128xf32>
    %407 = arith.mulf %406, %405 : vector<64x128xf32>
    %cst_153 = arith.constant 0.707106769 : f32
    %408 = vector.broadcast %cst_153 : f32 to vector<64x128xf32>
    %409 = arith.mulf %405, %408 : vector<64x128xf32>
    %410 = math.absf %409 : vector<64x128xf32>
    %cst_154 = arith.constant 0.327591091 : f32
    %411 = vector.broadcast %cst_154 : f32 to vector<64x128xf32>
    %412 = arith.mulf %411, %410 : vector<64x128xf32>
    %cst_155 = arith.constant 1.000000e+00 : f32
    %413 = vector.broadcast %cst_155 : f32 to vector<64x128xf32>
    %414 = arith.addf %413, %412 : vector<64x128xf32>
    %cst_156 = arith.constant 1.000000e+00 : f32
    %415 = vector.broadcast %cst_156 : f32 to vector<64x128xf32>
    %416 = arith.divf %415, %414 : vector<64x128xf32>
    %cst_157 = arith.constant 1.06140542 : f32
    %417 = vector.broadcast %cst_157 : f32 to vector<64x128xf32>
    %418 = arith.mulf %417, %416 : vector<64x128xf32>
    %cst_158 = arith.constant -1.45315206 : f32
    %419 = vector.broadcast %cst_158 : f32 to vector<64x128xf32>
    %420 = arith.addf %418, %419 : vector<64x128xf32>
    %421 = arith.mulf %420, %416 : vector<64x128xf32>
    %cst_159 = arith.constant 1.42141378 : f32
    %422 = vector.broadcast %cst_159 : f32 to vector<64x128xf32>
    %423 = arith.addf %421, %422 : vector<64x128xf32>
    %424 = arith.mulf %423, %416 : vector<64x128xf32>
    %cst_160 = arith.constant -0.284496725 : f32
    %425 = vector.broadcast %cst_160 : f32 to vector<64x128xf32>
    %426 = arith.addf %424, %425 : vector<64x128xf32>
    %427 = arith.mulf %426, %416 : vector<64x128xf32>
    %cst_161 = arith.constant 0.254829586 : f32
    %428 = vector.broadcast %cst_161 : f32 to vector<64x128xf32>
    %429 = arith.addf %427, %428 : vector<64x128xf32>
    %430 = arith.mulf %429, %416 : vector<64x128xf32>
    %cst_162 = arith.constant 0.000000e+00 : f32
    %431 = vector.broadcast %cst_162 : f32 to vector<64x128xf32>
    %432 = arith.subf %431, %410 : vector<64x128xf32>
    %433 = arith.mulf %432, %410 : vector<64x128xf32>
    %434 = math.exp %433 : vector<64x128xf32>
    %435 = arith.mulf %430, %434 : vector<64x128xf32>
    %cst_163 = arith.constant 1.000000e+00 : f32
    %436 = vector.broadcast %cst_163 : f32 to vector<64x128xf32>
    %437 = arith.subf %436, %435 : vector<64x128xf32>
    %cst_164 = arith.constant 0.000000e+00 : f32
    %438 = vector.broadcast %cst_164 : f32 to vector<64x128xf32>
    %439 = arith.cmpf oge, %409, %438 : vector<64x128xf32>
    %cst_165 = arith.constant 0.000000e+00 : f32
    %440 = vector.broadcast %cst_165 : f32 to vector<64x128xf32>
    %441 = arith.subf %440, %437 : vector<64x128xf32>
    %442 = arith.select %439, %437, %441 : vector<64x128xi1>, vector<64x128xf32>
    %cst_166 = arith.constant 1.000000e+00 : f32
    %443 = vector.broadcast %cst_166 : f32 to vector<64x128xf32>
    %444 = arith.addf %443, %442 : vector<64x128xf32>
    %445 = arith.mulf %407, %444 : vector<64x128xf32>
    %446 = arith.truncf %445 : vector<64x128xf32> to vector<64x128xbf16>
    %c0_167 = arith.constant 0 : index
    %c0_168 = arith.constant 0 : index
    %447 = vector.load %arg28[%c0_167, %c0_168] : memref<128x16xbf16, #tpu.memory_space<vmem>>, vector<128x16xbf16>
    %cst_169 = arith.constant dense<0.000000e+00> : vector<64x16xf32>
    %448 = tpu.matmul %446, %447, %cst_169 {dimension_numbers = #tpu.dot_dimension_numbers<[1], [0], [0], [1], [0, 0, 1, 1], [], []>} : vector<64x128xbf16>, vector<128x16xbf16>, vector<64x16xf32> -> vector<64x16xf32>
    %c0_170 = arith.constant 0 : index
    %c0_171 = arith.constant 0 : index
    %449 = vector.load %arg29[%c0_170, %c0_171] : memref<1x16xf32, #tpu.memory_space<vmem>>, vector<1x16xf32>
    %450 = vector.broadcast %449 : vector<1x16xf32> to vector<64x16xf32>
    %451 = arith.addf %448, %450 : vector<64x16xf32>
    %c0_172 = arith.constant 0 : index
    %c0_173 = arith.constant 0 : index
    %c0_174 = arith.constant 0 : index
    %452 = vector.load %arg30[%c0_172, %c0_173, %c0_174] : memref<1x64x16xf32, #tpu.memory_space<vmem>>, vector<1x64x16xf32>
    %453 = vector.shape_cast %452 : vector<1x64x16xf32> to vector<64x16xf32>
    %454 = vector.shape_cast %451 : vector<64x16xf32> to vector<1x64x16xf32>
    tpu.vector_store %arg30[%c0_172, %c0_173, %c0_174], %454 {strides = array<i32>} : memref<1x64x16xf32, #tpu.memory_space<vmem>>, vector<1x64x16xf32>,
    return
  }
  func.func @transform_0(%arg0: i32) -> (i32, i32, i32) {
    %c0_i32 = arith.constant 0 : i32
    %c0_i32_0 = arith.constant 0 : i32
    %c0_i32_1 = arith.constant 0 : i32
    return %arg0, %c0_i32, %c0_i32_0 : i32, i32, i32
  }
  func.func @transform_1(%arg0: i32) -> (i32, i32) {
    %c0_i32 = arith.constant 0 : i32
    %c0_i32_0 = arith.constant 0 : i32
    %c0_i32_1 = arith.constant 0 : i32
    return %c0_i32, %c0_i32_0 : i32, i32
  }
  func.func @transform_2(%arg0: i32) -> (i32, i32) {
    %c0_i32 = arith.constant 0 : i32
    %c0_i32_0 = arith.constant 0 : i32
    %c0_i32_1 = arith.constant 0 : i32
    return %c0_i32, %c0_i32_0 : i32, i32
  }
  func.func @transform_3(%arg0: i32) -> (i32, i32) {
    %c0_i32 = arith.constant 0 : i32
    %c0_i32_0 = arith.constant 0 : i32
    %c0_i32_1 = arith.constant 0 : i32
    return %c0_i32, %c0_i32_0 : i32, i32
  }
  func.func @transform_4(%arg0: i32) -> (i32, i32) {
    %c0_i32 = arith.constant 0 : i32
    %c0_i32_0 = arith.constant 0 : i32
    %c0_i32_1 = arith.constant 0 : i32
    return %c0_i32, %c0_i32_0 : i32, i32
  }
  func.func @transform_5(%arg0: i32) -> (i32, i32) {
    %c0_i32 = arith.constant 0 : i32
    %c0_i32_0 = arith.constant 0 : i32
    %c0_i32_1 = arith.constant 0 : i32
    return %c0_i32, %c0_i32_0 : i32, i32
  }
  func.func @transform_6(%arg0: i32) -> (i32, i32) {
    %c0_i32 = arith.constant 0 : i32
    %c0_i32_0 = arith.constant 0 : i32
    %c0_i32_1 = arith.constant 0 : i32
    return %c0_i32, %c0_i32_0 : i32, i32
  }
  func.func @transform_7(%arg0: i32) -> (i32, i32) {
    %c0_i32 = arith.constant 0 : i32
    %c0_i32_0 = arith.constant 0 : i32
    %c0_i32_1 = arith.constant 0 : i32
    return %c0_i32, %c0_i32_0 : i32, i32
  }
  func.func @transform_8(%arg0: i32) -> (i32, i32) {
    %c0_i32 = arith.constant 0 : i32
    %c0_i32_0 = arith.constant 0 : i32
    %c0_i32_1 = arith.constant 0 : i32
    return %c0_i32, %c0_i32_0 : i32, i32
  }
  func.func @transform_9(%arg0: i32) -> (i32, i32) {
    %c0_i32 = arith.constant 0 : i32
    %c0_i32_0 = arith.constant 0 : i32
    %c0_i32_1 = arith.constant 0 : i32
    return %c0_i32, %c0_i32_0 : i32, i32
  }
  func.func @transform_10(%arg0: i32) -> (i32, i32) {
    %c0_i32 = arith.constant 0 : i32
    %c0_i32_0 = arith.constant 0 : i32
    %c0_i32_1 = arith.constant 0 : i32
    return %c0_i32, %c0_i32_0 : i32, i32
  }
  func.func @transform_11(%arg0: i32) -> (i32, i32) {
    %c0_i32 = arith.constant 0 : i32
    %c0_i32_0 = arith.constant 0 : i32
    %c0_i32_1 = arith.constant 0 : i32
    return %c0_i32, %c0_i32_0 : i32, i32
  }
  func.func @transform_12(%arg0: i32) -> (i32, i32) {
    %c0_i32 = arith.constant 0 : i32
    %c0_i32_0 = arith.constant 0 : i32
    %c0_i32_1 = arith.constant 0 : i32
    return %c0_i32, %c0_i32_0 : i32, i32
  }
  func.func @transform_13(%arg0: i32) -> (i32, i32) {
    %c0_i32 = arith.constant 0 : i32
    %c0_i32_0 = arith.constant 0 : i32
    %c0_i32_1 = arith.constant 0 : i32
    return %c0_i32, %c0_i32_0 : i32, i32
  }
  func.func @transform_14(%arg0: i32) -> (i32, i32) {
    %c0_i32 = arith.constant 0 : i32
    %c0_i32_0 = arith.constant 0 : i32
    %c0_i32_1 = arith.constant 0 : i32
    return %c0_i32, %c0_i32_0 : i32, i32
  }
  func.func @transform_15(%arg0: i32) -> (i32, i32) {
    %c0_i32 = arith.constant 0 : i32
    %c0_i32_0 = arith.constant 0 : i32
    %c0_i32_1 = arith.constant 0 : i32
    return %c0_i32, %c0_i32_0 : i32, i32
  }
  func.func @transform_16(%arg0: i32) -> (i32, i32) {
    %c0_i32 = arith.constant 0 : i32
    %c0_i32_0 = arith.constant 0 : i32
    %c0_i32_1 = arith.constant 0 : i32
    return %c0_i32, %c0_i32_0 : i32, i32
  }
  func.func @transform_17(%arg0: i32) -> (i32, i32) {
    %c0_i32 = arith.constant 0 : i32
    %c0_i32_0 = arith.constant 0 : i32
    %c0_i32_1 = arith.constant 0 : i32
    return %c0_i32, %c0_i32_0 : i32, i32
  }
  func.func @transform_18(%arg0: i32) -> (i32, i32) {
    %c0_i32 = arith.constant 0 : i32
    %c0_i32_0 = arith.constant 0 : i32
    %c0_i32_1 = arith.constant 0 : i32
    return %c0_i32, %c0_i32_0 : i32, i32
  }
  func.func @transform_19(%arg0: i32) -> (i32, i32) {
    %c0_i32 = arith.constant 0 : i32
    %c0_i32_0 = arith.constant 0 : i32
    %c0_i32_1 = arith.constant 0 : i32
    return %c0_i32, %c0_i32_0 : i32, i32
  }
  func.func @transform_20(%arg0: i32) -> (i32, i32) {
    %c0_i32 = arith.constant 0 : i32
    %c0_i32_0 = arith.constant 0 : i32
    %c0_i32_1 = arith.constant 0 : i32
    return %c0_i32, %c0_i32_0 : i32, i32
  }
  func.func @transform_21(%arg0: i32) -> (i32, i32) {
    %c0_i32 = arith.constant 0 : i32
    %c0_i32_0 = arith.constant 0 : i32
    %c0_i32_1 = arith.constant 0 : i32
    return %c0_i32, %c0_i32_0 : i32, i32
  }
  func.func @transform_22(%arg0: i32) -> (i32, i32) {
    %c0_i32 = arith.constant 0 : i32
    %c0_i32_0 = arith.constant 0 : i32
    %c0_i32_1 = arith.constant 0 : i32
    return %c0_i32, %c0_i32_0 : i32, i32
  }
  func.func @transform_23(%arg0: i32) -> (i32, i32) {
    %c0_i32 = arith.constant 0 : i32
    %c0_i32_0 = arith.constant 0 : i32
    %c0_i32_1 = arith.constant 0 : i32
    return %c0_i32, %c0_i32_0 : i32, i32
  }
  func.func @transform_24(%arg0: i32) -> (i32, i32) {
    %c0_i32 = arith.constant 0 : i32
    %c0_i32_0 = arith.constant 0 : i32
    %c0_i32_1 = arith.constant 0 : i32
    return %c0_i32, %c0_i32_0 : i32, i32
  }
  func.func @transform_25(%arg0: i32) -> (i32, i32) {
    %c0_i32 = arith.constant 0 : i32
    %c0_i32_0 = arith.constant 0 : i32
    %c0_i32_1 = arith.constant 0 : i32
    return %c0_i32, %c0_i32_0 : i32, i32
  }
  func.func @transform_26(%arg0: i32) -> (i32, i32) {
    %c0_i32 = arith.constant 0 : i32
    %c0_i32_0 = arith.constant 0 : i32
    %c0_i32_1 = arith.constant 0 : i32
    return %c0_i32, %c0_i32_0 : i32, i32
  }
  func.func @transform_27(%arg0: i32) -> (i32, i32) {
    %c0_i32 = arith.constant 0 : i32
    %c0_i32_0 = arith.constant 0 : i32
    %c0_i32_1 = arith.constant 0 : i32
    return %c0_i32, %c0_i32_0 : i32, i32
  }
  func.func @transform_28(%arg0: i32) -> (i32, i32) {
    %c0_i32 = arith.constant 0 : i32
    %c0_i32_0 = arith.constant 0 : i32
    %c0_i32_1 = arith.constant 0 : i32
    return %c0_i32, %c0_i32_0 : i32, i32
  }
  func.func @transform_29(%arg0: i32) -> (i32, i32, i32) {
    %c0_i32 = arith.constant 0 : i32
    %c0_i32_0 = arith.constant 0 : i32
    %c0_i32_1 = arith.constant 0 : i32
    return %arg0, %c0_i32, %c0_i32_0 : i32, i32, i32
  }
}

</mosaic_0001>

<bundles_post_ra>
// kernel: up_forward.2
= control target key start
LH: loop header
LB: loop body
LE: loop exit
PB: predicated region body
PF: predicated region fallthrough
CT: control target
= control target key end

     0   :  { %9 = vsyncpa [#allocation3], 0  ;;  %s1000_s0 = inlined_call_operand.hbm [shape: f32[2,16,32], index: 0, kind: input, shape index: {}]   ;;  %s1001_s1 = inlined_call_operand.vmem [shape: bf16[32,64], index: 1, kind: input, shape index: {}]   ;;  %s1002_s2 = inlined_call_operand.vmem [shape: f32[1,16], index: 2, kind: input, shape index: {}]   ;;  %s1003_s3 = inlined_call_operand.vmem [shape: f32[1,16], index: 3, kind: input, shape index: {}]   ;;  %s1004_s4 = inlined_call_operand.vmem [shape: f32[2,16,64], index: 4, kind: output, shape index: {}]  }
   0x1   :  { %11 = vsyncpa [#allocation3 + $0x1], 0  ;;  %s757_s15 = smov 0   ;;  %s759_s16 = smov 0  }
   0x2   :  { %s761_s17 = smov 0   ;;  %s763_s18 = smov 0  }
   0x3 LB: > { %s776_s19 = sadd.s32 4294967295, %s719_s18   ;;  %s779_s20 = sadd.s32 1, %s719_s18   ;;  %s719_s18 = sphi %s763_s18, %s1011_s18   ;;  %s715_s17 = sphi %s761_s17, %s1010_s17   ;;  %s711_s16 = sphi %s759_s16, %s1009_s16   ;;  %s707_s15 = sphi %s757_s15, %s1008_s15  }
   0x4   : > { %s21_s21 = ssub.s32 %s719_s18, %s779_s20  ;;  %s24_s22 = sadd.s32 1, %s715_s17 }
   0x5   : > { %p22_p0 = scmp.eq.s32.totalorder %s21_s21, 0  ;;  %p31_p1 = scmp.ne.s32.totalorder %s715_s17, %s711_s16 }
   0x6   : > { %p32_p2 = scmp.eq.s32.totalorder %s719_s18, 0  ;;  %p37_p3 = scmp.ne.s32.totalorder %s711_s16, %s707_s15 }
   0x7   : > { %s789_s23 = scalar_select %p22_p0, %s715_s17, %s24_s22  }
   0x8   : > { %p33_p4 = por %p32_p2, %p31_p1  ;;  %p38_p5 = scmp.eq.s32.totalorder %s776_s19, 0 }
   0x9   : > { %p594_p6 = scmp.lt.s32.totalorder %s719_s18, 2  ;;  %s159_s25 = sand.u32 1, %s715_s17  }
   0xa   : > { %p793_p7 = por %p38_p5, %p37_p3  ;;  %s561_s26 = sshll.u32 %s159_s25, 4 }
   0xb   : > { %s575_s27 = sshll.u32 %s719_s18, 8  ;;  %s163_s5 = scalar_lea.vmem [#allocation2], %s561_s26 }
   0xc   : > { %s802_s30 = scalar_lea.hbm %s1000_s0, %s575_s27  ;;  %s170_s6 = sshll.u32 %s163_s5, 4  ;;  %s804_s6 = int_to_ptr.vmem [resolvable:$true] %s170_s6 }
   0xd   : > { %p806_p8 = pnand %p594_p6, %p33_p4  ;;  %s811_s8 = scalar_lea.sflag [#allocation3], %s159_s25 }
   0xe   : > { %s655_s9 = scalar_lea.hbm %s802_s30, 256  ;;  %s660_s12 = scalar_lea.hbm %s1000_s0, 512 }
   0xf   : > { %p656_p10 = scmp.ne.s32.totalorder %s802_s30, %s655_s9  ;;  %p657_p11 = pneg %p806_p8 }
  0x10   : > { %p661_p0 = scmp.lt.u32.totalorder %s802_s30, %s1000_s0  ;;  %p662_p1 = scmp.lt.u32.totalorder %s660_s12, %s655_s9 }
  0x11   : > { %p658_p12 = pnand %p657_p11, %p656_p10  ;;  %p664_p3 = scmp.lt.u32.totalorder %s655_s9, %s802_s30 }
  0x12   : > { %p663_p2 = por %p662_p1, %p661_p0 }
  0x13   : > { %p659_p13 = pneg %p658_p12 }
  0x14   : > { %p665_p4 = por %p664_p3, %p663_p2 }
  0x16   : > { %p666_p5 = pnand %p665_p4, %p659_p13 }
  0x18   : > { %669 = shalt.err (!%p666_p5)
}
  0x19   : > { %s670_s15 = scalar_lea.vmem %s804_s6, 256  ;;  %s721_s21 = smov [#allocation2]  }
  0x1a   : > { %p671_p6 = scmp.ne.s32.totalorder %s804_s6, %s670_s15  ;;  %s675_s22 = sshll.u32 %s721_s21, 4  ;;  %s676_s22 = int_to_ptr.vmem [resolvable:$false] %s675_s22 }
  0x1b   : > { %s677_s25 = scalar_lea.vmem %s676_s22, 512  ;;  %p678_p9 = scmp.lt.s32.totalorder %s804_s6, %s676_s22 }
  0x1c   : > { %p673_p10 = pnand %p671_p6, %p657_p11  ;;  %p679_p0 = scmp.lt.s32.totalorder %s677_s25, %s670_s15 }
  0x1e   : > { %p674_p12 = pneg %p673_p10  ;;  %p680_p1 = por %p679_p0, %p678_p9 }
  0x20   : > { %p681_p2 = pnand %p680_p1, %p674_p12 }
  0x22   : > { %684 = shalt.err (!%p681_p2)
}
  0x23   : > { %s722_s26 = smov 128   ;;  %s723_s27 = smov 8  }
  0x24   : > { %593 = dma.hbm_to_vmem [thread:$0]  (!%p806_p8), %s802_s30, 256, %s804_s6, %s811_s8, %s722_s26, %s722_s26, %s723_s27  }
  0x25   : > { %p178_p11 = scmp.lt.s32.totalorder %s719_s18, 3  ;;  %p1007_p13 = scmp.ge.s32.totalorder %s719_s18, 1 }
  0x27   : > { %p179_p3 = pnand %p1007_p13, %p178_p11 }
  0x28   : > { %s184_s28 = sand.u32 (!%p179_p3), 1, %s711_s16  }
  0x29   : > { %182 = sbr.rel (%p179_p3) target bundleno = 879 (0x36f), region = 36  ;;  %s565_s29 = sshll.u32 (!%p179_p3), %s184_s28, 4 }
  0x2a   : > { %s185_s5 = scalar_lea.sflag (!%p179_p3), [#allocation3], %s184_s28  ;;  %s188_s9 = scalar_lea.vmem (!%p179_p3), [#allocation2], %s565_s29 }
  0x30   : > { %702 = dma.done.wait (%p793_p7), %s185_s5, 256  }
  0x31   : > { %704 = vsyncadd (%p793_p7), %s185_s5, 4294967040  ;;  %v724_v0 = vmov 0.0   ;;  %vm725_vm0 = vmmov 0   ;;  %v637_v1 = vld [vmem:[%s1001_s1] sm:$0xff]   ;;  %v638_v2 = vld [vmem:[%s1001_s1 + $0x8] sm:$0xff]   ;;  %vm238_vm1 = vcmask 261120  }
  0x32   : > { %580 = vmatprep.subr.bf16.mxu0 %v724_v0  ;;  %584 = vmatprep.mubr.msk.bf16.mxu0 %vm725_vm0, %v724_v0  ;;  %v219_v3 = vld [vmem:[%s188_s9] sm:$0xff]  ;;  %v220_v4 = vld [vmem:[%s188_s9 + $0x8] sm:$0xff]  ;;  %s726_s24 = smov 96   ;;  %s727_s8 = smov 112   ;;  %vm283_vm2 = vcmask 130048   ;;  %vm485_vm3 = vcmask 392192  }
  0x33   : > { %581 = vmatpush3.bf16.msra.mxu0 %v637_v1  ;;  %v221_v5 = vpack.c.bf16 %v220_v4, %v219_v3  ;;  %s728_s10 = smov 80   ;;  %v901_v44 = vld [vmem:[%s1002_s2] ss:$0 sm:$0xff]  ;;  %s729_s13 = smov 16   ;;  %vm488_vm4 = vcmask 523264  }
  0x34   : > { %582 = vmatprep.subr.bf16.mxu0 %v724_v0  ;;  %v910_v47 = vld [vmem:[%s1003_s3] ss:$0 sm:$0xff]  ;;  %s730_s21 = smov 32   ;;  %s731_s22 = smov 48  }
  0x35   : > { %p213_p7 = scmp.lt.s32.totalorder %s776_s19, 1 }
  0x37   : > { %583 = vmatpush3.bf16.msra.mxu0 %v638_v2  ;;  %s1013_s19 = smov (!%p213_p7, %s776_s19), 1 }
  0x38   : > { %s576_s25 = sshll.u32 %s1013_s19, 4 }
  0x39   : > { %s217_s28 = scalar_lea.vmem %s1004_s4, %s576_s25 }
  0x3a   : > { %585 = vmatmul.mubr.msk.bf16.vlgmr.msra.gmra.mrb[0].mxu0 %vm238_vm1, %v221_v5 }
 0x10d   : > { %v854_v6 = vpop.f32.mrb[0].mxu0 }
 0x10e   : > { %381 = vrot.lane.b32.xlu1 %v854_v6, %s726_s24  ;;  %331 = vrot.lane.b32.xlu0 %v854_v6, %s727_s8  ;;  %v586_v7 = vpop.f32.mrb[1].mxu0  ;;  %v284_v22 = vsel %vm283_vm2, %v854_v6, 0.0 }
 0x10f   : > { %v860_v8 = vpop.f32.mrb[2].mxu0 }
 0x110   : > { %v587_v9 = vpop.f32.mrb[3].mxu0  ;;  %v287_v23 = vsel %vm283_vm2, %v860_v8, 0.0 }
 0x112   : > { %383 = vrot.lane.b32.xlu1 %v860_v8, %s726_s24  ;;  %333 = vrot.lane.b32.xlu0 %v860_v8, %s727_s8 }
 0x116   : > { %433 = vrot.lane.b32.xlu1 %v860_v8, %s728_s10  ;;  %431 = vrot.lane.b32.xlu0 %v854_v6, %s728_s10 }
 0x180   : > { %v382_v10 = vpop.permute.xlu1 %381  ;;  %v332_v11 = vpop.permute.xlu0 %331 }
 0x181   : > { %v337_v12 = vsel %vm283_vm2, %v332_v11, 0.0  ;;  %v387_v15 = vsel %vm283_vm2, %v382_v10, 0.0 }
 0x182   : > { %338 = vadd.xlane.f32.xlu0 %v337_v12 }
 0x184   : > { %v384_v13 = vpop.permute.xlu1 %383  ;;  %v334_v14 = vpop.permute.xlu0 %333 }
 0x185   : > { %v340_v16 = vsel %vm283_vm2, %v334_v14, 0.0  ;;  %v390_v18 = vsel %vm283_vm2, %v384_v13, 0.0 }
 0x186   : > { %388 = vadd.xlane.f32.xlu0 %v387_v15  ;;  %341 = vadd.xlane.f32.xlu1 %v340_v16 }
 0x188   : > { %v432_v17 = vpop.permute.xlu0 %431  ;;  %v434_v20 = vpop.permute.xlu1 %433 }
 0x189   : > { %v437_v19 = vsel %vm283_vm2, %v432_v17, 0.0  ;;  %v440_v21 = vsel %vm283_vm2, %v434_v20, 0.0 }
 0x18a   : > { %391 = vadd.xlane.f32.xlu0 %v390_v18  ;;  %438 = vadd.xlane.f32.xlu1 %v437_v19 }
 0x18e   : > { %441 = vadd.xlane.f32.xlu0 %v440_v21  ;;  %285 = vadd.xlane.f32.xlu1 %v284_v22 }
 0x192   : > { %288 = vadd.xlane.f32.xlu0 %v287_v23 }
 0x20f   : > { %v339_v24 = vpop.xlane.xlu0 %338 }
 0x210   : > { %v343_v40 = vmul.f32 0.0625, %v339_v24 }
 0x212   : > { %v893_v41 = vsub.f32 %v854_v6, %v343_v40 }
 0x213   : > { %v342_v25 = vpop.xlane.xlu1 %341  ;;  %v389_v26 = vpop.xlane.xlu0 %388 }
 0x214   : > { %v347_v42 = vmul.f32 %v893_v41, %v893_v41  ;;  %v393_v43 = vmul.f32 0.0625, %v389_v26  ;;  %v344_v48 = vmul.f32 0.0625, %v342_v25 }
 0x216   : > { %v904_v45 = vsub.f32 %v854_v6, %v393_v43  ;;  %v920_v51 = vsub.f32 %v860_v8, %v344_v48 }
 0x217   : > { %v439_v27 = vpop.xlane.xlu1 %438  ;;  %v392_v28 = vpop.xlane.xlu0 %391 }
 0x218   : > { %v443_v46 = vmul.f32 0.0625, %v439_v27  ;;  %v397_v50 = vmul.f32 %v904_v45, %v904_v45  ;;  %v394_v52 = vmul.f32 0.0625, %v392_v28  ;;  %v348_v56 = vmul.f32 %v920_v51, %v920_v51 }
 0x21a   : > { %v913_v49 = vsub.f32 %v854_v6, %v443_v46  ;;  %v926_v54 = vsub.f32 %v860_v8, %v394_v52 }
 0x21b   : > { %v286_v29 = vpop.xlane.xlu1 %285  ;;  %v442_v30 = vpop.xlane.xlu0 %441 }
 0x21c   : > { %v291_v31 = vmul.f32 0.0625, %v286_v29  ;;  %v447_v53 = vmul.f32 %v913_v49, %v913_v49  ;;  %v444_v55 = vmul.f32 0.0625, %v442_v30  ;;  %v398_v58 = vmul.f32 %v926_v54, %v926_v54 }
 0x21e   : > { %v881_v32 = vsub.f32 %v854_v6, %v291_v31  ;;  %v932_v57 = vsub.f32 %v860_v8, %v444_v55 }
 0x21f   : > { %v289_v33 = vpop.xlane.xlu0 %288 }
 0x220   : > { %v292_v34 = vmul.f32 0.0625, %v289_v33  ;;  %v295_v35 = vmul.f32 %v881_v32, %v881_v32  ;;  %v448_v59 = vmul.f32 %v932_v57, %v932_v57 }
 0x222   : > { %v886_v36 = vsub.f32 %v860_v8, %v292_v34  ;;  %v297_v37 = vsel %vm283_vm2, %v295_v35, 0.0 }
 0x223   : > { %298 = vadd.xlane.f32.xlu1 %v297_v37 }
 0x224   : > { %v296_v38 = vmul.f32 %v886_v36, %v886_v36 }
 0x226   : > { %v300_v39 = vsel %vm283_vm2, %v296_v38, 0.0 }
 0x227   : > { %301 = vadd.xlane.f32.xlu0 %v300_v39 }
 0x234   : > { %351 = vrot.lane.b32.xlu1 %v347_v42, %s727_s8 }
 0x238   : > { %371 = vrot.lane.b32.xlu1 %v901_v44, %s729_s13 }
 0x23c   : > { %376 = vrot.lane.b32.xlu1 %v910_v47, %s729_s13 }
 0x23d   : > { %401 = vrot.lane.b32.xlu0 %v397_v50, %s726_s24 }
 0x241   : > { %451 = vrot.lane.b32.xlu0 %v447_v53, %s728_s10 }
 0x245   : > { %353 = vrot.lane.b32.xlu0 %v348_v56, %s727_s8 }
 0x249   : > { %403 = vrot.lane.b32.xlu0 %v398_v58, %s726_s24 }
 0x24d   : > { %453 = vrot.lane.b32.xlu0 %v448_v59, %s728_s10 }
 0x251   : > { %421 = vrot.lane.b32.xlu0 %v901_v44, %s730_s21 }
 0x2b0   : > { %v299_v60 = vpop.xlane.xlu1 %298 }
 0x2b1   : > { %v303_v12 = vmul.f32 0.0625, %v299_v60 }
 0x2b3   : > { %v305_v16 = vadd.f32 1e-05, %v303_v12 }
 0x2b4   : > { %v352_v61 = vpop.permute.xlu1 %351  ;;  %v302_v62 = vpop.xlane.xlu0 %301 }
 0x2b5   : > { %v357_v63 = vsel %vm283_vm2, %v352_v61, 0.0  ;;  %v304_v21 = vmul.f32 0.0625, %v302_v62 }
 0x2b6   : > { %358 = vadd.xlane.f32.xlu1 %v357_v63 }
 0x2b7   : > { %v306_v25 = vadd.f32 1e-05, %v304_v21 }
 0x2b8   : > { %v402_v0 = vpop.permute.xlu0 %401  ;;  %v950_v10 = vpop.permute.xlu1 %371 }
 0x2b9   : > { %v407_v1 = vsel %vm283_vm2, %v402_v0, 0.0 }
 0x2ba   : > { %408 = vadd.xlane.f32.xlu0 %v407_v1 }
 0x2bc   : > { %v452_v2 = vpop.permute.xlu0 %451  ;;  %v952_v11 = vpop.permute.xlu1 %376 }
 0x2bd   : > { %v457_v3 = vsel %vm283_vm2, %v452_v2, 0.0 }
 0x2be   : > { %458 = vadd.xlane.f32.xlu0 %v457_v3 }
 0x2c0   : > { %v354_v4 = vpop.permute.xlu0 %353 }
 0x2c1   : > { %v360_v5 = vsel %vm283_vm2, %v354_v4, 0.0 }
 0x2c2   : > { %361 = vadd.xlane.f32.xlu0 %v360_v5 }
 0x2c4   : > { %v404_v6 = vpop.permute.xlu0 %403 }
 0x2c5   : > { %v410_v7 = vsel %vm283_vm2, %v404_v6, 0.0 }
 0x2c6   : > { %411 = vadd.xlane.f32.xlu1 %v410_v7 }
 0x2c8   : > { %v454_v8 = vpop.permute.xlu0 %453 }
 0x2c9   : > { %v460_v9 = vsel %vm283_vm2, %v454_v8, 0.0 }
 0x2ca   : > { %461 = vadd.xlane.f32.xlu0 %v460_v9 }
 0x2cc   : > { %v954_v13 = vpop.permute.xlu0 %421 }
 0x2d7   : > { %476 = vrot.lane.b32.xlu1 %v910_v47, %s731_s22 }
 0x2e0   : > { %471 = vrot.lane.b32.xlu0 %v901_v44, %s731_s22 }
 0x2e4   : > { %426 = vrot.lane.b32.xlu0 %v910_v47, %s730_s21 }
 0x343   : > { %v359_v14 = vpop.xlane.xlu1 %358 }
 0x344   : > { %v363_v15 = vmul.f32 0.0625, %v359_v14 }
 0x346   : > { %v365_v17 = vadd.f32 1e-05, %v363_v15 }
 0x347   : > { %v409_v18 = vpop.xlane.xlu0 %408 }
 0x348   : > { %639 = vrsqrt.f32 %v365_v17  ;;  %v413_v19 = vmul.f32 0.0625, %v409_v18 }
 0x349   : > { %641 = vrsqrt.f32 %v305_v16 }
 0x34a   : > { %v415_v20 = vadd.f32 1e-05, %v413_v19 }
 0x34b   : > { %v459_v22 = vpop.xlane.xlu0 %458 }
 0x34c   : > { %v463_v23 = vmul.f32 0.0625, %v459_v22  ;;  %643 = vrsqrt.f32 %v415_v20 }
 0x34e   : > { %v465_v24 = vadd.f32 1e-05, %v463_v23 }
 0x34f   : > { %v362_v26 = vpop.xlane.xlu0 %361 }
 0x350   : > { %645 = vrsqrt.f32 %v465_v24  ;;  %v364_v27 = vmul.f32 0.0625, %v362_v26 }
 0x351   : > { %647 = vrsqrt.f32 %v306_v25 }
 0x352   : > { %v640_v28 = vpop.eup %639  ;;  %v366_v29 = vadd.f32 1e-05, %v364_v27 }
 0x353   : > { %v412_v30 = vpop.xlane.xlu1 %411  ;;  %v642_v31 = vpop.eup %641  ;;  %v369_v34 = vmul.f32 %v640_v28, %v893_v41 }
 0x354   : > { %649 = vrsqrt.f32 %v366_v29  ;;  %v414_v33 = vmul.f32 0.0625, %v412_v30  ;;  %v309_v38 = vmul.f32 %v642_v31, %v881_v32 }
 0x355   : > { %v374_v42 = vmul.f32 %v950_v10, %v369_v34 }
 0x356   : > { %v416_v35 = vadd.f32 1e-05, %v414_v33  ;;  %v644_v37 = vpop.eup %643  ;;  %v318_v41 = vmul.f32 %v901_v44, %v309_v38 }
 0x357   : > { %v462_v39 = vpop.xlane.xlu0 %461  ;;  %v419_v48 = vmul.f32 %v644_v37, %v904_v45  ;;  %v379_v32 = vadd.f32 %v952_v11, %v374_v42  ;;  %v477_v58 = vpop.permute.xlu1 %476 }
 0x358   : > { %651 = vrsqrt.f32 %v416_v35  ;;  %v464_v40 = vmul.f32 0.0625, %v462_v39  ;;  %v327_v61 = vadd.f32 %v910_v47, %v318_v41 }
 0x359   : > { %v424_v59 = vmul.f32 %v954_v13, %v419_v48 }
 0x35a   : > { %v646_v43 = vpop.eup %645  ;;  %v466_v46 = vadd.f32 1e-05, %v464_v40  ;;  %v481_v0 = vsel %vm283_vm2, %v327_v61, %v379_v32 }
 0x35b   : > { %v469_v50 = vmul.f32 %v646_v43, %v913_v49  ;;  %v472_v52 = vpop.permute.xlu0 %471  ;;  %v648_v53 = vpop.eup %647 }
 0x35c   : > { %653 = vrsqrt.f32 %v466_v46  ;;  %v310_v62 = vmul.f32 %v648_v53, %v886_v36 }
 0x35d   : > { %v474_v55 = vmul.f32 %v472_v52, %v469_v50 }
 0x35e   : > { %v650_v56 = vpop.eup %649  ;;  %v319_v36 = vmul.f32 %v901_v44, %v310_v62 }
 0x35f   : > { %v370_v60 = vmul.f32 %v650_v56, %v920_v51  ;;  %v427_v45 = vpop.permute.xlu0 %426  ;;  %v479_v63 = vadd.f32 %v477_v58, %v474_v55 }
 0x360   : > { %v429_v49 = vadd.f32 %v427_v45, %v424_v59  ;;  %v328_v14 = vadd.f32 %v910_v47, %v319_v36 }
 0x361   : > { %v375_v51 = vmul.f32 %v950_v10, %v370_v60 }
 0x362   : > { %v652_v1 = vpop.eup %651  ;;  %v483_v2 = vsel %vm238_vm1, %v481_v0, %v429_v49 }
 0x363   : > { %v420_v3 = vmul.f32 %v652_v1, %v926_v54  ;;  %v486_v4 = vsel %vm485_vm3, %v483_v2, %v479_v63  ;;  %v380_v8 = vadd.f32 %v952_v11, %v375_v51 }
 0x364   : > { %489 = vst.msk [vmem:[%s217_s28] sm:$0xff] %vm488_vm4, %v486_v4 }
 0x365   : > { %v425_v5 = vmul.f32 %v954_v13, %v420_v3  ;;  %v482_v54 = vsel %vm283_vm2, %v328_v14, %v380_v8 }
 0x366   : > { %v654_v6 = vpop.eup %653 }
 0x367   : > { %v470_v7 = vmul.f32 %v654_v6, %v932_v57  ;;  %v430_v9 = vadd.f32 %v427_v45, %v425_v5 }
 0x369   : > { %v475_v12 = vmul.f32 %v472_v52, %v470_v7  ;;  %v484_v15 = vsel %vm238_vm1, %v482_v54, %v430_v9 }
 0x36b   : > { %v480_v10 = vadd.f32 %v477_v58, %v475_v12 }
 0x36d   : > { %v487_v16 = vsel %vm485_vm3, %v484_v15, %v480_v10 }
 0x36e   : > { %490 = vst.msk [vmem:[%s217_s28 + $0x8] sm:$0xff] %vm488_vm4, %v487_v16 }
 0x36f PF: > { %p14_p8 = scmp.ge.s32.totalorder %s779_s20, 4   ;;  %s1008_s15 = smov %s711_s16 }
 0x370   : > { %s1009_s16 = smov %s715_s17  ;;  %s1010_s17 = smov %s789_s23 }
 0x371   : > { %s1011_s18 = smov %s779_s20  ;;  %16 = sbr.rel (!%p14_p8) target bundleno = 3 (0x3), region = 76 }
 0x378   :  { %512 = vsyncpa [#allocation3], 1 }
 0x379   :  { %514 = vsyncpa [#allocation3 + $0x1], 1 }

// kernel: up_forward.3
= control target key start
LH: loop header
LB: loop body
LE: loop exit
PB: predicated region body
PF: predicated region fallthrough
CT: control target
= control target key end

     0   :  { %s7494_s6 = smov 1   ;;  %s7495_s10 = smov 2   ;;  %s9679_s0 = inlined_call_operand.smem [shape: u32[30], index: -1, kind: input, shape index: {}] }
   0x1   :  { %s7547_s5 = sld [smem:[%s9679_s0]]   ;;  %s7496_s14 = smov 3  }
   0x2   :  { %s7552_s9 = sld [smem:[%s9679_s0 + %s7494_s6]]   ;;  %s7497_s18 = smov 4  }
   0x3   :  { %s7557_s13 = sld [smem:[%s9679_s0 + %s7495_s10]]   ;;  %s7498_s22 = smov 5  }
   0x4   :  { %s7562_s17 = sld [smem:[%s9679_s0 + %s7496_s14]]   ;;  %s7499_s26 = smov 6  }
   0x5   :  { %s7567_s21 = sld [smem:[%s9679_s0 + %s7497_s18]]   ;;  %s7500_s30 = smov 7  }
   0x6   :  { %s7572_s25 = sld [smem:[%s9679_s0 + %s7498_s22]]   ;;  %s7501_s4 = smov 8  }
   0x7   :  { %9712 = sst [smem:[#allocation5_spill]] %s7547_s5  ;;  %s7502_s10 = smov 9  }
   0x8   :  { %9713 = sst [smem:[#allocation6_spill]] %s7552_s9  ;;  %s7503_s15 = smov 10  }
   0x9   :  { %9714 = sst [smem:[#allocation7_spill]] %s7557_s13  ;;  %s7504_s20 = smov 11  }
   0xa   :  { %s7577_s29 = sld [smem:[%s9679_s0 + %s7499_s26]]   ;;  %s7505_s26 = smov 12  }
   0xb   :  { %s7582_s3 = sld [smem:[%s9679_s0 + %s7500_s30]]   ;;  %s7506_s1 = smov 13  }
   0xc   :  { %s7587_s8 = sld [smem:[%s9679_s0 + %s7501_s4]]   ;;  %s7507_s7 = smov 14  }
   0xd   :  { %s7592_s14 = sld [smem:[%s9679_s0 + %s7502_s10]]   ;;  %s7509_s22 = smov 16  }
   0xe   :  { %s7597_s19 = sld [smem:[%s9679_s0 + %s7503_s15]]   ;;  %s7508_s15 = smov 15  }
   0xf   :  { %s7602_s24 = sld [smem:[%s9679_s0 + %s7504_s20]]   ;;  %s7510_s28 = smov 17  }
  0x10   :  { %s7607_s30 = sld [smem:[%s9679_s0 + %s7505_s26]]  }
  0x11   :  { %9715 = sst [smem:[#allocation8_spill]] %s7582_s3 }
  0x12   :  { %9716 = sst [smem:[#allocation9_spill]] %s7587_s8 }
  0x13   :  { %s7612_s6 = sld [smem:[%s9679_s0 + %s7506_s1]]  }
  0x14   :  { %s7617_s12 = sld [smem:[%s9679_s0 + %s7507_s7]]   ;;  %s7511_s7 = smov 18  }
  0x15   :  { %s7622_s20 = sld [smem:[%s9679_s0 + %s7508_s15]]   ;;  %s7512_s15 = smov 19  }
  0x16   :  { %s7627_s27 = sld [smem:[%s9679_s0 + %s7509_s22]]   ;;  %s7513_s22 = smov 20  }
  0x17   :  { %s7632_s4 = sld [smem:[%s9679_s0 + %s7510_s28]]   ;;  %s7514_s28 = smov 21  }
  0x19   :  { %9717 = sst [smem:[#allocation10_spill]] %s7612_s6 }
  0x1a   :  { %9718 = sst [smem:[#allocation11_spill]] %s7617_s12 }
  0x1b   :  { %s7637_s12 = sld [smem:[%s9679_s0 + %s7511_s7]]   ;;  %s7515_s7 = smov 22  }
  0x1c   :  { %9719 = sst [smem:[#allocation12_spill]] %s7627_s27 }
  0x1d   :  { %9720 = sst [smem:[#allocation13_spill]] %s7632_s4 }
  0x1e   :  { %s7642_s6 = sld [smem:[%s9679_s0 + %s7512_s15]]   ;;  %s7516_s15 = smov 23  }
  0x1f   :  { %s7647_s27 = sld [smem:[%s9679_s0 + %s7513_s22]]   ;;  %s7517_s22 = smov 24  }
  0x20   :  { %s7652_s4 = sld [smem:[%s9679_s0 + %s7514_s28]]   ;;  %s7518_s28 = smov 25  }
  0x21   :  { %9721 = sst [smem:[#allocation14_spill]] %s7637_s12 }
  0x22   :  { %s7657_s12 = sld [smem:[%s9679_s0 + %s7515_s7]]   ;;  %s7519_s7 = smov 26  }
  0x24   :  { %9722 = sst [smem:[#allocation15_spill]] %s7642_s6 }
  0x25   :  { %9723 = sst [smem:[#allocation16_spill]] %s7647_s27 }
  0x26   :  { %9724 = sst [smem:[#allocation17_spill]] %s7652_s4 }
  0x27   :  { %s7662_s6 = sld [smem:[%s9679_s0 + %s7516_s15]]   ;;  %s7520_s15 = smov 27  }
  0x28   :  { %9725 = sst [smem:[#allocation18_spill]] %s7657_s12 }
  0x29   :  { %s7667_s27 = sld [smem:[%s9679_s0 + %s7517_s22]]   ;;  %s7521_s22 = smov 28  }
  0x2a   :  { %s7672_s4 = sld [smem:[%s9679_s0 + %s7518_s28]]   ;;  %s7522_s28 = smov 29  }
  0x2b   :  { %s7677_s12 = sld [smem:[%s9679_s0 + %s7519_s7]]  }
  0x2d   :  { %9726 = sst [smem:[#allocation19_spill]] %s7662_s6 }
  0x2e   :  { %s7682_s6 = sld [smem:[%s9679_s0 + %s7520_s15]]  }
  0x2f   :  { %9727 = sst [smem:[#allocation20_spill]] %s7667_s27 }
  0x30   :  { %9728 = sst [smem:[#allocation21_spill]] %s7672_s4 }
  0x31   :  { %9729 = sst [smem:[#allocation22_spill]] %s7677_s12 }
  0x32   :  { %s7687_s27 = sld [smem:[%s9679_s0 + %s7521_s22]]  }
  0x33   :  { %s7692_s4 = sld [smem:[%s9679_s0 + %s7522_s28]]  }
  0x34   :  { %9730 = sst [smem:[#allocation23_spill]] %s7682_s6 }
  0x35   :  { %64 = vsyncpa [#allocation3], 0 }
  0x36   :  { %66 = vsyncpa [#allocation3 + $0x1], 0  ;;  %s7694_s7 = smov 0   ;;  %s7696_s10 = smov 0  }
  0x37   :  { %s7698_s11 = smov 0   ;;  %s7700_s15 = smov 0  }
  0x38 LB: > { %s9731_s6 = sld [smem:[#allocation23_spill]]  ;;  %s7715_s0 = sadd.s32 4294967295, %s7492_s15   ;;  %s7480_s7 = sphi %s7694_s7, %s9771_s7   ;;  %s7492_s15 = sphi %s7700_s15, %s9774_s15   ;;  %s7488_s11 = sphi %s7698_s11, %s9773_s11   ;;  %s7484_s10 = sphi %s7696_s10, %s9772_s10  }
  0x39   : > { %s5953_s16 = sadd.s32 4294967294, %s7492_s15   ;;  %s7719_s18 = sadd.s32 1, %s7492_s15  }
  0x3a   : > { %s693_s22 = sadd.s32 1, %s7488_s11  ;;  %s690_s23 = ssub.s32 %s7492_s15, %s7719_s18 }
  0x3b   : > { %p703_p0 = scmp.ne.s32.totalorder %s7488_s11, %s7484_s10  ;;  %p691_p1 = scmp.eq.s32.totalorder %s690_s23, 0 }
  0x3c   : > { %p704_p2 = scmp.eq.s32.totalorder %s7715_s0, 1  ;;  %p709_p3 = scmp.ne.s32.totalorder %s7484_s10, %s7480_s7 }
  0x3d   : > { %p710_p4 = scmp.eq.s32.totalorder %s5953_s16, 1  ;;  %p5956_p7 = scmp.ge.s32.totalorder %s7492_s15, 1 }
  0x3e   : > { %s7730_s26 = scalar_select %p691_p1, %s7488_s11, %s693_s22  }
  0x3f   : > { %p7732_p5 = por %p704_p2, %p703_p0  ;;  %p7736_p6 = por %p710_p4, %p709_p3 }
  0x40   : > { %p820_p8 = scmp.lt.s32.totalorder %s7492_s15, 3 }
  0x42   : > { %p821_p9 = pnand %p5956_p7, %p820_p8 }
  0x43   : > { %s9734_s5 = sld [smem:[#allocation5_spill]] (!%p821_p9)  ;;  %p896_p10 = scmp.lt.s32.totalorder (!%p821_p9), %s7715_s0, 1  ;;  %vm910_vm0 = vcmask (!%p821_p9), 261120   ;;  %v6968_v56 = vld [vmem:[%s7562_s17] sm:$0xff] (!%p821_p9)   ;;  %v6969_v57 = vld [vmem:[%s7562_s17 + $0x8] sm:$0xff] (!%p821_p9)   ;;  %vm1178_vm1 = vcmask (!%p821_p9), 64512  }
  0x44   : > { %824 = sbr.rel (%p821_p9) target bundleno = 9111 (0x2397), region = 136  ;;  %6321 = vmatprep.subr.bf16.mxu0 (!%p821_p9), %v6968_v56  ;;  %s9735_s9 = sld [smem:[#allocation6_spill]] (!%p821_p9)  ;;  %vm1268_vm2 = vcmask (!%p821_p9), 523264   ;;  %vm2416_vm3 = vcmask (!%p821_p9), 130048   ;;  %vm2425_vm4 = vcmask (!%p821_p9), 195584  }
  0x45   : > { %6322 = vmatpush3.bf16.msra.mxu0 (!%p821_p9), %v6968_v56  ;;  %s9736_s13 = sld [smem:[#allocation7_spill]] (!%p821_p9)  ;;  %s9686_s23 = smov (!%p821_p9), 96  }
  0x46   : > { %6323 = vmatprep.subr.bf16.mxu0 (!%p821_p9), %v6969_v57  ;;  %s9737_s3 = sld [smem:[#allocation8_spill]] (!%p821_p9)  ;;  %s9738_s8 = sld [smem:[#allocation9_spill]] (!%p821_p9) }
  0x47   : > { %s9768_s12 = sld [smem:[#allocation22_spill]] (!%p821_p9) }
  0x49   : > { %6324 = vmatpush3.bf16.msra.mxu0 (!%p821_p9), %v6969_v57 }
  0x4b   : > { %s897_s2 = scalar_select %p896_p10, %s7715_s0, 1 }
  0x4d   : > { %s6113_s16 = sshll.u32 %s897_s2, 6  ;;  %s9684_s2 = smov 64  }
  0x4e   : > { %s7745_s22 = scalar_lea.vmem %s9734_s5, %s6113_s16  ;;  %s9688_s16 = smov 88  }
  0x4f   : > { %v902_v0 = vld [vmem:[%s7745_s22] sm:$0xff]  ;;  %v904_v1 = vld [vmem:[%s7745_s22 + $0x10] sm:$0xff]  ;;  %v903_v2 = vld [vmem:[%s7745_s22 + $0x8] sm:$0xff] }
  0x50   : > { %v911_v3 = vsel %vm910_vm0, %v902_v0, 0.0  ;;  %v917_v4 = vsel %vm910_vm0, %v904_v1, 0.0  ;;  %v905_v5 = vld [vmem:[%s7745_s22 + $0x18] sm:$0xff]  ;;  %v906_v6 = vld [vmem:[%s7745_s22 + $0x20] sm:$0xff]  ;;  %v907_v7 = vld [vmem:[%s7745_s22 + $0x28] sm:$0xff]  ;;  %v914_v8 = vsel %vm910_vm0, %v903_v2, 0.0 }
  0x51   : > { %912 = vadd.xlane.f32.xlu0 %v911_v3  ;;  %918 = vadd.xlane.f32.xlu1 %v917_v4  ;;  %v920_v9 = vsel %vm910_vm0, %v905_v5, 0.0  ;;  %v923_v10 = vsel %vm910_vm0, %v906_v6, 0.0  ;;  %v926_v11 = vsel %vm910_vm0, %v907_v7, 0.0  ;;  %v908_v12 = vld [vmem:[%s7745_s22 + $0x30] sm:$0xff]  ;;  %v909_v13 = vld [vmem:[%s7745_s22 + $0x38] sm:$0xff] }
  0x52   : > { %v929_v14 = vsel %vm910_vm0, %v908_v12, 0.0  ;;  %v932_v15 = vsel %vm910_vm0, %v909_v13, 0.0 }
  0x55   : > { %915 = vadd.xlane.f32.xlu0 %v914_v8  ;;  %921 = vadd.xlane.f32.xlu1 %v920_v9 }
  0x59   : > { %924 = vadd.xlane.f32.xlu0 %v923_v10  ;;  %927 = vadd.xlane.f32.xlu1 %v926_v11 }
  0x5d   : > { %930 = vadd.xlane.f32.xlu0 %v929_v14  ;;  %933 = vadd.xlane.f32.xlu1 %v932_v15 }
  0xde   : > { %v913_v16 = vpop.xlane.xlu0 %912  ;;  %v919_v17 = vpop.xlane.xlu1 %918 }
  0xdf   : > { %v936_v18 = vmul.f32 0.03125, %v913_v16  ;;  %v938_v19 = vmul.f32 0.03125, %v919_v17 }
  0xe1   : > { %v7763_v20 = vsub.f32 %v902_v0, %v936_v18  ;;  %v7765_v21 = vsub.f32 %v904_v1, %v938_v19  ;;  %v5960_v19 = vld [vmem:[%s9735_s9] ss:$0 sm:$0xff] }
  0xe2   : > { %v916_v22 = vpop.xlane.xlu0 %915  ;;  %v922_v23 = vpop.xlane.xlu1 %921 }
  0xe3   : > { %v937_v24 = vmul.f32 0.03125, %v916_v22  ;;  %v939_v25 = vmul.f32 0.03125, %v922_v23  ;;  %v952_v26 = vmul.f32 %v7763_v20, %v7763_v20  ;;  %v954_v27 = vmul.f32 %v7765_v21, %v7765_v21 }
  0xe5   : > { %v7771_v28 = vsub.f32 %v903_v2, %v937_v24  ;;  %v7773_v29 = vsub.f32 %v905_v5, %v939_v25  ;;  %v960_v30 = vsel %vm910_vm0, %v952_v26, 0.0  ;;  %v966_v33 = vsel %vm910_vm0, %v954_v27, 0.0  ;;  %v5961_v27 = vld [vmem:[%s9736_s13] ss:$0 sm:$0xff] }
  0xe6   : > { %961 = vadd.xlane.f32.xlu0 %v960_v30  ;;  %v925_v31 = vpop.xlane.xlu0 %924  ;;  %v928_v32 = vpop.xlane.xlu1 %927 }
  0xe7   : > { %v940_v34 = vmul.f32 0.03125, %v925_v31  ;;  %v941_v35 = vmul.f32 0.03125, %v928_v32  ;;  %v953_v36 = vmul.f32 %v7771_v28, %v7771_v28  ;;  %v955_v37 = vmul.f32 %v7773_v29, %v7773_v29 }
  0xe9   : > { %v7781_v38 = vsub.f32 %v906_v6, %v940_v34  ;;  %v7783_v39 = vsub.f32 %v907_v7, %v941_v35  ;;  %v963_v40 = vsel %vm910_vm0, %v953_v36, 0.0  ;;  %v969_v43 = vsel %vm910_vm0, %v955_v37, 0.0 }
  0xea   : > { %967 = vadd.xlane.f32.xlu0 %v966_v33  ;;  %964 = vadd.xlane.f32.xlu1 %v963_v40  ;;  %v931_v41 = vpop.xlane.xlu0 %930  ;;  %v934_v42 = vpop.xlane.xlu1 %933 }
  0xeb   : > { %v942_v44 = vmul.f32 0.03125, %v931_v41  ;;  %v943_v45 = vmul.f32 0.03125, %v934_v42  ;;  %v956_v46 = vmul.f32 %v7781_v38, %v7781_v38  ;;  %v957_v47 = vmul.f32 %v7783_v39, %v7783_v39 }
  0xed   : > { %v7791_v48 = vsub.f32 %v908_v12, %v942_v44  ;;  %v7793_v49 = vsub.f32 %v909_v13, %v943_v45  ;;  %v972_v50 = vsel %vm910_vm0, %v956_v46, 0.0  ;;  %v975_v51 = vsel %vm910_vm0, %v957_v47, 0.0 }
  0xee   : > { %970 = vadd.xlane.f32.xlu1 %v969_v43  ;;  %973 = vadd.xlane.f32.xlu0 %v972_v50 }
  0xef   : > { %v958_v52 = vmul.f32 %v7791_v48, %v7791_v48  ;;  %v959_v53 = vmul.f32 %v7793_v49, %v7793_v49 }
  0xf1   : > { %v978_v54 = vsel %vm910_vm0, %v958_v52, 0.0  ;;  %v981_v55 = vsel %vm910_vm0, %v959_v53, 0.0 }
  0xf2   : > { %976 = vadd.xlane.f32.xlu1 %v975_v51  ;;  %979 = vadd.xlane.f32.xlu0 %v978_v54 }
  0xf6   : > { %982 = vadd.xlane.f32.xlu1 %v981_v55 }
 0x173   : > { %v962_v58 = vpop.xlane.xlu0 %961 }
 0x174   : > { %v984_v59 = vmul.f32 0.03125, %v962_v58 }
 0x176   : > { %v992_v60 = vadd.f32 1e-06, %v984_v59 }
 0x177   : > { %v965_v61 = vpop.xlane.xlu1 %964  ;;  %v968_v62 = vpop.xlane.xlu0 %967 }
 0x178   : > { %7006 = vrsqrt.f32 %v992_v60  ;;  %v985_v63 = vmul.f32 0.03125, %v965_v61  ;;  %v986_v0 = vmul.f32 0.03125, %v968_v62 }
 0x17a   : > { %v993_v1 = vadd.f32 1e-06, %v985_v63  ;;  %v994_v2 = vadd.f32 1e-06, %v986_v0 }
 0x17b   : > { %v971_v3 = vpop.xlane.xlu1 %970  ;;  %v974_v4 = vpop.xlane.xlu0 %973 }
 0x17c   : > { %7008 = vrsqrt.f32 %v993_v1  ;;  %v987_v5 = vmul.f32 0.03125, %v971_v3  ;;  %v988_v6 = vmul.f32 0.03125, %v974_v4 }
 0x17d   : > { %7010 = vrsqrt.f32 %v994_v2 }
 0x17e   : > { %v995_v7 = vadd.f32 1e-06, %v987_v5  ;;  %v996_v8 = vadd.f32 1e-06, %v988_v6 }
 0x17f   : > { %v977_v9 = vpop.xlane.xlu1 %976  ;;  %v980_v10 = vpop.xlane.xlu0 %979 }
 0x180   : > { %7012 = vrsqrt.f32 %v995_v7  ;;  %v989_v11 = vmul.f32 0.03125, %v977_v9  ;;  %v990_v12 = vmul.f32 0.03125, %v980_v10 }
 0x181   : > { %7014 = vrsqrt.f32 %v996_v8 }
 0x182   : > { %v7007_v13 = vpop.eup %7006  ;;  %v997_v14 = vadd.f32 1e-06, %v989_v11  ;;  %v998_v15 = vadd.f32 1e-06, %v990_v12 }
 0x183   : > { %v983_v16 = vpop.xlane.xlu1 %982  ;;  %v1008_v17 = vmul.f32 %v7007_v13, %v7763_v20 }
 0x184   : > { %7016 = vrsqrt.f32 %v997_v14  ;;  %v991_v18 = vmul.f32 0.03125, %v983_v16 }
 0x185   : > { %7018 = vrsqrt.f32 %v998_v15  ;;  %v1023_v26 = vmul.f32 %v5960_v19, %v1008_v17 }
 0x186   : > { %v7009_v22 = vpop.eup %7008  ;;  %v999_v23 = vadd.f32 1e-06, %v991_v18 }
 0x187   : > { %v7011_v24 = vpop.eup %7010  ;;  %v1009_v25 = vmul.f32 %v7009_v22, %v7771_v28  ;;  %v1038_v34 = vadd.f32 %v5961_v27, %v1023_v26 }
 0x188   : > { %7020 = vrsqrt.f32 %v999_v23  ;;  %v1010_v30 = vmul.f32 %v7011_v24, %v7765_v21 }
 0x189   : > { %v1024_v31 = vmul.f32 %v5960_v19, %v1009_v25 }
 0x18a   : > { %v7013_v32 = vpop.eup %7012  ;;  %v1025_v36 = vmul.f32 %v5960_v19, %v1010_v30 }
 0x18b   : > { %v7015_v33 = vpop.eup %7014  ;;  %v1039_v35 = vadd.f32 %v5961_v27, %v1024_v31  ;;  %v1011_v20 = vmul.f32 %v7013_v32, %v7773_v29 }
 0x18c   : > { %v1012_v37 = vmul.f32 %v7015_v33, %v7781_v38  ;;  %v1040_v28 = vadd.f32 %v5961_v27, %v1025_v36 }
 0x18d   : > { %v1046_v40 = vpack.c.bf16 %v1039_v35, %v1038_v34  ;;  %v1026_v41 = vmul.f32 %v5960_v19, %v1011_v20 }
 0x18e   : > { %v7017_v42 = vpop.eup %7016  ;;  %v1027_v45 = vmul.f32 %v5960_v19, %v1012_v37 }
 0x18f   : > { %v7019_v43 = vpop.eup %7018  ;;  %6325 = vmatprep.mubr.msk.bf16.mxu0 %vm910_vm0, %v1046_v40  ;;  %v1041_v44 = vadd.f32 %v5961_v27, %v1026_v41  ;;  %v1013_v21 = vmul.f32 %v7017_v42, %v7783_v39 }
 0x190   : > { %v1014_v46 = vmul.f32 %v7019_v43, %v7791_v48  ;;  %v1042_v38 = vadd.f32 %v5961_v27, %v1027_v45  ;;  %v5962_v48 = vld [vmem:[%s7567_s21] ss:$0 sm:$0xff] }
 0x191   : > { %v1047_v47 = vpack.c.bf16 %v1041_v44, %v1040_v28  ;;  %v1028_v50 = vmul.f32 %v5960_v19, %v1013_v21 }
 0x192   : > { %v7021_v29 = vpop.eup %7020  ;;  %v1029_v53 = vmul.f32 %v5960_v19, %v1014_v46 }
 0x193   : > { %6326 = vmatmul.mubr.msk.bf16.vlgmr.msra.gmra.mrb[0].mxu0 %vm910_vm0, %v1047_v47  ;;  %v1043_v51 = vadd.f32 %v5961_v27, %v1028_v50  ;;  %v1015_v52 = vmul.f32 %v7021_v29, %v7793_v49 }
 0x194   : > { %v1044_v56 = vadd.f32 %v5961_v27, %v1029_v53 }
 0x195   : > { %v1048_v54 = vpack.c.bf16 %v1043_v51, %v1042_v38  ;;  %v1030_v55 = vmul.f32 %v5960_v19, %v1015_v52 }
 0x197   : > { %6329 = vmatprep.mubr.msk.bf16.mxu0 %vm910_vm0, %v1048_v54  ;;  %v1045_v39 = vadd.f32 %v5961_v27, %v1030_v55 }
 0x199   : > { %v1049_v57 = vpack.c.bf16 %v1045_v39, %v1044_v56 }
 0x19b   : > { %6330 = vmatmul.mubr.msk.bf16.gmra.mrb[4].mxu0 %vm910_vm0, %v1049_v57 }
 0x266   : > { %v6327_v58 = vpop.f32.mrb[0].mxu0 }
 0x267   : > { %v1128_v59 = vadd.f32 %v6327_v58, %v5962_v48  ;;  %v1119_v60 = vpop.f32.mrb[1].mxu0 }
 0x268   : > { %v1120_v61 = vadd.f32 %v5962_v48, %v1119_v60  ;;  %v6328_v62 = vpop.f32.mrb[2].mxu0 }
 0x269   : > { %v1131_v63 = vadd.f32 %v6328_v62, %v5962_v48  ;;  %v1122_v0 = vpop.f32.mrb[3].mxu0  ;;  %v1152_v49 = vmul.f32 0.35355338, %v1128_v59 }
 0x26a   : > { %v1123_v1 = vadd.f32 %v5962_v48, %v1122_v0  ;;  %v1150_v4 = vmul.f32 0.35355338, %v1120_v61 }
 0x26b   : > { %v1153_v2 = vmul.f32 0.35355338, %v1131_v63  ;;  %v7820_v3 = vpack.c.bf16 %v1131_v63, %v1128_v59 }
 0x26c   : > { %v1151_v5 = vmul.f32 0.35355338, %v1123_v1  ;;  %v7822_v6 = vpack.c.bf16 %v1123_v1, %v1120_v61 }
 0x26d   : > { %v7824_v7 = vpack.c.bf16 %v1153_v2, %v1152_v49  ;;  %1172 = vrot.lane.b32.xlu1 %v7820_v3, %s9686_s23 }
 0x26e   : > { %v7828_v8 = vpack.c.bf16 %v1151_v5, %v1150_v4  ;;  %1170 = vrot.lane.b32.xlu0 %v7822_v6, %s9686_s23  ;;  %v6331_v9 = vpop.f32.mrb[4].mxu0 }
 0x26f   : > { %v1144_v10 = vadd.f32 %v6331_v9, %v5962_v48  ;;  %v1135_v11 = vpop.f32.mrb[5].mxu0 }
 0x270   : > { %v1136_v12 = vadd.f32 %v5962_v48, %v1135_v11  ;;  %v6332_v13 = vpop.f32.mrb[6].mxu0  ;;  %6341 = vmatprep.mubr.msk.bf16.mxu1 %vm1178_vm1, %v7828_v8 }
 0x271   : > { %v1147_v14 = vadd.f32 %v6332_v13, %v5962_v48  ;;  %v1138_v15 = vpop.f32.mrb[7].mxu0  ;;  %v1156_v17 = vmul.f32 0.35355338, %v1144_v10 }
 0x272   : > { %v1139_v16 = vadd.f32 %v5962_v48, %v1138_v15  ;;  %v1154_v22 = vmul.f32 0.35355338, %v1136_v12 }
 0x273   : > { %v1157_v18 = vmul.f32 0.35355338, %v1147_v14  ;;  %v7834_v19 = vpack.c.bf16 %v1147_v14, %v1144_v10 }
 0x274   : > { %v1155_v23 = vmul.f32 0.35355338, %v1139_v16  ;;  %v7836_v24 = vpack.c.bf16 %v1139_v16, %v1136_v12 }
 0x275   : > { %v7838_v25 = vpack.c.bf16 %v1157_v18, %v1156_v17 }
 0x276   : > { %v7840_v26 = vpack.c.bf16 %v1155_v23, %v1154_v22  ;;  %1174 = vrot.lane.b32.xlu1 %v7836_v24, %s9686_s23 }
 0x27a   : > { %1176 = vrot.lane.b32.xlu1 %v7834_v19, %s9686_s23  ;;  %s9696_s23 = smov 120  }
 0x2df   : > { %v1173_v31 = vpop.permute.xlu1 %1172 }
 0x2e0   : > { %v1171_v27 = vpop.permute.xlu0 %1170  ;;  %v1195_v32 = vsel %vm1178_vm1, %v1173_v31, 0 }
 0x2e1   : > { %6733 = vmatprep.subr.msk.bf16.mxu1 %vm1178_vm1, %v1171_v27  ;;  %v1192_v30 = vsel %vm1178_vm1, %v1171_v27, 0 }
 0x2e2   : > { %6334 = vmatpush3.bf16.xpose.msra.mxu1 %v1192_v30 }
 0x2e3   : > { %6734 = vmatprep.subr.msk.bf16.mxu1 %vm1178_vm1, %v1173_v31 }
 0x2e8   : > { %v1175_v33 = vpop.permute.xlu1 %1174 }
 0x2e9   : > { %v1198_v34 = vsel %vm1178_vm1, %v1175_v33, 0 }
 0x2ea   : > { %6336 = vmatpush3.bf16.xpose.msra.mxu1 %v1195_v32 }
 0x2eb   : > { %6735 = vmatprep.subr.msk.bf16.mxu1 %vm1178_vm1, %v1175_v33 }
 0x2ec   : > { %v1177_v35 = vpop.permute.xlu1 %1176 }
 0x2ed   : > { %v1201_v20 = vsel %vm1178_vm1, %v1177_v35, 0 }
 0x2f2   : > { %6338 = vmatpush3.bf16.xpose.msra.mxu1 %v1198_v34 }
 0x2f3   : > { %6736 = vmatprep.subr.msk.bf16.mxu1 %vm1178_vm1, %v1177_v35 }
 0x2fa   : > { %6340 = vmatpush3.bf16.xpose.msra.mxu1 %v1201_v20 }
 0x301   : > { %6342 = vmatmul.mubr.msk.bf16.vlgmr.msra.gmra.mrb[0].mxu1 %vm1178_vm1, %v7824_v7 }
 0x302   : > { %6345 = vmatprep.mubr.msk.bf16.mxu1 %vm1178_vm1, %v7840_v26 }
 0x309   : > { %6346 = vmatmul.mubr.msk.bf16.gmra.mrb[4].mxu1 %vm1178_vm1, %v7838_v25 }
 0x3d4   : > { %v6343_v36 = vpop.f32.mrb[0].mxu1 }
 0x3d5   : > { %v1237_v37 = vpop.f32.mrb[1].mxu1  ;;  %v1275_v40 = vsel %vm1268_vm2, %v6343_v36, -inf }
 0x3d6   : > { %1276 = vmax.xlane.f32.xlu0 %v1275_v40  ;;  %v6344_v41 = vpop.f32.mrb[2].mxu1  ;;  %v1269_v28 = vsel %vm1268_vm2, %v1237_v37, -inf }
 0x3d7   : > { %v1240_v42 = vpop.f32.mrb[3].mxu1  ;;  %v1278_v45 = vsel %vm1268_vm2, %v6344_v41, -inf }
 0x3d8   : > { %v1272_v43 = vsel %vm1268_vm2, %v1240_v42, -inf }
 0x3d9   : > { %1273 = vmax.xlane.f32.xlu1 %v1272_v43 }
 0x3da   : > { %1270 = vmax.xlane.f32.xlu0 %v1269_v28 }
 0x3dc   : > { %v7863_v44 = vpop.f32.mrb[4].mxu1 }
 0x3dd   : > { %v7865_v21 = vpop.f32.mrb[5].mxu1  ;;  %v1287_v50 = vsel %vm1268_vm2, %v7863_v44, -inf }
 0x3de   : > { %1279 = vmax.xlane.f32.xlu0 %v1278_v45  ;;  %v7868_v46 = vpop.f32.mrb[6].mxu1  ;;  %v1281_v29 = vsel %vm1268_vm2, %v7865_v21, -inf }
 0x3df   : > { %v7870_v47 = vpop.f32.mrb[7].mxu1  ;;  %v1290_v38 = vsel %vm1268_vm2, %v7868_v46, -inf }
 0x3e0   : > { %v1284_v51 = vsel %vm1268_vm2, %v7870_v47, -inf }
 0x3e2   : > { %1288 = vmax.xlane.f32.xlu0 %v1287_v50 }
 0x3e6   : > { %1282 = vmax.xlane.f32.xlu0 %v1281_v29 }
 0x3ea   : > { %1363 = vrot.lane.b32.xlu1 %v7820_v3, %s9684_s2 }
 0x3ee   : > { %1365 = vrot.lane.b32.xlu1 %v7836_v24, %s9684_s2 }
 0x3f2   : > { %1367 = vrot.lane.b32.xlu1 %v7834_v19, %s9684_s2 }
 0x3fc   : > { %1361 = vrot.lane.b32.xlu0 %v7822_v6, %s9684_s2  ;;  %s9692_s2 = smov 80  }
 0x416   : > { %1291 = vmax.xlane.f32.xlu1 %v1290_v38 }
 0x41a   : > { %1285 = vmax.xlane.f32.xlu1 %v1284_v51 }
 0x42b   : > { %1464 = vrot.lane.b32.xlu1 %v7820_v3, %s9688_s16 }
 0x42f   : > { %1466 = vrot.lane.b32.xlu1 %v7836_v24, %s9688_s16 }
 0x463   : > { %v1277_v52 = vpop.xlane.xlu0 %1276 }
 0x464   : > { %v1295_v53 = vsub.f32 %v6343_v36, %v1277_v52 }
 0x466   : > { %v1305_v54 = vmul.f32 1.442695, %v1295_v53  ;;  %v1274_v55 = vpop.xlane.xlu1 %1273 }
 0x467   : > { %v1271_v56 = vpop.xlane.xlu0 %1270  ;;  %v1294_v57 = vsub.f32 %v1240_v42, %v1274_v55 }
 0x468   : > { %7022 = vpow2.f32 %v1305_v54  ;;  %v1293_v39 = vsub.f32 %v1237_v37, %v1271_v56 }
 0x469   : > { %v1303_v60 = vmul.f32 1.442695, %v1294_v57 }
 0x46a   : > { %v1301_v48 = vmul.f32 1.442695, %v1293_v39  ;;  %v1364_v49 = vpop.permute.xlu1 %1363 }
 0x46b   : > { %v1280_v58 = vpop.xlane.xlu0 %1279 }
 0x46c   : > { %7024 = vpow2.f32 %v1301_v48  ;;  %v1296_v59 = vsub.f32 %v6344_v41, %v1280_v58 }
 0x46e   : > { %v1307_v61 = vmul.f32 1.442695, %v1296_v59  ;;  %v1366_v10 = vpop.permute.xlu1 %1365 }
 0x46f   : > { %v1289_v62 = vpop.xlane.xlu0 %1288 }
 0x470   : > { %7026 = vpow2.f32 %v1307_v61  ;;  %v1299_v15 = vsub.f32 %v7863_v44, %v1289_v62 }
 0x471   : > { %7028 = vpow2.f32 %v1303_v60 }
 0x472   : > { %v7892_v63 = vpop.eup %7022  ;;  %v1368_v14 = vpop.permute.xlu1 %1367  ;;  %v1313_v16 = vmul.f32 1.442695, %v1299_v15 }
 0x473   : > { %v1283_v0 = vpop.xlane.xlu0 %1282  ;;  %v1323_v1 = vsel %vm1268_vm2, %v7892_v63, 0.0 }
 0x474   : > { %1324 = vadd.xlane.f32.xlu0 %v1323_v1  ;;  %v1297_v17 = vsub.f32 %v7865_v21, %v1283_v0  ;;  %7030 = vpow2.f32 %v1313_v16 }
 0x476   : > { %v7896_v2 = vpop.eup %7024  ;;  %v1309_v18 = vmul.f32 1.442695, %v1297_v17 }
 0x477   : > { %v1362_v4 = vpop.permute.xlu0 %1361  ;;  %v1317_v5 = vsel %vm1268_vm2, %v7896_v2, 0.0 }
 0x478   : > { %1318 = vadd.xlane.f32.xlu0 %v1317_v5  ;;  %6349 = vmatprep.subr.bf16.mxu0 %v1362_v4  ;;  %7032 = vpow2.f32 %v1309_v18 }
 0x479   : > { %6350 = vmatpush3.bf16.msra.mxu0 %v1362_v4 }
 0x47a   : > { %v7900_v9 = vpop.eup %7026  ;;  %6351 = vmatprep.subr.bf16.mxu0 %v1364_v49 }
 0x47b   : > { %v1326_v11 = vsel %vm1268_vm2, %v7900_v9, 0.0  ;;  %v7904_v12 = vpop.eup %7028 }
 0x47c   : > { %1327 = vadd.xlane.f32.xlu1 %v1326_v11  ;;  %v1320_v13 = vsel %vm1268_vm2, %v7904_v12, 0.0 }
 0x47d   : > { %6352 = vmatpush3.bf16.msra.mxu0 %v1364_v49 }
 0x47e   : > { %6353 = vmatprep.subr.bf16.mxu0 %v1366_v10  ;;  %v7916_v32 = vpop.eup %7030 }
 0x47f   : > { %v1335_v34 = vsel %vm1268_vm2, %v7916_v32, 0.0 }
 0x480   : > { %1321 = vadd.xlane.f32.xlu1 %v1320_v13 }
 0x481   : > { %6354 = vmatpush3.bf16.msra.mxu0 %v1366_v10 }
 0x482   : > { %6355 = vmatprep.subr.bf16.mxu0 %v1368_v14  ;;  %v7920_v35 = vpop.eup %7032 }
 0x483   : > { %v1329_v20 = vsel %vm1268_vm2, %v7920_v35, 0.0 }
 0x485   : > { %6356 = vmatpush3.bf16.msra.mxu0 %v1368_v14 }
 0x48e   : > { %1462 = vrot.lane.b32.xlu0 %v7822_v6, %s9688_s16 }
 0x491   : > { %1748 = vrot.lane.b32.xlu1 %v7822_v6, %s9692_s2 }
 0x4a3   : > { %v1292_v22 = vpop.xlane.xlu1 %1291 }
 0x4a4   : > { %v1300_v23 = vsub.f32 %v7868_v46, %v1292_v22 }
 0x4a6   : > { %v1315_v27 = vmul.f32 1.442695, %v1300_v23 }
 0x4a7   : > { %v1286_v30 = vpop.xlane.xlu1 %1285 }
 0x4a8   : > { %7034 = vpow2.f32 %v1315_v27  ;;  %v1298_v31 = vsub.f32 %v7870_v47, %v1286_v30 }
 0x4aa   : > { %v1311_v33 = vmul.f32 1.442695, %v1298_v31 }
 0x4ab   : > { %v1465_v42 = vpop.permute.xlu1 %1464 }
 0x4ac   : > { %7036 = vpow2.f32 %v1311_v33  ;;  %v1486_v58 = vsel %vm1178_vm1, %v1465_v42, 0 }
 0x4ad   : > { %1336 = vadd.xlane.f32.xlu0 %v1335_v34 }
 0x4af   : > { %v1467_v28 = vpop.permute.xlu1 %1466 }
 0x4b0   : > { %v1489_v59 = vsel %vm1178_vm1, %v1467_v28, 0 }
 0x4b1   : > { %1330 = vadd.xlane.f32.xlu0 %v1329_v20 }
 0x4b2   : > { %v7924_v36 = vpop.eup %7034 }
 0x4b3   : > { %v1338_v37 = vsel %vm1268_vm2, %v7924_v36, 0.0 }
 0x4b5   : > { %1339 = vadd.xlane.f32.xlu0 %v1338_v37 }
 0x4b6   : > { %v7928_v40 = vpop.eup %7036 }
 0x4b7   : > { %v1332_v41 = vsel %vm1268_vm2, %v7928_v40, 0.0 }
 0x4b8   : > { %1333 = vadd.xlane.f32.xlu1 %v1332_v41 }
 0x4c9   : > { %1750 = vrot.lane.b32.xlu1 %v7820_v3, %s9692_s2 }
 0x4cb   : > { %1468 = vrot.lane.b32.xlu0 %v7834_v19, %s9688_s16  ;;  %s9690_s16 = smov 112  }
 0x4cd   : > { %1456 = vrot.lane.b32.xlu1 %v7824_v7, %s9696_s23 }
 0x4cf   : > { %1454 = vrot.lane.b32.xlu0 %v7828_v8, %s9696_s23 }
 0x4d1   : > { %1458 = vrot.lane.b32.xlu1 %v7840_v26, %s9696_s23 }
 0x4d3   : > { %1752 = vrot.lane.b32.xlu0 %v7836_v24, %s9692_s2 }
 0x4d5   : > { %1754 = vrot.lane.b32.xlu1 %v7834_v19, %s9692_s2  ;;  %s9702_s2 = smov 48  }
 0x4d7   : > { %1460 = vrot.lane.b32.xlu0 %v7838_v25, %s9696_s23  ;;  %s9698_s23 = smov 104  }
 0x4d9   : > { %1742 = vrot.lane.b32.xlu1 %v7824_v7, %s9690_s16 }
 0x4db   : > { %1740 = vrot.lane.b32.xlu0 %v7828_v8, %s9690_s16 }
 0x4dd   : > { %1746 = vrot.lane.b32.xlu1 %v7838_v25, %s9690_s16 }
 0x4df   : > { %1744 = vrot.lane.b32.xlu0 %v7840_v26, %s9690_s16  ;;  %s9694_s16 = smov 56  }
 0x501   : > { %v1325_v43 = vpop.xlane.xlu0 %1324 }
 0x505   : > { %v1319_v44 = vpop.xlane.xlu0 %1318 }
 0x509   : > { %v1463_v21 = vpop.permute.xlu0 %1462  ;;  %v1328_v45 = vpop.xlane.xlu1 %1327 }
 0x50a   : > { %6737 = vmatprep.subr.msk.bf16.mxu0 %vm1178_vm1, %v1463_v21  ;;  %7038 = vrcp.f32 %v1328_v45  ;;  %v1483_v48 = vsel %vm1178_vm1, %v1463_v21, 0 }
 0x50b   : > { %7040 = vrcp.f32 %v1319_v44 }
 0x50c   : > { %7042 = vrcp.f32 %v1325_v43 }
 0x50d   : > { %v1322_v46 = vpop.xlane.xlu1 %1321 }
 0x50e   : > { %7044 = vrcp.f32 %v1322_v46 }
 0x511   : > { %v1749_v47 = vpop.permute.xlu1 %1748 }
 0x512   : > { %6741 = vmatprep.subr.msk.bf16.mxu1 %vm1178_vm1, %v1749_v47  ;;  %v1769_v50 = vsel %vm1178_vm1, %v1749_v47, 0 }
 0x513   : > { %6398 = vmatpush3.bf16.xpose.msra.mxu1 %v1769_v50 }
 0x514   : > { %v7039_v29 = vpop.eup %7038 }
 0x515   : > { %v7041_v38 = vpop.eup %7040  ;;  %v1352_v53 = vmul.f32 %v7039_v29, %v7900_v9 }
 0x516   : > { %v7043_v51 = vpop.eup %7042  ;;  %v1349_v54 = vmul.f32 %v7041_v38, %v7896_v2 }
 0x517   : > { %v1351_v56 = vmul.f32 %v7043_v51, %v7892_v63 }
 0x518   : > { %v7045_v52 = vpop.eup %7044 }
 0x519   : > { %v1350_v55 = vmul.f32 %v7045_v52, %v7904_v12  ;;  %v1358_v57 = vpack.c.bf16 %v1352_v53, %v1351_v56 }
 0x51b   : > { %v1357_v39 = vpack.c.bf16 %v1350_v55, %v1349_v54 }
 0x51d   : > { %6357 = vmatprep.mubr.msk.bf16.mxu0 %vm1268_vm2, %v1357_v39 }
 0x51e   : > { %6358 = vmatmul.mubr.msk.bf16.vlgmr.msra.gmra.mrb[8].mxu0 %vm1268_vm2, %v1358_v57 }
 0x51f   : > { %6366 = vmatpush3.bf16.xpose.msra.mxu0 %v1483_v48 }
 0x520   : > { %6738 = vmatprep.subr.msk.bf16.mxu0 %vm1178_vm1, %v1465_v42 }
 0x527   : > { %6368 = vmatpush3.bf16.xpose.msra.mxu0 %v1486_v58 }
 0x528   : > { %6739 = vmatprep.subr.msk.bf16.mxu0 %vm1178_vm1, %v1467_v28 }
 0x52f   : > { %6370 = vmatpush3.bf16.xpose.msra.mxu0 %v1489_v59 }
 0x53a   : > { %v1337_v60 = vpop.xlane.xlu0 %1336 }
 0x53e   : > { %v1331_v61 = vpop.xlane.xlu0 %1330 }
 0x542   : > { %v1340_v62 = vpop.xlane.xlu0 %1339 }
 0x543   : > { %7046 = vrcp.f32 %v1340_v62 }
 0x544   : > { %7048 = vrcp.f32 %v1331_v61 }
 0x545   : > { %7050 = vrcp.f32 %v1337_v60  ;;  %v1334_v63 = vpop.xlane.xlu1 %1333 }
 0x546   : > { %7052 = vrcp.f32 %v1334_v63  ;;  %v1469_v0 = vpop.permute.xlu0 %1468 }
 0x547   : > { %6740 = vmatprep.subr.msk.bf16.mxu0 %vm1178_vm1, %v1469_v0  ;;  %v1492_v1 = vsel %vm1178_vm1, %v1469_v0, 0 }
 0x548   : > { %6372 = vmatpush3.bf16.xpose.msra.mxu0 %v1492_v1 }
 0x549   : > { %v1751_v49 = vpop.permute.xlu1 %1750 }
 0x54a   : > { %v1455_v2 = vpop.permute.xlu0 %1454  ;;  %6742 = vmatprep.subr.msk.bf16.mxu1 %vm1178_vm1, %v1751_v49  ;;  %v1772_v4 = vsel %vm1178_vm1, %v1751_v49, 0 }
 0x54b   : > { %6400 = vmatpush3.bf16.xpose.msra.mxu1 %v1772_v4 }
 0x54d   : > { %v7047_v5 = vpop.eup %7046  ;;  %v1457_v9 = vpop.permute.xlu1 %1456 }
 0x54e   : > { %v7049_v10 = vpop.eup %7048  ;;  %v1753_v11 = vpop.permute.xlu0 %1752  ;;  %v1356_v14 = vmul.f32 %v7047_v5, %v7924_v36 }
 0x54f   : > { %v7051_v12 = vpop.eup %7050  ;;  %6743 = vmatprep.subr.msk.bf16.mxu1 %vm1178_vm1, %v1753_v11  ;;  %v1353_v16 = vmul.f32 %v7049_v10, %v7920_v35  ;;  %v1775_v22 = vsel %vm1178_vm1, %v1753_v11, 0 }
 0x550   : > { %v7053_v13 = vpop.eup %7052  ;;  %v1355_v23 = vmul.f32 %v7051_v12, %v7916_v32 }
 0x551   : > { %v1459_v15 = vpop.permute.xlu1 %1458  ;;  %v1354_v17 = vmul.f32 %v7053_v13, %v7928_v40 }
 0x552   : > { %v1461_v18 = vpop.permute.xlu0 %1460  ;;  %v1360_v30 = vpack.c.bf16 %v1356_v14, %v1355_v23 }
 0x553   : > { %6402 = vmatpush3.bf16.xpose.msra.mxu1 %v1775_v22  ;;  %v1359_v27 = vpack.c.bf16 %v1354_v17, %v1353_v16 }
 0x555   : > { %6361 = vmatprep.mubr.msk.bf16.mxu0 %vm1268_vm2, %v1359_v27  ;;  %v1755_v31 = vpop.permute.xlu1 %1754 }
 0x556   : > { %v1741_v33 = vpop.permute.xlu0 %1740  ;;  %6362 = vmatmul.mubr.msk.bf16.gmra.mrb[12].mxu0 %vm1268_vm2, %v1360_v30  ;;  %6744 = vmatprep.subr.msk.bf16.mxu1 %vm1178_vm1, %v1755_v31  ;;  %v1778_v34 = vsel %vm1178_vm1, %v1755_v31, 0 }
 0x557   : > { %6373 = vmatprep.mubr.msk.bf16.mxu0 %vm1178_vm1, %v1455_v2  ;;  %6405 = vmatprep.mubr.msk.bf16.mxu1 %vm1178_vm1, %v1741_v33 }
 0x559   : > { %v1743_v32 = vpop.permute.xlu1 %1742 }
 0x55a   : > { %v1745_v35 = vpop.permute.xlu0 %1744 }
 0x55b   : > { %6404 = vmatpush3.bf16.xpose.msra.mxu1 %v1778_v34 }
 0x55d   : > { %v1747_v20 = vpop.permute.xlu1 %1746 }
 0x55e   : > { %6374 = vmatmul.mubr.msk.bf16.vlgmr.msra.gmra.mrb[16].mxu0 %vm1178_vm1, %v1457_v9 }
 0x55f   : > { %6377 = vmatprep.mubr.msk.bf16.mxu0 %vm1178_vm1, %v1459_v15 }
 0x562   : > { %6406 = vmatmul.mubr.msk.bf16.vlgmr.msra.gmra.mrb[8].mxu1 %vm1178_vm1, %v1743_v32 }
 0x563   : > { %6409 = vmatprep.mubr.msk.bf16.mxu1 %vm1178_vm1, %v1745_v35 }
 0x566   : > { %6378 = vmatmul.mubr.msk.bf16.gmra.mrb[20].mxu0 %vm1178_vm1, %v1461_v18 }
 0x56a   : > { %6410 = vmatmul.mubr.msk.bf16.gmra.mrb[12].mxu1 %vm1178_vm1, %v1747_v20 }
 0x5f1   : > { %v7992_v36 = vpop.f32.mrb[8].mxu0 }
 0x5f2   : > { %v7994_v37 = vpop.f32.mrb[9].mxu0 }
 0x5f3   : > { %v7996_v40 = vpop.f32.mrb[10].mxu0 }
 0x5f4   : > { %v7998_v41 = vpop.f32.mrb[11].mxu0 }
 0x629   : > { %v8000_v42 = vpop.f32.mrb[12].mxu0 }
 0x62a   : > { %v8002_v43 = vpop.f32.mrb[13].mxu0 }
 0x62b   : > { %v8004_v28 = vpop.f32.mrb[14].mxu0 }
 0x62c   : > { %v8006_v44 = vpop.f32.mrb[15].mxu0 }
 0x631   : > { %v8008_v21 = vpop.f32.mrb[16].mxu0 }
 0x632   : > { %v8010_v45 = vpop.f32.mrb[17].mxu0  ;;  %v1565_v49 = vsel %vm1268_vm2, %v8008_v21, -inf }
 0x633   : > { %v8012_v46 = vpop.f32.mrb[18].mxu0  ;;  %v1559_v4 = vsel %vm1268_vm2, %v8010_v45, -inf }
 0x634   : > { %v8014_v47 = vpop.f32.mrb[19].mxu0  ;;  %v1568_v5 = vsel %vm1268_vm2, %v8012_v46, -inf }
 0x635   : > { %v6407_v50 = vpop.f32.mrb[8].mxu1  ;;  %v1562_v2 = vsel %vm1268_vm2, %v8014_v47, -inf }
 0x636   : > { %v1814_v29 = vpop.f32.mrb[9].mxu1  ;;  %v1851_v39 = vsel %vm1268_vm2, %v6407_v50, -inf }
 0x637   : > { %v6408_v38 = vpop.f32.mrb[10].mxu1  ;;  %v1845_v51 = vsel %vm1268_vm2, %v1814_v29, -inf }
 0x638   : > { %1846 = vmax.xlane.f32.xlu0 %v1845_v51  ;;  %v1817_v52 = vpop.f32.mrb[11].mxu1  ;;  %v1854_v58 = vsel %vm1268_vm2, %v6408_v38, -inf }
 0x639   : > { %v8017_v53 = vpop.f32.mrb[20].mxu0  ;;  %v1848_v54 = vsel %vm1268_vm2, %v1817_v52, -inf }
 0x63a   : > { %v8020_v55 = vpop.f32.mrb[21].mxu0  ;;  %1849 = vmax.xlane.f32.xlu1 %v1848_v54  ;;  %v1577_v9 = vsel %vm1268_vm2, %v8017_v53, -inf }
 0x63b   : > { %v8022_v56 = vpop.f32.mrb[22].mxu0  ;;  %v1571_v10 = vsel %vm1268_vm2, %v8020_v55, -inf }
 0x63c   : > { %v8025_v57 = vpop.f32.mrb[23].mxu0  ;;  %1852 = vmax.xlane.f32.xlu0 %v1851_v39 }
 0x63d   : > { %v8027_v48 = vpop.f32.mrb[12].mxu1 }
 0x63e   : > { %1855 = vmax.xlane.f32.xlu1 %v1854_v58  ;;  %v8030_v59 = vpop.f32.mrb[13].mxu1  ;;  %v1863_v0 = vsel %vm1268_vm2, %v8027_v48, -inf }
 0x63f   : > { %v8032_v60 = vpop.f32.mrb[14].mxu1  ;;  %v1857_v61 = vsel %vm1268_vm2, %v8030_v59, -inf }
 0x640   : > { %1858 = vmax.xlane.f32.xlu0 %v1857_v61  ;;  %v8036_v62 = vpop.f32.mrb[15].mxu1  ;;  %v1866_v1 = vsel %vm1268_vm2, %v8032_v60, -inf }
 0x641   : > { %v1860_v63 = vsel %vm1268_vm2, %v8036_v62, -inf }
 0x642   : > { %1861 = vmax.xlane.f32.xlu1 %v1860_v63 }
 0x644   : > { %1864 = vmax.xlane.f32.xlu0 %v1863_v0 }
 0x646   : > { %1867 = vmax.xlane.f32.xlu1 %v1866_v1 }
 0x657   : > { %1653 = vrot.lane.b32.xlu1 %v7820_v3, %s9694_s16 }
 0x65a   : > { %1651 = vrot.lane.b32.xlu0 %v7822_v6, %s9694_s16 }
 0x679   : > { %1566 = vmax.xlane.f32.xlu0 %v1565_v49  ;;  %v1580_v49 = vsel %vm1268_vm2, %v8022_v56, -inf }
 0x67b   : > { %1563 = vmax.xlane.f32.xlu1 %v1562_v2 }
 0x67d   : > { %1560 = vmax.xlane.f32.xlu0 %v1559_v4 }
 0x681   : > { %1569 = vmax.xlane.f32.xlu0 %v1568_v5 }
 0x685   : > { %1578 = vmax.xlane.f32.xlu0 %v1577_v9  ;;  %v1574_v9 = vsel %vm1268_vm2, %v8025_v57, -inf }
 0x689   : > { %1572 = vmax.xlane.f32.xlu0 %v1571_v10 }
 0x69f   : > { %1655 = vrot.lane.b32.xlu0 %v7836_v24, %s9694_s16 }
 0x6c5   : > { %v1847_v11 = vpop.xlane.xlu0 %1846 }
 0x6c6   : > { %v1869_v12 = vsub.f32 %v1814_v29, %v1847_v11 }
 0x6c7   : > { %v1850_v13 = vpop.xlane.xlu1 %1849 }
 0x6c8   : > { %v1877_v14 = vmul.f32 1.442695, %v1869_v12  ;;  %v1870_v15 = vsub.f32 %v1817_v52, %v1850_v13 }
 0x6c9   : > { %v1853_v16 = vpop.xlane.xlu0 %1852 }
 0x6ca   : > { %7054 = vpow2.f32 %v1877_v14  ;;  %v1879_v17 = vmul.f32 1.442695, %v1870_v15  ;;  %v1871_v18 = vsub.f32 %v6407_v50, %v1853_v16 }
 0x6cb   : > { %v1856_v22 = vpop.xlane.xlu1 %1855 }
 0x6cc   : > { %7056 = vpow2.f32 %v1879_v17  ;;  %v1881_v23 = vmul.f32 1.442695, %v1871_v18  ;;  %v1872_v27 = vsub.f32 %v6408_v38, %v1856_v22 }
 0x6cd   : > { %v8062_v30 = vpop.xlane.xlu0 %1858 }
 0x6ce   : > { %7058 = vpow2.f32 %v1881_v23  ;;  %v1883_v31 = vmul.f32 1.442695, %v1872_v27 }
 0x6cf   : > { %v8064_v33 = vpop.xlane.xlu1 %1861 }
 0x6d0   : > { %7060 = vpow2.f32 %v1883_v31 }
 0x6d1   : > { %v8066_v34 = vpop.xlane.xlu0 %1864 }
 0x6d3   : > { %v8068_v32 = vpop.xlane.xlu1 %1867 }
 0x6d4   : > { %v8070_v35 = vpop.eup %7054 }
 0x6d5   : > { %v1652_v20 = vpop.permute.xlu0 %1651  ;;  %v1893_v50 = vsel %vm1268_vm2, %v8070_v35, 0.0 }
 0x6d6   : > { %v8074_v29 = vpop.eup %7056  ;;  %6381 = vmatprep.subr.bf16.mxu0 %v1652_v20  ;;  %1894 = vadd.xlane.f32.xlu1 %v1893_v50 }
 0x6d7   : > { %6382 = vmatpush3.bf16.msra.mxu0 %v1652_v20  ;;  %v1654_v38 = vpop.permute.xlu1 %1653  ;;  %v1896_v51 = vsel %vm1268_vm2, %v8074_v29, 0.0  ;;  %v1873_v20 = vsub.f32 %v8030_v59, %v8062_v30 }
 0x6d8   : > { %v8078_v52 = vpop.eup %7058  ;;  %1897 = vadd.xlane.f32.xlu0 %v1896_v51  ;;  %6383 = vmatprep.subr.bf16.mxu0 %v1654_v38  ;;  %v1876_v51 = vsub.f32 %v8032_v60, %v8068_v32 }
 0x6d9   : > { %v1899_v54 = vsel %vm1268_vm2, %v8078_v52, 0.0 }
 0x6da   : > { %v8082_v39 = vpop.eup %7060  ;;  %v1891_v59 = vmul.f32 1.442695, %v1876_v51 }
 0x6db   : > { %6384 = vmatpush3.bf16.msra.mxu0 %v1654_v38  ;;  %v1902_v58 = vsel %vm1268_vm2, %v8082_v39, 0.0  ;;  %v1885_v38 = vmul.f32 1.442695, %v1873_v20 }
 0x6dc   : > { %1900 = vadd.xlane.f32.xlu0 %v1899_v54 }
 0x6e0   : > { %1903 = vadd.xlane.f32.xlu0 %v1902_v58 }
 0x6e7   : > { %1657 = vrot.lane.b32.xlu1 %v7834_v19, %s9694_s16  ;;  %s9700_s16 = smov 72  }
 0x706   : > { %v1567_v61 = vpop.xlane.xlu0 %1566 }
 0x707   : > { %v1585_v63 = vsub.f32 %v8008_v21, %v1567_v61 }
 0x708   : > { %v1564_v16 = vpop.xlane.xlu1 %1563 }
 0x709   : > { %v1595_v0 = vmul.f32 1.442695, %v1585_v63  ;;  %v1584_v17 = vsub.f32 %v8014_v47, %v1564_v16 }
 0x70a   : > { %v1561_v1 = vpop.xlane.xlu0 %1560 }
 0x70b   : > { %7062 = vpow2.f32 %v1595_v0  ;;  %v1583_v2 = vsub.f32 %v8010_v45, %v1561_v1  ;;  %1581 = vmax.xlane.f32.xlu1 %v1580_v49  ;;  %v1593_v23 = vmul.f32 1.442695, %v1584_v17 }
 0x70d   : > { %v1591_v4 = vmul.f32 1.442695, %v1583_v2 }
 0x70e   : > { %v1570_v5 = vpop.xlane.xlu0 %1569 }
 0x70f   : > { %7064 = vpow2.f32 %v1591_v4  ;;  %1575 = vmax.xlane.f32.xlu1 %v1574_v9  ;;  %v1586_v15 = vsub.f32 %v8012_v46, %v1570_v5  ;;  %v1875_v46 = vsub.f32 %v8027_v48, %v8066_v34 }
 0x711   : > { %v1597_v18 = vmul.f32 1.442695, %v1586_v15 }
 0x712   : > { %v1579_v10 = vpop.xlane.xlu0 %1578 }
 0x713   : > { %v1589_v22 = vsub.f32 %v8017_v53, %v1579_v10  ;;  %7066 = vpow2.f32 %v1597_v18  ;;  %v1889_v53 = vmul.f32 1.442695, %v1875_v46 }
 0x714   : > { %7068 = vpow2.f32 %v1593_v23 }
 0x715   : > { %v8094_v11 = vpop.eup %7062  ;;  %v1603_v31 = vmul.f32 1.442695, %v1589_v22 }
 0x716   : > { %v1573_v21 = vpop.xlane.xlu0 %1572  ;;  %v1613_v12 = vsel %vm1268_vm2, %v8094_v11, 0.0 }
 0x717   : > { %1614 = vadd.xlane.f32.xlu0 %v1613_v12  ;;  %v1587_v27 = vsub.f32 %v8020_v55, %v1573_v21  ;;  %7070 = vpow2.f32 %v1603_v31 }
 0x719   : > { %v8098_v13 = vpop.eup %7064  ;;  %v1599_v50 = vmul.f32 1.442695, %v1587_v27  ;;  %v1874_v27 = vsub.f32 %v8036_v62, %v8064_v33 }
 0x71a   : > { %v1656_v14 = vpop.permute.xlu0 %1655  ;;  %v1607_v45 = vsel %vm1268_vm2, %v8098_v13, 0.0 }
 0x71b   : > { %1608 = vadd.xlane.f32.xlu0 %v1607_v45  ;;  %6385 = vmatprep.subr.bf16.mxu0 %v1656_v14  ;;  %7072 = vpow2.f32 %v1599_v50  ;;  %v1887_v31 = vmul.f32 1.442695, %v1874_v27 }
 0x71c   : > { %6386 = vmatpush3.bf16.msra.mxu0 %v1656_v14  ;;  %7074 = vpow2.f32 %v1885_v38 }
 0x71d   : > { %v8116_v47 = vpop.eup %7066  ;;  %7076 = vpow2.f32 %v1889_v53 }
 0x71e   : > { %v1616_v55 = vsel %vm1268_vm2, %v8116_v47, 0.0  ;;  %v8122_v54 = vpop.eup %7068  ;;  %7078 = vpow2.f32 %v1891_v59 }
 0x71f   : > { %v1610_v48 = vsel %vm1268_vm2, %v8122_v54, 0.0 }
 0x720   : > { %1939 = vrot.lane.b32.xlu1 %v7820_v3, %s9702_s2 }
 0x721   : > { %v8124_v30 = vpop.eup %7070 }
 0x722   : > { %v1625_v32 = vsel %vm1268_vm2, %v8124_v30, 0.0 }
 0x724   : > { %1941 = vrot.lane.b32.xlu1 %v7836_v24, %s9702_s2 }
 0x725   : > { %v8128_v34 = vpop.eup %7072 }
 0x726   : > { %v1619_v60 = vsel %vm1268_vm2, %v8128_v34, 0.0  ;;  %v8134_v58 = vpop.eup %7074 }
 0x727   : > { %v1905_v61 = vsel %vm1268_vm2, %v8134_v58, 0.0  ;;  %v8138_v63 = vpop.eup %7076 }
 0x728   : > { %v1911_v0 = vsel %vm1268_vm2, %v8138_v63, 0.0  ;;  %v8142_v1 = vpop.eup %7078 }
 0x729   : > { %v1914_v49 = vsel %vm1268_vm2, %v8142_v1, 0.0 }
 0x731   : > { %1937 = vrot.lane.b32.xlu0 %v7822_v6, %s9702_s2 }
 0x748   : > { %1617 = vadd.xlane.f32.xlu1 %v1616_v55 }
 0x74c   : > { %1611 = vadd.xlane.f32.xlu1 %v1610_v48 }
 0x750   : > { %1620 = vadd.xlane.f32.xlu0 %v1619_v60  ;;  %1626 = vadd.xlane.f32.xlu1 %v1625_v32 }
 0x754   : > { %1906 = vadd.xlane.f32.xlu0 %v1905_v61 }
 0x758   : > { %1912 = vadd.xlane.f32.xlu0 %v1911_v0 }
 0x75c   : > { %1915 = vadd.xlane.f32.xlu0 %v1914_v49 }
 0x763   : > { %v8146_v2 = vpop.xlane.xlu1 %1894 }
 0x765   : > { %v8154_v5 = vpop.xlane.xlu0 %1897 }
 0x767   : > { %v1658_v4 = vpop.permute.xlu1 %1657 }
 0x768   : > { %6387 = vmatprep.subr.bf16.mxu0 %v1658_v4 }
 0x769   : > { %6388 = vmatpush3.bf16.msra.mxu0 %v1658_v4  ;;  %v8157_v21 = vpop.xlane.xlu0 %1900 }
 0x76d   : > { %v8160_v16 = vpop.xlane.xlu0 %1903 }
 0x772   : > { %2034 = vrot.lane.b32.xlu0 %v7822_v6, %s9700_s16 }
 0x776   : > { %2026 = vrot.lane.b32.xlu0 %v7828_v8, %s9698_s23 }
 0x77a   : > { %2030 = vrot.lane.b32.xlu0 %v7840_v26, %s9698_s23 }
 0x798   : > { %v1582_v9 = vpop.xlane.xlu1 %1581 }
 0x799   : > { %v1590_v10 = vsub.f32 %v8022_v56, %v1582_v9 }
 0x79b   : > { %v1605_v12 = vmul.f32 1.442695, %v1590_v10 }
 0x79c   : > { %v1576_v14 = vpop.xlane.xlu1 %1575 }
 0x79d   : > { %7080 = vpow2.f32 %v1605_v12  ;;  %v1588_v45 = vsub.f32 %v8025_v57, %v1576_v14 }
 0x79f   : > { %v1601_v15 = vmul.f32 1.442695, %v1588_v45 }
 0x7a0   : > { %v1940_v57 = vpop.permute.xlu1 %1939 }
 0x7a1   : > { %7082 = vpow2.f32 %v1601_v15 }
 0x7a2   : > { %7084 = vpow2.f32 %v1887_v31 }
 0x7a4   : > { %v1615_v8 = vpop.xlane.xlu0 %1614  ;;  %v1942_v20 = vpop.permute.xlu1 %1941 }
 0x7a7   : > { %v8162_v17 = vpop.eup %7080 }
 0x7a8   : > { %v1609_v26 = vpop.xlane.xlu0 %1608  ;;  %v1628_v18 = vsel %vm1268_vm2, %v8162_v17, 0.0 }
 0x7a9   : > { %1629 = vadd.xlane.f32.xlu1 %v1628_v18 }
 0x7ab   : > { %v8166_v56 = vpop.eup %7082 }
 0x7ac   : > { %v1938_v22 = vpop.permute.xlu0 %1937  ;;  %v1622_v23 = vsel %vm1268_vm2, %v8166_v56, 0.0  ;;  %v8174_v46 = vpop.eup %7084 }
 0x7ad   : > { %6413 = vmatprep.subr.bf16.mxu0 %v1938_v22  ;;  %1623 = vadd.xlane.f32.xlu1 %v1622_v23  ;;  %v1908_v51 = vsel %vm1268_vm2, %v8174_v46, 0.0 }
 0x7be   : > { %1943 = vrot.lane.b32.xlu1 %v7834_v19, %s9702_s2  ;;  %s7535_s2 = smov 16  }
 0x7d5   : > { %v1618_v50 = vpop.xlane.xlu1 %1617 }
 0x7d6   : > { %7086 = vrcp.f32 %v1618_v50 }
 0x7d7   : > { %7088 = vrcp.f32 %v1609_v26 }
 0x7d8   : > { %7090 = vrcp.f32 %v1615_v8 }
 0x7d9   : > { %v1612_v38 = vpop.xlane.xlu1 %1611 }
 0x7da   : > { %7092 = vrcp.f32 %v1612_v38 }
 0x7db   : > { %7094 = vrcp.f32 %v8146_v2 }
 0x7dc   : > { %7096 = vrcp.f32 %v8154_v5 }
 0x7e0   : > { %v7087_v53 = vpop.eup %7086 }
 0x7e1   : > { %v7089_v55 = vpop.eup %7088  ;;  %v1642_v62 = vmul.f32 %v7087_v53, %v8116_v47  ;;  %v1627_v47 = vpop.xlane.xlu1 %1626 }
 0x7e2   : > { %1909 = vadd.xlane.f32.xlu1 %v1908_v51  ;;  %v7091_v59 = vpop.eup %7090  ;;  %v1639_v33 = vmul.f32 %v7089_v55, %v8098_v13 }
 0x7e3   : > { %v1641_v32 = vmul.f32 %v7091_v59, %v8094_v11  ;;  %v1621_v11 = vpop.xlane.xlu0 %1620 }
 0x7e4   : > { %v7093_v48 = vpop.eup %7092 }
 0x7e5   : > { %v1640_v60 = vmul.f32 %v7093_v48, %v8122_v54  ;;  %v1648_v0 = vpack.c.bf16 %v1642_v62, %v1641_v32 }
 0x7e7   : > { %v1647_v61 = vpack.c.bf16 %v1640_v60, %v1639_v33  ;;  %v1907_v13 = vpop.xlane.xlu0 %1906 }
 0x7e9   : > { %6389 = vmatprep.mubr.msk.bf16.mxu0 %vm1268_vm2, %v1647_v61 }
 0x7ea   : > { %6390 = vmatmul.mubr.msk.bf16.vlgmr.msra.gmra.mrb[24].mxu0 %vm1268_vm2, %v1648_v0 }
 0x7eb   : > { %6414 = vmatpush3.bf16.msra.mxu0 %v1938_v22  ;;  %v1913_v54 = vpop.xlane.xlu0 %1912 }
 0x7ec   : > { %6415 = vmatprep.subr.bf16.mxu0 %v1940_v57 }
 0x7ef   : > { %6416 = vmatpush3.bf16.msra.mxu0 %v1940_v57  ;;  %v1916_v4 = vpop.xlane.xlu0 %1915 }
 0x7f0   : > { %6417 = vmatprep.subr.bf16.mxu0 %v1942_v20 }
 0x7f3   : > { %6418 = vmatpush3.bf16.msra.mxu0 %v1942_v20  ;;  %2036 = vrot.lane.b32.xlu1 %v7820_v3, %s9700_s16 }
 0x7f7   : > { %2038 = vrot.lane.b32.xlu1 %v7836_v24, %s9700_s16 }
 0x7fb   : > { %2040 = vrot.lane.b32.xlu1 %v7834_v19, %s9700_s16  ;;  %s9708_s16 = smov 8  }
 0x7ff   : > { %2028 = vrot.lane.b32.xlu1 %v7824_v7, %s9698_s23  ;;  %v7095_v7 = vpop.eup %7094 }
 0x800   : > { %v7097_v12 = vpop.eup %7096  ;;  %v1925_v23 = vmul.f32 %v7095_v7, %v8070_v35 }
 0x801   : > { %v1926_v18 = vmul.f32 %v7097_v12, %v8074_v29 }
 0x803   : > { %2032 = vrot.lane.b32.xlu1 %v7838_v25, %s9698_s23  ;;  %v2035_v25 = vpop.permute.xlu0 %2034  ;;  %s9704_s23 = smov 40  }
 0x807   : > { %v2027_v61 = vpop.permute.xlu0 %2026 }
 0x836   : > { %v1630_v49 = vpop.xlane.xlu1 %1629 }
 0x837   : > { %7098 = vrcp.f32 %v1630_v49 }
 0x838   : > { %7100 = vrcp.f32 %v1621_v11 }
 0x839   : > { %7102 = vrcp.f32 %v1627_v47 }
 0x83a   : > { %v1624_v9 = vpop.xlane.xlu1 %1623 }
 0x83b   : > { %7104 = vrcp.f32 %v1624_v9 }
 0x83c   : > { %7106 = vrcp.f32 %v8160_v16 }
 0x83d   : > { %7108 = vrcp.f32 %v8157_v21  ;;  %v1933_v21 = vpack.c.bf16 %v1926_v18, %v1925_v23 }
 0x83e   : > { %v1944_v10 = vpop.permute.xlu1 %1943  ;;  %7110 = vrcp.f32 %v1916_v4 }
 0x83f   : > { %6419 = vmatprep.subr.bf16.mxu0 %v1944_v10  ;;  %7112 = vrcp.f32 %v1907_v13 }
 0x840   : > { %6420 = vmatpush3.bf16.msra.mxu0 %v1944_v10  ;;  %7114 = vrcp.f32 %v1913_v54 }
 0x841   : > { %6745 = vmatprep.subr.msk.bf16.mxu0 %vm1178_vm1, %v2035_v25  ;;  %v7099_v2 = vpop.eup %7098 }
 0x842   : > { %v7101_v5 = vpop.eup %7100  ;;  %v1646_v15 = vmul.f32 %v7099_v2, %v8162_v17 }
 0x843   : > { %v7103_v14 = vpop.eup %7102  ;;  %v1643_v8 = vmul.f32 %v7101_v5, %v8128_v34 }
 0x844   : > { %v1645_v16 = vmul.f32 %v7103_v14, %v8124_v30  ;;  %v2055_v30 = vsel %vm1178_vm1, %v2035_v25, 0 }
 0x845   : > { %v7105_v45 = vpop.eup %7104 }
 0x846   : > { %v1644_v26 = vmul.f32 %v7105_v45, %v8166_v56  ;;  %v1650_v57 = vpack.c.bf16 %v1646_v15, %v1645_v16  ;;  %v7107_v27 = vpop.eup %7106 }
 0x847   : > { %v7109_v31 = vpop.eup %7108  ;;  %v1928_v34 = vmul.f32 %v7107_v27, %v8082_v39 }
 0x848   : > { %v1649_v22 = vpack.c.bf16 %v1644_v26, %v1643_v8  ;;  %v1927_v17 = vmul.f32 %v7109_v31, %v8078_v52  ;;  %v7111_v39 = vpop.eup %7110 }
 0x849   : > { %v7113_v52 = vpop.eup %7112  ;;  %v1932_v51 = vmul.f32 %v7111_v39, %v8142_v1 }
 0x84a   : > { %6393 = vmatprep.mubr.msk.bf16.mxu0 %vm1268_vm2, %v1649_v22  ;;  %v1934_v29 = vpack.c.bf16 %v1928_v34, %v1927_v17  ;;  %v7115_v38 = vpop.eup %7114  ;;  %v1929_v55 = vmul.f32 %v7113_v52, %v8134_v58 }
 0x84b   : > { %6394 = vmatmul.mubr.msk.bf16.gmra.mrb[28].mxu0 %vm1268_vm2, %v1650_v57  ;;  %v1931_v62 = vmul.f32 %v7115_v38, %v8138_v63 }
 0x84c   : > { %6421 = vmatprep.mubr.msk.bf16.mxu0 %vm1268_vm2, %v1933_v21 }
 0x84d   : > { %v1936_v32 = vpack.c.bf16 %v1932_v51, %v1931_v62 }
 0x853   : > { %6422 = vmatmul.mubr.msk.bf16.vlgmr.msra.gmra.mrb[32].mxu0 %vm1268_vm2, %v1934_v29 }
 0x854   : > { %6430 = vmatpush3.bf16.xpose.msra.mxu0 %v2055_v30 }
 0x86f   : > { %v1910_v35 = vpop.xlane.xlu1 %1909 }
 0x870   : > { %7116 = vrcp.f32 %v1910_v35 }
 0x873   : > { %v2037_v56 = vpop.permute.xlu1 %2036 }
 0x874   : > { %6746 = vmatprep.subr.msk.bf16.mxu0 %vm1178_vm1, %v2037_v56  ;;  %v2058_v20 = vsel %vm1178_vm1, %v2037_v56, 0 }
 0x875   : > { %6432 = vmatpush3.bf16.xpose.msra.mxu0 %v2058_v20 }
 0x877   : > { %v2039_v50 = vpop.permute.xlu1 %2038 }
 0x878   : > { %6747 = vmatprep.subr.msk.bf16.mxu0 %vm1178_vm1, %v2039_v50  ;;  %v2061_v48 = vsel %vm1178_vm1, %v2039_v50, 0 }
 0x87a   : > { %v7117_v53 = vpop.eup %7116 }
 0x87b   : > { %v1930_v59 = vmul.f32 %v7117_v53, %v8174_v46  ;;  %v2041_v33 = vpop.permute.xlu1 %2040  ;;  %v2031_v46 = vpop.permute.xlu0 %2030 }
 0x87c   : > { %v2064_v58 = vsel %vm1178_vm1, %v2041_v33, 0 }
 0x87d   : > { %6434 = vmatpush3.bf16.xpose.msra.mxu0 %v2061_v48  ;;  %v1935_v60 = vpack.c.bf16 %v1930_v59, %v1929_v55 }
 0x87e   : > { %6748 = vmatprep.subr.msk.bf16.mxu0 %vm1178_vm1, %v2041_v33 }
 0x87f   : > { %6425 = vmatprep.mubr.msk.bf16.mxu0 %vm1268_vm2, %v1935_v60  ;;  %v2029_v1 = vpop.permute.xlu1 %2028 }
 0x880   : > { %6426 = vmatmul.mubr.msk.bf16.gmra.mrb[36].mxu0 %vm1268_vm2, %v1936_v32 }
 0x881   : > { %6437 = vmatprep.mubr.msk.bf16.mxu0 %vm1178_vm1, %v2027_v61 }
 0x883   : > { %v2033_v63 = vpop.permute.xlu1 %2032 }
 0x885   : > { %6436 = vmatpush3.bf16.xpose.msra.mxu0 %v2064_v58 }
 0x88c   : > { %6438 = vmatmul.mubr.msk.bf16.vlgmr.msra.gmra.mrb[40].mxu0 %vm1178_vm1, %v2029_v1 }
 0x88d   : > { %6441 = vmatprep.mubr.msk.bf16.mxu0 %vm1178_vm1, %v2031_v46 }
 0x894   : > { %6442 = vmatmul.mubr.msk.bf16.gmra.mrb[44].mxu0 %vm1178_vm1, %v2033_v63 }
 0x8bd   : > { %v8228_v0 = vpop.f32.mrb[24].mxu0 }
 0x8be   : > { %v8230_v11 = vpop.f32.mrb[25].mxu0 }
 0x8bf   : > { %v8232_v13 = vpop.f32.mrb[26].mxu0 }
 0x8c0   : > { %v6853_v47 = vpack.i.bf16 %v8232_v13, %v8228_v0  ;;  %v8236_v54 = vpop.f32.mrb[27].mxu0 }
 0x8c1   : > { %v6848_v49 = vpack.i.bf16 %v8236_v54, %v8230_v11 }
 0x91e   : > { %v8240_v4 = vpop.f32.mrb[28].mxu0 }
 0x91f   : > { %v8242_v9 = vpop.f32.mrb[29].mxu0 }
 0x920   : > { %v8244_v10 = vpop.f32.mrb[30].mxu0 }
 0x921   : > { %v6883_v7 = vpack.i.bf16 %v8244_v10, %v8240_v4  ;;  %v8248_v25 = vpop.f32.mrb[31].mxu0 }
 0x922   : > { %v6878_v12 = vpack.i.bf16 %v8248_v25, %v8242_v9 }
 0x926   : > { %v8252_v2 = vpop.f32.mrb[32].mxu0 }
 0x927   : > { %v8254_v5 = vpop.f32.mrb[33].mxu0 }
 0x928   : > { %v8256_v14 = vpop.f32.mrb[34].mxu0 }
 0x929   : > { %v6863_v45 = vpack.i.bf16 %v8256_v14, %v8252_v2  ;;  %v8260_v15 = vpop.f32.mrb[35].mxu0 }
 0x92a   : > { %v6858_v8 = vpack.i.bf16 %v8260_v15, %v8254_v5 }
 0x953   : > { %v8264_v26 = vpop.f32.mrb[36].mxu0 }
 0x954   : > { %v8266_v18 = vpop.f32.mrb[37].mxu0 }
 0x955   : > { %v8268_v16 = vpop.f32.mrb[38].mxu0 }
 0x956   : > { %v6893_v22 = vpack.i.bf16 %v8268_v16, %v8264_v26  ;;  %v8272_v23 = vpop.f32.mrb[39].mxu0 }
 0x957   : > { %v6888_v57 = vpack.i.bf16 %v8272_v23, %v8266_v18 }
 0x95f   : > { %v6439_v27 = vpop.f32.mrb[40].mxu0 }
 0x960   : > { %v2100_v21 = vpop.f32.mrb[41].mxu0  ;;  %v2137_v30 = vsel %vm1268_vm2, %v6439_v27, -inf }
 0x961   : > { %v6440_v31 = vpop.f32.mrb[42].mxu0  ;;  %v2131_v34 = vsel %vm1268_vm2, %v2100_v21, -inf }
 0x962   : > { %2132 = vmax.xlane.f32.xlu0 %v2131_v34  ;;  %v2103_v17 = vpop.f32.mrb[43].mxu0  ;;  %v2140_v39 = vsel %vm1268_vm2, %v6440_v31, -inf }
 0x963   : > { %v2134_v29 = vsel %vm1268_vm2, %v2103_v17, -inf }
 0x964   : > { %2135 = vmax.xlane.f32.xlu1 %v2134_v29 }
 0x966   : > { %2138 = vmax.xlane.f32.xlu0 %v2137_v30 }
 0x967   : > { %v6443_v35 = vpop.f32.mrb[44].mxu0 }
 0x968   : > { %v2116_v56 = vpop.f32.mrb[45].mxu0  ;;  %v2149_v51 = vsel %vm1268_vm2, %v6443_v35, -inf }
 0x969   : > { %v6444_v20 = vpop.f32.mrb[46].mxu0  ;;  %v2143_v38 = vsel %vm1268_vm2, %v2116_v56, -inf }
 0x96a   : > { %2141 = vmax.xlane.f32.xlu0 %v2140_v39  ;;  %v2119_v50 = vpop.f32.mrb[47].mxu0  ;;  %v2152_v53 = vsel %vm1268_vm2, %v6444_v20, -inf }
 0x96b   : > { %v2146_v52 = vsel %vm1268_vm2, %v2119_v50, -inf }
 0x96c   : > { %2147 = vmax.xlane.f32.xlu1 %v2146_v52 }
 0x96e   : > { %2144 = vmax.xlane.f32.xlu0 %v2143_v38 }
 0x970   : > { %2153 = vmax.xlane.f32.xlu1 %v2152_v53 }
 0x972   : > { %2150 = vmax.xlane.f32.xlu0 %v2149_v51 }
 0x988   : > { %2223 = vrot.lane.b32.xlu0 %v7822_v6, %s9704_s23 }
 0x9ef   : > { %v2133_v55 = vpop.xlane.xlu0 %2132 }
 0x9f0   : > { %v2155_v59 = vsub.f32 %v2100_v21, %v2133_v55 }
 0x9f1   : > { %v2136_v48 = vpop.xlane.xlu1 %2135 }
 0x9f2   : > { %v2163_v60 = vmul.f32 1.442695, %v2155_v59  ;;  %v2156_v32 = vsub.f32 %v2103_v17, %v2136_v48 }
 0x9f3   : > { %v2139_v62 = vpop.xlane.xlu0 %2138 }
 0x9f4   : > { %v2157_v33 = vsub.f32 %v6439_v27, %v2139_v62  ;;  %v2165_v63 = vmul.f32 1.442695, %v2156_v32 }
 0x9f6   : > { %v2167_v61 = vmul.f32 1.442695, %v2157_v33 }
 0x9f7   : > { %v2142_v58 = vpop.xlane.xlu0 %2141 }
 0x9f8   : > { %7118 = vpow2.f32 %v2167_v61  ;;  %v2158_v1 = vsub.f32 %v6440_v31, %v2142_v58 }
 0x9f9   : > { %v2148_v46 = vpop.xlane.xlu1 %2147  ;;  %7120 = vpow2.f32 %v2163_v60 }
 0x9fa   : > { %v2169_v34 = vmul.f32 1.442695, %v2158_v1 }
 0x9fb   : > { %v2145_v29 = vpop.xlane.xlu0 %2144 }
 0x9fc   : > { %7122 = vpow2.f32 %v2169_v34  ;;  %v2159_v30 = vsub.f32 %v2116_v56, %v2145_v29  ;;  %v2160_v56 = vsub.f32 %v2119_v50, %v2148_v46 }
 0x9fd   : > { %7124 = vpow2.f32 %v2165_v63  ;;  %v2154_v6 = vpop.xlane.xlu1 %2153 }
 0x9fe   : > { %v2171_v27 = vmul.f32 1.442695, %v2159_v30  ;;  %v2162_v38 = vsub.f32 %v6444_v20, %v2154_v6  ;;  %v2173_v62 = vmul.f32 1.442695, %v2160_v56 }
 0x9ff   : > { %v2151_v39 = vpop.xlane.xlu0 %2150 }
 0xa00   : > { %v2161_v21 = vsub.f32 %v6443_v35, %v2151_v39  ;;  %v2177_v59 = vmul.f32 1.442695, %v2162_v38 }
 0xa02   : > { %v8286_v52 = vpop.eup %7118  ;;  %v2175_v17 = vmul.f32 1.442695, %v2161_v21 }
 0xa03   : > { %v2224_v53 = vpop.permute.xlu0 %2223  ;;  %v2185_v31 = vsel %vm1268_vm2, %v8286_v52, 0.0  ;;  %v7121_v51 = vpop.eup %7120 }
 0xa04   : > { %7126 = vpow2.f32 %v2175_v17  ;;  %2186 = vadd.xlane.f32.xlu0 %v2185_v31  ;;  %6445 = vmatprep.subr.bf16.mxu1 %v2224_v53  ;;  %v2179_v35 = vsel %vm1268_vm2, %v7121_v51, 0.0 }
 0xa05   : > { %6446 = vmatpush3.bf16.msra.mxu1 %v2224_v53  ;;  %7128 = vpow2.f32 %v2171_v27 }
 0xa06   : > { %v8290_v55 = vpop.eup %7122  ;;  %7130 = vpow2.f32 %v2177_v59 }
 0xa07   : > { %v2188_v20 = vsel %vm1268_vm2, %v8290_v55, 0.0  ;;  %v7125_v48 = vpop.eup %7124  ;;  %7132 = vpow2.f32 %v2173_v62 }
 0xa08   : > { %2180 = vadd.xlane.f32.xlu0 %v2179_v35  ;;  %2189 = vadd.xlane.f32.xlu1 %v2188_v20  ;;  %v2182_v33 = vsel %vm1268_vm2, %v7125_v48, 0.0  ;;  %v6970_v20 = vld [vmem:[%s7572_s25] sm:$0xff]  }
 0xa0c   : > { %2183 = vadd.xlane.f32.xlu1 %v2182_v33 }
 0xa0e   : > { %v8296_v60 = vpop.eup %7126 }
 0xa0f   : > { %v2197_v50 = vsel %vm1268_vm2, %v8296_v60, 0.0  ;;  %v7129_v32 = vpop.eup %7128 }
 0xa10   : > { %2198 = vadd.xlane.f32.xlu1 %v2197_v50  ;;  %v2191_v61 = vsel %vm1268_vm2, %v7129_v32, 0.0  ;;  %v7131_v58 = vpop.eup %7130 }
 0xa11   : > { %v2200_v1 = vsel %vm1268_vm2, %v7131_v58, 0.0  ;;  %v7133_v46 = vpop.eup %7132 }
 0xa12   : > { %v2194_v63 = vsel %vm1268_vm2, %v7133_v46, 0.0 }
 0xa14   : > { %2192 = vadd.xlane.f32.xlu1 %v2191_v61 }
 0xa18   : > { %2201 = vadd.xlane.f32.xlu1 %v2200_v1 }
 0xa1c   : > { %2195 = vadd.xlane.f32.xlu1 %v2194_v63 }
 0xa1e   : > { %2227 = vrot.lane.b32.xlu0 %v7836_v24, %s9704_s23 }
 0xa22   : > { %2229 = vrot.lane.b32.xlu0 %v7834_v19, %s9704_s23 }
 0xa26   : > { %6849 = vrot.lane.b32.xlu0 %v6848_v49, %s9708_s16 }
 0xa2a   : > { %6859 = vrot.lane.b32.xlu0 %v6858_v8, %s7535_s2 }
 0xa2d   : > { %2225 = vrot.lane.b32.xlu1 %v7820_v3, %s9704_s23  ;;  %s9706_s23 = smov 24  }
 0xa31   : > { %6854 = vrot.lane.b32.xlu1 %v6853_v47, %s9708_s16 }
 0xa35   : > { %6864 = vrot.lane.b32.xlu1 %v6863_v45, %s7535_s2 }
 0xa91   : > { %v2187_v19 = vpop.xlane.xlu0 %2186 }
 0xa95   : > { %v2181_v24 = vpop.xlane.xlu0 %2180  ;;  %v2190_v11 = vpop.xlane.xlu1 %2189 }
 0xa96   : > { %7134 = vrcp.f32 %v2181_v24 }
 0xa99   : > { %v2184_v54 = vpop.xlane.xlu1 %2183  ;;  %v2228_v47 = vpop.permute.xlu0 %2227 }
 0xa9a   : > { %7136 = vrcp.f32 %v2184_v54 }
 0xa9b   : > { %7138 = vrcp.f32 %v2190_v11 }
 0xa9c   : > { %7140 = vrcp.f32 %v2187_v19 }
 0xa9d   : > { %v2199_v49 = vpop.xlane.xlu1 %2198  ;;  %v2230_v6 = vpop.permute.xlu0 %2229 }
 0xaa0   : > { %v7135_v15 = vpop.eup %7134 }
 0xaa1   : > { %v2193_v5 = vpop.xlane.xlu1 %2192  ;;  %v2211_v34 = vmul.f32 %v7135_v15, %v7121_v51  ;;  %v6850_v9 = vpop.permute.xlu0 %6849 }
 0xaa2   : > { %7142 = vrcp.f32 %v2193_v5  ;;  %v6851_v25 = vunpack.i.l.bf16 %v6850_v9 }
 0xaa4   : > { %v7137_v3 = vpop.eup %7136  ;;  %v2408_v23 = vsel %vm1178_vm1, %v7994_v37, %v6851_v25 }
 0xaa5   : > { %v2202_v8 = vpop.xlane.xlu1 %2201  ;;  %v2212_v29 = vmul.f32 %v7137_v3, %v7125_v48  ;;  %v7139_v14 = vpop.eup %7138  ;;  %v6971_v48 = vld [vmem:[%s7572_s25 + $0x8] sm:$0xff]  }
 0xaa6   : > { %v7141_v45 = vpop.eup %7140  ;;  %v2214_v21 = vmul.f32 %v7139_v14, %v8290_v55 }
 0xaa7   : > { %v2219_v0 = vpack.c.bf16 %v2212_v29, %v2211_v34  ;;  %v2213_v38 = vmul.f32 %v7141_v45, %v8286_v52 }
 0xaa9   : > { %6453 = vmatprep.mubr.msk.bf16.mxu1 %vm1268_vm2, %v2219_v0  ;;  %v2196_v13 = vpop.xlane.xlu1 %2195  ;;  %v2220_v53 = vpack.c.bf16 %v2214_v21, %v2213_v38 }
 0xaaa   : > { %7144 = vrcp.f32 %v2196_v13 }
 0xaab   : > { %7146 = vrcp.f32 %v2202_v8 }
 0xaac   : > { %7148 = vrcp.f32 %v2199_v49  ;;  %v7143_v30 = vpop.eup %7142 }
 0xaad   : > { %v2226_v2 = vpop.permute.xlu1 %2225  ;;  %v2215_v17 = vmul.f32 %v7143_v30, %v7129_v32 }
 0xaae   : > { %6447 = vmatprep.subr.bf16.mxu1 %v2226_v2 }
 0xaaf   : > { %6448 = vmatpush3.bf16.msra.mxu1 %v2226_v2 }
 0xab0   : > { %6449 = vmatprep.subr.bf16.mxu1 %v2228_v47 }
 0xab1   : > { %v6855_v4 = vpop.permute.xlu1 %6854 }
 0xab2   : > { %v6857_v24 = vunpack.i.h.bf16 %v6855_v4  ;;  %v6856_v11 = vunpack.i.l.bf16 %v6855_v4  ;;  %v6001_v4 = vld [vmem:[%s7577_s29] ss:$0 sm:$0xff] }
 0xab3   : > { %6450 = vmatpush3.bf16.msra.mxu1 %v2228_v47 }
 0xab4   : > { %v7145_v39 = vpop.eup %7144  ;;  %6451 = vmatprep.subr.bf16.mxu1 %v2230_v6  ;;  %v2411_v49 = vsel %vm1178_vm1, %v7996_v40, %v6857_v24  ;;  %v2410_v5 = vsel %vm1178_vm1, %v7992_v36, %v6856_v11  ;;  %v7422_v11 = vld [vmem:[%s7745_s22] sm:$0xff] }
 0xab5   : > { %v2216_v27 = vmul.f32 %v7145_v39, %v7133_v46  ;;  %v7147_v31 = vpop.eup %7146  ;;  %v6865_v10 = vpop.permute.xlu1 %6864 }
 0xab6   : > { %v7149_v56 = vpop.eup %7148  ;;  %v2218_v59 = vmul.f32 %v7147_v31, %v7131_v58  ;;  %v6867_v54 = vunpack.i.h.bf16 %v6865_v10  ;;  %v6866_v26 = vunpack.i.l.bf16 %v6865_v10 }
 0xab7   : > { %6452 = vmatpush3.bf16.msra.mxu1 %v2230_v6  ;;  %v2221_v51 = vpack.c.bf16 %v2216_v27, %v2215_v17  ;;  %v2217_v35 = vmul.f32 %v7149_v56, %v8296_v60 }
 0xab8   : > { %6461 = vmatprep.subr.bf16.mxu1 %v6970_v20  ;;  %v2419_v34 = vsel %vm2416_vm3, %v2410_v5, %v6866_v26  ;;  %v2420_v29 = vsel %vm2416_vm3, %v2411_v49, %v6867_v54 }
 0xab9   : > { %v2222_v55 = vpack.c.bf16 %v2218_v59, %v2217_v35 }
 0xaba   : > { %6454 = vmatmul.mubr.msk.bf16.vlgmr.msra.gmra.mrb[16].mxu1 %vm1268_vm2, %v2220_v53 }
 0xabb   : > { %6457 = vmatprep.mubr.msk.bf16.mxu1 %vm1268_vm2, %v2221_v51  ;;  %6462 = vmatpush3.bf16.msra.mxu1 %v6970_v20 }
 0xabc   : > { %6463 = vmatprep.subr.bf16.mxu1 %v6971_v48 }
 0xabf   : > { %6464 = vmatpush3.bf16.msra.mxu1 %v6971_v48 }
 0xac2   : > { %6458 = vmatmul.mubr.msk.bf16.gmra.mrb[20].mxu1 %vm1268_vm2, %v2222_v55 }
 0xb8d   : > { %v6455_v52 = vpop.f32.mrb[16].mxu1 }
 0xb8e   : > { %v2281_v62 = vpop.f32.mrb[17].mxu1 }
 0xb8f   : > { %v6456_v33 = vpop.f32.mrb[18].mxu1 }
 0xb90   : > { %v6873_v50 = vpack.i.bf16 %v6456_v33, %v6455_v52  ;;  %v2284_v32 = vpop.f32.mrb[19].mxu1 }
 0xb91   : > { %v6868_v61 = vpack.i.bf16 %v2284_v32, %v2281_v62 }
 0xb92   : > { %6874 = vrot.lane.b32.xlu1 %v6873_v50, %s9706_s23 }
 0xb93   : > { %6869 = vrot.lane.b32.xlu0 %v6868_v61, %s9706_s23 }
 0xb95   : > { %v6459_v60 = vpop.f32.mrb[20].mxu1 }
 0xb96   : > { %6884 = vrot.lane.b32.xlu1 %v6883_v7, %s9708_s16  ;;  %v2297_v58 = vpop.f32.mrb[21].mxu1  ;;  %v6852_v7 = vunpack.i.h.bf16 %v6850_v9 }
 0xb97   : > { %6879 = vrot.lane.b32.xlu0 %v6878_v12, %s9708_s16  ;;  %v6460_v1 = vpop.f32.mrb[22].mxu1  ;;  %v6860_v12 = vpop.permute.xlu0 %6859 }
 0xb98   : > { %v6903_v46 = vpack.i.bf16 %v6460_v1, %v6459_v60  ;;  %v2300_v63 = vpop.f32.mrb[23].mxu1  ;;  %v6862_v16 = vunpack.i.h.bf16 %v6860_v12  ;;  %v2409_v18 = vsel %vm1178_vm1, %v7998_v41, %v6852_v7 }
 0xb99   : > { %v6898_v19 = vpack.i.bf16 %v2300_v63, %v2297_v58 }
 0xb9a   : > { %6894 = vrot.lane.b32.xlu1 %v6893_v22, %s7535_s2  ;;  %v6861_v22 = vunpack.i.l.bf16 %v6860_v12  ;;  %v2418_v13 = vsel %vm2416_vm3, %v2409_v18, %v6862_v16  ;;  %v7423_v16 = vld [vmem:[%s7745_s22 + $0x10] sm:$0xff] }
 0xb9b   : > { %6889 = vrot.lane.b32.xlu0 %v6888_v57, %s7535_s2 }
 0xb9c   : > { %v2417_v37 = vsel %vm2416_vm3, %v2408_v23, %v6861_v22  ;;  %v7424_v23 = vld [vmem:[%s7745_s22 + $0x8] sm:$0xff] }
 0xb9e   : > { %6904 = vrot.lane.b32.xlu1 %v6903_v46, %s9706_s23 }
 0xb9f   : > { %6899 = vrot.lane.b32.xlu0 %v6898_v19, %s9706_s23  ;;  %s9740_s23 = sld [smem:[#allocation11_spill]] }
 0xc04   : > { %v6875_v57 = vpop.permute.xlu1 %6874 }
 0xc05   : > { %v6877_v15 = vunpack.i.h.bf16 %v6875_v57  ;;  %v6876_v3 = vunpack.i.l.bf16 %v6875_v57  ;;  %v6870_v8 = vpop.permute.xlu0 %6869 }
 0xc06   : > { %v6872_v41 = vunpack.i.h.bf16 %v6870_v8  ;;  %v6871_v0 = vunpack.i.l.bf16 %v6870_v8 }
 0xc07   : > { %v2428_v47 = vsel %vm2425_vm4, %v2419_v34, %v6876_v3  ;;  %v2429_v40 = vsel %vm2425_vm4, %v2420_v29, %v6877_v15  ;;  %v7425_v15 = vld [vmem:[%s7745_s22 + $0x18] sm:$0xff] }
 0xc08   : > { %v2435_v2 = vpack.c.bf16 %v2429_v40, %v2428_v47  ;;  %v2427_v36 = vsel %vm2425_vm4, %v2418_v13, %v6872_v41  ;;  %v2426_v14 = vsel %vm2425_vm4, %v2417_v37, %v6871_v0  ;;  %v6885_v45 = vpop.permute.xlu1 %6884  ;;  %v7426_v40 = vld [vmem:[%s7745_s22 + $0x20] sm:$0xff] }
 0xc09   : > { %v6880_v30 = vpop.permute.xlu0 %6879  ;;  %v2434_v6 = vpack.c.bf16 %v2427_v36, %v2426_v14  ;;  %v6887_v39 = vunpack.i.h.bf16 %v6885_v45  ;;  %v6886_v21 = vunpack.i.l.bf16 %v6885_v45  ;;  %v7427_v45 = vld [vmem:[%s7745_s22 + $0x30] sm:$0xff] }
 0xc0a   : > { %v6882_v38 = vunpack.i.h.bf16 %v6880_v30  ;;  %v6881_v17 = vunpack.i.l.bf16 %v6880_v30 }
 0xc0b   : > { %6465 = vmatprep.mubr.msk.bf16.mxu1 %vm910_vm0, %v2434_v6  ;;  %v2415_v35 = vsel %vm1178_vm1, %v8004_v28, %v6887_v39  ;;  %v2414_v55 = vsel %vm1178_vm1, %v8000_v42, %v6886_v21  ;;  %v7428_v6 = vld [vmem:[%s7745_s22 + $0x28] sm:$0xff] }
 0xc0c   : > { %v6895_v27 = vpop.permute.xlu1 %6894  ;;  %6466 = vmatmul.mubr.msk.bf16.vlgmr.msra.gmra.mrb[24].mxu1 %vm910_vm0, %v2435_v2  ;;  %v2413_v48 = vsel %vm1178_vm1, %v8006_v44, %v6882_v38  ;;  %v2412_v52 = vsel %vm1178_vm1, %v8002_v43, %v6881_v17 }
 0xc0d   : > { %v6890_v53 = vpop.permute.xlu0 %6889  ;;  %v6897_v31 = vunpack.i.h.bf16 %v6895_v27  ;;  %v6896_v51 = vunpack.i.l.bf16 %v6895_v27  ;;  %v7429_v27 = vld [vmem:[%s7745_s22 + $0x38] sm:$0xff]  ;;  %s9739_s22 = sld [smem:[#allocation10_spill]] }
 0xc0e   : > { %v6892_v56 = vunpack.i.h.bf16 %v6890_v53  ;;  %v6891_v59 = vunpack.i.l.bf16 %v6890_v53 }
 0xc0f   : > { %v2423_v32 = vsel %vm2416_vm3, %v2414_v55, %v6896_v51  ;;  %v2424_v61 = vsel %vm2416_vm3, %v2415_v35, %v6897_v31 }
 0xc10   : > { %v6905_v20 = vpop.permute.xlu1 %6904  ;;  %v2421_v58 = vsel %vm2416_vm3, %v2412_v52, %v6891_v59  ;;  %v2422_v42 = vsel %vm2416_vm3, %v2413_v48, %v6892_v56 }
 0xc11   : > { %v6907_v62 = vunpack.i.h.bf16 %v6905_v20  ;;  %v6906_v33 = vunpack.i.l.bf16 %v6905_v20  ;;  %v6900_v50 = vpop.permute.xlu0 %6899 }
 0xc12   : > { %v6902_v60 = vunpack.i.h.bf16 %v6900_v50  ;;  %v6901_v28 = vunpack.i.l.bf16 %v6900_v50 }
 0xc13   : > { %v2432_v44 = vsel %vm2425_vm4, %v2423_v32, %v6906_v33  ;;  %v2433_v1 = vsel %vm2425_vm4, %v2424_v61, %v6907_v62 }
 0xc14   : > { %v2431_v43 = vsel %vm2425_vm4, %v2422_v42, %v6902_v60  ;;  %v2430_v46 = vsel %vm2425_vm4, %v2421_v58, %v6901_v28  ;;  %v2437_v63 = vpack.c.bf16 %v2433_v1, %v2432_v44 }
 0xc15   : > { %v2436_v19 = vpack.c.bf16 %v2431_v43, %v2430_v46 }
 0xc17   : > { %6469 = vmatprep.mubr.msk.bf16.mxu1 %vm910_vm0, %v2436_v19 }
 0xc18   : > { %6470 = vmatmul.mubr.msk.bf16.gmra.mrb[28].mxu1 %vm910_vm0, %v2437_v63 }
 0xcdf   : > { %v6467_v9 = vpop.f32.mrb[24].mxu1 }
 0xce0   : > { %v2507_v10 = vpop.f32.mrb[25].mxu1  ;;  %v2516_v7 = vadd.f32 %v6467_v9, %v6001_v4 }
 0xce1   : > { %v2508_v25 = vadd.f32 %v6001_v4, %v2507_v10  ;;  %v6468_v12 = vpop.f32.mrb[26].mxu1 }
 0xce2   : > { %v2510_v24 = vpop.f32.mrb[27].mxu1  ;;  %v8395_v22 = vadd.f32 %v7423_v16, %v2516_v7  ;;  %v2519_v18 = vadd.f32 %v6468_v12, %v6001_v4 }
 0xce3   : > { %v8392_v54 = vadd.f32 %v7422_v11, %v2508_v25  ;;  %v2511_v26 = vadd.f32 %v6001_v4, %v2510_v24 }
 0xce4   : > { %v8405_v3 = vadd.f32 %v7425_v15, %v2519_v18  ;;  %v2552_v8 = vsel %vm910_vm0, %v8395_v22, 0.0 }
 0xce5   : > { %v8398_v57 = vadd.f32 %v7424_v23, %v2511_v26  ;;  %v2546_v49 = vsel %vm910_vm0, %v8392_v54, 0.0 }
 0xce6   : > { %2547 = vadd.xlane.f32.xlu0 %v2546_v49  ;;  %v2555_v13 = vsel %vm910_vm0, %v8405_v3, 0.0 }
 0xce7   : > { %v2549_v5 = vsel %vm910_vm0, %v8398_v57, 0.0 }
 0xce8   : > { %2550 = vadd.xlane.f32.xlu1 %v2549_v5 }
 0xcea   : > { %2553 = vadd.xlane.f32.xlu0 %v2552_v8 }
 0xceb   : > { %v6471_v34 = vpop.f32.mrb[28].mxu1 }
 0xcec   : > { %v2523_v29 = vpop.f32.mrb[29].mxu1  ;;  %v2532_v41 = vadd.f32 %v6471_v34, %v6001_v4 }
 0xced   : > { %v2524_v0 = vadd.f32 %v6001_v4, %v2523_v29  ;;  %v6472_v37 = vpop.f32.mrb[30].mxu1  ;;  %v6972_v29 = vld [vmem:[%s7592_s14] sm:$0xff]  }
 0xcee   : > { %v2526_v47 = vpop.f32.mrb[31].mxu1  ;;  %2556 = vadd.xlane.f32.xlu0 %v2555_v13  ;;  %v2535_v36 = vadd.f32 %v6472_v37, %v6001_v4  ;;  %v8415_v30 = vadd.f32 %v7427_v45, %v2532_v41  ;;  %6473 = vmatprep.subr.bf16.mxu0 %v6972_v29  ;;  %v6973_v41 = vld [vmem:[%s7592_s14 + $0x8] sm:$0xff]  }
 0xcef   : > { %v8412_v2 = vadd.f32 %v7426_v40, %v2524_v0  ;;  %v2527_v14 = vadd.f32 %v6001_v4, %v2526_v47  ;;  %6474 = vmatpush3.bf16.msra.mxu0 %v6972_v29 }
 0xcf0   : > { %v8423_v38 = vadd.f32 %v7429_v27, %v2535_v36  ;;  %v2564_v53 = vsel %vm910_vm0, %v8415_v30, 0.0  ;;  %6475 = vmatprep.subr.bf16.mxu0 %v6973_v41 }
 0xcf1   : > { %v8418_v39 = vadd.f32 %v7428_v6, %v2527_v14  ;;  %v2558_v21 = vsel %vm910_vm0, %v8412_v2, 0.0 }
 0xcf2   : > { %2559 = vadd.xlane.f32.xlu0 %v2558_v21  ;;  %v2567_v31 = vsel %vm910_vm0, %v8423_v38, 0.0 }
 0xcf3   : > { %v2561_v17 = vsel %vm910_vm0, %v8418_v39, 0.0  ;;  %6476 = vmatpush3.bf16.msra.mxu0 %v6973_v41 }
 0xcf4   : > { %2562 = vadd.xlane.f32.xlu1 %v2561_v17 }
 0xcf6   : > { %2565 = vadd.xlane.f32.xlu0 %v2564_v53 }
 0xcf8   : > { %2568 = vadd.xlane.f32.xlu1 %v2567_v31 }
 0xd73   : > { %v2548_v51 = vpop.xlane.xlu0 %2547 }
 0xd74   : > { %v2570_v56 = vmul.f32 0.03125, %v2548_v51 }
 0xd75   : > { %v2551_v59 = vpop.xlane.xlu1 %2550 }
 0xd76   : > { %v8432_v35 = vsub.f32 %v8392_v54, %v2570_v56  ;;  %v2571_v55 = vmul.f32 0.03125, %v2551_v59  ;;  %v6008_v59 = vld [vmem:[%s9737_s3] ss:$0 sm:$0xff]  ;;  %s9766_s3 = sld [smem:[#allocation18_spill]] }
 0xd77   : > { %v2554_v20 = vpop.xlane.xlu0 %2553 }
 0xd78   : > { %v8435_v48 = vsub.f32 %v8398_v57, %v2571_v55  ;;  %v2572_v52 = vmul.f32 0.03125, %v2554_v20  ;;  %v2586_v62 = vmul.f32 %v8432_v35, %v8432_v35 }
 0xd7a   : > { %v8440_v33 = vsub.f32 %v8395_v22, %v2572_v52  ;;  %v2594_v50 = vsel %vm910_vm0, %v2586_v62, 0.0  ;;  %v2587_v32 = vmul.f32 %v8435_v48, %v8435_v48 }
 0xd7b   : > { %2595 = vadd.xlane.f32.xlu0 %v2594_v50  ;;  %v2557_v61 = vpop.xlane.xlu0 %2556 }
 0xd7c   : > { %v2573_v60 = vmul.f32 0.03125, %v2557_v61  ;;  %v2597_v28 = vsel %vm910_vm0, %v2587_v32, 0.0  ;;  %v2588_v58 = vmul.f32 %v8440_v33, %v8440_v33 }
 0xd7d   : > { %2598 = vadd.xlane.f32.xlu1 %v2597_v28 }
 0xd7e   : > { %v8449_v42 = vsub.f32 %v8405_v3, %v2573_v60  ;;  %v2600_v44 = vsel %vm910_vm0, %v2588_v58, 0.0 }
 0xd7f   : > { %2601 = vadd.xlane.f32.xlu0 %v2600_v44  ;;  %v2560_v1 = vpop.xlane.xlu0 %2559 }
 0xd80   : > { %v2574_v43 = vmul.f32 0.03125, %v2560_v1  ;;  %v2589_v46 = vmul.f32 %v8449_v42, %v8449_v42  ;;  %v6009_v1 = vld [vmem:[%s9738_s8] ss:$0 sm:$0xff] }
 0xd81   : > { %v2563_v63 = vpop.xlane.xlu1 %2562 }
 0xd82   : > { %v8455_v19 = vsub.f32 %v8412_v2, %v2574_v43  ;;  %v2575_v4 = vmul.f32 0.03125, %v2563_v63  ;;  %v2603_v9 = vsel %vm910_vm0, %v2589_v46, 0.0 }
 0xd83   : > { %2604 = vadd.xlane.f32.xlu1 %v2603_v9  ;;  %v2566_v10 = vpop.xlane.xlu0 %2565 }
 0xd84   : > { %v8459_v7 = vsub.f32 %v8418_v39, %v2575_v4  ;;  %v2576_v25 = vmul.f32 0.03125, %v2566_v10  ;;  %v2590_v12 = vmul.f32 %v8455_v19, %v8455_v19 }
 0xd85   : > { %v2569_v24 = vpop.xlane.xlu1 %2568 }
 0xd86   : > { %v8464_v11 = vsub.f32 %v8415_v30, %v2576_v25  ;;  %v2577_v26 = vmul.f32 0.03125, %v2569_v24  ;;  %v2606_v16 = vsel %vm910_vm0, %v2590_v12, 0.0  ;;  %v2591_v18 = vmul.f32 %v8459_v7, %v8459_v7 }
 0xd87   : > { %2607 = vadd.xlane.f32.xlu0 %v2606_v16 }
 0xd88   : > { %v8470_v23 = vsub.f32 %v8423_v38, %v2577_v26  ;;  %v2609_v49 = vsel %vm910_vm0, %v2591_v18, 0.0  ;;  %v2592_v5 = vmul.f32 %v8464_v11, %v8464_v11 }
 0xd89   : > { %2610 = vadd.xlane.f32.xlu1 %v2609_v49 }
 0xd8a   : > { %v2612_v15 = vsel %vm910_vm0, %v2592_v5, 0.0  ;;  %v2593_v8 = vmul.f32 %v8470_v23, %v8470_v23 }
 0xd8b   : > { %2613 = vadd.xlane.f32.xlu0 %v2612_v15 }
 0xd8c   : > { %v2615_v34 = vsel %vm910_vm0, %v2593_v8, 0.0 }
 0xd8d   : > { %2616 = vadd.xlane.f32.xlu1 %v2615_v34 }
 0xe08   : > { %v2596_v0 = vpop.xlane.xlu0 %2595 }
 0xe09   : > { %v2618_v37 = vmul.f32 0.03125, %v2596_v0 }
 0xe0a   : > { %v2599_v13 = vpop.xlane.xlu1 %2598 }
 0xe0b   : > { %v2626_v47 = vadd.f32 1e-06, %v2618_v37  ;;  %v2619_v40 = vmul.f32 0.03125, %v2599_v13 }
 0xe0c   : > { %v2602_v36 = vpop.xlane.xlu0 %2601 }
 0xe0d   : > { %7150 = vrsqrt.f32 %v2626_v47  ;;  %v2627_v14 = vadd.f32 1e-06, %v2619_v40  ;;  %v2620_v45 = vmul.f32 0.03125, %v2602_v36 }
 0xe0f   : > { %7152 = vrsqrt.f32 %v2627_v14  ;;  %v2628_v6 = vadd.f32 1e-06, %v2620_v45 }
 0xe10   : > { %v2605_v21 = vpop.xlane.xlu1 %2604 }
 0xe11   : > { %7154 = vrsqrt.f32 %v2628_v6  ;;  %v2621_v27 = vmul.f32 0.03125, %v2605_v21  ;;  %v6975_v6 = vld [vmem:[%s7602_s24 + $0x8] sm:$0xff]   ;;  %v6977_v21 = vld [vmem:[%s7602_s24 + $0x18] sm:$0xff]  }
 0xe13   : > { %v2629_v17 = vadd.f32 1e-06, %v2621_v27  ;;  %v6978_v27 = vld [vmem:[%s7602_s24 + $0x20] sm:$0xff]  }
 0xe14   : > { %v2608_v53 = vpop.xlane.xlu0 %2607 }
 0xe15   : > { %7156 = vrsqrt.f32 %v2629_v17  ;;  %v2622_v31 = vmul.f32 0.03125, %v2608_v53  ;;  %v6979_v17 = vld [vmem:[%s7602_s24 + $0x28] sm:$0xff]   ;;  %v6980_v53 = vld [vmem:[%s7602_s24 + $0x30] sm:$0xff]  }
 0xe16   : > { %v2611_v51 = vpop.xlane.xlu1 %2610 }
 0xe17   : > { %v7151_v56 = vpop.eup %7150  ;;  %v2630_v55 = vadd.f32 1e-06, %v2622_v31  ;;  %v2623_v20 = vmul.f32 0.03125, %v2611_v51  ;;  %v6981_v31 = vld [vmem:[%s7602_s24 + $0x38] sm:$0xff]   ;;  %v6010_v51 = vld [vmem:[%s7597_s19] ss:$0 sm:$0xff] }
 0xe18   : > { %v2614_v52 = vpop.xlane.xlu0 %2613  ;;  %v2642_v62 = vmul.f32 %v7151_v56, %v8432_v35 }
 0xe19   : > { %v7153_v50 = vpop.eup %7152  ;;  %7158 = vrsqrt.f32 %v2630_v55  ;;  %v2631_v32 = vadd.f32 1e-06, %v2623_v20  ;;  %v2624_v61 = vmul.f32 0.03125, %v2614_v52 }
 0xe1a   : > { %v2617_v60 = vpop.xlane.xlu1 %2616  ;;  %v2643_v28 = vmul.f32 %v7153_v50, %v8435_v48  ;;  %v2657_v58 = vmul.f32 %v6008_v59, %v2642_v62 }
 0xe1b   : > { %v7155_v44 = vpop.eup %7154  ;;  %7160 = vrsqrt.f32 %v2631_v32  ;;  %v2632_v43 = vadd.f32 1e-06, %v2624_v61  ;;  %v2625_v46 = vmul.f32 0.03125, %v2617_v60 }
 0xe1c   : > { %v2644_v63 = vmul.f32 %v7155_v44, %v8440_v33  ;;  %v2658_v4 = vmul.f32 %v6008_v59, %v2643_v28  ;;  %v2672_v10 = vadd.f32 %v6009_v1, %v2657_v58 }
 0xe1d   : > { %7162 = vrsqrt.f32 %v2632_v43  ;;  %v2633_v9 = vadd.f32 1e-06, %v2625_v46 }
 0xe1e   : > { %v2673_v35 = vadd.f32 %v6009_v1, %v2658_v4  ;;  %v2659_v12 = vmul.f32 %v6008_v59, %v2644_v63 }
 0xe1f   : > { %v7157_v25 = vpop.eup %7156  ;;  %7164 = vrsqrt.f32 %v2633_v9 }
 0xe20   : > { %v2645_v24 = vmul.f32 %v7157_v25, %v8449_v42  ;;  %v2680_v26 = vpack.c.bf16 %v2673_v35, %v2672_v10  ;;  %v2674_v18 = vadd.f32 %v6009_v1, %v2659_v12 }
 0xe22   : > { %v2660_v48 = vmul.f32 %v6008_v59, %v2645_v24  ;;  %6477 = vmatprep.mubr.msk.bf16.mxu0 %vm910_vm0, %v2680_v26 }
 0xe23   : > { %v7159_v16 = vpop.eup %7158 }
 0xe24   : > { %v2675_v49 = vadd.f32 %v6009_v1, %v2660_v48  ;;  %v2646_v5 = vmul.f32 %v7159_v16, %v8455_v19 }
 0xe25   : > { %v7161_v33 = vpop.eup %7160 }
 0xe26   : > { %v2681_v15 = vpack.c.bf16 %v2675_v49, %v2674_v18  ;;  %v2647_v8 = vmul.f32 %v7161_v33, %v8459_v7  ;;  %v2661_v34 = vmul.f32 %v6008_v59, %v2646_v5 }
 0xe27   : > { %v7163_v29 = vpop.eup %7162 }
 0xe28   : > { %6478 = vmatmul.mubr.msk.bf16.vlgmr.msra.gmra.mrb[48].mxu0 %vm910_vm0, %v2681_v15  ;;  %v2662_v41 = vmul.f32 %v6008_v59, %v2647_v8  ;;  %v2648_v42 = vmul.f32 %v7163_v29, %v8464_v11  ;;  %v2676_v37 = vadd.f32 %v6009_v1, %v2661_v34  ;;  %v6974_v11 = vld [vmem:[%s7602_s24] sm:$0xff]  }
 0xe29   : > { %v7165_v0 = vpop.eup %7164  ;;  %6485 = vmatprep.subr.bf16.mxu1 %v6974_v11 }
 0xe2a   : > { %v2677_v13 = vadd.f32 %v6009_v1, %v2662_v41  ;;  %v2649_v47 = vmul.f32 %v7165_v0, %v8470_v23  ;;  %v2663_v19 = vmul.f32 %v6008_v59, %v2648_v42  ;;  %6486 = vmatpush3.bf16.msra.mxu1 %v6974_v11  ;;  %v6976_v23 = vld [vmem:[%s7602_s24 + $0x10] sm:$0xff]  }
 0xe2b   : > { %6487 = vmatprep.subr.bf16.mxu1 %v6975_v6 }
 0xe2c   : > { %v2682_v40 = vpack.c.bf16 %v2677_v13, %v2676_v37  ;;  %v2664_v36 = vmul.f32 %v6008_v59, %v2649_v47  ;;  %v2678_v7 = vadd.f32 %v6009_v1, %v2663_v19 }
 0xe2e   : > { %6481 = vmatprep.mubr.msk.bf16.mxu0 %vm910_vm0, %v2682_v40  ;;  %v2679_v14 = vadd.f32 %v6009_v1, %v2664_v36  ;;  %6488 = vmatpush3.bf16.msra.mxu1 %v6975_v6 }
 0xe2f   : > { %6489 = vmatprep.subr.bf16.mxu1 %v6976_v23 }
 0xe30   : > { %v2683_v45 = vpack.c.bf16 %v2679_v14, %v2678_v7 }
 0xe32   : > { %6482 = vmatmul.mubr.msk.bf16.gmra.mrb[52].mxu0 %vm910_vm0, %v2683_v45  ;;  %6490 = vmatpush3.bf16.msra.mxu1 %v6976_v23 }
 0xe33   : > { %6491 = vmatprep.subr.bf16.mxu1 %v6977_v21 }
 0xe36   : > { %6492 = vmatpush3.bf16.msra.mxu1 %v6977_v21 }
 0xe37   : > { %6493 = vmatprep.subr.bf16.mxu1 %v6978_v27 }
 0xe3a   : > { %6494 = vmatpush3.bf16.msra.mxu1 %v6978_v27 }
 0xe3b   : > { %6495 = vmatprep.subr.bf16.mxu1 %v6979_v17 }
 0xe3e   : > { %6496 = vmatpush3.bf16.msra.mxu1 %v6979_v17 }
 0xe3f   : > { %6497 = vmatprep.subr.bf16.mxu1 %v6980_v53 }
 0xe42   : > { %6498 = vmatpush3.bf16.msra.mxu1 %v6980_v53 }
 0xe43   : > { %6499 = vmatprep.subr.bf16.mxu1 %v6981_v31 }
 0xe46   : > { %6500 = vmatpush3.bf16.msra.mxu1 %v6981_v31 }
 0xefb   : > { %v6479_v56 = vpop.f32.mrb[48].mxu0 }
 0xefc   : > { %v2762_v59 = vadd.f32 %v6479_v56, %v6010_v51  ;;  %v2753_v55 = vpop.f32.mrb[49].mxu0 }
 0xefd   : > { %v8504_v20 = vadd.f32 %v6010_v51, %v2753_v55  ;;  %v6480_v52 = vpop.f32.mrb[50].mxu0 }
 0xefe   : > { %v8506_v62 = vmul.f32 0.70710677, %v2762_v59  ;;  %v8508_v50 = vadd.f32 %v6480_v52, %v6010_v51  ;;  %v2756_v32 = vpop.f32.mrb[51].mxu0  ;;  %v8548_v7 = vmul.f32 0.5, %v2762_v59 }
 0xeff   : > { %v8511_v61 = vmul.f32 0.70710677, %v8504_v20  ;;  %v8513_v60 = vadd.f32 %v6010_v51, %v2756_v32 }
 0xf00   : > { %v2802_v28 = vand.u32 2147483647, %v8506_v62  ;;  %v8517_v58 = vmul.f32 0.70710677, %v8508_v50  ;;  %vm2962_vm5 = vcmp.ge.f32.partialorder %v8506_v62, 0.0 }
 0xf01   : > { %v2800_v44 = vand.u32 2147483647, %v8511_v61  ;;  %v8521_v1 = vmul.f32 0.70710677, %v8513_v60  ;;  %vm2960_vm6 = vcmp.ge.f32.partialorder %v8511_v61, 0.0 }
 0xf02   : > { %v2810_v43 = vmul.f32 0.3275911, %v2802_v28  ;;  %v2803_v46 = vand.u32 2147483647, %v8517_v58  ;;  %v2914_v34 = vsub.f32 0.0, %v2802_v28  ;;  %vm2963_vm7 = vcmp.ge.f32.partialorder %v8517_v58, 0.0 }
 0xf03   : > { %v2808_v63 = vmul.f32 0.3275911, %v2800_v44  ;;  %v2801_v4 = vand.u32 2147483647, %v8521_v1  ;;  %v2912_v42 = vsub.f32 0.0, %v2800_v44  ;;  %vm2961_vm8 = vcmp.ge.f32.partialorder %v8521_v1, 0.0 }
 0xf04   : > { %v2818_v9 = vadd.f32 1.0, %v2810_v43  ;;  %v2811_v10 = vmul.f32 0.3275911, %v2803_v46  ;;  %v2915_v37 = vsub.f32 0.0, %v2803_v46  ;;  %v2922_v14 = vmul.f32 %v2914_v34, %v2802_v28 }
 0xf05   : > { %v2816_v35 = vadd.f32 1.0, %v2808_v63  ;;  %v2809_v25 = vmul.f32 0.3275911, %v2801_v4  ;;  %v6483_v12 = vpop.f32.mrb[52].mxu0  ;;  %v2913_v13 = vsub.f32 0.0, %v2801_v4  ;;  %v2920_v23 = vmul.f32 %v2912_v42, %v2800_v44 }
 0xf06   : > { %7166 = vrcp.f32 %v2818_v9  ;;  %v2819_v24 = vadd.f32 1.0, %v2811_v10  ;;  %v2769_v26 = vpop.f32.mrb[53].mxu0  ;;  %v8525_v18 = vadd.f32 %v6483_v12, %v6010_v51  ;;  %v2932_v43 = vmul.f32 1.442695, %v2922_v14 }
 0xf07   : > { %7168 = vrcp.f32 %v2816_v35  ;;  %v6484_v48 = vpop.f32.mrb[54].mxu0  ;;  %v2817_v16 = vadd.f32 1.0, %v2809_v25  ;;  %v8527_v49 = vadd.f32 %v6010_v51, %v2769_v26  ;;  %v2921_v56 = vmul.f32 %v2913_v13, %v2801_v4 }
 0xf08   : > { %v2772_v5 = vpop.f32.mrb[55].mxu0  ;;  %v8529_v33 = vadd.f32 %v6484_v48, %v6010_v51  ;;  %7170 = vrcp.f32 %v2819_v24  ;;  %v8532_v15 = vmul.f32 0.70710677, %v8525_v18  ;;  %v2928_v10 = vmul.f32 1.442695, %v2920_v23 }
 0xf09   : > { %v8534_v8 = vadd.f32 %v6010_v51, %v2772_v5  ;;  %v8537_v29 = vmul.f32 0.70710677, %v8527_v49  ;;  %7172 = vrcp.f32 %v2817_v16  ;;  %v2923_v51 = vmul.f32 %v2915_v37, %v2803_v46 }
 0xf0a   : > { %v8540_v41 = vmul.f32 0.70710677, %v8529_v33  ;;  %v2806_v0 = vand.u32 2147483647, %v8532_v15  ;;  %v2930_v16 = vmul.f32 1.442695, %v2921_v56 }
 0xf0b   : > { %v2804_v47 = vand.u32 2147483647, %v8537_v29  ;;  %v8546_v36 = vmul.f32 0.70710677, %v8534_v8  ;;  %v2934_v4 = vmul.f32 1.442695, %v2923_v51 }
 0xf0c   : > { %v2807_v19 = vand.u32 2147483647, %v8540_v41  ;;  %v2814_v40 = vmul.f32 0.3275911, %v2806_v0  ;;  %v2918_v27 = vsub.f32 0.0, %v2806_v0  ;;  %vm2966_vm9 = vcmp.ge.f32.partialorder %v8532_v15, 0.0 }
 0xf0d   : > { %v2812_v45 = vmul.f32 0.3275911, %v2804_v47  ;;  %v2805_v17 = vand.u32 2147483647, %v8546_v36  ;;  %v2916_v52 = vsub.f32 0.0, %v2804_v47  ;;  %vm2967_vm10 = vcmp.ge.f32.partialorder %v8540_v41, 0.0 }
 0xf0e   : > { %v2815_v11 = vmul.f32 0.3275911, %v2807_v19  ;;  %v2822_v21 = vadd.f32 1.0, %v2814_v40  ;;  %v2926_v35 = vmul.f32 %v2918_v27, %v2806_v0  ;;  %v2919_v25 = vsub.f32 0.0, %v2807_v19 }
 0xf0f   : > { %v2820_v55 = vadd.f32 1.0, %v2812_v45  ;;  %v2813_v44 = vmul.f32 0.3275911, %v2805_v17  ;;  %v2924_v5 = vmul.f32 %v2916_v52, %v2804_v47  ;;  %vm2964_vm11 = vcmp.ge.f32.partialorder %v8537_v29, 0.0 }
 0xf10   : > { %v8550_v6 = vpop.eup %7166  ;;  %7174 = vrcp.f32 %v2822_v21  ;;  %v2823_v32 = vadd.f32 1.0, %v2815_v11  ;;  %v2940_v13 = vmul.f32 1.442695, %v2926_v35  ;;  %v2927_v40 = vmul.f32 %v2919_v25, %v2807_v19 }
 0xf11   : > { %v8553_v53 = vpop.eup %7168  ;;  %v2842_v31 = vmul.f32 1.0614054, %v8550_v6  ;;  %7176 = vrcp.f32 %v2820_v55  ;;  %v2821_v24 = vadd.f32 1.0, %v2813_v44  ;;  %v2936_v47 = vmul.f32 1.442695, %v2924_v5 }
 0xf12   : > { %v2840_v59 = vmul.f32 1.0614054, %v8553_v53  ;;  %v8557_v63 = vpop.eup %7170  ;;  %7178 = vrcp.f32 %v2823_v32  ;;  %v2917_v21 = vsub.f32 0.0, %v2805_v17  ;;  %v8572_v19 = vmul.f32 0.5, %v8504_v20 }
 0xf13   : > { %v2850_v28 = vadd.f32 -1.4531521, %v2842_v31  ;;  %v2843_v46 = vmul.f32 1.0614054, %v8557_v63  ;;  %v8561_v26 = vpop.eup %7172  ;;  %7180 = vpow2.f32 %v2932_v43  ;;  %vm2965_vm12 = vcmp.ge.f32.partialorder %v8546_v36, 0.0 }
 0xf14   : > { %v2848_v9 = vadd.f32 -1.4531521, %v2840_v59  ;;  %v2841_v37 = vmul.f32 1.0614054, %v8561_v26  ;;  %7182 = vrcp.f32 %v2821_v24  ;;  %v2942_v59 = vmul.f32 1.442695, %v2927_v40 }
 0xf15   : > { %v2858_v12 = vmul.f32 %v8550_v6, %v2850_v28  ;;  %v2851_v42 = vadd.f32 -1.4531521, %v2843_v46  ;;  %7184 = vpow2.f32 %v2928_v10  ;;  %v2925_v35 = vmul.f32 %v2917_v21, %v2805_v17 }
 0xf16   : > { %v2856_v48 = vmul.f32 %v8553_v53, %v2848_v9  ;;  %v2849_v11 = vadd.f32 -1.4531521, %v2841_v37  ;;  %7186 = vpow2.f32 %v2934_v4 }
 0xf17   : > { %v2866_v34 = vadd.f32 1.4214138, %v2858_v12  ;;  %v2859_v45 = vmul.f32 %v8557_v63, %v2851_v42  ;;  %7188 = vpow2.f32 %v2930_v16 }
 0xf18   : > { %v2864_v0 = vadd.f32 1.4214138, %v2856_v48  ;;  %v2857_v51 = vmul.f32 %v8561_v26, %v2849_v11  ;;  %7190 = vpow2.f32 %v2940_v13  ;;  %v8586_v48 = vmul.f32 0.5, %v8508_v50 }
 0xf19   : > { %v2874_v14 = vmul.f32 %v8550_v6, %v2866_v34  ;;  %v2867_v31 = vadd.f32 1.4214138, %v2859_v45  ;;  %7192 = vpow2.f32 %v2936_v47 }
 0xf1a   : > { %v2872_v23 = vmul.f32 %v8553_v53, %v2864_v0  ;;  %v8569_v56 = vpop.eup %7174  ;;  %v2865_v43 = vadd.f32 1.4214138, %v2857_v51  ;;  %7194 = vpow2.f32 %v2942_v59 }
 0xf1b   : > { %v2882_v27 = vadd.f32 -0.28449672, %v2874_v14  ;;  %v8574_v52 = vpop.eup %7176  ;;  %v2875_v28 = vmul.f32 %v8557_v63, %v2867_v31  ;;  %v2846_v44 = vmul.f32 1.0614054, %v8569_v56  ;;  %v2938_v14 = vmul.f32 1.442695, %v2925_v35 }
 0xf1c   : > { %v2880_v55 = vadd.f32 -0.28449672, %v2872_v23  ;;  %v2844_v10 = vmul.f32 1.0614054, %v8574_v52  ;;  %v2873_v12 = vmul.f32 %v8561_v26, %v2865_v43  ;;  %v8582_v4 = vpop.eup %7178 }
 0xf1d   : > { %v2890_v32 = vmul.f32 %v8550_v6, %v2882_v27  ;;  %v2883_v25 = vadd.f32 -0.28449672, %v2875_v28  ;;  %v2854_v46 = vadd.f32 -1.4531521, %v2846_v44  ;;  %v7181_v5 = vpop.eup %7180  ;;  %v2847_v50 = vmul.f32 1.0614054, %v8582_v4 }
 0xf1e   : > { %v2888_v9 = vmul.f32 %v8553_v53, %v2880_v55  ;;  %v2852_v16 = vadd.f32 -1.4531521, %v2844_v10  ;;  %v2881_v42 = vadd.f32 -0.28449672, %v2873_v12  ;;  %v8592_v0 = vpop.eup %7182  ;;  %7196 = vpow2.f32 %v2938_v14 }
 0xf1f   : > { %v2898_v20 = vadd.f32 0.2548296, %v2890_v32  ;;  %v2891_v17 = vmul.f32 %v8557_v63, %v2883_v25  ;;  %v2862_v37 = vmul.f32 %v8569_v56, %v2854_v46  ;;  %v7185_v45 = vpop.eup %7184  ;;  %v2855_v51 = vadd.f32 -1.4531521, %v2847_v50 }
 0xf20   : > { %v2896_v24 = vadd.f32 0.2548296, %v2888_v9  ;;  %v2860_v40 = vmul.f32 %v8574_v52, %v2852_v16  ;;  %v7187_v21 = vpop.eup %7186  ;;  %v2845_v55 = vmul.f32 1.0614054, %v8592_v0 }
 0xf21   : > { %v2906_v34 = vmul.f32 %v8550_v6, %v2898_v20  ;;  %v2899_v23 = vadd.f32 0.2548296, %v2891_v17  ;;  %v2889_v6 = vmul.f32 %v8561_v26, %v2881_v42  ;;  %v2870_v47 = vadd.f32 1.4214138, %v2862_v37 }
 0xf22   : > { %v2904_v13 = vmul.f32 %v8553_v53, %v2896_v24  ;;  %v2868_v31 = vadd.f32 1.4214138, %v2860_v40  ;;  %v7189_v53 = vpop.eup %7188  ;;  %v2863_v35 = vmul.f32 %v8582_v4, %v2855_v51  ;;  %v2853_v20 = vadd.f32 -1.4531521, %v2845_v55 }
 0xf23   : > { %v2946_v11 = vmul.f32 %v7181_v5, %v2906_v34  ;;  %v2907_v32 = vmul.f32 %v8557_v63, %v2899_v23  ;;  %v2897_v28 = vadd.f32 0.2548296, %v2889_v6  ;;  %v2878_v43 = vmul.f32 %v8569_v56, %v2870_v47  ;;  %v7191_v44 = vpop.eup %7190 }
 0xf24   : > { %v2944_v27 = vmul.f32 %v7185_v45, %v2904_v13  ;;  %v2876_v10 = vmul.f32 %v8574_v52, %v2868_v31  ;;  %v7193_v16 = vpop.eup %7192  ;;  %v2871_v17 = vadd.f32 1.4214138, %v2863_v35  ;;  %v2861_v63 = vmul.f32 %v8592_v0, %v2853_v20 }
 0xf25   : > { %v2954_v59 = vsub.f32 1.0, %v2946_v11  ;;  %v2947_v12 = vmul.f32 %v7187_v21, %v2907_v32  ;;  %v2905_v46 = vmul.f32 %v8561_v26, %v2897_v28  ;;  %v2886_v24 = vadd.f32 -0.28449672, %v2878_v43  ;;  %v7195_v50 = vpop.eup %7194 }
 0xf26   : > { %v2952_v9 = vsub.f32 1.0, %v2944_v27  ;;  %v2884_v34 = vadd.f32 -0.28449672, %v2876_v10  ;;  %v2879_v11 = vmul.f32 %v8582_v4, %v2871_v17  ;;  %v2869_v31 = vadd.f32 1.4214138, %v2861_v63 }
 0xf27   : > { %v2970_v25 = vsub.f32 0.0, %v2954_v59  ;;  %v2955_v37 = vsub.f32 1.0, %v2947_v12  ;;  %v2945_v13 = vmul.f32 %v7189_v53, %v2905_v46  ;;  %v2894_v40 = vmul.f32 %v8569_v56, %v2886_v24 }
 0xf28   : > { %v2968_v5 = vsub.f32 0.0, %v2952_v9  ;;  %v2892_v26 = vmul.f32 %v8574_v52, %v2884_v34  ;;  %v2887_v27 = vadd.f32 -0.28449672, %v2879_v11  ;;  %v2877_v43 = vmul.f32 %v8592_v0, %v2869_v31 }
 0xf29   : > { %v2978_v42 = vsel %vm2962_vm5, %v2954_v59, %v2970_v25  ;;  %v2971_v6 = vsub.f32 0.0, %v2955_v37  ;;  %v2953_v47 = vsub.f32 1.0, %v2945_v13  ;;  %v2902_v21 = vadd.f32 0.2548296, %v2894_v40 }
 0xf2a   : > { %v2976_v45 = vsel %vm2960_vm6, %v2952_v9, %v2968_v5  ;;  %v2986_v23 = vadd.f32 1.0, %v2978_v42  ;;  %v2900_v62 = vadd.f32 0.2548296, %v2892_v26  ;;  %v2895_v28 = vmul.f32 %v8582_v4, %v2887_v27 }
 0xf2b   : > { %v2984_v51 = vadd.f32 1.0, %v2976_v45  ;;  %v2979_v55 = vsel %vm2963_vm7, %v2955_v37, %v2971_v6  ;;  %v2969_v61 = vsub.f32 0.0, %v2953_v47  ;;  %v2910_v53 = vmul.f32 %v8569_v56, %v2902_v21 }
 0xf2c   : > { %v2987_v59 = vadd.f32 1.0, %v2979_v55  ;;  %v2908_v32 = vmul.f32 %v8574_v52, %v2900_v62  ;;  %v2994_v9 = vmul.f32 %v2986_v23, %v8548_v7  ;;  %v2785_v10 = vmul.f32 0.5, %v8513_v60 }
 0xf2d   : > { %v2977_v14 = vsel %vm2961_vm8, %v2953_v47, %v2969_v61  ;;  %v2950_v35 = vmul.f32 %v7191_v44, %v2910_v53  ;;  %v2903_v56 = vadd.f32 0.2548296, %v2895_v28  ;;  %v2885_v46 = vadd.f32 -0.28449672, %v2877_v43  ;;  %v7197_v44 = vpop.eup %7196 }
 0xf2e   : > { %v2995_v58 = vmul.f32 %v2987_v59, %v8586_v48  ;;  %v2985_v20 = vadd.f32 1.0, %v2977_v14  ;;  %v2948_v25 = vmul.f32 %v7193_v16, %v2908_v32  ;;  %v2992_v52 = vmul.f32 %v2984_v51, %v8572_v19 }
 0xf2f   : > { %v2958_v12 = vsub.f32 1.0, %v2950_v35  ;;  %v2911_v34 = vmul.f32 %v8582_v4, %v2903_v56  ;;  %v2893_v60 = vmul.f32 %v8592_v0, %v2885_v46  ;;  %v2790_v45 = vmul.f32 0.5, %v8525_v18 }
 0xf30   : > { %v3001_v24 = vpack.c.bf16 %v2995_v58, %v2994_v9  ;;  %v2993_v5 = vmul.f32 %v2985_v20, %v2785_v10  ;;  %v2956_v17 = vsub.f32 1.0, %v2948_v25  ;;  %v2791_v26 = vmul.f32 0.5, %v8529_v33  ;;  %v6017_v33 = vld [vmem:[%s7607_s30] ss:$0 sm:$0xff] }
 0xf31   : > { %v2974_v7 = vsub.f32 0.0, %v2958_v12  ;;  %v2951_v1 = vmul.f32 %v7195_v50, %v2911_v34  ;;  %v2901_v48 = vadd.f32 0.2548296, %v2893_v60  ;;  %v2788_v27 = vmul.f32 0.5, %v8527_v49 }
 0xf32   : > { %v3000_v63 = vpack.c.bf16 %v2993_v5, %v2992_v52  ;;  %v2972_v37 = vsub.f32 0.0, %v2956_v17  ;;  %v2789_v18 = vmul.f32 0.5, %v8534_v8 }
 0xf33   : > { %v2982_v16 = vsel %vm2966_vm9, %v2958_v12, %v2974_v7  ;;  %v2959_v42 = vsub.f32 1.0, %v2951_v1  ;;  %v2909_v19 = vmul.f32 %v8592_v0, %v2901_v48 }
 0xf34   : > { %6501 = vmatprep.mubr.bf16.mxu1 %v3000_v63  ;;  %v2990_v40 = vadd.f32 1.0, %v2982_v16  ;;  %v2980_v15 = vsel %vm2964_vm11, %v2956_v17, %v2972_v37 }
 0xf35   : > { %6502 = vmatmul.mubr.bf16.vlgmr.msra.gmra.mrb[32].mxu1 %v3001_v24  ;;  %v2975_v13 = vsub.f32 0.0, %v2959_v42  ;;  %v2949_v4 = vmul.f32 %v7197_v44, %v2909_v19  ;;  %v2988_v21 = vadd.f32 1.0, %v2980_v15 }
 0xf36   : > { %v2998_v6 = vmul.f32 %v2990_v40, %v2790_v45 }
 0xf37   : > { %v2983_v50 = vsel %vm2967_vm10, %v2959_v42, %v2975_v13  ;;  %v2957_v23 = vsub.f32 1.0, %v2949_v4  ;;  %v2996_v31 = vmul.f32 %v2988_v21, %v2788_v27 }
 0xf38   : > { %v2991_v11 = vadd.f32 1.0, %v2983_v50 }
 0xf39   : > { %v2973_v0 = vsub.f32 0.0, %v2957_v23 }
 0xf3a   : > { %v2999_v47 = vmul.f32 %v2991_v11, %v2791_v26 }
 0xf3b   : > { %v2981_v62 = vsel %vm2965_vm12, %v2957_v23, %v2973_v0 }
 0xf3c   : > { %v3003_v41 = vpack.c.bf16 %v2999_v47, %v2998_v6  ;;  %v2989_v29 = vadd.f32 1.0, %v2981_v62 }
 0xf3e   : > { %v2997_v51 = vmul.f32 %v2989_v29, %v2789_v18 }
 0xf40   : > { %v3002_v55 = vpack.c.bf16 %v2997_v51, %v2996_v31 }
 0xf42   : > { %6505 = vmatprep.mubr.bf16.mxu1 %v3002_v55 }
 0xf43   : > { %6506 = vmatmul.mubr.bf16.gmra.mrb[36].mxu1 %v3003_v41 }
0x1008   : > { %v6503_v61 = vpop.f32.mrb[32].mxu1 }
0x1009   : > { %v3109_v53 = vpop.f32.mrb[33].mxu1  ;;  %v3118_v59 = vadd.f32 %v6503_v61, %v6017_v33 }
0x100a   : > { %v3110_v32 = vadd.f32 %v6017_v33, %v3109_v53  ;;  %v6504_v28 = vpop.f32.mrb[34].mxu1 }
0x100b   : > { %v3112_v43 = vpop.f32.mrb[35].mxu1  ;;  %v3121_v9 = vadd.f32 %v6504_v28, %v6017_v33  ;;  %v8642_v8 = vadd.f32 %v3118_v59, %v8395_v22 }
0x100c   : > { %v8639_v36 = vadd.f32 %v3110_v32, %v8392_v54  ;;  %v3113_v49 = vadd.f32 %v6017_v33, %v3112_v43 }
0x100d   : > { %v8650_v35 = vadd.f32 %v3121_v9, %v8405_v3  ;;  %v3154_v54 = vsel %vm910_vm0, %v8642_v8, 0.0 }
0x100e   : > { %v8645_v10 = vadd.f32 %v3113_v49, %v8398_v57  ;;  %v3148_v14 = vsel %vm910_vm0, %v8639_v36, 0.0 }
0x100f   : > { %3149 = vadd.xlane.f32.xlu0 %v3148_v14  ;;  %v3157_v22 = vsel %vm910_vm0, %v8650_v35, 0.0  ;;  %v6982_v14 = vld [vmem:[%s7622_s20] sm:$0xff]  }
0x1010   : > { %v3151_v58 = vsel %vm910_vm0, %v8645_v10, 0.0  ;;  %6509 = vmatprep.subr.bf16.mxu0 %v6982_v14 }
0x1011   : > { %3152 = vadd.xlane.f32.xlu1 %v3151_v58  ;;  %v6983_v58 = vld [vmem:[%s7622_s20 + $0x8] sm:$0xff]   ;;  %6510 = vmatpush3.bf16.msra.mxu0 %v6982_v14 }
0x1012   : > { %6511 = vmatprep.subr.bf16.mxu0 %v6983_v58 }
0x1013   : > { %3155 = vadd.xlane.f32.xlu0 %v3154_v54 }
0x1015   : > { %3158 = vadd.xlane.f32.xlu1 %v3157_v22  ;;  %6512 = vmatpush3.bf16.msra.mxu0 %v6983_v58 }
0x1016   : > { %v6507_v57 = vpop.f32.mrb[36].mxu1 }
0x1017   : > { %v3125_v20 = vpop.f32.mrb[37].mxu1  ;;  %v3134_v25 = vadd.f32 %v6507_v57, %v6017_v33 }
0x1018   : > { %v3126_v56 = vadd.f32 %v6017_v33, %v3125_v20  ;;  %v6508_v12 = vpop.f32.mrb[38].mxu1 }
0x1019   : > { %v3128_v46 = vpop.f32.mrb[39].mxu1  ;;  %v3137_v52 = vadd.f32 %v6508_v12, %v6017_v33  ;;  %v8662_v5 = vadd.f32 %v3134_v25, %v8415_v30 }
0x101a   : > { %v8659_v3 = vadd.f32 %v3126_v56, %v8412_v2  ;;  %v3129_v24 = vadd.f32 %v6017_v33, %v3128_v46 }
0x101b   : > { %v8670_v17 = vadd.f32 %v3137_v52, %v8423_v38  ;;  %v3166_v2 = vsel %vm910_vm0, %v8662_v5, 0.0 }
0x101c   : > { %v8665_v34 = vadd.f32 %v3129_v24, %v8418_v39  ;;  %v3160_v7 = vsel %vm910_vm0, %v8659_v3, 0.0 }
0x101d   : > { %3161 = vadd.xlane.f32.xlu0 %v3160_v7  ;;  %v3169_v30 = vsel %vm910_vm0, %v8670_v17, 0.0 }
0x101e   : > { %v3163_v60 = vsel %vm910_vm0, %v8665_v34, 0.0 }
0x101f   : > { %3164 = vadd.xlane.f32.xlu1 %v3163_v60 }
0x1021   : > { %3167 = vadd.xlane.f32.xlu0 %v3166_v2 }
0x1023   : > { %3170 = vadd.xlane.f32.xlu1 %v3169_v30  ;;  %v6026_v30 = vld [vmem:[%s9739_s22] ss:$0 sm:$0xff]  ;;  %s9742_s22 = smov 96  }
0x109c   : > { %v3150_v39 = vpop.xlane.xlu0 %3149 }
0x109d   : > { %v3172_v1 = vmul.f32 0.03125, %v3150_v39 }
0x109e   : > { %v3153_v63 = vpop.xlane.xlu1 %3152 }
0x109f   : > { %v8679_v48 = vsub.f32 %v8639_v36, %v3172_v1  ;;  %v3173_v38 = vmul.f32 0.03125, %v3153_v63 }
0x10a0   : > { %v3156_v44 = vpop.xlane.xlu0 %3155 }
0x10a1   : > { %v8682_v16 = vsub.f32 %v8645_v10, %v3173_v38  ;;  %v3174_v42 = vmul.f32 0.03125, %v3156_v44  ;;  %v3188_v37 = vmul.f32 %v8679_v48, %v8679_v48 }
0x10a2   : > { %v3159_v19 = vpop.xlane.xlu1 %3158 }
0x10a3   : > { %v8687_v13 = vsub.f32 %v8642_v8, %v3174_v42  ;;  %v3175_v40 = vmul.f32 0.03125, %v3159_v19  ;;  %v3196_v4 = vsel %vm910_vm0, %v3188_v37, 0.0  ;;  %v3189_v45 = vmul.f32 %v8682_v16, %v8682_v16 }
0x10a4   : > { %3197 = vadd.xlane.f32.xlu0 %v3196_v4 }
0x10a5   : > { %v8693_v50 = vsub.f32 %v8650_v35, %v3175_v40  ;;  %v3199_v15 = vsel %vm910_vm0, %v3189_v45, 0.0  ;;  %v3190_v26 = vmul.f32 %v8687_v13, %v8687_v13  ;;  %v6027_v40 = vld [vmem:[%s9740_s23] ss:$0 sm:$0xff]  ;;  %s9741_s23 = sld [smem:[#allocation12_spill]] }
0x10a6   : > { %3200 = vadd.xlane.f32.xlu1 %v3199_v15 }
0x10a7   : > { %v3202_v11 = vsel %vm910_vm0, %v3190_v26, 0.0  ;;  %v3191_v23 = vmul.f32 %v8693_v50, %v8693_v50 }
0x10a8   : > { %3203 = vadd.xlane.f32.xlu0 %v3202_v11 }
0x10a9   : > { %v3205_v6 = vsel %vm910_vm0, %v3191_v23, 0.0 }
0x10aa   : > { %3206 = vadd.xlane.f32.xlu1 %v3205_v6  ;;  %v3162_v47 = vpop.xlane.xlu0 %3161 }
0x10ab   : > { %v3176_v0 = vmul.f32 0.03125, %v3162_v47 }
0x10ac   : > { %v3165_v21 = vpop.xlane.xlu1 %3164 }
0x10ad   : > { %v8703_v62 = vsub.f32 %v8659_v3, %v3176_v0  ;;  %v3177_v41 = vmul.f32 0.03125, %v3165_v21 }
0x10ae   : > { %v3168_v27 = vpop.xlane.xlu0 %3167 }
0x10af   : > { %v8706_v18 = vsub.f32 %v8665_v34, %v3177_v41  ;;  %v3178_v29 = vmul.f32 0.03125, %v3168_v27  ;;  %v3192_v31 = vmul.f32 %v8703_v62, %v8703_v62 }
0x10b0   : > { %v3171_v51 = vpop.xlane.xlu1 %3170 }
0x10b1   : > { %v8711_v55 = vsub.f32 %v8662_v5, %v3178_v29  ;;  %v3179_v33 = vmul.f32 0.03125, %v3171_v51  ;;  %v3208_v61 = vsel %vm910_vm0, %v3192_v31, 0.0  ;;  %v3193_v53 = vmul.f32 %v8706_v18, %v8706_v18 }
0x10b2   : > { %3209 = vadd.xlane.f32.xlu0 %v3208_v61 }
0x10b3   : > { %v8717_v59 = vsub.f32 %v8670_v17, %v3179_v33  ;;  %v3211_v32 = vsel %vm910_vm0, %v3193_v53, 0.0  ;;  %v3194_v28 = vmul.f32 %v8711_v55, %v8711_v55 }
0x10b4   : > { %3212 = vadd.xlane.f32.xlu1 %v3211_v32 }
0x10b5   : > { %v3214_v43 = vsel %vm910_vm0, %v3194_v28, 0.0  ;;  %v3195_v9 = vmul.f32 %v8717_v59, %v8717_v59 }
0x10b6   : > { %3215 = vadd.xlane.f32.xlu0 %v3214_v43 }
0x10b7   : > { %v3217_v49 = vsel %vm910_vm0, %v3195_v9, 0.0 }
0x10b8   : > { %3218 = vadd.xlane.f32.xlu1 %v3217_v49 }
0x1131   : > { %v3198_v54 = vpop.xlane.xlu0 %3197 }
0x1132   : > { %v3220_v22 = vmul.f32 0.03125, %v3198_v54 }
0x1133   : > { %v3201_v57 = vpop.xlane.xlu1 %3200 }
0x1134   : > { %v3228_v20 = vadd.f32 1e-06, %v3220_v22  ;;  %v3221_v25 = vmul.f32 0.03125, %v3201_v57 }
0x1135   : > { %v3204_v56 = vpop.xlane.xlu0 %3203 }
0x1136   : > { %7198 = vrsqrt.f32 %v3228_v20  ;;  %v3229_v12 = vadd.f32 1e-06, %v3221_v25  ;;  %v3222_v46 = vmul.f32 0.03125, %v3204_v56 }
0x1137   : > { %v3207_v52 = vpop.xlane.xlu1 %3206 }
0x1138   : > { %7200 = vrsqrt.f32 %v3229_v12  ;;  %v3230_v24 = vadd.f32 1e-06, %v3222_v46  ;;  %v3223_v7 = vmul.f32 0.03125, %v3207_v52 }
0x113a   : > { %7202 = vrsqrt.f32 %v3230_v24  ;;  %v3231_v60 = vadd.f32 1e-06, %v3223_v7 }
0x113c   : > { %7204 = vrsqrt.f32 %v3231_v60 }
0x113f   : > { %v3210_v39 = vpop.xlane.xlu0 %3209 }
0x1140   : > { %v7199_v2 = vpop.eup %7198  ;;  %v3224_v38 = vmul.f32 0.03125, %v3210_v39 }
0x1141   : > { %v3244_v1 = vmul.f32 %v7199_v2, %v8679_v48  ;;  %v3213_v44 = vpop.xlane.xlu1 %3212 }
0x1142   : > { %v7201_v63 = vpop.eup %7200  ;;  %v3232_v4 = vadd.f32 1e-06, %v3224_v38  ;;  %v3225_v45 = vmul.f32 0.03125, %v3213_v44 }
0x1143   : > { %v3245_v42 = vmul.f32 %v7201_v63, %v8682_v16  ;;  %v3259_v37 = vmul.f32 %v6026_v30, %v3244_v1  ;;  %v3216_v26 = vpop.xlane.xlu0 %3215 }
0x1144   : > { %v7203_v19 = vpop.eup %7202  ;;  %7206 = vrsqrt.f32 %v3232_v4  ;;  %v3233_v6 = vadd.f32 1e-06, %v3225_v45  ;;  %v3226_v47 = vmul.f32 0.03125, %v3216_v26 }
0x1145   : > { %v3246_v15 = vmul.f32 %v7203_v19, %v8687_v13  ;;  %v3260_v11 = vmul.f32 %v6026_v30, %v3245_v42  ;;  %v3219_v21 = vpop.xlane.xlu1 %3218  ;;  %v3274_v41 = vadd.f32 %v6027_v40, %v3259_v37 }
0x1146   : > { %v7205_v23 = vpop.eup %7204  ;;  %7208 = vrsqrt.f32 %v3233_v6  ;;  %v3234_v16 = vadd.f32 1e-06, %v3226_v47  ;;  %v3227_v29 = vmul.f32 0.03125, %v3219_v21 }
0x1147   : > { %v3261_v0 = vmul.f32 %v6026_v30, %v3246_v15  ;;  %v3247_v48 = vmul.f32 %v7205_v23, %v8693_v50  ;;  %v3275_v27 = vadd.f32 %v6027_v40, %v3260_v11 }
0x1148   : > { %7210 = vrsqrt.f32 %v3234_v16  ;;  %v3235_v33 = vadd.f32 1e-06, %v3227_v29 }
0x1149   : > { %v3262_v31 = vmul.f32 %v6026_v30, %v3247_v48  ;;  %v3282_v51 = vpack.c.bf16 %v3275_v27, %v3274_v41  ;;  %v3276_v13 = vadd.f32 %v6027_v40, %v3261_v0 }
0x114a   : > { %7212 = vrsqrt.f32 %v3235_v33 }
0x114b   : > { %v3277_v61 = vadd.f32 %v6027_v40, %v3262_v31  ;;  %6513 = vmatprep.mubr.msk.bf16.mxu0 %vm910_vm0, %v3282_v51 }
0x114d   : > { %v3283_v53 = vpack.c.bf16 %v3277_v61, %v3276_v13 }
0x114e   : > { %v7207_v32 = vpop.eup %7206 }
0x114f   : > { %6514 = vmatmul.mubr.msk.bf16.vlgmr.msra.gmra.mrb[56].mxu0 %vm910_vm0, %v3283_v53  ;;  %v3248_v50 = vmul.f32 %v7207_v32, %v8703_v62 }
0x1150   : > { %v7209_v28 = vpop.eup %7208 }
0x1151   : > { %v3249_v43 = vmul.f32 %v7209_v28, %v8706_v18  ;;  %v3263_v9 = vmul.f32 %v6026_v30, %v3248_v50  ;;  %v6028_v18 = vld [vmem:[%s9741_s23] ss:$0 sm:$0xff]  ;;  %s9743_s23 = smov 64  }
0x1152   : > { %v7211_v49 = vpop.eup %7210 }
0x1153   : > { %v3264_v14 = vmul.f32 %v6026_v30, %v3249_v43  ;;  %v3250_v58 = vmul.f32 %v7211_v49, %v8711_v55  ;;  %v3278_v22 = vadd.f32 %v6027_v40, %v3263_v9 }
0x1154   : > { %v7213_v54 = vpop.eup %7212 }
0x1155   : > { %v3279_v57 = vadd.f32 %v6027_v40, %v3264_v14  ;;  %v3251_v20 = vmul.f32 %v7213_v54, %v8717_v59  ;;  %v3265_v25 = vmul.f32 %v6026_v30, %v3250_v58 }
0x1157   : > { %v3284_v56 = vpack.c.bf16 %v3279_v57, %v3278_v22  ;;  %v3266_v12 = vmul.f32 %v6026_v30, %v3251_v20  ;;  %v3280_v62 = vadd.f32 %v6027_v40, %v3265_v25 }
0x1159   : > { %6517 = vmatprep.mubr.msk.bf16.mxu0 %vm910_vm0, %v3284_v56  ;;  %v3281_v46 = vadd.f32 %v6027_v40, %v3266_v12 }
0x115b   : > { %v3285_v52 = vpack.c.bf16 %v3281_v46, %v3280_v62 }
0x115d   : > { %6518 = vmatmul.mubr.msk.bf16.gmra.mrb[60].mxu0 %vm910_vm0, %v3285_v52 }
0x1222   : > { %v6515_v24 = vpop.f32.mrb[56].mxu0 }
0x1223   : > { %v3364_v7 = vadd.f32 %v6515_v24, %v6028_v18  ;;  %v3355_v60 = vpop.f32.mrb[57].mxu0 }
0x1224   : > { %v3356_v55 = vadd.f32 %v6028_v18, %v3355_v60  ;;  %v6516_v2 = vpop.f32.mrb[58].mxu0 }
0x1225   : > { %v3367_v39 = vadd.f32 %v6516_v2, %v6028_v18  ;;  %v3358_v1 = vpop.f32.mrb[59].mxu0  ;;  %v3388_v59 = vmul.f32 0.35355338, %v3364_v7 }
0x1226   : > { %v3359_v63 = vadd.f32 %v6028_v18, %v3358_v1  ;;  %v3386_v30 = vmul.f32 0.35355338, %v3356_v55 }
0x1227   : > { %v3389_v38 = vmul.f32 0.35355338, %v3367_v39  ;;  %v8743_v44 = vpack.c.bf16 %v3367_v39, %v3364_v7 }
0x1228   : > { %v3387_v42 = vmul.f32 0.35355338, %v3359_v63  ;;  %v8745_v37 = vpack.c.bf16 %v3359_v63, %v3356_v55 }
0x1229   : > { %v8747_v19 = vpack.c.bf16 %v3389_v38, %v3388_v59  ;;  %3408 = vrot.lane.b32.xlu1 %v8743_v44, %s9742_s22 }
0x122a   : > { %v8751_v40 = vpack.c.bf16 %v3387_v42, %v3386_v30  ;;  %3406 = vrot.lane.b32.xlu0 %v8745_v37, %s9742_s22 }
0x122c   : > { %6529 = vmatprep.mubr.msk.bf16.mxu0 %vm1178_vm1, %v8751_v40 }
0x1230   : > { %v6519_v4 = vpop.f32.mrb[60].mxu0 }
0x1231   : > { %v3380_v45 = vadd.f32 %v6519_v4, %v6028_v18  ;;  %v3371_v15 = vpop.f32.mrb[61].mxu0 }
0x1232   : > { %v3372_v26 = vadd.f32 %v6028_v18, %v3371_v15  ;;  %v6520_v11 = vpop.f32.mrb[62].mxu0 }
0x1233   : > { %v3383_v23 = vadd.f32 %v6520_v11, %v6028_v18  ;;  %v3374_v6 = vpop.f32.mrb[63].mxu0  ;;  %v3392_v0 = vmul.f32 0.35355338, %v3380_v45 }
0x1234   : > { %v3375_v47 = vadd.f32 %v6028_v18, %v3374_v6  ;;  %v3390_v41 = vmul.f32 0.35355338, %v3372_v26 }
0x1235   : > { %v3393_v48 = vmul.f32 0.35355338, %v3383_v23  ;;  %v8757_v21 = vpack.c.bf16 %v3383_v23, %v3380_v45 }
0x1236   : > { %v3391_v27 = vmul.f32 0.35355338, %v3375_v47  ;;  %v8759_v16 = vpack.c.bf16 %v3375_v47, %v3372_v26 }
0x1237   : > { %v8761_v29 = vpack.c.bf16 %v3393_v48, %v3392_v0 }
0x1238   : > { %v8763_v31 = vpack.c.bf16 %v3391_v27, %v3390_v41  ;;  %3410 = vrot.lane.b32.xlu1 %v8759_v16, %s9742_s22 }
0x123c   : > { %3412 = vrot.lane.b32.xlu1 %v8757_v21, %s9742_s22  ;;  %s9744_s22 = smov 88  }
0x129b   : > { %v3409_v13 = vpop.permute.xlu1 %3408 }
0x129c   : > { %v3407_v51 = vpop.permute.xlu0 %3406  ;;  %v3430_v61 = vsel %vm1178_vm1, %v3409_v13, 0 }
0x129d   : > { %6749 = vmatprep.subr.msk.bf16.mxu0 %vm1178_vm1, %v3407_v51  ;;  %v3427_v33 = vsel %vm1178_vm1, %v3407_v51, 0 }
0x129e   : > { %6522 = vmatpush3.bf16.xpose.msra.mxu0 %v3427_v33 }
0x129f   : > { %6750 = vmatprep.subr.msk.bf16.mxu0 %vm1178_vm1, %v3409_v13 }
0x12a6   : > { %6524 = vmatpush3.bf16.xpose.msra.mxu0 %v3430_v61 }
0x12aa   : > { %v3411_v53 = vpop.permute.xlu1 %3410 }
0x12ab   : > { %6751 = vmatprep.subr.msk.bf16.mxu0 %vm1178_vm1, %v3411_v53  ;;  %v3433_v32 = vsel %vm1178_vm1, %v3411_v53, 0 }
0x12ae   : > { %6526 = vmatpush3.bf16.xpose.msra.mxu0 %v3433_v32  ;;  %v3413_v50 = vpop.permute.xlu1 %3412 }
0x12af   : > { %6752 = vmatprep.subr.msk.bf16.mxu0 %vm1178_vm1, %v3413_v50  ;;  %v3436_v28 = vsel %vm1178_vm1, %v3413_v50, 0 }
0x12b6   : > { %6528 = vmatpush3.bf16.xpose.msra.mxu0 %v3436_v28 }
0x12bd   : > { %6530 = vmatmul.mubr.msk.bf16.vlgmr.msra.gmra.mrb[64].mxu0 %vm1178_vm1, %v8747_v19 }
0x12be   : > { %6533 = vmatprep.mubr.msk.bf16.mxu0 %vm1178_vm1, %v8763_v31 }
0x12c5   : > { %6534 = vmatmul.mubr.msk.bf16.gmra.mrb[68].mxu0 %vm1178_vm1, %v8761_v29 }
0x1390   : > { %v6531_v43 = vpop.f32.mrb[64].mxu0 }
0x1391   : > { %v3472_v9 = vpop.f32.mrb[65].mxu0  ;;  %v3509_v49 = vsel %vm1268_vm2, %v6531_v43, -inf }
0x1392   : > { %3510 = vmax.xlane.f32.xlu0 %v3509_v49  ;;  %v6532_v14 = vpop.f32.mrb[66].mxu0  ;;  %v3503_v22 = vsel %vm1268_vm2, %v3472_v9, -inf }
0x1393   : > { %v3475_v58 = vpop.f32.mrb[67].mxu0  ;;  %v3512_v25 = vsel %vm1268_vm2, %v6532_v14, -inf }
0x1394   : > { %v3506_v54 = vsel %vm1268_vm2, %v3475_v58, -inf }
0x1395   : > { %3507 = vmax.xlane.f32.xlu1 %v3506_v54 }
0x1396   : > { %3504 = vmax.xlane.f32.xlu0 %v3503_v22 }
0x1398   : > { %v6535_v57 = vpop.f32.mrb[68].mxu0 }
0x1399   : > { %v3488_v20 = vpop.f32.mrb[69].mxu0  ;;  %v3521_v62 = vsel %vm1268_vm2, %v6535_v57, -inf }
0x139a   : > { %3513 = vmax.xlane.f32.xlu0 %v3512_v25  ;;  %v8787_v56 = vpop.f32.mrb[70].mxu0  ;;  %v3515_v46 = vsel %vm1268_vm2, %v3488_v20, -inf }
0x139b   : > { %v8789_v12 = vpop.f32.mrb[71].mxu0  ;;  %v3524_v52 = vsel %vm1268_vm2, %v8787_v56, -inf }
0x139c   : > { %v3518_v18 = vsel %vm1268_vm2, %v8789_v12, -inf }
0x139e   : > { %3522 = vmax.xlane.f32.xlu0 %v3521_v62 }
0x13a2   : > { %3516 = vmax.xlane.f32.xlu0 %v3515_v46 }
0x13a6   : > { %3597 = vrot.lane.b32.xlu1 %v8743_v44, %s9743_s23 }
0x13aa   : > { %3599 = vrot.lane.b32.xlu1 %v8759_v16, %s9743_s23 }
0x13b8   : > { %3595 = vrot.lane.b32.xlu0 %v8745_v37, %s9743_s23 }
0x13ce   : > { %3525 = vmax.xlane.f32.xlu1 %v3524_v52 }
0x13d2   : > { %3519 = vmax.xlane.f32.xlu1 %v3518_v18 }
0x13e3   : > { %3601 = vrot.lane.b32.xlu1 %v8757_v21, %s9743_s23  ;;  %s9745_s23 = smov 120  }
0x141f   : > { %v3511_v24 = vpop.xlane.xlu0 %3510 }
0x1420   : > { %v3529_v7 = vsub.f32 %v6531_v43, %v3511_v24 }
0x1422   : > { %v3539_v60 = vmul.f32 1.442695, %v3529_v7  ;;  %v3508_v55 = vpop.xlane.xlu1 %3507 }
0x1423   : > { %v3505_v2 = vpop.xlane.xlu0 %3504  ;;  %v3528_v1 = vsub.f32 %v3475_v58, %v3508_v55 }
0x1424   : > { %7214 = vpow2.f32 %v3539_v60  ;;  %v3527_v39 = vsub.f32 %v3472_v9, %v3505_v2 }
0x1425   : > { %v3537_v30 = vmul.f32 1.442695, %v3528_v1 }
0x1426   : > { %v3535_v63 = vmul.f32 1.442695, %v3527_v39  ;;  %v3598_v48 = vpop.permute.xlu1 %3597 }
0x1427   : > { %v3514_v59 = vpop.xlane.xlu0 %3513 }
0x1428   : > { %7216 = vpow2.f32 %v3535_v63  ;;  %v3530_v38 = vsub.f32 %v6532_v14, %v3514_v59 }
0x142a   : > { %v3541_v42 = vmul.f32 1.442695, %v3530_v38  ;;  %v3600_v61 = vpop.permute.xlu1 %3599 }
0x142b   : > { %v3523_v4 = vpop.xlane.xlu0 %3522 }
0x142c   : > { %7218 = vpow2.f32 %v3541_v42  ;;  %v3533_v45 = vsub.f32 %v6535_v57, %v3523_v4 }
0x142d   : > { %7220 = vpow2.f32 %v3537_v30 }
0x142e   : > { %v8805_v15 = vpop.eup %7214  ;;  %v3547_v26 = vmul.f32 1.442695, %v3533_v45 }
0x142f   : > { %v3517_v11 = vpop.xlane.xlu0 %3516  ;;  %v3557_v23 = vsel %vm1268_vm2, %v8805_v15, 0.0 }
0x1430   : > { %7222 = vpow2.f32 %v3547_v26  ;;  %v3531_v6 = vsub.f32 %v3488_v20, %v3517_v11  ;;  %3558 = vadd.xlane.f32.xlu0 %v3557_v23 }
0x1432   : > { %v8809_v47 = vpop.eup %7216  ;;  %v3543_v0 = vmul.f32 1.442695, %v3531_v6 }
0x1433   : > { %v3596_v41 = vpop.permute.xlu0 %3595  ;;  %v3551_v27 = vsel %vm1268_vm2, %v8809_v47, 0.0 }
0x1434   : > { %7224 = vpow2.f32 %v3543_v0  ;;  %3552 = vadd.xlane.f32.xlu0 %v3551_v27  ;;  %6537 = vmatprep.subr.bf16.mxu1 %v3596_v41 }
0x1435   : > { %6538 = vmatpush3.bf16.msra.mxu1 %v3596_v41 }
0x1436   : > { %v7219_v51 = vpop.eup %7218  ;;  %6539 = vmatprep.subr.bf16.mxu1 %v3598_v48 }
0x1437   : > { %v3560_v33 = vsel %vm1268_vm2, %v7219_v51, 0.0  ;;  %v7221_v13 = vpop.eup %7220 }
0x1438   : > { %3561 = vadd.xlane.f32.xlu1 %v3560_v33  ;;  %v3554_v50 = vsel %vm1268_vm2, %v7221_v13, 0.0 }
0x1439   : > { %6540 = vmatpush3.bf16.msra.mxu1 %v3598_v48 }
0x143a   : > { %v8814_v53 = vpop.eup %7222  ;;  %6541 = vmatprep.subr.bf16.mxu1 %v3600_v61 }
0x143b   : > { %v3569_v32 = vsel %vm1268_vm2, %v8814_v53, 0.0 }
0x143c   : > { %3570 = vadd.xlane.f32.xlu0 %v3569_v32  ;;  %3555 = vadd.xlane.f32.xlu1 %v3554_v50 }
0x143d   : > { %6542 = vmatpush3.bf16.msra.mxu1 %v3600_v61 }
0x143e   : > { %v8819_v28 = vpop.eup %7224 }
0x143f   : > { %v3563_v43 = vsel %vm1268_vm2, %v8819_v28, 0.0 }
0x1440   : > { %3564 = vadd.xlane.f32.xlu0 %v3563_v43 }
0x144d   : > { %3698 = vrot.lane.b32.xlu1 %v8743_v44, %s9744_s22 }
0x1451   : > { %3700 = vrot.lane.b32.xlu1 %v8759_v16, %s9744_s22 }
0x145b   : > { %v3526_v9 = vpop.xlane.xlu1 %3525 }
0x145c   : > { %v3534_v49 = vsub.f32 %v8787_v56, %v3526_v9 }
0x145e   : > { %v3549_v14 = vmul.f32 1.442695, %v3534_v49 }
0x145f   : > { %v3520_v58 = vpop.xlane.xlu1 %3519 }
0x1460   : > { %7226 = vpow2.f32 %v3549_v14  ;;  %v3532_v54 = vsub.f32 %v8789_v12, %v3520_v58 }
0x1462   : > { %v3545_v22 = vmul.f32 1.442695, %v3532_v54 }
0x1463   : > { %v3602_v57 = vpop.permute.xlu1 %3601 }
0x1464   : > { %6543 = vmatprep.subr.bf16.mxu1 %v3602_v57  ;;  %7228 = vpow2.f32 %v3545_v22 }
0x1465   : > { %6544 = vmatpush3.bf16.msra.mxu1 %v3602_v57 }
0x146a   : > { %v7227_v20 = vpop.eup %7226 }
0x146b   : > { %v3572_v25 = vsel %vm1268_vm2, %v7227_v20, 0.0 }
0x146c   : > { %3573 = vadd.xlane.f32.xlu0 %v3572_v25 }
0x146e   : > { %v7229_v62 = vpop.eup %7228 }
0x146f   : > { %v3566_v46 = vsel %vm1268_vm2, %v7229_v62, 0.0 }
0x1475   : > { %3567 = vadd.xlane.f32.xlu1 %v3566_v46 }
0x1482   : > { %3696 = vrot.lane.b32.xlu0 %v8745_v37, %s9744_s22 }
0x1486   : > { %3688 = vrot.lane.b32.xlu0 %v8751_v40, %s9745_s23  ;;  %3702 = vrot.lane.b32.xlu1 %v8757_v21, %s9744_s22  ;;  %s9746_s22 = smov 56  }
0x148a   : > { %3692 = vrot.lane.b32.xlu0 %v8763_v31, %s9745_s23  ;;  %3690 = vrot.lane.b32.xlu1 %v8747_v19, %s9745_s23 }
0x148e   : > { %3694 = vrot.lane.b32.xlu1 %v8761_v29, %s9745_s23  ;;  %s9747_s23 = smov 80  }
0x14bd   : > { %v3559_v56 = vpop.xlane.xlu0 %3558 }
0x14c1   : > { %v3553_v52 = vpop.xlane.xlu0 %3552 }
0x14c5   : > { %v3562_v12 = vpop.xlane.xlu1 %3561 }
0x14c6   : > { %7230 = vrcp.f32 %v3562_v12 }
0x14c7   : > { %7232 = vrcp.f32 %v3553_v52 }
0x14c8   : > { %7234 = vrcp.f32 %v3559_v56 }
0x14c9   : > { %v3556_v18 = vpop.xlane.xlu1 %3555  ;;  %v3571_v30 = vpop.xlane.xlu0 %3570 }
0x14ca   : > { %7236 = vrcp.f32 %v3556_v18 }
0x14cd   : > { %v3565_v42 = vpop.xlane.xlu0 %3564  ;;  %v3699_v4 = vpop.permute.xlu1 %3698 }
0x14ce   : > { %v3720_v6 = vsel %vm1178_vm1, %v3699_v4, 0 }
0x14d0   : > { %v7231_v24 = vpop.eup %7230 }
0x14d1   : > { %v7233_v7 = vpop.eup %7232  ;;  %v3586_v2 = vmul.f32 %v7231_v24, %v7219_v51  ;;  %v3701_v11 = vpop.permute.xlu1 %3700 }
0x14d2   : > { %v7235_v60 = vpop.eup %7234  ;;  %v3583_v39 = vmul.f32 %v7233_v7, %v8809_v47  ;;  %v3723_v51 = vsel %vm1178_vm1, %v3701_v11, 0 }
0x14d3   : > { %v3585_v63 = vmul.f32 %v7235_v60, %v8805_v15 }
0x14d4   : > { %v7237_v55 = vpop.eup %7236 }
0x14d5   : > { %v3584_v1 = vmul.f32 %v7237_v55, %v7221_v13  ;;  %v3592_v38 = vpack.c.bf16 %v3586_v2, %v3585_v63 }
0x14d7   : > { %v3591_v59 = vpack.c.bf16 %v3584_v1, %v3583_v39 }
0x14d9   : > { %6545 = vmatprep.mubr.msk.bf16.mxu1 %vm1268_vm2, %v3591_v59 }
0x14da   : > { %6546 = vmatmul.mubr.msk.bf16.vlgmr.msra.gmra.mrb[40].mxu1 %vm1268_vm2, %v3592_v38 }
0x14f9   : > { %v3574_v45 = vpop.xlane.xlu0 %3573 }
0x14fa   : > { %7238 = vrcp.f32 %v3574_v45 }
0x14fb   : > { %7240 = vrcp.f32 %v3565_v42 }
0x14fc   : > { %7242 = vrcp.f32 %v3571_v30 }
0x14fd   : > { %v3697_v26 = vpop.permute.xlu0 %3696 }
0x14fe   : > { %6753 = vmatprep.subr.msk.bf16.mxu1 %vm1178_vm1, %v3697_v26  ;;  %v3717_v23 = vsel %vm1178_vm1, %v3697_v26, 0 }
0x14ff   : > { %6554 = vmatpush3.bf16.xpose.msra.mxu1 %v3717_v23 }
0x1500   : > { %6754 = vmatprep.subr.msk.bf16.mxu1 %vm1178_vm1, %v3699_v4 }
0x1501   : > { %v3689_v9 = vpop.permute.xlu0 %3688 }
0x1502   : > { %v3568_v15 = vpop.xlane.xlu1 %3567 }
0x1503   : > { %7244 = vrcp.f32 %v3568_v15 }
0x1504   : > { %v7239_v47 = vpop.eup %7238 }
0x1505   : > { %v7241_v0 = vpop.eup %7240  ;;  %v3590_v27 = vmul.f32 %v7239_v47, %v7227_v20  ;;  %v3693_v14 = vpop.permute.xlu0 %3692 }
0x1506   : > { %v7243_v48 = vpop.eup %7242  ;;  %v3587_v33 = vmul.f32 %v7241_v0, %v8819_v28  ;;  %v3703_v61 = vpop.permute.xlu1 %3702 }
0x1507   : > { %6556 = vmatpush3.bf16.xpose.msra.mxu1 %v3720_v6  ;;  %v3589_v32 = vmul.f32 %v7243_v48, %v8814_v53  ;;  %v3726_v49 = vsel %vm1178_vm1, %v3703_v61, 0 }
0x1508   : > { %6755 = vmatprep.subr.msk.bf16.mxu1 %vm1178_vm1, %v3701_v11 }
0x1509   : > { %v3594_v43 = vpack.c.bf16 %v3590_v27, %v3589_v32 }
0x150a   : > { %v3691_v28 = vpop.permute.xlu1 %3690 }
0x150d   : > { %v7245_v41 = vpop.eup %7244 }
0x150e   : > { %v3588_v13 = vmul.f32 %v7245_v41, %v7229_v62  ;;  %v3695_v53 = vpop.permute.xlu1 %3694 }
0x150f   : > { %6558 = vmatpush3.bf16.xpose.msra.mxu1 %v3723_v51 }
0x1510   : > { %6756 = vmatprep.subr.msk.bf16.mxu1 %vm1178_vm1, %v3703_v61  ;;  %v3593_v50 = vpack.c.bf16 %v3588_v13, %v3587_v33 }
0x1512   : > { %6549 = vmatprep.mubr.msk.bf16.mxu1 %vm1268_vm2, %v3593_v50 }
0x1513   : > { %6550 = vmatmul.mubr.msk.bf16.gmra.mrb[44].mxu1 %vm1268_vm2, %v3594_v43 }
0x1514   : > { %6561 = vmatprep.mubr.msk.bf16.mxu1 %vm1178_vm1, %v3689_v9 }
0x1517   : > { %6560 = vmatpush3.bf16.xpose.msra.mxu1 %v3726_v49 }
0x151e   : > { %6562 = vmatmul.mubr.msk.bf16.vlgmr.msra.gmra.mrb[48].mxu1 %vm1178_vm1, %v3691_v28 }
0x151f   : > { %6565 = vmatprep.mubr.msk.bf16.mxu1 %vm1178_vm1, %v3693_v14 }
0x1526   : > { %6566 = vmatmul.mubr.msk.bf16.gmra.mrb[52].mxu1 %vm1178_vm1, %v3695_v53 }
0x15ad   : > { %v8863_v58 = vpop.f32.mrb[40].mxu1 }
0x15ae   : > { %v8865_v54 = vpop.f32.mrb[41].mxu1 }
0x15af   : > { %v8867_v22 = vpop.f32.mrb[42].mxu1 }
0x15b0   : > { %v8869_v57 = vpop.f32.mrb[43].mxu1 }
0x15e6   : > { %v8871_v20 = vpop.f32.mrb[44].mxu1 }
0x15e7   : > { %v8873_v25 = vpop.f32.mrb[45].mxu1 }
0x15e8   : > { %v8875_v62 = vpop.f32.mrb[46].mxu1 }
0x15e9   : > { %v8877_v46 = vpop.f32.mrb[47].mxu1 }
0x15f1   : > { %v6563_v56 = vpop.f32.mrb[48].mxu1 }
0x15f2   : > { %v3762_v12 = vpop.f32.mrb[49].mxu1  ;;  %v3799_v52 = vsel %vm1268_vm2, %v6563_v56, -inf }
0x15f3   : > { %3800 = vmax.xlane.f32.xlu0 %v3799_v52  ;;  %v6564_v18 = vpop.f32.mrb[50].mxu1  ;;  %v3793_v60 = vsel %vm1268_vm2, %v3762_v12, -inf }
0x15f4   : > { %v3765_v24 = vpop.f32.mrb[51].mxu1  ;;  %v3802_v39 = vsel %vm1268_vm2, %v6564_v18, -inf }
0x15f5   : > { %v3796_v7 = vsel %vm1268_vm2, %v3765_v24, -inf }
0x15f6   : > { %3797 = vmax.xlane.f32.xlu1 %v3796_v7 }
0x15f7   : > { %3794 = vmax.xlane.f32.xlu0 %v3793_v60 }
0x15f9   : > { %v6567_v55 = vpop.f32.mrb[52].mxu1 }
0x15fa   : > { %v3778_v2 = vpop.f32.mrb[53].mxu1  ;;  %v3811_v59 = vsel %vm1268_vm2, %v6567_v55, -inf }
0x15fb   : > { %3803 = vmax.xlane.f32.xlu0 %v3802_v39  ;;  %v8883_v1 = vpop.f32.mrb[54].mxu1  ;;  %v3805_v38 = vsel %vm1268_vm2, %v3778_v2, -inf }
0x15fc   : > { %v8885_v63 = vpop.f32.mrb[55].mxu1  ;;  %v3814_v30 = vsel %vm1268_vm2, %v8883_v1, -inf }
0x15fd   : > { %v3808_v42 = vsel %vm1268_vm2, %v8885_v63, -inf }
0x15ff   : > { %3812 = vmax.xlane.f32.xlu0 %v3811_v59 }
0x1603   : > { %3806 = vmax.xlane.f32.xlu0 %v3805_v38 }
0x1607   : > { %3887 = vrot.lane.b32.xlu1 %v8743_v44, %s9746_s22 }
0x160b   : > { %3889 = vrot.lane.b32.xlu1 %v8759_v16, %s9746_s22 }
0x1619   : > { %3885 = vrot.lane.b32.xlu0 %v8745_v37, %s9746_s22 }
0x162f   : > { %3815 = vmax.xlane.f32.xlu1 %v3814_v30 }
0x1633   : > { %3809 = vmax.xlane.f32.xlu1 %v3808_v42 }
0x1644   : > { %3891 = vrot.lane.b32.xlu1 %v8757_v21, %s9746_s22  ;;  %s9748_s22 = smov 112  }
0x1680   : > { %v3801_v4 = vpop.xlane.xlu0 %3800 }
0x1681   : > { %v3819_v45 = vsub.f32 %v6563_v56, %v3801_v4 }
0x1683   : > { %v3829_v26 = vmul.f32 1.442695, %v3819_v45  ;;  %v3798_v11 = vpop.xlane.xlu1 %3797 }
0x1684   : > { %v3795_v23 = vpop.xlane.xlu0 %3794  ;;  %v3818_v6 = vsub.f32 %v3765_v24, %v3798_v11 }
0x1685   : > { %7246 = vpow2.f32 %v3829_v26  ;;  %v3817_v15 = vsub.f32 %v3762_v12, %v3795_v23 }
0x1686   : > { %v3827_v41 = vmul.f32 1.442695, %v3818_v6 }
0x1687   : > { %v3825_v47 = vmul.f32 1.442695, %v3817_v15  ;;  %v3888_v28 = vpop.permute.xlu1 %3887 }
0x1688   : > { %v3804_v0 = vpop.xlane.xlu0 %3803 }
0x1689   : > { %7248 = vpow2.f32 %v3825_v47  ;;  %v3820_v48 = vsub.f32 %v6564_v18, %v3804_v0 }
0x168b   : > { %v3831_v27 = vmul.f32 1.442695, %v3820_v48  ;;  %v3890_v18 = vpop.permute.xlu1 %3889 }
0x168c   : > { %v3813_v51 = vpop.xlane.xlu0 %3812 }
0x168d   : > { %7250 = vpow2.f32 %v3831_v27  ;;  %v3823_v33 = vsub.f32 %v6567_v55, %v3813_v51 }
0x168e   : > { %7252 = vpow2.f32 %v3827_v41 }
0x168f   : > { %v8901_v13 = vpop.eup %7246  ;;  %v3837_v61 = vmul.f32 1.442695, %v3823_v33 }
0x1690   : > { %v3807_v32 = vpop.xlane.xlu0 %3806  ;;  %v3847_v50 = vsel %vm1268_vm2, %v8901_v13, 0.0 }
0x1691   : > { %7254 = vpow2.f32 %v3837_v61  ;;  %v3821_v43 = vsub.f32 %v3778_v2, %v3807_v32  ;;  %3848 = vadd.xlane.f32.xlu0 %v3847_v50 }
0x1693   : > { %v8905_v9 = vpop.eup %7248  ;;  %v3833_v49 = vmul.f32 1.442695, %v3821_v43 }
0x1694   : > { %v3886_v14 = vpop.permute.xlu0 %3885  ;;  %v3841_v53 = vsel %vm1268_vm2, %v8905_v9, 0.0 }
0x1695   : > { %7256 = vpow2.f32 %v3833_v49  ;;  %3842 = vadd.xlane.f32.xlu0 %v3841_v53  ;;  %6569 = vmatprep.subr.bf16.mxu0 %v3886_v14 }
0x1696   : > { %6570 = vmatpush3.bf16.msra.mxu0 %v3886_v14 }
0x1697   : > { %v7251_v56 = vpop.eup %7250  ;;  %6571 = vmatprep.subr.bf16.mxu0 %v3888_v28 }
0x1698   : > { %v3850_v12 = vsel %vm1268_vm2, %v7251_v56, 0.0  ;;  %v7253_v52 = vpop.eup %7252 }
0x1699   : > { %3851 = vadd.xlane.f32.xlu1 %v3850_v12  ;;  %v3844_v60 = vsel %vm1268_vm2, %v7253_v52, 0.0 }
0x169a   : > { %6572 = vmatpush3.bf16.msra.mxu0 %v3888_v28 }
0x169b   : > { %v8910_v24 = vpop.eup %7254  ;;  %6573 = vmatprep.subr.bf16.mxu0 %v3890_v18 }
0x169c   : > { %v3859_v7 = vsel %vm1268_vm2, %v8910_v24, 0.0 }
0x169d   : > { %3860 = vadd.xlane.f32.xlu0 %v3859_v7  ;;  %3845 = vadd.xlane.f32.xlu1 %v3844_v60 }
0x169e   : > { %6574 = vmatpush3.bf16.msra.mxu0 %v3890_v18 }
0x169f   : > { %v8915_v55 = vpop.eup %7256 }
0x16a0   : > { %v3853_v2 = vsel %vm1268_vm2, %v8915_v55, 0.0 }
0x16a1   : > { %3854 = vadd.xlane.f32.xlu0 %v3853_v2 }
0x16ae   : > { %3984 = vrot.lane.b32.xlu1 %v8743_v44, %s9747_s23 }
0x16b2   : > { %3986 = vrot.lane.b32.xlu1 %v8759_v16, %s9747_s23 }
0x16bc   : > { %v3816_v39 = vpop.xlane.xlu1 %3815 }
0x16bd   : > { %v3824_v59 = vsub.f32 %v8883_v1, %v3816_v39 }
0x16bf   : > { %v3839_v38 = vmul.f32 1.442695, %v3824_v59 }
0x16c0   : > { %v3810_v30 = vpop.xlane.xlu1 %3809 }
0x16c1   : > { %7258 = vpow2.f32 %v3839_v38  ;;  %v3822_v42 = vsub.f32 %v8885_v63, %v3810_v30 }
0x16c3   : > { %v3835_v4 = vmul.f32 1.442695, %v3822_v42 }
0x16c4   : > { %v3892_v45 = vpop.permute.xlu1 %3891 }
0x16c5   : > { %6575 = vmatprep.subr.bf16.mxu0 %v3892_v45  ;;  %7260 = vpow2.f32 %v3835_v4 }
0x16c6   : > { %6576 = vmatpush3.bf16.msra.mxu0 %v3892_v45 }
0x16cb   : > { %v7259_v26 = vpop.eup %7258 }
0x16cc   : > { %v3862_v11 = vsel %vm1268_vm2, %v7259_v26, 0.0 }
0x16cd   : > { %3863 = vadd.xlane.f32.xlu0 %v3862_v11 }
0x16cf   : > { %v7261_v23 = vpop.eup %7260 }
0x16d0   : > { %v3856_v15 = vsel %vm1268_vm2, %v7261_v23, 0.0 }
0x16d6   : > { %3857 = vadd.xlane.f32.xlu1 %v3856_v15 }
0x16e3   : > { %3982 = vrot.lane.b32.xlu0 %v8745_v37, %s9747_s23 }
0x16e7   : > { %3974 = vrot.lane.b32.xlu0 %v8751_v40, %s9748_s22  ;;  %3988 = vrot.lane.b32.xlu1 %v8757_v21, %s9747_s23  ;;  %s9749_s23 = smov 48  }
0x16eb   : > { %3978 = vrot.lane.b32.xlu0 %v8763_v31, %s9748_s22  ;;  %3976 = vrot.lane.b32.xlu1 %v8747_v19, %s9748_s22 }
0x16ef   : > { %3980 = vrot.lane.b32.xlu1 %v8761_v29, %s9748_s22  ;;  %s9750_s22 = smov 72  }
0x171e   : > { %v3849_v1 = vpop.xlane.xlu0 %3848 }
0x1722   : > { %v3843_v6 = vpop.xlane.xlu0 %3842 }
0x1726   : > { %v3852_v63 = vpop.xlane.xlu1 %3851 }
0x1727   : > { %7262 = vrcp.f32 %v3852_v63 }
0x1728   : > { %7264 = vrcp.f32 %v3843_v6 }
0x1729   : > { %7266 = vrcp.f32 %v3849_v1 }
0x172a   : > { %v3846_v47 = vpop.xlane.xlu1 %3845  ;;  %v3861_v49 = vpop.xlane.xlu0 %3860 }
0x172b   : > { %7268 = vrcp.f32 %v3846_v47 }
0x172e   : > { %v3855_v28 = vpop.xlane.xlu0 %3854  ;;  %v3985_v14 = vpop.permute.xlu1 %3984 }
0x1731   : > { %v7263_v0 = vpop.eup %7262 }
0x1732   : > { %v7265_v48 = vpop.eup %7264  ;;  %v3876_v51 = vmul.f32 %v7263_v0, %v7251_v56  ;;  %v3987_v18 = vpop.permute.xlu1 %3986 }
0x1733   : > { %v7267_v41 = vpop.eup %7266  ;;  %v3873_v33 = vmul.f32 %v7265_v48, %v8905_v9  ;;  %v4006_v9 = vsel %vm1178_vm1, %v3985_v14, 0  ;;  %v4009_v59 = vsel %vm1178_vm1, %v3987_v18, 0 }
0x1734   : > { %v3875_v32 = vmul.f32 %v7267_v41, %v8901_v13 }
0x1735   : > { %v7269_v27 = vpop.eup %7268 }
0x1736   : > { %v3874_v61 = vmul.f32 %v7269_v27, %v7253_v52  ;;  %v3882_v43 = vpack.c.bf16 %v3876_v51, %v3875_v32 }
0x1738   : > { %v3881_v50 = vpack.c.bf16 %v3874_v61, %v3873_v33 }
0x173a   : > { %6577 = vmatprep.mubr.msk.bf16.mxu0 %vm1268_vm2, %v3881_v50 }
0x173b   : > { %6578 = vmatmul.mubr.msk.bf16.vlgmr.msra.gmra.mrb[72].mxu0 %vm1268_vm2, %v3882_v43 }
0x175a   : > { %v3864_v53 = vpop.xlane.xlu0 %3863 }
0x175b   : > { %7270 = vrcp.f32 %v3864_v53 }
0x175c   : > { %7272 = vrcp.f32 %v3855_v28 }
0x175d   : > { %7274 = vrcp.f32 %v3861_v49 }
0x175e   : > { %v3983_v12 = vpop.permute.xlu0 %3982 }
0x175f   : > { %v4003_v7 = vsel %vm1178_vm1, %v3983_v12, 0  ;;  %6757 = vmatprep.subr.msk.bf16.mxu0 %vm1178_vm1, %v3983_v12 }
0x1760   : > { %6586 = vmatpush3.bf16.xpose.msra.mxu0 %v4003_v7 }
0x1761   : > { %6758 = vmatprep.subr.msk.bf16.mxu0 %vm1178_vm1, %v3985_v14 }
0x1762   : > { %v3975_v15 = vpop.permute.xlu0 %3974 }
0x1763   : > { %v3858_v13 = vpop.xlane.xlu1 %3857 }
0x1764   : > { %7276 = vrcp.f32 %v3858_v13 }
0x1765   : > { %v7271_v56 = vpop.eup %7270 }
0x1766   : > { %v7273_v52 = vpop.eup %7272  ;;  %v3880_v39 = vmul.f32 %v7271_v56, %v7259_v26 }
0x1767   : > { %v7275_v60 = vpop.eup %7274  ;;  %v3877_v38 = vmul.f32 %v7273_v52, %v8915_v55  ;;  %v3989_v42 = vpop.permute.xlu1 %3988 }
0x1768   : > { %6588 = vmatpush3.bf16.xpose.msra.mxu0 %v4006_v9  ;;  %v3879_v4 = vmul.f32 %v7275_v60, %v8910_v24  ;;  %v4012_v26 = vsel %vm1178_vm1, %v3989_v42, 0 }
0x1769   : > { %6759 = vmatprep.subr.msk.bf16.mxu0 %vm1178_vm1, %v3987_v18 }
0x176a   : > { %v3884_v11 = vpack.c.bf16 %v3880_v39, %v3879_v4 }
0x176b   : > { %v3977_v55 = vpop.permute.xlu1 %3976 }
0x176e   : > { %v7277_v2 = vpop.eup %7276 }
0x176f   : > { %v3878_v30 = vmul.f32 %v7277_v2, %v7261_v23  ;;  %v3979_v23 = vpop.permute.xlu0 %3978  ;;  %v3981_v24 = vpop.permute.xlu1 %3980 }
0x1770   : > { %6590 = vmatpush3.bf16.xpose.msra.mxu0 %v4009_v59 }
0x1771   : > { %6760 = vmatprep.subr.msk.bf16.mxu0 %vm1178_vm1, %v3989_v42  ;;  %v3883_v45 = vpack.c.bf16 %v3878_v30, %v3877_v38 }
0x1773   : > { %6581 = vmatprep.mubr.msk.bf16.mxu0 %vm1268_vm2, %v3883_v45 }
0x1774   : > { %6582 = vmatmul.mubr.msk.bf16.gmra.mrb[76].mxu0 %vm1268_vm2, %v3884_v11 }
0x1775   : > { %6593 = vmatprep.mubr.msk.bf16.mxu0 %vm1178_vm1, %v3975_v15 }
0x1778   : > { %6592 = vmatpush3.bf16.xpose.msra.mxu0 %v4012_v26 }
0x177f   : > { %6594 = vmatmul.mubr.msk.bf16.vlgmr.msra.gmra.mrb[80].mxu0 %vm1178_vm1, %v3977_v55 }
0x1780   : > { %6597 = vmatprep.mubr.msk.bf16.mxu0 %vm1178_vm1, %v3979_v23 }
0x1787   : > { %6598 = vmatmul.mubr.msk.bf16.gmra.mrb[84].mxu0 %vm1178_vm1, %v3981_v24 }
0x180e   : > { %v8959_v1 = vpop.f32.mrb[72].mxu0 }
0x180f   : > { %v8961_v63 = vpop.f32.mrb[73].mxu0 }
0x1810   : > { %v8963_v6 = vpop.f32.mrb[74].mxu0 }
0x1811   : > { %v8967_v0 = vpop.f32.mrb[75].mxu0 }
0x1812   : > { %v6908_v48 = vpack.i.bf16 %v8967_v0, %v8961_v63 }
0x1847   : > { %v8971_v41 = vpop.f32.mrb[76].mxu0 }
0x1848   : > { %v8973_v27 = vpop.f32.mrb[77].mxu0 }
0x1849   : > { %v8975_v51 = vpop.f32.mrb[78].mxu0 }
0x184a   : > { %v8979_v61 = vpop.f32.mrb[79].mxu0 }
0x184b   : > { %v6928_v32 = vpack.i.bf16 %v8979_v61, %v8973_v27  ;;  %v9755_v61 = vpack.i.bf16 %v8975_v51, %v8971_v41 }
0x1852   : > { %v6595_v50 = vpop.f32.mrb[80].mxu0 }
0x1853   : > { %v4048_v43 = vpop.f32.mrb[81].mxu0  ;;  %v4085_v49 = vsel %vm1268_vm2, %v6595_v50, -inf }
0x1854   : > { %4086 = vmax.xlane.f32.xlu0 %v4085_v49  ;;  %v6596_v28 = vpop.f32.mrb[82].mxu0  ;;  %v4079_v12 = vsel %vm1268_vm2, %v4048_v43, -inf }
0x1855   : > { %v4051_v14 = vpop.f32.mrb[83].mxu0  ;;  %v4088_v13 = vsel %vm1268_vm2, %v6596_v28, -inf }
0x1856   : > { %v4082_v53 = vsel %vm1268_vm2, %v4051_v14, -inf }
0x1857   : > { %4083 = vmax.xlane.f32.xlu1 %v4082_v53 }
0x1858   : > { %4080 = vmax.xlane.f32.xlu0 %v4079_v12 }
0x185a   : > { %v6599_v18 = vpop.f32.mrb[84].mxu0 }
0x185b   : > { %v4064_v7 = vpop.f32.mrb[85].mxu0  ;;  %v4097_v52 = vsel %vm1268_vm2, %v6599_v18, -inf }
0x185c   : > { %4089 = vmax.xlane.f32.xlu0 %v4088_v13  ;;  %v8987_v9 = vpop.f32.mrb[86].mxu0  ;;  %v4091_v60 = vsel %vm1268_vm2, %v4064_v7, -inf }
0x185d   : > { %v8989_v56 = vpop.f32.mrb[87].mxu0  ;;  %v4100_v2 = vsel %vm1268_vm2, %v8987_v9, -inf }
0x185e   : > { %v4094_v39 = vsel %vm1268_vm2, %v8989_v56, -inf }
0x1860   : > { %4098 = vmax.xlane.f32.xlu0 %v4097_v52 }
0x1864   : > { %4092 = vmax.xlane.f32.xlu0 %v4091_v60 }
0x1868   : > { %4173 = vrot.lane.b32.xlu1 %v8743_v44, %s9749_s23 }
0x186c   : > { %4175 = vrot.lane.b32.xlu1 %v8759_v16, %s9749_s23 }
0x187a   : > { %4171 = vrot.lane.b32.xlu0 %v8745_v37, %s9749_s23 }
0x1890   : > { %4101 = vmax.xlane.f32.xlu1 %v4100_v2 }
0x1894   : > { %4095 = vmax.xlane.f32.xlu1 %v4094_v39 }
0x18a5   : > { %4177 = vrot.lane.b32.xlu1 %v8757_v21, %s9749_s23  ;;  %s9751_s23 = smov 104  }
0x18e1   : > { %v4087_v59 = vpop.xlane.xlu0 %4086 }
0x18e2   : > { %v4105_v38 = vsub.f32 %v6595_v50, %v4087_v59 }
0x18e4   : > { %v4115_v30 = vmul.f32 1.442695, %v4105_v38  ;;  %v4084_v42 = vpop.xlane.xlu1 %4083 }
0x18e5   : > { %v4081_v4 = vpop.xlane.xlu0 %4080  ;;  %v4104_v11 = vsub.f32 %v4051_v14, %v4084_v42 }
0x18e6   : > { %7278 = vpow2.f32 %v4115_v30  ;;  %v4103_v45 = vsub.f32 %v4048_v43, %v4081_v4 }
0x18e7   : > { %v4113_v23 = vmul.f32 1.442695, %v4104_v11 }
0x18e8   : > { %v4111_v15 = vmul.f32 1.442695, %v4103_v45 }
0x18e9   : > { %v4090_v26 = vpop.xlane.xlu0 %4089 }
0x18ea   : > { %7280 = vpow2.f32 %v4111_v15  ;;  %v4106_v55 = vsub.f32 %v6596_v28, %v4090_v26  ;;  %v4174_v28 = vpop.permute.xlu1 %4173 }
0x18ec   : > { %v4117_v24 = vmul.f32 1.442695, %v4106_v55 }
0x18ed   : > { %v4099_v49 = vpop.xlane.xlu0 %4098 }
0x18ee   : > { %7282 = vpow2.f32 %v4117_v24  ;;  %v4109_v53 = vsub.f32 %v6599_v18, %v4099_v49 }
0x18ef   : > { %7284 = vpow2.f32 %v4113_v23 }
0x18f0   : > { %v9005_v12 = vpop.eup %7278  ;;  %v4123_v13 = vmul.f32 1.442695, %v4109_v53 }
0x18f1   : > { %v4093_v50 = vpop.xlane.xlu0 %4092  ;;  %v4133_v52 = vsel %vm1268_vm2, %v9005_v12, 0.0 }
0x18f2   : > { %7286 = vpow2.f32 %v4123_v13  ;;  %v4107_v43 = vsub.f32 %v4064_v7, %v4093_v50  ;;  %4134 = vadd.xlane.f32.xlu0 %v4133_v52  ;;  %v4176_v7 = vpop.permute.xlu1 %4175 }
0x18f4   : > { %v9009_v14 = vpop.eup %7280  ;;  %v4119_v60 = vmul.f32 1.442695, %v4107_v43 }
0x18f5   : > { %v4172_v2 = vpop.permute.xlu0 %4171  ;;  %v4127_v39 = vsel %vm1268_vm2, %v9009_v14, 0.0 }
0x18f6   : > { %7288 = vpow2.f32 %v4119_v60  ;;  %4128 = vadd.xlane.f32.xlu0 %v4127_v39  ;;  %6601 = vmatprep.subr.bf16.mxu1 %v4172_v2 }
0x18f7   : > { %6602 = vmatpush3.bf16.msra.mxu1 %v4172_v2 }
0x18f8   : > { %v7283_v18 = vpop.eup %7282  ;;  %6603 = vmatprep.subr.bf16.mxu1 %v4174_v28 }
0x18f9   : > { %v4136_v59 = vsel %vm1268_vm2, %v7283_v18, 0.0  ;;  %v7285_v38 = vpop.eup %7284 }
0x18fa   : > { %4137 = vadd.xlane.f32.xlu1 %v4136_v59  ;;  %v4130_v4 = vsel %vm1268_vm2, %v7285_v38, 0.0 }
0x18fb   : > { %6604 = vmatpush3.bf16.msra.mxu1 %v4174_v28 }
0x18fc   : > { %v9014_v30 = vpop.eup %7286  ;;  %6605 = vmatprep.subr.bf16.mxu1 %v4176_v7 }
0x18fd   : > { %v4145_v42 = vsel %vm1268_vm2, %v9014_v30, 0.0 }
0x18fe   : > { %4146 = vadd.xlane.f32.xlu0 %v4145_v42  ;;  %4131 = vadd.xlane.f32.xlu1 %v4130_v4 }
0x18ff   : > { %6606 = vmatpush3.bf16.msra.mxu1 %v4176_v7 }
0x1900   : > { %v9019_v45 = vpop.eup %7288 }
0x1901   : > { %v4139_v11 = vsel %vm1268_vm2, %v9019_v45, 0.0 }
0x1902   : > { %4140 = vadd.xlane.f32.xlu0 %v4139_v11 }
0x190f   : > { %4270 = vrot.lane.b32.xlu1 %v8743_v44, %s9750_s22 }
0x1913   : > { %4272 = vrot.lane.b32.xlu1 %v8759_v16, %s9750_s22 }
0x191d   : > { %v4102_v15 = vpop.xlane.xlu1 %4101 }
0x191e   : > { %v4110_v26 = vsub.f32 %v8987_v9, %v4102_v15 }
0x1920   : > { %v4125_v55 = vmul.f32 1.442695, %v4110_v26 }
0x1921   : > { %v4096_v23 = vpop.xlane.xlu1 %4095 }
0x1922   : > { %7290 = vpow2.f32 %v4125_v55  ;;  %v4108_v24 = vsub.f32 %v8989_v56, %v4096_v23 }
0x1924   : > { %v4121_v49 = vmul.f32 1.442695, %v4108_v24 }
0x1925   : > { %v4178_v53 = vpop.permute.xlu1 %4177 }
0x1926   : > { %6607 = vmatprep.subr.bf16.mxu1 %v4178_v53  ;;  %7292 = vpow2.f32 %v4121_v49 }
0x1927   : > { %6608 = vmatpush3.bf16.msra.mxu1 %v4178_v53 }
0x192c   : > { %v7291_v13 = vpop.eup %7290 }
0x192d   : > { %v4148_v50 = vsel %vm1268_vm2, %v7291_v13, 0.0 }
0x192e   : > { %4149 = vadd.xlane.f32.xlu0 %v4148_v50 }
0x1930   : > { %v7293_v52 = vpop.eup %7292 }
0x1931   : > { %v4142_v43 = vsel %vm1268_vm2, %v7293_v52, 0.0 }
0x1937   : > { %4143 = vadd.xlane.f32.xlu1 %v4142_v43 }
0x1944   : > { %4268 = vrot.lane.b32.xlu0 %v8745_v37, %s9750_s22 }
0x1948   : > { %4260 = vrot.lane.b32.xlu0 %v8751_v40, %s9751_s23  ;;  %4274 = vrot.lane.b32.xlu1 %v8757_v21, %s9750_s22  ;;  %s9752_s22 = smov 40  }
0x194c   : > { %4264 = vrot.lane.b32.xlu0 %v8763_v31, %s9751_s23  ;;  %4262 = vrot.lane.b32.xlu1 %v8747_v19, %s9751_s23 }
0x1950   : > { %4266 = vrot.lane.b32.xlu1 %v8761_v29, %s9751_s23  ;;  %s9756_s23 = sld [smem:[#allocation13_spill]] }
0x197f   : > { %v4135_v9 = vpop.xlane.xlu0 %4134 }
0x1983   : > { %v4129_v60 = vpop.xlane.xlu0 %4128 }
0x1987   : > { %v4138_v56 = vpop.xlane.xlu1 %4137 }
0x1988   : > { %7294 = vrcp.f32 %v4138_v56 }
0x1989   : > { %7296 = vrcp.f32 %v4129_v60 }
0x198a   : > { %7298 = vrcp.f32 %v4135_v9 }
0x198b   : > { %v4132_v28 = vpop.xlane.xlu1 %4131  ;;  %v4147_v11 = vpop.xlane.xlu0 %4146 }
0x198c   : > { %7300 = vrcp.f32 %v4132_v28 }
0x198f   : > { %v4141_v15 = vpop.xlane.xlu0 %4140  ;;  %v4271_v26 = vpop.permute.xlu1 %4270 }
0x1992   : > { %v7295_v40 = vpop.eup %7294 }
0x1993   : > { %v7297_v2 = vpop.eup %7296  ;;  %v4162_v7 = vmul.f32 %v7295_v40, %v7283_v18  ;;  %v4273_v24 = vpop.permute.xlu1 %4272 }
0x1994   : > { %v7299_v39 = vpop.eup %7298  ;;  %v4159_v31 = vmul.f32 %v7297_v2, %v9009_v14  ;;  %v4292_v14 = vsel %vm1178_vm1, %v4271_v26, 0  ;;  %v4295_v9 = vsel %vm1178_vm1, %v4273_v24, 0 }
0x1995   : > { %v4161_v19 = vmul.f32 %v7299_v39, %v9005_v12 }
0x1996   : > { %v7301_v59 = vpop.eup %7300 }
0x1997   : > { %v4160_v42 = vmul.f32 %v7301_v59, %v7285_v38  ;;  %v4168_v29 = vpack.c.bf16 %v4162_v7, %v4161_v19 }
0x1999   : > { %v4167_v4 = vpack.c.bf16 %v4160_v42, %v4159_v31 }
0x199b   : > { %6609 = vmatprep.mubr.msk.bf16.mxu1 %vm1268_vm2, %v4167_v4 }
0x199c   : > { %6610 = vmatmul.mubr.msk.bf16.vlgmr.msra.gmra.mrb[56].mxu1 %vm1268_vm2, %v4168_v29 }
0x19bb   : > { %v4150_v55 = vpop.xlane.xlu0 %4149 }
0x19bc   : > { %7302 = vrcp.f32 %v4150_v55 }
0x19bd   : > { %7304 = vrcp.f32 %v4141_v15 }
0x19be   : > { %7306 = vrcp.f32 %v4147_v11 }
0x19bf   : > { %v4269_v23 = vpop.permute.xlu0 %4268 }
0x19c0   : > { %v4289_v49 = vsel %vm1178_vm1, %v4269_v23, 0  ;;  %6761 = vmatprep.subr.msk.bf16.mxu1 %vm1178_vm1, %v4269_v23 }
0x19c1   : > { %6618 = vmatpush3.bf16.xpose.msra.mxu1 %v4289_v49 }
0x19c2   : > { %6762 = vmatprep.subr.msk.bf16.mxu1 %vm1178_vm1, %v4271_v26 }
0x19c3   : > { %v4261_v59 = vpop.permute.xlu0 %4260 }
0x19c4   : > { %v4144_v12 = vpop.xlane.xlu1 %4143 }
0x19c5   : > { %7308 = vrcp.f32 %v4144_v12 }
0x19c6   : > { %v7303_v18 = vpop.eup %7302 }
0x19c7   : > { %v7305_v38 = vpop.eup %7304  ;;  %v4166_v43 = vmul.f32 %v7303_v18, %v7291_v13 }
0x19c8   : > { %v7307_v53 = vpop.eup %7306  ;;  %v4163_v56 = vmul.f32 %v7305_v38, %v9019_v45  ;;  %v4275_v28 = vpop.permute.xlu1 %4274 }
0x19c9   : > { %6620 = vmatpush3.bf16.xpose.msra.mxu1 %v4292_v14  ;;  %v4165_v40 = vmul.f32 %v7307_v53, %v9014_v30  ;;  %v4298_v13 = vsel %vm1178_vm1, %v4275_v28, 0 }
0x19ca   : > { %6763 = vmatprep.subr.msk.bf16.mxu1 %vm1178_vm1, %v4273_v24 }
0x19cb   : > { %v4170_v39 = vpack.c.bf16 %v4166_v43, %v4165_v40 }
0x19cc   : > { %v4263_v45 = vpop.permute.xlu1 %4262 }
0x19cf   : > { %v7309_v50 = vpop.eup %7308 }
0x19d0   : > { %v4164_v60 = vmul.f32 %v7309_v50, %v7293_v52  ;;  %v4265_v52 = vpop.permute.xlu0 %4264  ;;  %v4267_v30 = vpop.permute.xlu1 %4266 }
0x19d1   : > { %6622 = vmatpush3.bf16.xpose.msra.mxu1 %v4295_v9 }
0x19d2   : > { %6764 = vmatprep.subr.msk.bf16.mxu1 %vm1178_vm1, %v4275_v28  ;;  %v4169_v2 = vpack.c.bf16 %v4164_v60, %v4163_v56 }
0x19d4   : > { %6613 = vmatprep.mubr.msk.bf16.mxu1 %vm1268_vm2, %v4169_v2 }
0x19d5   : > { %6614 = vmatmul.mubr.msk.bf16.gmra.mrb[60].mxu1 %vm1268_vm2, %v4170_v39 }
0x19d6   : > { %6625 = vmatprep.mubr.msk.bf16.mxu1 %vm1178_vm1, %v4261_v59 }
0x19d9   : > { %6624 = vmatpush3.bf16.xpose.msra.mxu1 %v4298_v13 }
0x19e0   : > { %6626 = vmatmul.mubr.msk.bf16.vlgmr.msra.gmra.mrb[64].mxu1 %vm1178_vm1, %v4263_v45 }
0x19e1   : > { %6629 = vmatprep.mubr.msk.bf16.mxu1 %vm1178_vm1, %v4265_v52 }
0x19e8   : > { %6630 = vmatmul.mubr.msk.bf16.gmra.mrb[68].mxu1 %vm1178_vm1, %v4267_v30 }
0x1a6f   : > { %v9063_v7 = vpop.f32.mrb[56].mxu1 }
0x1a70   : > { %v9065_v31 = vpop.f32.mrb[57].mxu1 }
0x1a71   : > { %v9067_v42 = vpop.f32.mrb[58].mxu1 }
0x1a72   : > { %v9071_v4 = vpop.f32.mrb[59].mxu1  ;;  %v9754_v27 = vpack.i.bf16 %v9067_v42, %v9063_v7 }
0x1a73   : > { %v6918_v29 = vpack.i.bf16 %v9071_v4, %v9065_v31  ;;  %v9753_v31 = vpack.i.bf16 %v8963_v6, %v8959_v1 }
0x1aa8   : > { %v9075_v11 = vpop.f32.mrb[60].mxu1 }
0x1aa9   : > { %v9077_v15 = vpop.f32.mrb[61].mxu1 }
0x1aaa   : > { %v9079_v26 = vpop.f32.mrb[62].mxu1 }
0x1aab   : > { %v9083_v23 = vpop.f32.mrb[63].mxu1 }
0x1ab3   : > { %v6627_v49 = vpop.f32.mrb[64].mxu1 }
0x1ab4   : > { %v4334_v12 = vpop.f32.mrb[65].mxu1  ;;  %v4371_v50 = vsel %vm1268_vm2, %v6627_v49, -inf }
0x1ab5   : > { %v6628_v14 = vpop.f32.mrb[66].mxu1  ;;  %v4365_v18 = vsel %vm1268_vm2, %v4334_v12, -inf }
0x1ab6   : > { %4366 = vmax.xlane.f32.xlu0 %v4365_v18  ;;  %v4337_v38 = vpop.f32.mrb[67].mxu1  ;;  %v4374_v60 = vsel %vm1268_vm2, %v6628_v14, -inf }
0x1ab7   : > { %v4368_v53 = vsel %vm1268_vm2, %v4337_v38, -inf }
0x1ab8   : > { %4369 = vmax.xlane.f32.xlu1 %v4368_v53 }
0x1aba   : > { %4372 = vmax.xlane.f32.xlu0 %v4371_v50 }
0x1abb   : > { %v6631_v43 = vpop.f32.mrb[68].mxu1 }
0x1abc   : > { %v4350_v9 = vpop.f32.mrb[69].mxu1  ;;  %v4383_v59 = vsel %vm1268_vm2, %v6631_v43, -inf }
0x1abd   : > { %v9090_v56 = vpop.f32.mrb[70].mxu1  ;;  %v4377_v2 = vsel %vm1268_vm2, %v4350_v9, -inf }
0x1abe   : > { %4375 = vmax.xlane.f32.xlu0 %v4374_v60  ;;  %v4353_v28 = vpop.f32.mrb[71].mxu1  ;;  %v4386_v39 = vsel %vm1268_vm2, %v9090_v56, -inf }
0x1abf   : > { %v4380_v40 = vsel %vm1268_vm2, %v4353_v28, -inf }
0x1ac0   : > { %4381 = vmax.xlane.f32.xlu1 %v4380_v40 }
0x1ac2   : > { %4378 = vmax.xlane.f32.xlu0 %v4377_v2 }
0x1ac4   : > { %4387 = vmax.xlane.f32.xlu1 %v4386_v39 }
0x1ac6   : > { %4384 = vmax.xlane.f32.xlu0 %v4383_v59 }
0x1b43   : > { %v4367_v13 = vpop.xlane.xlu0 %4366 }
0x1b44   : > { %v4389_v45 = vsub.f32 %v4334_v12, %v4367_v13 }
0x1b45   : > { %v4370_v52 = vpop.xlane.xlu1 %4369 }
0x1b46   : > { %v4397_v53 = vmul.f32 1.442695, %v4389_v45  ;;  %v4390_v50 = vsub.f32 %v4337_v38, %v4370_v52 }
0x1b47   : > { %v4373_v30 = vpop.xlane.xlu0 %4372 }
0x1b48   : > { %v4391_v18 = vsub.f32 %v6627_v49, %v4373_v30  ;;  %v4399_v2 = vmul.f32 1.442695, %v4390_v50 }
0x1b4a   : > { %v4401_v60 = vmul.f32 1.442695, %v4391_v18 }
0x1b4b   : > { %v4376_v24 = vpop.xlane.xlu0 %4375 }
0x1b4c   : > { %7310 = vpow2.f32 %v4401_v60  ;;  %v4392_v40 = vsub.f32 %v6628_v14, %v4376_v24 }
0x1b4d   : > { %7312 = vpow2.f32 %v4397_v53  ;;  %v4382_v30 = vpop.xlane.xlu1 %4381 }
0x1b4e   : > { %v4403_v55 = vmul.f32 1.442695, %v4392_v40 }
0x1b4f   : > { %v4379_v33 = vpop.xlane.xlu0 %4378 }
0x1b50   : > { %7314 = vpow2.f32 %v4403_v55  ;;  %v4393_v39 = vsub.f32 %v4350_v9, %v4379_v33 }
0x1b51   : > { %7316 = vpow2.f32 %v4399_v2  ;;  %v4388_v18 = vpop.xlane.xlu1 %4387 }
0x1b52   : > { %v4405_v12 = vmul.f32 1.442695, %v4393_v39  ;;  %v4396_v53 = vsub.f32 %v9090_v56, %v4388_v18 }
0x1b53   : > { %v4385_v19 = vpop.xlane.xlu0 %4384 }
0x1b54   : > { %v4395_v59 = vsub.f32 %v6631_v43, %v4385_v19  ;;  %v4411_v50 = vmul.f32 1.442695, %v4396_v53 }
0x1b56   : > { %v9098_v47 = vpop.eup %7310  ;;  %v4409_v13 = vmul.f32 1.442695, %v4395_v59 }
0x1b57   : > { %v4419_v49 = vsel %vm1268_vm2, %v9098_v47, 0.0  ;;  %v7313_v38 = vpop.eup %7312 }
0x1b58   : > { %7318 = vpow2.f32 %v4409_v13  ;;  %4420 = vadd.xlane.f32.xlu0 %v4419_v49  ;;  %v4413_v14 = vsel %vm1268_vm2, %v7313_v38, 0.0 }
0x1b59   : > { %7320 = vpow2.f32 %v4405_v12 }
0x1b5a   : > { %v9102_v24 = vpop.eup %7314  ;;  %7322 = vpow2.f32 %v4411_v50  ;;  %v6985_v50 = vld [vmem:[%s9756_s23 + $0x8] sm:$0xff]  }
0x1b5b   : > { %v4422_v33 = vsel %vm1268_vm2, %v9102_v24, 0.0  ;;  %v7317_v55 = vpop.eup %7316 }
0x1b5c   : > { %4414 = vadd.xlane.f32.xlu0 %v4413_v14  ;;  %4423 = vadd.xlane.f32.xlu1 %v4422_v33  ;;  %v4416_v19 = vsel %vm1268_vm2, %v7317_v55, 0.0 }
0x1b60   : > { %4417 = vadd.xlane.f32.xlu1 %v4416_v19 }
0x1b62   : > { %v9108_v43 = vpop.eup %7318 }
0x1b63   : > { %v4431_v9 = vsel %vm1268_vm2, %v9108_v43, 0.0  ;;  %v9112_v45 = vpop.eup %7320 }
0x1b64   : > { %4432 = vadd.xlane.f32.xlu0 %v4431_v9  ;;  %v4425_v52 = vsel %vm1268_vm2, %v9112_v45, 0.0 }
0x1b68   : > { %4426 = vadd.xlane.f32.xlu0 %v4425_v52 }
0x1b71   : > { %4459 = vrot.lane.b32.xlu1 %v8743_v44, %s9752_s22  ;;  %v4394_v44 = vsub.f32 %v4353_v28, %v4382_v30 }
0x1b75   : > { %4461 = vrot.lane.b32.xlu1 %v8759_v16, %s9752_s22  ;;  %v7323_v16 = vpop.eup %7322 }
0x1b76   : > { %v4434_v63 = vsel %vm1268_vm2, %v7323_v16, 0.0 }
0x1b7e   : > { %4457 = vrot.lane.b32.xlu0 %v8745_v37, %s9752_s22  ;;  %v4407_v37 = vmul.f32 1.442695, %v4394_v44 }
0x1b80   : > { %7324 = vpow2.f32 %v4407_v37 }
0x1b82   : > { %6909 = vrot.lane.b32.xlu0 %v6908_v48, %s9708_s16 }
0x1b86   : > { %6919 = vrot.lane.b32.xlu0 %v6918_v29, %s7535_s2 }
0x1b8a   : > { %6929 = vrot.lane.b32.xlu0 %v6928_v32, %s9708_s16  ;;  %v7325_v0 = vpop.eup %7324 }
0x1b8b   : > { %v4428_v48 = vsel %vm1268_vm2, %v7325_v0, 0.0 }
0x1b99   : > { %4435 = vadd.xlane.f32.xlu1 %v4434_v63 }
0x1b9d   : > { %4429 = vadd.xlane.f32.xlu1 %v4428_v48 }
0x1bae   : > { %4463 = vrot.lane.b32.xlu1 %v8757_v21, %s9752_s22  ;;  %s9757_s22 = smov 24  }
0x1bb2   : > { %6914 = vrot.lane.b32.xlu1 %v9753_v31, %s9708_s16  ;;  %v9758_v31 = vpack.i.bf16 %v9079_v26, %v9075_v11 }
0x1bb6   : > { %6924 = vrot.lane.b32.xlu1 %v9754_v27, %s7535_s2 }
0x1bba   : > { %6934 = vrot.lane.b32.xlu1 %v9755_v61, %s9708_s16  ;;  %v9759_v61 = vpack.i.bf16 %v9083_v23, %v9077_v15  ;;  %s9763_s16 = sld [smem:[#allocation16_spill]] }
0x1be5   : > { %v4421_v32 = vpop.xlane.xlu0 %4420 }
0x1be9   : > { %v4415_v4 = vpop.xlane.xlu0 %4414  ;;  %v4424_v29 = vpop.xlane.xlu1 %4423 }
0x1bea   : > { %7326 = vrcp.f32 %v4415_v4 }
0x1bed   : > { %v4418_v21 = vpop.xlane.xlu1 %4417 }
0x1bee   : > { %7328 = vrcp.f32 %v4418_v21 }
0x1bef   : > { %7330 = vrcp.f32 %v4424_v29 }
0x1bf0   : > { %7332 = vrcp.f32 %v4421_v32 }
0x1bf1   : > { %v4433_v56 = vpop.xlane.xlu0 %4432  ;;  %v4460_v60 = vpop.permute.xlu1 %4459 }
0x1bf4   : > { %v7327_v1 = vpop.eup %7326 }
0x1bf5   : > { %v4427_v28 = vpop.xlane.xlu0 %4426  ;;  %v4445_v2 = vmul.f32 %v7327_v1, %v7313_v38  ;;  %v4462_v41 = vpop.permute.xlu1 %4461 }
0x1bf8   : > { %v7329_v6 = vpop.eup %7328 }
0x1bf9   : > { %v4458_v40 = vpop.permute.xlu0 %4457  ;;  %v4446_v7 = vmul.f32 %v7329_v6, %v7317_v55  ;;  %v7331_v39 = vpop.eup %7330 }
0x1bfa   : > { %6633 = vmatprep.subr.bf16.mxu0 %v4458_v40  ;;  %v7333_v12 = vpop.eup %7332  ;;  %v4448_v13 = vmul.f32 %v7331_v39, %v9102_v24 }
0x1bfb   : > { %6634 = vmatpush3.bf16.msra.mxu0 %v4458_v40  ;;  %v4453_v42 = vpack.c.bf16 %v4446_v7, %v4445_v2  ;;  %v4447_v38 = vmul.f32 %v7333_v12, %v9098_v47  ;;  %v6984_v47 = vld [vmem:[%s9756_s23] sm:$0xff]  }
0x1bfc   : > { %6635 = vmatprep.subr.bf16.mxu0 %v4460_v60 }
0x1bfd   : > { %6641 = vmatprep.mubr.msk.bf16.mxu0 %vm1268_vm2, %v4453_v42  ;;  %v4454_v14 = vpack.c.bf16 %v4448_v13, %v4447_v38 }
0x1bff   : > { %6636 = vmatpush3.bf16.msra.mxu0 %v4460_v60 }
0x1c00   : > { %6637 = vmatprep.subr.bf16.mxu0 %v4462_v41 }
0x1c03   : > { %6638 = vmatpush3.bf16.msra.mxu0 %v4462_v41 }
0x1c26   : > { %v4436_v51 = vpop.xlane.xlu1 %4435 }
0x1c27   : > { %7334 = vrcp.f32 %v4436_v51 }
0x1c28   : > { %7336 = vrcp.f32 %v4427_v28  ;;  %v6910_v28 = vpop.permute.xlu0 %6909 }
0x1c29   : > { %7338 = vrcp.f32 %v4433_v56  ;;  %v6911_v11 = vunpack.i.l.bf16 %v6910_v28  ;;  %v6912_v26 = vunpack.i.h.bf16 %v6910_v28 }
0x1c2a   : > { %v4430_v59 = vpop.xlane.xlu1 %4429 }
0x1c2b   : > { %7340 = vrcp.f32 %v4430_v59  ;;  %v4642_v41 = vsel %vm1178_vm1, %v8865_v54, %v6911_v11  ;;  %v4643_v39 = vsel %vm1178_vm1, %v8869_v57, %v6912_v26 }
0x1c2c   : > { %v6920_v6 = vpop.permute.xlu0 %6919 }
0x1c2d   : > { %v6921_v60 = vunpack.i.l.bf16 %v6920_v6  ;;  %v6922_v51 = vunpack.i.h.bf16 %v6920_v6 }
0x1c2e   : > { %v4464_v49 = vpop.permute.xlu1 %4463 }
0x1c2f   : > { %6639 = vmatprep.subr.bf16.mxu0 %v4464_v49  ;;  %v4650_v59 = vsel %vm2416_vm3, %v4642_v41, %v6921_v60  ;;  %v4651_v57 = vsel %vm2416_vm3, %v4643_v39, %v6922_v51 }
0x1c30   : > { %6640 = vmatpush3.bf16.msra.mxu0 %v4464_v49  ;;  %v6930_v2 = vpop.permute.xlu0 %6929 }
0x1c31   : > { %v7335_v33 = vpop.eup %7334  ;;  %6649 = vmatprep.subr.bf16.mxu0 %v6984_v47 }
0x1c32   : > { %v7337_v55 = vpop.eup %7336  ;;  %v4452_v52 = vmul.f32 %v7335_v33, %v7323_v16  ;;  %v6915_v56 = vpop.permute.xlu1 %6914 }
0x1c33   : > { %6642 = vmatmul.mubr.msk.bf16.vlgmr.msra.gmra.mrb[88].mxu0 %vm1268_vm2, %v4454_v14  ;;  %v7339_v19 = vpop.eup %7338  ;;  %v4449_v30 = vmul.f32 %v7337_v55, %v9112_v45  ;;  %v6917_v7 = vunpack.i.h.bf16 %v6915_v56  ;;  %v6916_v15 = vunpack.i.l.bf16 %v6915_v56 }
0x1c34   : > { %v4451_v24 = vmul.f32 %v7339_v19, %v9108_v43  ;;  %6650 = vmatpush3.bf16.msra.mxu0 %v6984_v47 }
0x1c35   : > { %v7341_v9 = vpop.eup %7340  ;;  %6651 = vmatprep.subr.bf16.mxu0 %v6985_v50  ;;  %v4645_v13 = vsel %vm1178_vm1, %v8867_v22, %v6917_v7  ;;  %v4644_v49 = vsel %vm1178_vm1, %v8863_v58, %v6916_v15  ;;  %v6931_v22 = vunpack.i.l.bf16 %v6930_v2 }
0x1c36   : > { %v4450_v18 = vmul.f32 %v7341_v9, %v7325_v0  ;;  %v4456_v44 = vpack.c.bf16 %v4452_v52, %v4451_v24  ;;  %v6925_v1 = vpop.permute.xlu1 %6924  ;;  %v6932_v52 = vunpack.i.h.bf16 %v6930_v2 }
0x1c37   : > { %v6927_v23 = vunpack.i.h.bf16 %v6925_v1  ;;  %v6926_v42 = vunpack.i.l.bf16 %v6925_v1 }
0x1c38   : > { %v4455_v53 = vpack.c.bf16 %v4450_v18, %v4449_v30  ;;  %6652 = vmatpush3.bf16.msra.mxu0 %v6985_v50 }
0x1c39   : > { %v4652_v55 = vsel %vm2416_vm3, %v4644_v49, %v6926_v42  ;;  %v4653_v54 = vsel %vm2416_vm3, %v4645_v13, %v6927_v23 }
0x1c3a   : > { %6645 = vmatprep.mubr.msk.bf16.mxu0 %vm1268_vm2, %v4455_v53  ;;  %v6935_v40 = vpop.permute.xlu1 %6934 }
0x1c3b   : > { %6646 = vmatmul.mubr.msk.bf16.gmra.mrb[92].mxu0 %vm1268_vm2, %v4456_v44  ;;  %v6937_v47 = vunpack.i.h.bf16 %v6935_v40  ;;  %v6936_v50 = vunpack.i.l.bf16 %v6935_v40 }
0x1d06   : > { %v6643_v37 = vpop.f32.mrb[88].mxu0 }
0x1d07   : > { %v4515_v63 = vpop.f32.mrb[89].mxu0 }
0x1d08   : > { %v6644_v16 = vpop.f32.mrb[90].mxu0 }
0x1d09   : > { %v6938_v48 = vpack.i.bf16 %v6644_v16, %v6643_v37  ;;  %v4518_v45 = vpop.f32.mrb[91].mxu0 }
0x1d0a   : > { %v6943_v0 = vpack.i.bf16 %v4518_v45, %v4515_v63 }
0x1d0b   : > { %6939 = vrot.lane.b32.xlu1 %v6938_v48, %s9757_s22 }
0x1d0c   : > { %6944 = vrot.lane.b32.xlu0 %v6943_v0, %s9757_s22 }
0x1d0e   : > { %v6647_v43 = vpop.f32.mrb[92].mxu0 }
0x1d0f   : > { %6954 = vrot.lane.b32.xlu1 %v9758_v31, %s7535_s2  ;;  %v4531_v27 = vpop.f32.mrb[93].mxu0  ;;  %v4646_v31 = vsel %vm1178_vm1, %v8873_v25, %v6931_v22 }
0x1d10   : > { %6949 = vrot.lane.b32.xlu0 %v9759_v61, %s7535_s2  ;;  %v6648_v32 = vpop.f32.mrb[94].mxu0  ;;  %v4649_v61 = vsel %vm1178_vm1, %v8875_v62, %v6937_v47  ;;  %s9760_s2 = sld [smem:[#allocation14_spill]] }
0x1d11   : > { %v6963_v4 = vpack.i.bf16 %v6648_v32, %v6647_v43  ;;  %v4534_v29 = vpop.f32.mrb[95].mxu0  ;;  %v4647_v43 = vsel %vm1178_vm1, %v8877_v46, %v6932_v52  ;;  %v4648_v32 = vsel %vm1178_vm1, %v8871_v20, %v6936_v50 }
0x1d12   : > { %v6958_v21 = vpack.i.bf16 %v4534_v29, %v4531_v27 }
0x1d13   : > { %6964 = vrot.lane.b32.xlu1 %v6963_v4, %s9757_s22 }
0x1d14   : > { %6959 = vrot.lane.b32.xlu0 %v6958_v21, %s9757_s22  ;;  %s9761_s22 = sld [smem:[#allocation17_spill]] }
0x1d16   : > { %v6067_v2 = vld [vmem:[%s9760_s2] ss:$0 sm:$0xff]  ;;  %s9762_s2 = sld [smem:[#allocation15_spill]] }
0x1d7d   : > { %v6940_v12 = vpop.permute.xlu1 %6939 }
0x1d7e   : > { %v6942_v38 = vunpack.i.h.bf16 %v6940_v12  ;;  %v6941_v14 = vunpack.i.l.bf16 %v6940_v12  ;;  %v6945_v33 = vpop.permute.xlu0 %6944 }
0x1d7f   : > { %v6947_v19 = vunpack.i.h.bf16 %v6945_v33  ;;  %v6946_v9 = vunpack.i.l.bf16 %v6945_v33 }
0x1d80   : > { %v4660_v30 = vsel %vm2425_vm4, %v4652_v55, %v6941_v14  ;;  %v4661_v18 = vsel %vm2425_vm4, %v4653_v54, %v6942_v38 }
0x1d81   : > { %v4667_v24 = vpack.c.bf16 %v4661_v18, %v4660_v30  ;;  %v4659_v58 = vsel %vm2425_vm4, %v4651_v57, %v6947_v19  ;;  %v4658_v53 = vsel %vm2425_vm4, %v4650_v59, %v6946_v9  ;;  %v6955_v44 = vpop.permute.xlu1 %6954 }
0x1d82   : > { %v4666_v37 = vpack.c.bf16 %v4659_v58, %v4658_v53  ;;  %v6950_v63 = vpop.permute.xlu0 %6949  ;;  %v6957_v16 = vunpack.i.h.bf16 %v6955_v44  ;;  %v6956_v48 = vunpack.i.l.bf16 %v6955_v44 }
0x1d83   : > { %v6952_v45 = vunpack.i.h.bf16 %v6950_v63  ;;  %v6951_v0 = vunpack.i.l.bf16 %v6950_v63 }
0x1d84   : > { %6653 = vmatprep.mubr.msk.bf16.mxu0 %vm910_vm0, %v4666_v37  ;;  %v4656_v56 = vsel %vm2416_vm3, %v4648_v32, %v6956_v48  ;;  %v4657_v46 = vsel %vm2416_vm3, %v4649_v61, %v6957_v16 }
0x1d85   : > { %v6965_v27 = vpop.permute.xlu1 %6964  ;;  %6654 = vmatmul.mubr.msk.bf16.vlgmr.msra.gmra.mrb[96].mxu0 %vm910_vm0, %v4667_v24  ;;  %v4655_v25 = vsel %vm2416_vm3, %v4647_v43, %v6952_v45  ;;  %v4654_v6 = vsel %vm2416_vm3, %v4646_v31, %v6951_v0 }
0x1d86   : > { %v6967_v4 = vunpack.i.h.bf16 %v6965_v27  ;;  %v6966_v29 = vunpack.i.l.bf16 %v6965_v27  ;;  %v6960_v21 = vpop.permute.xlu0 %6959 }
0x1d87   : > { %v6962_v28 = vunpack.i.h.bf16 %v6960_v21  ;;  %v6961_v1 = vunpack.i.l.bf16 %v6960_v21 }
0x1d88   : > { %v4664_v11 = vsel %vm2425_vm4, %v4656_v56, %v6966_v29  ;;  %v4665_v62 = vsel %vm2425_vm4, %v4657_v46, %v6967_v4 }
0x1d89   : > { %v4669_v26 = vpack.c.bf16 %v4665_v62, %v4664_v11  ;;  %v4663_v20 = vsel %vm2425_vm4, %v4655_v25, %v6962_v28  ;;  %v4662_v60 = vsel %vm2425_vm4, %v4654_v6, %v6961_v1 }
0x1d8a   : > { %v4668_v40 = vpack.c.bf16 %v4663_v20, %v4662_v60 }
0x1d8c   : > { %6657 = vmatprep.mubr.msk.bf16.mxu0 %vm910_vm0, %v4668_v40 }
0x1d8d   : > { %6658 = vmatmul.mubr.msk.bf16.gmra.mrb[100].mxu0 %vm910_vm0, %v4669_v26 }
0x1e58   : > { %v6655_v7 = vpop.f32.mrb[96].mxu0 }
0x1e59   : > { %v4739_v15 = vpop.f32.mrb[97].mxu0  ;;  %v4748_v23 = vadd.f32 %v6655_v7, %v6067_v2 }
0x1e5a   : > { %v4740_v42 = vadd.f32 %v6067_v2, %v4739_v15  ;;  %v6656_v41 = vpop.f32.mrb[98].mxu0 }
0x1e5b   : > { %v4742_v51 = vpop.f32.mrb[99].mxu0  ;;  %v9214_v12 = vadd.f32 %v4748_v23, %v8642_v8  ;;  %v4751_v13 = vadd.f32 %v6656_v41, %v6067_v2 }
0x1e5c   : > { %v9211_v39 = vadd.f32 %v4740_v42, %v8639_v36  ;;  %v4743_v59 = vadd.f32 %v6067_v2, %v4742_v51 }
0x1e5d   : > { %v9224_v36 = vadd.f32 %v4751_v13, %v8650_v35  ;;  %v4784_v19 = vsel %vm910_vm0, %v9214_v12, 0.0 }
0x1e5e   : > { %v9217_v49 = vadd.f32 %v4743_v59, %v8645_v10  ;;  %v4778_v38 = vsel %vm910_vm0, %v9211_v39, 0.0 }
0x1e5f   : > { %4779 = vadd.xlane.f32.xlu0 %v4778_v38  ;;  %v4787_v35 = vsel %vm910_vm0, %v9224_v36, 0.0  ;;  %v6986_v38 = vld [vmem:[%s9761_s22] sm:$0xff]  }
0x1e60   : > { %v6659_v14 = vpop.f32.mrb[100].mxu0  ;;  %v4781_v33 = vsel %vm910_vm0, %v9217_v49, 0.0  ;;  %6661 = vmatprep.subr.bf16.mxu1 %v6986_v38 }
0x1e61   : > { %v4755_v55 = vpop.f32.mrb[101].mxu0  ;;  %4782 = vadd.xlane.f32.xlu1 %v4781_v33  ;;  %v4764_v52 = vadd.f32 %v6659_v14, %v6067_v2  ;;  %6662 = vmatpush3.bf16.msra.mxu1 %v6986_v38  ;;  %v6987_v14 = vld [vmem:[%s9761_s22 + $0x8] sm:$0xff]  }
0x1e62   : > { %v4756_v54 = vadd.f32 %v6067_v2, %v4755_v55  ;;  %v6660_v8 = vpop.f32.mrb[102].mxu0  ;;  %6663 = vmatprep.subr.bf16.mxu1 %v6987_v14 }
0x1e63   : > { %v4758_v10 = vpop.f32.mrb[103].mxu0  ;;  %4785 = vadd.xlane.f32.xlu0 %v4784_v19  ;;  %v4767_v9 = vadd.f32 %v6660_v8, %v6067_v2  ;;  %v9242_v58 = vadd.f32 %v4764_v52, %v8662_v5 }
0x1e64   : > { %v4759_v57 = vadd.f32 %v6067_v2, %v4758_v10  ;;  %v9229_v30 = vadd.f32 %v4756_v54, %v8659_v3 }
0x1e65   : > { %v9237_v22 = vadd.f32 %v4767_v9, %v8670_v17  ;;  %v4796_v53 = vsel %vm910_vm0, %v9242_v58, 0.0  ;;  %6664 = vmatpush3.bf16.msra.mxu1 %v6987_v14 }
0x1e66   : > { %v9232_v18 = vadd.f32 %v4759_v57, %v8665_v34  ;;  %v4790_v3 = vsel %vm910_vm0, %v9229_v30, 0.0 }
0x1e67   : > { %4788 = vadd.xlane.f32.xlu0 %v4787_v35  ;;  %v4799_v34 = vsel %vm910_vm0, %v9237_v22, 0.0 }
0x1e68   : > { %v4793_v24 = vsel %vm910_vm0, %v9232_v18, 0.0 }
0x1e69   : > { %4794 = vadd.xlane.f32.xlu1 %v4793_v24 }
0x1e6b   : > { %4791 = vadd.xlane.f32.xlu0 %v4790_v3 }
0x1e6d   : > { %4800 = vadd.xlane.f32.xlu1 %v4799_v34 }
0x1e6f   : > { %4797 = vadd.xlane.f32.xlu0 %v4796_v53 }
0x1eec   : > { %v4780_v17 = vpop.xlane.xlu0 %4779 }
0x1eed   : > { %v4802_v44 = vmul.f32 0.03125, %v4780_v17 }
0x1eee   : > { %v4783_v47 = vpop.xlane.xlu1 %4782 }
0x1eef   : > { %v9251_v50 = vsub.f32 %v9211_v39, %v4802_v44  ;;  %v4803_v5 = vmul.f32 0.03125, %v4783_v47 }
0x1ef0   : > { %v4786_v37 = vpop.xlane.xlu0 %4785 }
0x1ef1   : > { %v9254_v63 = vsub.f32 %v9217_v49, %v4803_v5  ;;  %v4804_v16 = vmul.f32 0.03125, %v4786_v37  ;;  %v4818_v48 = vmul.f32 %v9251_v50, %v9251_v50  ;;  %v6074_v5 = vld [vmem:[%s9762_s2] ss:$0 sm:$0xff]  ;;  %s9765_s2 = sld [smem:[#allocation21_spill]] }
0x1ef3   : > { %v9259_v45 = vsub.f32 %v9214_v12, %v4804_v16  ;;  %v4826_v0 = vsel %vm910_vm0, %v4818_v48, 0.0  ;;  %v4819_v43 = vmul.f32 %v9254_v63, %v9254_v63 }
0x1ef4   : > { %4827 = vadd.xlane.f32.xlu0 %v4826_v0  ;;  %v4789_v31 = vpop.xlane.xlu0 %4788 }
0x1ef5   : > { %v4805_v27 = vmul.f32 0.03125, %v4789_v31  ;;  %v4829_v61 = vsel %vm910_vm0, %v4819_v43, 0.0  ;;  %v4820_v32 = vmul.f32 %v9259_v45, %v9259_v45 }
0x1ef6   : > { %4830 = vadd.xlane.f32.xlu1 %v4829_v61  ;;  %v4795_v4 = vpop.xlane.xlu1 %4794 }
0x1ef7   : > { %v9268_v29 = vsub.f32 %v9224_v36, %v4805_v27  ;;  %v4807_v21 = vmul.f32 0.03125, %v4795_v4  ;;  %v4832_v56 = vsel %vm910_vm0, %v4820_v32, 0.0 }
0x1ef8   : > { %4833 = vadd.xlane.f32.xlu0 %v4832_v56  ;;  %v4792_v46 = vpop.xlane.xlu0 %4791  ;;  %v6075_v56 = vld [vmem:[%s9763_s16] ss:$0 sm:$0xff]  ;;  %s9764_s16 = sld [smem:[#allocation19_spill]] }
0x1ef9   : > { %v9272_v28 = vsub.f32 %v9232_v18, %v4807_v21  ;;  %v4806_v1 = vmul.f32 0.03125, %v4792_v46  ;;  %v4821_v25 = vmul.f32 %v9268_v29, %v9268_v29 }
0x1efa   : > { %v4801_v6 = vpop.xlane.xlu1 %4800 }
0x1efb   : > { %v9277_v11 = vsub.f32 %v9229_v30, %v4806_v1  ;;  %v4809_v62 = vmul.f32 0.03125, %v4801_v6  ;;  %v4835_v26 = vsel %vm910_vm0, %v4821_v25, 0.0  ;;  %v4823_v20 = vmul.f32 %v9272_v28, %v9272_v28 }
0x1efc   : > { %4836 = vadd.xlane.f32.xlu1 %v4835_v26  ;;  %v4798_v60 = vpop.xlane.xlu0 %4797 }
0x1efd   : > { %v9283_v40 = vsub.f32 %v9237_v22, %v4809_v62  ;;  %v4808_v2 = vmul.f32 0.03125, %v4798_v60  ;;  %v4822_v7 = vmul.f32 %v9277_v11, %v9277_v11  ;;  %v4841_v23 = vsel %vm910_vm0, %v4823_v20, 0.0 }
0x1eff   : > { %v9288_v15 = vsub.f32 %v9242_v58, %v4808_v2  ;;  %v4838_v42 = vsel %vm910_vm0, %v4822_v7, 0.0  ;;  %v4825_v41 = vmul.f32 %v9283_v40, %v9283_v40 }
0x1f00   : > { %4842 = vadd.xlane.f32.xlu1 %v4841_v23  ;;  %4839 = vadd.xlane.f32.xlu0 %v4838_v42 }
0x1f01   : > { %v4824_v51 = vmul.f32 %v9288_v15, %v9288_v15  ;;  %v4847_v59 = vsel %vm910_vm0, %v4825_v41, 0.0 }
0x1f03   : > { %v4844_v13 = vsel %vm910_vm0, %v4824_v51, 0.0 }
0x1f04   : > { %4848 = vadd.xlane.f32.xlu1 %v4847_v59  ;;  %4845 = vadd.xlane.f32.xlu0 %v4844_v13 }
0x1f81   : > { %v4828_v33 = vpop.xlane.xlu0 %4827 }
0x1f82   : > { %v4850_v55 = vmul.f32 0.03125, %v4828_v33 }
0x1f83   : > { %v4831_v54 = vpop.xlane.xlu1 %4830 }
0x1f84   : > { %v4858_v8 = vadd.f32 1e-06, %v4850_v55  ;;  %v4851_v19 = vmul.f32 0.03125, %v4831_v54 }
0x1f85   : > { %v4834_v10 = vpop.xlane.xlu0 %4833 }
0x1f86   : > { %7342 = vrsqrt.f32 %v4858_v8  ;;  %v4859_v9 = vadd.f32 1e-06, %v4851_v19  ;;  %v4852_v57 = vmul.f32 0.03125, %v4834_v10 }
0x1f88   : > { %7344 = vrsqrt.f32 %v4859_v9  ;;  %v4860_v52 = vadd.f32 1e-06, %v4852_v57 }
0x1f89   : > { %v4837_v35 = vpop.xlane.xlu1 %4836 }
0x1f8a   : > { %7346 = vrsqrt.f32 %v4860_v52  ;;  %v4853_v24 = vmul.f32 0.03125, %v4837_v35  ;;  %v6990_v52 = vld [vmem:[%s9764_s16 + $0x10] sm:$0xff]   ;;  %v6991_v35 = vld [vmem:[%s9764_s16 + $0x18] sm:$0xff]  }
0x1f8c   : > { %v4861_v3 = vadd.f32 1e-06, %v4853_v24  ;;  %v6992_v24 = vld [vmem:[%s9764_s16 + $0x20] sm:$0xff]  }
0x1f8d   : > { %v4843_v34 = vpop.xlane.xlu1 %4842  ;;  %v4840_v53 = vpop.xlane.xlu0 %4839 }
0x1f8e   : > { %7348 = vrsqrt.f32 %v4861_v3  ;;  %v4855_v17 = vmul.f32 0.03125, %v4843_v34  ;;  %v4854_v44 = vmul.f32 0.03125, %v4840_v53  ;;  %v6993_v3 = vld [vmem:[%s9764_s16 + $0x28] sm:$0xff]   ;;  %v6994_v34 = vld [vmem:[%s9764_s16 + $0x30] sm:$0xff]   ;;  %v6995_v53 = vld [vmem:[%s9764_s16 + $0x38] sm:$0xff]  }
0x1f90   : > { %v7343_v47 = vpop.eup %7342  ;;  %v4863_v37 = vadd.f32 1e-06, %v4855_v17  ;;  %v4862_v16 = vadd.f32 1e-06, %v4854_v44  ;;  %v6996_v17 = vld [vmem:[%s9765_s2] sm:$0xff]  }
0x1f91   : > { %v4874_v48 = vmul.f32 %v7343_v47, %v9251_v50  ;;  %v4849_v0 = vpop.xlane.xlu1 %4848  ;;  %v4846_v43 = vpop.xlane.xlu0 %4845  ;;  %6697 = vmatprep.subr.bf16.mxu1 %v6996_v17  ;;  %v6076_v44 = vld [vmem:[%s9766_s3] ss:$0 sm:$0xff]  ;;  %s9767_s3 = sld [smem:[#allocation20_spill]] }
0x1f92   : > { %v7345_v31 = vpop.eup %7344  ;;  %7350 = vrsqrt.f32 %v4863_v37  ;;  %v4857_v27 = vmul.f32 0.03125, %v4849_v0  ;;  %v4856_v61 = vmul.f32 0.03125, %v4846_v43 }
0x1f93   : > { %v4875_v32 = vmul.f32 %v7345_v31, %v9254_v63  ;;  %7352 = vrsqrt.f32 %v4862_v16  ;;  %v4889_v4 = vmul.f32 %v6074_v5, %v4874_v48 }
0x1f94   : > { %v7347_v21 = vpop.eup %7346  ;;  %v4865_v46 = vadd.f32 1e-06, %v4857_v27  ;;  %v4864_v1 = vadd.f32 1e-06, %v4856_v61 }
0x1f95   : > { %v4876_v25 = vmul.f32 %v7347_v21, %v9259_v45  ;;  %v4890_v6 = vmul.f32 %v6074_v5, %v4875_v32  ;;  %v4904_v50 = vadd.f32 %v6075_v56, %v4889_v4 }
0x1f96   : > { %7354 = vrsqrt.f32 %v4865_v46 }
0x1f97   : > { %7356 = vrsqrt.f32 %v4864_v1  ;;  %v4905_v62 = vadd.f32 %v6075_v56, %v4890_v6  ;;  %v4891_v20 = vmul.f32 %v6074_v5, %v4876_v25 }
0x1f98   : > { %v7349_v26 = vpop.eup %7348 }
0x1f99   : > { %v4877_v60 = vmul.f32 %v7349_v26, %v9268_v29  ;;  %v4912_v2 = vpack.c.bf16 %v4905_v62, %v4904_v50  ;;  %v4906_v42 = vadd.f32 %v6075_v56, %v4891_v20 }
0x1f9b   : > { %v4892_v7 = vmul.f32 %v6074_v5, %v4877_v60  ;;  %6665 = vmatprep.mubr.msk.bf16.mxu1 %vm910_vm0, %v4912_v2 }
0x1f9c   : > { %v7351_v63 = vpop.eup %7350 }
0x1f9d   : > { %v7353_v23 = vpop.eup %7352  ;;  %v4907_v41 = vadd.f32 %v6075_v56, %v4892_v7  ;;  %v4879_v51 = vmul.f32 %v7351_v63, %v9272_v28 }
0x1f9e   : > { %v4878_v45 = vmul.f32 %v7353_v23, %v9277_v11 }
0x1f9f   : > { %v4913_v59 = vpack.c.bf16 %v4907_v41, %v4906_v42  ;;  %v4894_v13 = vmul.f32 %v6074_v5, %v4879_v51 }
0x1fa0   : > { %v7355_v38 = vpop.eup %7354  ;;  %v4893_v14 = vmul.f32 %v6074_v5, %v4878_v45 }
0x1fa1   : > { %v7357_v33 = vpop.eup %7356  ;;  %v4881_v29 = vmul.f32 %v7355_v38, %v9283_v40  ;;  %6666 = vmatmul.mubr.msk.bf16.vlgmr.msra.gmra.mrb[72].mxu1 %vm910_vm0, %v4913_v59  ;;  %v4909_v55 = vadd.f32 %v6075_v56, %v4894_v13  ;;  %v6988_v40 = vld [vmem:[%s9764_s16] sm:$0xff]  }
0x1fa2   : > { %v4880_v54 = vmul.f32 %v7357_v33, %v9288_v15  ;;  %v4908_v8 = vadd.f32 %v6075_v56, %v4893_v14  ;;  %6673 = vmatprep.subr.bf16.mxu0 %v6988_v40  ;;  %v6989_v15 = vld [vmem:[%s9764_s16 + $0x8] sm:$0xff]   ;;  %6698 = vmatpush3.bf16.msra.mxu1 %v6996_v17 }
0x1fa3   : > { %v4896_v19 = vmul.f32 %v6074_v5, %v4881_v29  ;;  %6674 = vmatpush3.bf16.msra.mxu0 %v6988_v40 }
0x1fa4   : > { %v4914_v28 = vpack.c.bf16 %v4909_v55, %v4908_v8  ;;  %v4895_v11 = vmul.f32 %v6074_v5, %v4880_v54  ;;  %6675 = vmatprep.subr.bf16.mxu0 %v6989_v15 }
0x1fa5   : > { %v4911_v10 = vadd.f32 %v6075_v56, %v4896_v19 }
0x1fa6   : > { %6669 = vmatprep.mubr.msk.bf16.mxu1 %vm910_vm0, %v4914_v28  ;;  %v4910_v9 = vadd.f32 %v6075_v56, %v4895_v11 }
0x1fa7   : > { %6676 = vmatpush3.bf16.msra.mxu0 %v6989_v15 }
0x1fa8   : > { %v4915_v57 = vpack.c.bf16 %v4911_v10, %v4910_v9  ;;  %6677 = vmatprep.subr.bf16.mxu0 %v6990_v52 }
0x1faa   : > { %6670 = vmatmul.mubr.msk.bf16.gmra.mrb[76].mxu1 %vm910_vm0, %v4915_v57 }
0x1fab   : > { %6678 = vmatpush3.bf16.msra.mxu0 %v6990_v52 }
0x1fac   : > { %6679 = vmatprep.subr.bf16.mxu0 %v6991_v35 }
0x1faf   : > { %6680 = vmatpush3.bf16.msra.mxu0 %v6991_v35 }
0x1fb0   : > { %6681 = vmatprep.subr.bf16.mxu0 %v6992_v24 }
0x1fb3   : > { %6682 = vmatpush3.bf16.msra.mxu0 %v6992_v24 }
0x1fb4   : > { %6683 = vmatprep.subr.bf16.mxu0 %v6993_v3 }
0x1fb7   : > { %6684 = vmatpush3.bf16.msra.mxu0 %v6993_v3 }
0x1fb8   : > { %6685 = vmatprep.subr.bf16.mxu0 %v6994_v34 }
0x1fbb   : > { %6686 = vmatpush3.bf16.msra.mxu0 %v6994_v34 }
0x1fbc   : > { %6687 = vmatprep.subr.bf16.mxu0 %v6995_v53 }
0x1fbf   : > { %6688 = vmatpush3.bf16.msra.mxu0 %v6995_v53 }
0x2074   : > { %v6667_v47 = vpop.f32.mrb[72].mxu1 }
0x2075   : > { %v4994_v5 = vadd.f32 %v6667_v47, %v6076_v44  ;;  %v4985_v37 = vpop.f32.mrb[73].mxu1 }
0x2076   : > { %v9324_v16 = vadd.f32 %v6076_v44, %v4985_v37  ;;  %v6668_v48 = vpop.f32.mrb[74].mxu1 }
0x2077   : > { %v9326_v0 = vmul.f32 0.70710677, %v4994_v5  ;;  %v9328_v43 = vadd.f32 %v6668_v48, %v6076_v44  ;;  %v4988_v31 = vpop.f32.mrb[75].mxu1  ;;  %v9368_v9 = vmul.f32 0.5, %v4994_v5 }
0x2078   : > { %v9331_v27 = vmul.f32 0.70710677, %v9324_v16  ;;  %v9333_v61 = vadd.f32 %v6076_v44, %v4988_v31 }
0x2079   : > { %v5034_v32 = vand.u32 2147483647, %v9326_v0  ;;  %v9337_v4 = vmul.f32 0.70710677, %v9328_v43  ;;  %vm5194_vm13 = vcmp.ge.f32.partialorder %v9326_v0, 0.0 }
0x207a   : > { %v5032_v21 = vand.u32 2147483647, %v9331_v27  ;;  %v9341_v56 = vmul.f32 0.70710677, %v9333_v61  ;;  %vm5192_vm14 = vcmp.ge.f32.partialorder %v9331_v27, 0.0 }
0x207b   : > { %v5042_v46 = vmul.f32 0.3275911, %v5034_v32  ;;  %v5035_v1 = vand.u32 2147483647, %v9337_v4  ;;  %v5146_v38 = vsub.f32 0.0, %v5034_v32  ;;  %vm5195_vm15 = vcmp.ge.f32.partialorder %v9337_v4, 0.0 }
0x207c   : > { %v5040_v25 = vmul.f32 0.3275911, %v5032_v21  ;;  %v5033_v6 = vand.u32 2147483647, %v9341_v56  ;;  %v5144_v29 = vsub.f32 0.0, %v5032_v21  ;;  %vm5193_vm1 = vcmp.ge.f32.partialorder %v9341_v56, 0.0 }
0x207d   : > { %v5050_v50 = vadd.f32 1.0, %v5042_v46  ;;  %v5043_v62 = vmul.f32 0.3275911, %v5035_v1  ;;  %v6671_v26 = vpop.f32.mrb[76].mxu1  ;;  %v5147_v54 = vsub.f32 0.0, %v5035_v1  ;;  %v5154_v57 = vmul.f32 %v5146_v38, %v5034_v32 }
0x207e   : > { %v5048_v20 = vadd.f32 1.0, %v5040_v25  ;;  %v5041_v60 = vmul.f32 0.3275911, %v5033_v6  ;;  %v5001_v2 = vpop.f32.mrb[77].mxu1  ;;  %v9345_v41 = vadd.f32 %v6671_v26, %v6076_v44  ;;  %v5145_v8 = vsub.f32 0.0, %v5033_v6 }
0x207f   : > { %7358 = vrcp.f32 %v5050_v50  ;;  %v5051_v7 = vadd.f32 1.0, %v5043_v62  ;;  %v6672_v63 = vpop.f32.mrb[78].mxu1  ;;  %v9347_v51 = vadd.f32 %v6076_v44, %v5001_v2  ;;  %v5152_v35 = vmul.f32 %v5144_v29, %v5032_v21 }
0x2080   : > { %7360 = vrcp.f32 %v5048_v20  ;;  %v5004_v23 = vpop.f32.mrb[79].mxu1  ;;  %v5049_v42 = vadd.f32 1.0, %v5041_v60  ;;  %v9349_v45 = vadd.f32 %v6672_v63, %v6076_v44  ;;  %v9352_v59 = vmul.f32 0.70710677, %v9345_v41 }
0x2081   : > { %7362 = vrcp.f32 %v5051_v7  ;;  %v9354_v13 = vadd.f32 %v6076_v44, %v5004_v23  ;;  %v9357_v14 = vmul.f32 0.70710677, %v9347_v51  ;;  %v5155_v44 = vmul.f32 %v5147_v54, %v5035_v1 }
0x2082   : > { %v9360_v33 = vmul.f32 0.70710677, %v9349_v45  ;;  %7364 = vrcp.f32 %v5049_v42  ;;  %v5038_v55 = vand.u32 2147483647, %v9352_v59  ;;  %v5153_v47 = vmul.f32 %v5145_v8, %v5033_v6 }
0x2083   : > { %v5036_v19 = vand.u32 2147483647, %v9357_v14  ;;  %v9366_v10 = vmul.f32 0.70710677, %v9354_v13  ;;  %v5164_v46 = vmul.f32 1.442695, %v5154_v57 }
0x2084   : > { %v5039_v28 = vand.u32 2147483647, %v9360_v33  ;;  %v5046_v11 = vmul.f32 0.3275911, %v5038_v55  ;;  %v5150_v3 = vsub.f32 0.0, %v5038_v55  ;;  %vm5198_vm2 = vcmp.ge.f32.partialorder %v9352_v59, 0.0 }
0x2085   : > { %v5044_v40 = vmul.f32 0.3275911, %v5036_v19  ;;  %v5037_v34 = vand.u32 2147483647, %v9366_v10  ;;  %v5148_v48 = vsub.f32 0.0, %v5036_v19  ;;  %vm5199_vm4 = vcmp.ge.f32.partialorder %v9360_v33, 0.0 }
0x2086   : > { %v5047_v15 = vmul.f32 0.3275911, %v5039_v28  ;;  %v5054_v24 = vadd.f32 1.0, %v5046_v11  ;;  %v5160_v62 = vmul.f32 1.442695, %v5152_v35  ;;  %v5158_v26 = vmul.f32 %v5150_v3, %v5038_v55 }
0x2087   : > { %v5052_v37 = vadd.f32 1.0, %v5044_v40  ;;  %v5045_v21 = vmul.f32 0.3275911, %v5037_v34  ;;  %v5151_v20 = vsub.f32 0.0, %v5039_v28  ;;  %v5166_v6 = vmul.f32 1.442695, %v5155_v44 }
0x2088   : > { %7366 = vrcp.f32 %v5054_v24  ;;  %v5055_v31 = vadd.f32 1.0, %v5047_v15  ;;  %v5162_v23 = vmul.f32 1.442695, %v5153_v47  ;;  %v5156_v42 = vmul.f32 %v5148_v48, %v5036_v19 }
0x2089   : > { %v9370_v52 = vpop.eup %7358  ;;  %7368 = vrcp.f32 %v5052_v37  ;;  %v5053_v2 = vadd.f32 1.0, %v5045_v21  ;;  %v5172_v8 = vmul.f32 1.442695, %v5158_v26  ;;  %v5159_v11 = vmul.f32 %v5151_v20, %v5039_v28 }
0x208a   : > { %v9373_v53 = vpop.eup %7360  ;;  %v5074_v17 = vmul.f32 1.0614054, %v9370_v52  ;;  %7370 = vrcp.f32 %v5055_v31  ;;  %v5168_v19 = vmul.f32 1.442695, %v5156_v42  ;;  %v5149_v24 = vsub.f32 0.0, %v5037_v34 }
0x208b   : > { %v5072_v5 = vmul.f32 1.0614054, %v9373_v53  ;;  %v9377_v25 = vpop.eup %7362  ;;  %7372 = vpow2.f32 %v5164_v46  ;;  %v9392_v28 = vmul.f32 0.5, %v9324_v16  ;;  %vm5196_vm5 = vcmp.ge.f32.partialorder %v9357_v14, 0.0 }
0x208c   : > { %v5082_v32 = vadd.f32 -1.4531521, %v5074_v17  ;;  %v5075_v1 = vmul.f32 1.0614054, %v9377_v25  ;;  %v9381_v7 = vpop.eup %7364  ;;  %7374 = vrcp.f32 %v5053_v2  ;;  %v5157_v26 = vmul.f32 %v5149_v24, %v5037_v34 }
0x208d   : > { %v5080_v50 = vadd.f32 -1.4531521, %v5072_v5  ;;  %v5073_v54 = vmul.f32 1.0614054, %v9381_v7  ;;  %7376 = vpow2.f32 %v5160_v62  ;;  %v5174_v5 = vmul.f32 1.442695, %v5159_v11 }
0x208e   : > { %v5090_v60 = vmul.f32 %v9370_v52, %v5082_v32  ;;  %v5083_v29 = vadd.f32 -1.4531521, %v5075_v1  ;;  %7378 = vpow2.f32 %v5166_v6  ;;  %vm5197_vm6 = vcmp.ge.f32.partialorder %v9366_v10, 0.0 }
0x208f   : > { %v5088_v63 = vmul.f32 %v9373_v53, %v5080_v50  ;;  %v5081_v15 = vadd.f32 -1.4531521, %v5073_v54  ;;  %7380 = vpow2.f32 %v5162_v23  ;;  %v5021_v14 = vmul.f32 0.5, %v9354_v13 }
0x2090   : > { %v5098_v38 = vadd.f32 1.4214138, %v5090_v60  ;;  %v5091_v40 = vmul.f32 %v9377_v25, %v5083_v29  ;;  %7382 = vpow2.f32 %v5172_v8 }
0x2091   : > { %v5096_v55 = vadd.f32 1.4214138, %v5088_v63  ;;  %v5089_v44 = vmul.f32 %v9381_v7, %v5081_v15  ;;  %7384 = vpow2.f32 %v5168_v19  ;;  %v9406_v63 = vmul.f32 0.5, %v9328_v43 }
0x2092   : > { %v5106_v57 = vmul.f32 %v9370_v52, %v5098_v38  ;;  %v5099_v17 = vadd.f32 1.4214138, %v5091_v40  ;;  %v9389_v47 = vpop.eup %7366  ;;  %7386 = vpow2.f32 %v5174_v5 }
0x2093   : > { %v5104_v35 = vmul.f32 %v9373_v53, %v5096_v55  ;;  %v9394_v48 = vpop.eup %7368  ;;  %v5097_v46 = vadd.f32 1.4214138, %v5089_v44  ;;  %v5078_v21 = vmul.f32 1.0614054, %v9389_v47 }
0x2094   : > { %v5114_v3 = vadd.f32 -0.28449672, %v5106_v57  ;;  %v5107_v32 = vmul.f32 %v9377_v25, %v5099_v17  ;;  %v5076_v62 = vmul.f32 1.0614054, %v9394_v48  ;;  %v9402_v6 = vpop.eup %7370  ;;  %v5170_v57 = vmul.f32 1.442695, %v5157_v26 }
0x2095   : > { %v5112_v37 = vadd.f32 -0.28449672, %v5104_v35  ;;  %v5105_v60 = vmul.f32 %v9381_v7, %v5097_v46  ;;  %v5086_v1 = vadd.f32 -1.4531521, %v5078_v21  ;;  %v7373_v42 = vpop.eup %7372  ;;  %v5079_v43 = vmul.f32 1.0614054, %v9402_v6 }
0x2096   : > { %v5122_v31 = vmul.f32 %v9370_v52, %v5114_v3  ;;  %v5115_v20 = vadd.f32 -0.28449672, %v5107_v32  ;;  %v5084_v23 = vadd.f32 -1.4531521, %v5076_v62  ;;  %v9412_v55 = vpop.eup %7374  ;;  %7388 = vpow2.f32 %v5170_v57 }
0x2097   : > { %v5120_v50 = vmul.f32 %v9373_v53, %v5112_v37  ;;  %v5113_v29 = vadd.f32 -0.28449672, %v5105_v60  ;;  %v5094_v54 = vmul.f32 %v9389_v47, %v5086_v1  ;;  %v7377_v40 = vpop.eup %7376  ;;  %v5087_v44 = vadd.f32 -1.4531521, %v5079_v43 }
0x2098   : > { %v5130_v16 = vadd.f32 0.2548296, %v5122_v31  ;;  %v5123_v34 = vmul.f32 %v9377_v25, %v5115_v20  ;;  %v5092_v11 = vmul.f32 %v9394_v48, %v5084_v23  ;;  %v7379_v24 = vpop.eup %7378  ;;  %v5077_v37 = vmul.f32 1.0614054, %v9412_v55 }
0x2099   : > { %v5128_v2 = vadd.f32 0.2548296, %v5120_v50  ;;  %v5102_v19 = vadd.f32 1.4214138, %v5094_v54  ;;  %v5095_v26 = vmul.f32 %v9402_v6, %v5087_v44 }
0x209a   : > { %v5138_v38 = vmul.f32 %v9370_v52, %v5130_v16  ;;  %v5131_v35 = vadd.f32 0.2548296, %v5123_v34  ;;  %v5121_v52 = vmul.f32 %v9381_v7, %v5113_v29  ;;  %v5100_v17 = vadd.f32 1.4214138, %v5092_v11 }
0x209b   : > { %v5136_v8 = vmul.f32 %v9373_v53, %v5128_v2  ;;  %v7381_v53 = vpop.eup %7380  ;;  %v5110_v46 = vmul.f32 %v9389_v47, %v5102_v19  ;;  %v5085_v16 = vadd.f32 -1.4531521, %v5077_v37  ;;  %v5103_v34 = vadd.f32 1.4214138, %v5095_v26 }
0x209c   : > { %v5178_v15 = vmul.f32 %v7373_v42, %v5138_v38  ;;  %v5139_v31 = vmul.f32 %v9377_v25, %v5131_v35  ;;  %v5129_v32 = vadd.f32 0.2548296, %v5121_v52  ;;  %v7383_v21 = vpop.eup %7382  ;;  %v5108_v62 = vmul.f32 %v9394_v48, %v5100_v17 }
0x209d   : > { %v5176_v3 = vmul.f32 %v7377_v40, %v5136_v8  ;;  %v5118_v2 = vadd.f32 -0.28449672, %v5110_v46  ;;  %v7385_v23 = vpop.eup %7384  ;;  %v5093_v25 = vmul.f32 %v9412_v55, %v5085_v16 }
0x209e   : > { %v5186_v5 = vsub.f32 1.0, %v5178_v15  ;;  %v5179_v60 = vmul.f32 %v7379_v24, %v5139_v31  ;;  %v5137_v1 = vmul.f32 %v9381_v7, %v5129_v32  ;;  %v5116_v38 = vadd.f32 -0.28449672, %v5108_v62  ;;  %v7387_v43 = vpop.eup %7386 }
0x209f   : > { %v5184_v50 = vsub.f32 1.0, %v5176_v3  ;;  %v5126_v11 = vmul.f32 %v9389_v47, %v5118_v2  ;;  %v5111_v15 = vmul.f32 %v9402_v6, %v5103_v34  ;;  %v5101_v17 = vadd.f32 1.4214138, %v5093_v25 }
0x20a0   : > { %v5202_v20 = vsub.f32 0.0, %v5186_v5  ;;  %v5187_v54 = vsub.f32 1.0, %v5179_v60  ;;  %v5177_v8 = vmul.f32 %v7381_v53, %v5137_v1  ;;  %v5124_v7 = vmul.f32 %v9394_v48, %v5116_v38 }
0x20a1   : > { %v5200_v42 = vsub.f32 0.0, %v5184_v50  ;;  %v5134_v24 = vadd.f32 0.2548296, %v5126_v11  ;;  %v5119_v3 = vadd.f32 -0.28449672, %v5111_v15  ;;  %v5109_v46 = vmul.f32 %v9412_v55, %v5101_v17 }
0x20a2   : > { %v5210_v29 = vsel %vm5194_vm13, %v5186_v5, %v5202_v20  ;;  %v5203_v52 = vsub.f32 0.0, %v5187_v54  ;;  %v5185_v19 = vsub.f32 1.0, %v5177_v8  ;;  %v5132_v0 = vadd.f32 0.2548296, %v5124_v7 }
0x20a3   : > { %v5208_v40 = vsel %vm5192_vm14, %v5184_v50, %v5200_v42  ;;  %v5218_v35 = vadd.f32 1.0, %v5210_v29  ;;  %v5142_v53 = vmul.f32 %v9389_v47, %v5134_v24  ;;  %v5127_v32 = vmul.f32 %v9402_v6, %v5119_v3 }
0x20a4   : > { %v5216_v44 = vadd.f32 1.0, %v5208_v40  ;;  %v5211_v37 = vsel %vm5195_vm15, %v5187_v54, %v5203_v52  ;;  %v5201_v27 = vsub.f32 0.0, %v5185_v19  ;;  %v5140_v31 = vmul.f32 %v9394_v48, %v5132_v0 }
0x20a5   : > { %v5219_v5 = vadd.f32 1.0, %v5211_v37  ;;  %v5226_v50 = vmul.f32 %v5218_v35, %v9368_v9  ;;  %v5017_v62 = vmul.f32 0.5, %v9333_v61  ;;  %v5182_v26 = vmul.f32 %v7383_v21, %v5142_v53  ;;  %v7389_v21 = vpop.eup %7388  ;;  %v6997_v37 = vld [vmem:[%s9765_s2 + $0x8] sm:$0xff]  }
0x20a6   : > { %v5209_v57 = vsel %vm5193_vm1, %v5185_v19, %v5201_v27  ;;  %v5180_v20 = vmul.f32 %v7385_v23, %v5140_v31  ;;  %v5135_v47 = vadd.f32 0.2548296, %v5127_v32  ;;  %v5117_v1 = vadd.f32 -0.28449672, %v5109_v46  ;;  %6699 = vmatprep.subr.bf16.mxu1 %v6997_v37  ;;  %v6083_v27 = vld [vmem:[%s9767_s3] ss:$0 sm:$0xff] }
0x20a7   : > { %v5227_v4 = vmul.f32 %v5219_v5, %v9406_v63  ;;  %v5217_v16 = vadd.f32 1.0, %v5209_v57  ;;  %v5190_v60 = vsub.f32 1.0, %v5182_v26  ;;  %v5224_v48 = vmul.f32 %v5216_v44, %v9392_v28  ;;  %6700 = vmatpush3.bf16.msra.mxu1 %v6997_v37  ;;  %s9710_s3 = sand.u32 1, %s7484_s10  }
0x20a8   : > { %v5143_v38 = vmul.f32 %v9402_v6, %v5135_v47  ;;  %v5188_v34 = vsub.f32 1.0, %v5180_v20  ;;  %v5125_v61 = vmul.f32 %v9412_v55, %v5117_v1  ;;  %v5022_v40 = vmul.f32 0.5, %v9345_v41  ;;  %s5957_s2 = sshll.u32 %s9710_s3, 6  ;;  %s6114_s3 = sshll.u32 %s7715_s0, 10 }
0x20a9   : > { %v5233_v2 = vpack.c.bf16 %v5227_v4, %v5226_v50  ;;  %v5225_v42 = vmul.f32 %v5217_v16, %v5017_v62  ;;  %v5206_v9 = vsub.f32 0.0, %v5190_v60  ;;  %v5023_v7 = vmul.f32 0.5, %v9349_v45  ;;  %s895_s5 = scalar_lea.vmem [#allocation2], %s5957_s2  ;;  %s9632_s2 = scalar_lea.hbm %s7692_s4, %s6114_s3 }
0x20aa   : > { %v5183_v56 = vmul.f32 %v7387_v43, %v5143_v38  ;;  %v5133_v63 = vadd.f32 0.2548296, %v5125_v61  ;;  %v5204_v54 = vsub.f32 0.0, %v5188_v34  ;;  %v5020_v41 = vmul.f32 0.5, %v9347_v51  ;;  %v6998_v61 = vld [vmem:[%s9731_s6] sm:$0xff]   ;;  %s9769_s0 = sand.u32 1, %s7484_s10  }
0x20ab   : > { %v5232_v25 = vpack.c.bf16 %v5225_v42, %v5224_v48  ;;  %v5214_v23 = vsel %vm5198_vm2, %v5190_v60, %v5206_v9  ;;  %6709 = vmatprep.subr.bf16.mxu1 %v6998_v61  ;;  %s9641_s8 = scalar_lea.sflag [#allocation3], %s9769_s0  ;;  %s7537_s3 = smov [#allocation2]  }
0x20ac   : > { %v5191_v29 = vsub.f32 1.0, %v5183_v56  ;;  %v5141_v28 = vmul.f32 %v9412_v55, %v5133_v63  ;;  %v5222_v11 = vadd.f32 1.0, %v5214_v23  ;;  %v5212_v59 = vsel %vm5196_vm5, %v5188_v34, %v5204_v54  ;;  %v7003_v56 = vld [vmem:[%s9731_s6 + $0x28] sm:$0xff]   ;;  %v7005_v63 = vld [vmem:[%s9731_s6 + $0x38] sm:$0xff]  }
0x20ad   : > { %6689 = vmatprep.mubr.bf16.mxu0 %v5232_v25  ;;  %v5220_v24 = vadd.f32 1.0, %v5212_v59  ;;  %v7004_v25 = vld [vmem:[%s9731_s6 + $0x30] sm:$0xff]  }
0x20ae   : > { %6690 = vmatmul.mubr.bf16.vlgmr.msra.gmra.mrb[104].mxu0 %v5233_v2  ;;  %v5207_v8 = vsub.f32 0.0, %v5191_v29  ;;  %v5181_v6 = vmul.f32 %v7389_v21, %v5141_v28  ;;  %v5230_v52 = vmul.f32 %v5222_v11, %v5022_v40  ;;  %v9480_v21 = vld [vmem:[%s9768_s12] ss:$0 sm:$0xff]  ;;  %s7434_s12 = sshll.u32 %s7537_s3, 4  ;;  %s7435_s12 = int_to_ptr.vmem [resolvable:$false] %s7434_s12 }
0x20af   : > { %v5228_v17 = vmul.f32 %v5220_v24, %v5020_v41  ;;  %s7436_s13 = scalar_lea.vmem %s7435_s12, 2048 }
0x20b0   : > { %v5215_v43 = vsel %vm5199_vm4, %v5191_v29, %v5207_v8  ;;  %v5189_v35 = vsub.f32 1.0, %v5181_v6 }
0x20b1   : > { %v5223_v15 = vadd.f32 1.0, %v5215_v43 }
0x20b2   : > { %v5205_v55 = vsub.f32 0.0, %v5189_v35 }
0x20b3   : > { %v5231_v19 = vmul.f32 %v5223_v15, %v5023_v7 }
0x20b4   : > { %v5213_v33 = vsel %vm5197_vm6, %v5189_v35, %v5205_v55 }
0x20b5   : > { %v5235_v0 = vpack.c.bf16 %v5231_v19, %v5230_v52  ;;  %v5221_v3 = vadd.f32 1.0, %v5213_v33 }
0x20b7   : > { %v5229_v44 = vmul.f32 %v5221_v3, %v5021_v14 }
0x20b9   : > { %v5234_v45 = vpack.c.bf16 %v5229_v44, %v5228_v17 }
0x20bb   : > { %6693 = vmatprep.mubr.bf16.mxu0 %v5234_v45 }
0x20bc   : > { %6694 = vmatmul.mubr.bf16.gmra.mrb[108].mxu0 %v5235_v0 }
0x2181   : > { %v6691_v53 = vpop.f32.mrb[104].mxu0 }
0x2182   : > { %v5350_v5 = vadd.f32 %v6691_v53, %v6083_v27  ;;  %v5341_v31 = vpop.f32.mrb[105].mxu0 }
0x2183   : > { %v5342_v10 = vadd.f32 %v6083_v27, %v5341_v31  ;;  %v6692_v32 = vpop.f32.mrb[106].mxu0 }
0x2184   : > { %v5353_v46 = vadd.f32 %v6692_v32, %v6083_v27  ;;  %v5344_v50 = vpop.f32.mrb[107].mxu0  ;;  %v5374_v13 = vadd.f32 %v5350_v5, %v9214_v12 }
0x2185   : > { %v5345_v51 = vadd.f32 %v6083_v27, %v5344_v50  ;;  %v5372_v57 = vadd.f32 %v5342_v10, %v9211_v39 }
0x2186   : > { %v5375_v62 = vadd.f32 %v5353_v46, %v9224_v36 }
0x2187   : > { %v5373_v26 = vadd.f32 %v5345_v51, %v9217_v49 }
0x2188   : > { %v5381_v4 = vpack.c.bf16 %v5375_v62, %v5374_v13 }
0x2189   : > { %v5380_v16 = vpack.c.bf16 %v5373_v26, %v5372_v57 }
0x218b   : > { %6701 = vmatprep.mubr.msk.bf16.mxu1 %vm910_vm0, %v5380_v16 }
0x218c   : > { %6702 = vmatmul.mubr.msk.bf16.vlgmr.msra.gmra.mrb[80].mxu1 %vm910_vm0, %v5381_v4 }
0x218d   : > { %6710 = vmatpush3.bf16.msra.mxu1 %v6998_v61 }
0x218f   : > { %v6695_v20 = vpop.f32.mrb[108].mxu0 }
0x2190   : > { %v5366_v47 = vadd.f32 %v6695_v20, %v6083_v27  ;;  %v5357_v60 = vpop.f32.mrb[109].mxu0 }
0x2191   : > { %v5358_v1 = vadd.f32 %v6083_v27, %v5357_v60  ;;  %v6696_v48 = vpop.f32.mrb[110].mxu0 }
0x2192   : > { %v5369_v12 = vadd.f32 %v6696_v48, %v6083_v27  ;;  %v5360_v2 = vpop.f32.mrb[111].mxu0  ;;  %v5378_v39 = vadd.f32 %v5366_v47, %v9242_v58  ;;  %v6999_v58 = vld [vmem:[%s9731_s6 + $0x8] sm:$0xff]  }
0x2193   : > { %v5361_v36 = vadd.f32 %v6083_v27, %v5360_v2  ;;  %v5376_v42 = vadd.f32 %v5358_v1, %v9229_v30  ;;  %6711 = vmatprep.subr.bf16.mxu1 %v6999_v58  ;;  %v7001_v30 = vld [vmem:[%s9731_s6 + $0x18] sm:$0xff]  }
0x2194   : > { %v5379_v49 = vadd.f32 %v5369_v12, %v9237_v22  ;;  %6712 = vmatpush3.bf16.msra.mxu1 %v6999_v58  ;;  %v7000_v22 = vld [vmem:[%s9731_s6 + $0x10] sm:$0xff]  }
0x2195   : > { %v5377_v38 = vadd.f32 %v5361_v36, %v9232_v18  ;;  %6713 = vmatprep.subr.bf16.mxu1 %v7000_v22  ;;  %v7002_v18 = vld [vmem:[%s9731_s6 + $0x20] sm:$0xff]   ;;  %s5862_s6 = sshll.u32 %s895_s5, 4  ;;  %s9635_s6 = int_to_ptr.vmem [resolvable:$true] %s5862_s6 }
0x2196   : > { %v5383_v9 = vpack.c.bf16 %v5379_v49, %v5378_v39  ;;  %s7430_s9 = scalar_lea.vmem %s9635_s6, 1024  ;;  %p7437_p0 = scmp.lt.s32.totalorder %s9635_s6, %s7435_s12 }
0x2197   : > { %v5382_v34 = vpack.c.bf16 %v5377_v38, %v5376_v42  ;;  %p7431_p11 = scmp.ne.s32.totalorder %s9635_s6, %s7430_s9  ;;  %p7438_p1 = scmp.lt.s32.totalorder %s7436_s13, %s7430_s9 }
0x2198   : > { %6714 = vmatpush3.bf16.msra.mxu1 %v7000_v22 }
0x2199   : > { %6705 = vmatprep.mubr.msk.bf16.mxu1 %vm910_vm0, %v5382_v34  ;;  %6715 = vmatprep.subr.bf16.mxu1 %v7001_v30  ;;  %p7432_p12 = pnand %p7431_p11, %p7732_p5  ;;  %p7439_p2 = por %p7438_p1, %p7437_p0 }
0x219a   : > { %6706 = vmatmul.mubr.msk.bf16.gmra.mrb[84].mxu1 %vm910_vm0, %v5383_v9 }
0x219b   : > { %p7433_p13 = pneg %p7432_p12 }
0x219c   : > { %6716 = vmatpush3.bf16.msra.mxu1 %v7001_v30 }
0x219d   : > { %6717 = vmatprep.subr.bf16.mxu1 %v7002_v18  ;;  %p7440_p3 = pnand %p7439_p2, %p7433_p13 }
0x21a0   : > { %6718 = vmatpush3.bf16.msra.mxu1 %v7002_v18 }
0x21a1   : > { %6719 = vmatprep.subr.bf16.mxu1 %v7003_v56 }
0x21a4   : > { %6720 = vmatpush3.bf16.msra.mxu1 %v7003_v56 }
0x21a5   : > { %6721 = vmatprep.subr.bf16.mxu1 %v7004_v25 }
0x21a8   : > { %6722 = vmatpush3.bf16.msra.mxu1 %v7004_v25 }
0x21a9   : > { %6723 = vmatprep.subr.bf16.mxu1 %v7005_v63 }
0x21ac   : > { %6724 = vmatpush3.bf16.msra.mxu1 %v7005_v63 }
0x225f   : > { %v6703_v23 = vpop.f32.mrb[80].mxu1 }
0x2260   : > { %v5462_v29 = vadd.f32 %v6703_v23, %v9480_v21  ;;  %v5453_v54 = vpop.f32.mrb[81].mxu1 }
0x2261   : > { %v9484_v28 = vadd.f32 %v9480_v21, %v5453_v54  ;;  %v6704_v8 = vpop.f32.mrb[82].mxu1 }
0x2262   : > { %v9486_v11 = vmul.f32 0.70710677, %v5462_v29  ;;  %v9489_v6 = vadd.f32 %v6704_v8, %v9480_v21  ;;  %v5456_v40 = vpop.f32.mrb[83].mxu1  ;;  %v9530_v60 = vmul.f32 0.5, %v5462_v29 }
0x2263   : > { %v9492_v43 = vmul.f32 0.70710677, %v9484_v28  ;;  %v9495_v59 = vadd.f32 %v9480_v21, %v5456_v40 }
0x2264   : > { %v5502_v7 = vand.u32 2147483647, %v9486_v11  ;;  %v9499_v15 = vmul.f32 0.70710677, %v9489_v6  ;;  %vm5662_vm0 = vcmp.ge.f32.partialorder %v9486_v11, 0.0 }
0x2265   : > { %v5500_v35 = vand.u32 2147483647, %v9492_v43  ;;  %v9503_v52 = vmul.f32 0.70710677, %v9495_v59  ;;  %vm5660_vm7 = vcmp.ge.f32.partialorder %v9492_v43, 0.0 }
0x2266   : > { %v5510_v19 = vmul.f32 0.3275911, %v5502_v7  ;;  %v5503_v55 = vand.u32 2147483647, %v9499_v15  ;;  %v5614_v45 = vsub.f32 0.0, %v5502_v7  ;;  %vm5663_vm8 = vcmp.ge.f32.partialorder %v9499_v15, 0.0 }
0x2267   : > { %v5508_v24 = vmul.f32 0.3275911, %v5500_v35  ;;  %v5501_v33 = vand.u32 2147483647, %v9503_v52  ;;  %v5612_v37 = vsub.f32 0.0, %v5500_v35  ;;  %vm5661_vm9 = vcmp.ge.f32.partialorder %v9503_v52, 0.0 }
0x2268   : > { %v5518_v0 = vadd.f32 1.0, %v5510_v19  ;;  %v5511_v41 = vmul.f32 0.3275911, %v5503_v55  ;;  %v5615_v31 = vsub.f32 0.0, %v5503_v55  ;;  %v5622_v46 = vmul.f32 %v5614_v45, %v5502_v7 }
0x2269   : > { %v5516_v14 = vadd.f32 1.0, %v5508_v24  ;;  %v5509_v3 = vmul.f32 0.3275911, %v5501_v33  ;;  %v5620_v62 = vmul.f32 %v5612_v37, %v5500_v35  ;;  %v5613_v4 = vsub.f32 0.0, %v5501_v33 }
0x226a   : > { %7390 = vrcp.f32 %v5518_v0  ;;  %v5519_v17 = vadd.f32 1.0, %v5511_v41  ;;  %v5623_v48 = vmul.f32 %v5615_v31, %v5503_v55  ;;  %v5632_v2 = vmul.f32 1.442695, %v5622_v46 }
0x226b   : > { %7392 = vrcp.f32 %v5516_v14  ;;  %v5517_v44 = vadd.f32 1.0, %v5509_v3  ;;  %v5628_v42 = vmul.f32 1.442695, %v5620_v62  ;;  %v5621_v61 = vmul.f32 %v5613_v4, %v5501_v33 }
0x226c   : > { %7394 = vrcp.f32 %v5519_v17  ;;  %v5634_v56 = vmul.f32 1.442695, %v5623_v48 }
0x226d   : > { %v6707_v27 = vpop.f32.mrb[84].mxu1  ;;  %7396 = vrcp.f32 %v5517_v44 }
0x226e   : > { %v9508_v53 = vadd.f32 %v6707_v27, %v9480_v21  ;;  %v5469_v5 = vpop.f32.mrb[85].mxu1 }
0x226f   : > { %v9511_v10 = vadd.f32 %v9480_v21, %v5469_v5  ;;  %v6708_v32 = vpop.f32.mrb[86].mxu1 }
0x2270   : > { %v9514_v50 = vmul.f32 0.70710677, %v9508_v53  ;;  %v9517_v51 = vadd.f32 %v6708_v32, %v9480_v21  ;;  %v5472_v13 = vpop.f32.mrb[87].mxu1  ;;  %v9559_v32 = vmul.f32 0.5, %v9484_v28 }
0x2271   : > { %v9520_v57 = vmul.f32 0.70710677, %v9511_v10  ;;  %v9544_v54 = vadd.f32 %v9480_v21, %v5472_v13  ;;  %v5630_v21 = vmul.f32 1.442695, %v5621_v61 }
0x2272   : > { %v5506_v16 = vand.u32 2147483647, %v9514_v50  ;;  %v9526_v20 = vmul.f32 0.70710677, %v9517_v51  ;;  %vm5666_vm10 = vcmp.ge.f32.partialorder %v9514_v50, 0.0 }
0x2273   : > { %v5504_v12 = vand.u32 2147483647, %v9520_v57  ;;  %v9551_v14 = vmul.f32 0.70710677, %v9544_v54  ;;  %vm5664_vm12 = vcmp.ge.f32.partialorder %v9520_v57, 0.0 }
0x2274   : > { %v9522_v26 = vpop.eup %7390  ;;  %v5514_v39 = vmul.f32 0.3275911, %v5506_v16  ;;  %v5507_v22 = vand.u32 2147483647, %v9526_v20  ;;  %v5618_v19 = vsub.f32 0.0, %v5506_v16  ;;  %vm5667_vm11 = vcmp.ge.f32.partialorder %v9526_v20, 0.0 }
0x2275   : > { %v9528_v47 = vpop.eup %7392  ;;  %v5542_v1 = vmul.f32 1.0614054, %v9522_v26  ;;  %v5512_v38 = vmul.f32 0.3275911, %v5504_v12  ;;  %v5616_v27 = vsub.f32 0.0, %v5504_v12  ;;  %vm5665_vm13 = vcmp.ge.f32.partialorder %v9551_v14, 0.0 }
0x2276   : > { %v5540_v36 = vmul.f32 1.0614054, %v9528_v47  ;;  %v9535_v9 = vpop.eup %7394  ;;  %v5522_v58 = vadd.f32 1.0, %v5514_v39  ;;  %v5515_v29 = vmul.f32 0.3275911, %v5507_v22  ;;  %v5626_v37 = vmul.f32 %v5618_v19, %v5506_v16 }
0x2277   : > { %v5550_v49 = vadd.f32 -1.4531521, %v5542_v1  ;;  %v5543_v18 = vmul.f32 1.0614054, %v9535_v9  ;;  %v5520_v25 = vadd.f32 1.0, %v5512_v38  ;;  %v9540_v63 = vpop.eup %7396  ;;  %v5619_v4 = vsub.f32 0.0, %v5507_v22 }
0x2278   : > { %v5548_v34 = vadd.f32 -1.4531521, %v5540_v36  ;;  %7398 = vrcp.f32 %v5522_v58  ;;  %v5541_v7 = vmul.f32 1.0614054, %v9540_v63  ;;  %v5523_v55 = vadd.f32 1.0, %v5515_v29 }
0x2279   : > { %v5558_v30 = vmul.f32 %v9522_v26, %v5550_v49  ;;  %v5551_v40 = vadd.f32 -1.4531521, %v5543_v18  ;;  %7400 = vrcp.f32 %v5520_v25  ;;  %v9555_v5 = vand.u32 2147483647, %v9551_v14  ;;  %v6099_v57 = vld [vmem:[%s7687_s27] ss:$0 sm:$0xff] }
0x227a   : > { %v5556_v23 = vmul.f32 %v9528_v47, %v5548_v34  ;;  %7402 = vpow2.f32 %v5632_v2  ;;  %v5549_v0 = vadd.f32 -1.4531521, %v5541_v7  ;;  %v9565_v16 = vmul.f32 0.5, %v9489_v6 }
0x227b   : > { %v5566_v8 = vadd.f32 1.4214138, %v5558_v30  ;;  %7404 = vpow2.f32 %v5628_v42  ;;  %v5559_v33 = vmul.f32 %v9535_v9, %v5551_v40  ;;  %v5513_v1 = vmul.f32 0.3275911, %v9555_v5 }
0x227c   : > { %v5564_v35 = vadd.f32 1.4214138, %v5556_v23  ;;  %7406 = vpow2.f32 %v5634_v56  ;;  %v5557_v44 = vmul.f32 %v9540_v63, %v5549_v0  ;;  %v5640_v49 = vmul.f32 1.442695, %v5626_v37 }
0x227d   : > { %v5574_v24 = vmul.f32 %v9522_v26, %v5566_v8  ;;  %v5567_v17 = vadd.f32 1.4214138, %v5559_v33  ;;  %7408 = vrcp.f32 %v5523_v55  ;;  %v5624_v42 = vmul.f32 %v5616_v27, %v5504_v12 }
0x227e   : > { %v5572_v41 = vmul.f32 %v9528_v47, %v5564_v35  ;;  %v5565_v13 = vadd.f32 1.4214138, %v5557_v44  ;;  %7410 = vpow2.f32 %v5630_v21  ;;  %v5521_v38 = vadd.f32 1.0, %v5513_v1 }
0x227f   : > { %v5582_v3 = vadd.f32 -0.28449672, %v5574_v24  ;;  %v5575_v46 = vmul.f32 %v9535_v9, %v5567_v17  ;;  %v5627_v23 = vmul.f32 %v5619_v4, %v5507_v22  ;;  %v5636_v55 = vmul.f32 1.442695, %v5624_v42 }
0x2280   : > { %v5580_v45 = vadd.f32 -0.28449672, %v5572_v41  ;;  %v5573_v36 = vmul.f32 %v9540_v63, %v5565_v13  ;;  %7412 = vrcp.f32 %v5521_v38 }
0x2281   : > { %v5590_v31 = vmul.f32 %v9522_v26, %v5582_v3  ;;  %v5583_v2 = vadd.f32 -0.28449672, %v5575_v46  ;;  %7414 = vpow2.f32 %v5640_v49  ;;  %v5642_v17 = vmul.f32 1.442695, %v5627_v23 }
0x2282   : > { %v5588_v62 = vmul.f32 %v9528_v47, %v5580_v45  ;;  %v9568_v39 = vpop.eup %7398  ;;  %v5581_v58 = vadd.f32 -0.28449672, %v5573_v36  ;;  %7416 = vpow2.f32 %v5636_v55 }
0x2283   : > { %v5598_v48 = vadd.f32 0.2548296, %v5590_v31  ;;  %v9571_v34 = vpop.eup %7400  ;;  %v5591_v6 = vmul.f32 %v9535_v9, %v5583_v2  ;;  %v5546_v30 = vmul.f32 1.0614054, %v9568_v39  ;;  %7418 = vpow2.f32 %v5642_v17 }
0x2284   : > { %v5596_v28 = vadd.f32 0.2548296, %v5588_v62  ;;  %v7403_v18 = vpop.eup %7402  ;;  %v5544_v25 = vmul.f32 1.0614054, %v9571_v34  ;;  %v5589_v40 = vmul.f32 %v9540_v63, %v5581_v58  ;;  %v5617_v62 = vsub.f32 0.0, %v9555_v5 }
0x2285   : > { %v5606_v61 = vmul.f32 %v9522_v26, %v5598_v48  ;;  %v7405_v12 = vpop.eup %7404  ;;  %v5599_v8 = vadd.f32 0.2548296, %v5591_v6  ;;  %v5554_v26 = vadd.f32 -1.4531521, %v5546_v30 }
0x2286   : > { %v5604_v56 = vmul.f32 %v9528_v47, %v5596_v28  ;;  %v7407_v7 = vpop.eup %7406  ;;  %v5552_v19 = vadd.f32 -1.4531521, %v5544_v25  ;;  %v5597_v22 = vadd.f32 0.2548296, %v5589_v40  ;;  %v5625_v30 = vmul.f32 %v5617_v62, %v9555_v5 }
0x2287   : > { %v5646_v29 = vmul.f32 %v7403_v18, %v5606_v61  ;;  %v9581_v24 = vpop.eup %7408  ;;  %v5607_v33 = vmul.f32 %v9535_v9, %v5599_v8  ;;  %v5562_v0 = vmul.f32 %v9568_v39, %v5554_v26 }
0x2288   : > { %v5644_v35 = vmul.f32 %v7405_v12, %v5604_v56  ;;  %v5560_v21 = vmul.f32 %v9571_v34, %v5552_v19  ;;  %v5547_v3 = vmul.f32 1.0614054, %v9581_v24  ;;  %v5605_v37 = vmul.f32 %v9540_v63, %v5597_v22  ;;  %v7411_v31 = vpop.eup %7410 }
0x2289   : > { %v5654_v47 = vsub.f32 1.0, %v5646_v29  ;;  %v5647_v45 = vmul.f32 %v7407_v7, %v5607_v33  ;;  %v5570_v27 = vadd.f32 1.4214138, %v5562_v0  ;;  %v5485_v7 = vmul.f32 0.5, %v9495_v59 }
0x228a   : > { %v5652_v41 = vsub.f32 1.0, %v5644_v35  ;;  %v5568_v13 = vadd.f32 1.4214138, %v5560_v21  ;;  %v5555_v9 = vadd.f32 -1.4531521, %v5547_v3  ;;  %v5645_v48 = vmul.f32 %v7411_v31, %v5605_v37  ;;  %v7413_v6 = vpop.eup %7412 }
0x228b   : > { %v5670_v44 = vsub.f32 0.0, %v5654_v47  ;;  %v5655_v1 = vsub.f32 1.0, %v5647_v45  ;;  %v5578_v2 = vmul.f32 %v9568_v39, %v5570_v27  ;;  %v7415_v23 = vpop.eup %7414  ;;  %v5545_v40 = vmul.f32 1.0614054, %v7413_v6 }
0x228c   : > { %v5668_v46 = vsub.f32 0.0, %v5652_v41  ;;  %v5576_v28 = vmul.f32 %v9571_v34, %v5568_v13  ;;  %v5563_v63 = vmul.f32 %v9581_v24, %v5555_v9  ;;  %v5653_v38 = vsub.f32 1.0, %v5645_v48 }
0x228d   : > { %v5678_v4 = vsel %vm5662_vm0, %v5654_v47, %v5670_v44  ;;  %v5671_v42 = vsub.f32 0.0, %v5655_v1  ;;  %v5586_v61 = vadd.f32 -0.28449672, %v5578_v2  ;;  %v5553_v22 = vadd.f32 -1.4531521, %v5545_v40  ;;  %v7417_v44 = vpop.eup %7416 }
0x228e   : > { %v5676_v36 = vsel %vm5660_vm7, %v5652_v41, %v5668_v46  ;;  %v5686_v49 = vadd.f32 1.0, %v5678_v4  ;;  %v5584_v58 = vadd.f32 -0.28449672, %v5576_v28  ;;  %v5571_v11 = vadd.f32 1.4214138, %v5563_v63  ;;  %v7419_v31 = vpop.eup %7418 }
0x228f   : > { %v5684_v18 = vadd.f32 1.0, %v5676_v36  ;;  %v5679_v43 = vsel %vm5663_vm8, %v5655_v1, %v5671_v42  ;;  %v5669_v56 = vsub.f32 0.0, %v5653_v38  ;;  %v5594_v25 = vmul.f32 %v9568_v39, %v5586_v61 }
0x2290   : > { %v5687_v12 = vadd.f32 1.0, %v5679_v43  ;;  %v5592_v29 = vmul.f32 %v9571_v34, %v5584_v58  ;;  %v5579_v8 = vmul.f32 %v9581_v24, %v5571_v11  ;;  %v5694_v26 = vmul.f32 %v5686_v49, %v9530_v60 }
0x2291   : > { %v5677_v5 = vsel %vm5661_vm9, %v5653_v38, %v5669_v56  ;;  %v5602_v35 = vadd.f32 0.2548296, %v5594_v25  ;;  %v5638_v0 = vmul.f32 1.442695, %v5625_v30  ;;  %v5692_v41 = vmul.f32 %v5684_v18, %v9559_v32 }
0x2292   : > { %v5695_v15 = vmul.f32 %v5687_v12, %v9565_v16  ;;  %v5685_v19 = vadd.f32 1.0, %v5677_v5  ;;  %v5600_v55 = vadd.f32 0.2548296, %v5592_v29  ;;  %v5587_v47 = vadd.f32 -0.28449672, %v5579_v8 }
0x2293   : > { %v5610_v33 = vmul.f32 %v9568_v39, %v5602_v35  ;;  %v5561_v17 = vmul.f32 %v7413_v6, %v5553_v22  ;;  %7420 = vpow2.f32 %v5638_v0  ;;  %v5491_v42 = vmul.f32 0.5, %v9517_v51 }
0x2294   : > { %v5701_v21 = vpack.c.bf16 %v5695_v15, %v5694_v26  ;;  %v5693_v3 = vmul.f32 %v5685_v19, %v5485_v7  ;;  %v5595_v60 = vmul.f32 %v9581_v24, %v5587_v47  ;;  %v5608_v52 = vmul.f32 %v9571_v34, %v5600_v55 }
0x2295   : > { %v5650_v59 = vmul.f32 %v7415_v23, %v5610_v33  ;;  %v5569_v27 = vadd.f32 1.4214138, %v5561_v17  ;;  %v5488_v51 = vmul.f32 0.5, %v9511_v10 }
0x2296   : > { %v5603_v45 = vadd.f32 0.2548296, %v5595_v60  ;;  %v5700_v16 = vpack.c.bf16 %v5693_v3, %v5692_v41  ;;  %v5648_v32 = vmul.f32 %v7417_v44, %v5608_v52 }
0x2297   : > { %v5658_v37 = vsub.f32 1.0, %v5650_v59  ;;  %v5577_v13 = vmul.f32 %v7413_v6, %v5569_v27 }
0x2298   : > { %v5611_v39 = vmul.f32 %v9581_v24, %v5603_v45  ;;  %6725 = vmatprep.mubr.bf16.mxu1 %v5700_v16  ;;  %v5656_v1 = vsub.f32 1.0, %v5648_v32  ;;  %v5490_v24 = vmul.f32 0.5, %v9508_v53 }
0x2299   : > { %v5674_v46 = vsub.f32 0.0, %v5658_v37  ;;  %6726 = vmatmul.mubr.bf16.vlgmr.msra.gmra.mrb[88].mxu1 %v5701_v21  ;;  %v5585_v62 = vadd.f32 -0.28449672, %v5577_v13 }
0x229a   : > { %v5651_v9 = vmul.f32 %v7419_v31, %v5611_v39  ;;  %v5672_v49 = vsub.f32 0.0, %v5656_v1 }
0x229b   : > { %v5682_v34 = vsel %vm5666_vm10, %v5658_v37, %v5674_v46  ;;  %v5593_v48 = vmul.f32 %v7413_v6, %v5585_v62 }
0x229c   : > { %v5659_v4 = vsub.f32 1.0, %v5651_v9  ;;  %v5690_v36 = vadd.f32 1.0, %v5682_v34  ;;  %v5680_v18 = vsel %vm5664_vm12, %v5656_v1, %v5672_v49 }
0x229d   : > { %v5601_v28 = vadd.f32 0.2548296, %v5593_v48  ;;  %v7421_v58 = vpop.eup %7420  ;;  %v5688_v53 = vadd.f32 1.0, %v5680_v18 }
0x229e   : > { %v5675_v2 = vsub.f32 0.0, %v5659_v4  ;;  %v5698_v50 = vmul.f32 %v5690_v36, %v5490_v24 }
0x229f   : > { %v5609_v61 = vmul.f32 %v7413_v6, %v5601_v28  ;;  %v5489_v6 = vmul.f32 0.5, %v9544_v54  ;;  %v5696_v12 = vmul.f32 %v5688_v53, %v5488_v51 }
0x22a0   : > { %v5683_v63 = vsel %vm5667_vm11, %v5659_v4, %v5675_v2 }
0x22a1   : > { %v5691_v38 = vadd.f32 1.0, %v5683_v63  ;;  %v5649_v30 = vmul.f32 %v7421_v58, %v5609_v61 }
0x22a3   : > { %v5699_v11 = vmul.f32 %v5691_v38, %v5491_v42  ;;  %v5657_v43 = vsub.f32 1.0, %v5649_v30 }
0x22a5   : > { %v5703_v20 = vpack.c.bf16 %v5699_v11, %v5698_v50  ;;  %v5673_v56 = vsub.f32 0.0, %v5657_v43 }
0x22a7   : > { %v5681_v25 = vsel %vm5665_vm13, %v5657_v43, %v5673_v56 }
0x22a8   : > { %v5689_v23 = vadd.f32 1.0, %v5681_v25 }
0x22aa   : > { %v5697_v29 = vmul.f32 %v5689_v23, %v5489_v6 }
0x22ac   : > { %v5702_v8 = vpack.c.bf16 %v5697_v29, %v5696_v12 }
0x22ae   : > { %6729 = vmatprep.mubr.bf16.mxu1 %v5702_v8 }
0x22af   : > { %6730 = vmatmul.mubr.bf16.gmra.mrb[92].mxu1 %v5703_v20 }
0x236c   : > { %v6727_v40 = vpop.f32.mrb[88].mxu1 }
0x236d   : > { %v5818_v26 = vadd.f32 %v6727_v40, %v6099_v57  ;;  %v5809_v7 = vpop.f32.mrb[89].mxu1 }
0x236e   : > { %v5810_v14 = vadd.f32 %v6099_v57, %v5809_v7  ;;  %v6728_v5 = vpop.f32.mrb[90].mxu1 }
0x236f   : > { %5842 = vst.msk [vmem:[%s895_s5 + $0x10] sm:$0xff] %vm2416_vm3, %v5818_v26  ;;  %v5821_v10 = vadd.f32 %v6728_v5, %v6099_v57  ;;  %v5812_v54 = vpop.f32.mrb[91].mxu1 }
0x2370   : > { %5840 = vst.msk [vmem:[%s895_s5] sm:$0xff] %vm2416_vm3, %v5810_v14  ;;  %v5813_v35 = vadd.f32 %v6099_v57, %v5812_v54 }
0x2371   : > { %5843 = vst.msk [vmem:[%s895_s5 + $0x18] sm:$0xff] %vm2416_vm3, %v5821_v10 }
0x2372   : > { %5841 = vst.msk [vmem:[%s895_s5 + $0x8] sm:$0xff] %vm2416_vm3, %v5813_v35 }
0x2382   : > { %v6731_v15 = vpop.f32.mrb[92].mxu1 }
0x2383   : > { %v5834_v19 = vadd.f32 %v6731_v15, %v6099_v57  ;;  %v5825_v55 = vpop.f32.mrb[93].mxu1 }
0x2384   : > { %v5826_v47 = vadd.f32 %v6099_v57, %v5825_v55  ;;  %v6732_v33 = vpop.f32.mrb[94].mxu1 }
0x2385   : > { %5846 = vst.msk [vmem:[%s895_s5 + $0x30] sm:$0xff] %vm2416_vm3, %v5834_v19  ;;  %v5837_v22 = vadd.f32 %v6732_v33, %v6099_v57  ;;  %v5828_v0 = vpop.f32.mrb[95].mxu1 }
0x2386   : > { %5844 = vst.msk [vmem:[%s895_s5 + $0x20] sm:$0xff] %vm2416_vm3, %v5826_v47  ;;  %v5829_v41 = vadd.f32 %v6099_v57, %v5828_v0 }
0x2387   : > { %5847 = vst.msk [vmem:[%s895_s5 + $0x38] sm:$0xff] %vm2416_vm3, %v5837_v22 }
0x2388   : > { %5845 = vst.msk [vmem:[%s895_s5 + $0x28] sm:$0xff] %vm2416_vm3, %v5829_v41 }
0x2389   : > { %7443 = shalt.err (!%p7440_p3)
}
0x238a   : > { %s7444_s5 = scalar_lea.hbm %s9632_s2, 1024  ;;  %s7448_s0 = scalar_lea.hbm %s7692_s4, 2048 }
0x238b   : > { %p7445_p4 = scmp.ne.s32.totalorder %s9632_s2, %s7444_s5  ;;  %p7449_p9 = scmp.lt.u32.totalorder %s9632_s2, %s7692_s4 }
0x238c   : > { %p7450_p10 = scmp.lt.u32.totalorder %s7448_s0, %s7444_s5  ;;  %p7452_p12 = scmp.lt.u32.totalorder %s7444_s5, %s9632_s2 }
0x238d   : > { %p7446_p7 = pnand %p7445_p4, %p7732_p5 }
0x238e   : > { %p7451_p11 = por %p7450_p10, %p7449_p9 }
0x238f   : > { %p7447_p8 = pneg %p7446_p7 }
0x2390   : > { %p7453_p0 = por %p7452_p12, %p7451_p11 }
0x2392   : > { %p7454_p13 = pnand %p7453_p0, %p7447_p8 }
0x2394   : > { %7457 = shalt.err (!%p7454_p13)
}
0x2395   : > { %s7538_s9 = smov 128   ;;  %s9770_s13 = smov 8  }
0x2396   : > { %6765 = dma.vmem_to_hbm [thread:$0]  (%p7732_p5), %s9635_s6, 1024, %s9632_s2, %s9641_s8, %s7538_s9, %s7538_s9, %s9770_s13  }
0x2397 PF: > { %p6771_p1 = scmp.ge.s32.totalorder %s7492_s15, 2  ;;  %s5877_s12 = sand.u32 1, %s7480_s7  }
0x2398   : > { %s5878_s3 = scalar_lea.sflag [#allocation3], %s5877_s12 }
0x2399   : > { %p6768_p2 = pnand %p6771_p1, %p7736_p6 }
0x239b   : > { %7475 = dma.done.wait (!%p6768_p2), %s5878_s3, 1024  }
0x239c   : > { %7477 = vsyncadd (!%p6768_p2), %s5878_s3, 4294966272  ;;  %p69_p3 = scmp.ge.s32.totalorder %s7719_s18, 4   ;;  %s9771_s7 = smov %s7484_s10 }
0x239d   : > { %s9772_s10 = smov %s7488_s11  ;;  %s9773_s11 = smov %s7730_s26 }
0x239e   : > { %s9774_s15 = smov %s7719_s18  ;;  %71 = sbr.rel (!%p69_p3) target bundleno = 56 (0x38), region = 200 }
0x23a5   :  { %5883 = vsyncpa [#allocation3], 1 }
0x23a6   :  { %5885 = vsyncpa [#allocation3 + $0x1], 1 }

</bundles_post_ra>
